<compile_context>
chip_gen: v5e
topology: v5e:2x2
jax: 0.10.0
libtpu: 0.0.40
codegen_flags: <defaults>
</compile_context>

<pallas_src>
import functools
import math

import jax
import jax.numpy as jnp
from jax.experimental import pallas as pl
from jax.experimental.pallas import tpu as pltpu


TIME_DIM = 32    # sinusoidal timestep-embedding width
HIDDEN = 16      # hidden channel count of the simplified sub-modules
CMAX = 16        # max channel count across the pipeline (per-tap patch-row stride)


# -----------------------------------------------------------------------------
# Fused Pallas kernel
# -----------------------------------------------------------------------------
def _apply_act(x, act):
    if act == "relu":
        return jnp.maximum(x, 0.0)
    if act == "silu":
        return x * jax.nn.sigmoid(x)
    if act == "sigmoid":
        return jax.nn.sigmoid(x)
    return x


def _conv3x3(xpad_ref, patch_ref, mask_ref, x, w_ref, b_ref, act, *, W, BHW):
    """3x3 same-pad conv over batch-folded lanes, as one im2col MXU matmul.

    x:      (cin, B*HW) f32 value, lane-dense (images contiguous along lanes)
    w_ref:  (cout, 9*CMAX) bf16, tap-major / channel-minor, zero-padded per tap
    b_ref:  (cout, 1) or (cout, B*HW) f32 bias (FiLM conditioning pre-folded)
    returns (cout, B*HW) f32
    """
    cin = x.shape[0]
    halo = W + 1

    # Stage the activation into the flat-padded scratch interior.
    xpad_ref[0:cin, halo:halo + BHW] = x

    # im2col: pack the 9 shifted taps along K.  Every non-center tap is masked:
    # with images contiguous along lanes, a shift that crosses an image edge
    # reads the neighbouring image's pixels and must be zeroed.
    for t in range(9):
        dy, dx = t // 3 - 1, t % 3 - 1
        off = halo + dy * W + dx
        tap = xpad_ref[0:cin, off:off + BHW]                       # (cin, BHW) f32
        if dy == 0 and dx == 0:
            patch_ref[t * CMAX:t * CMAX + cin, :] = tap.astype(jnp.bfloat16)
        else:
            patch_ref[t * CMAX:t * CMAX + cin, :] = (
                tap * mask_ref[t:t + 1, :]).astype(jnp.bfloat16)
        # rows [t*CMAX+cin, (t+1)*CMAX) keep stale-but-finite values; the
        # matching weight columns are zero, so they contribute nothing.

    # One MXU matmul: bf16 x bf16 operands, f32 accumulation.
    y = jnp.dot(w_ref[...], patch_ref[...], preferred_element_type=jnp.float32)
    y = y + b_ref[...]
    return _apply_act(y, act)


def fused_pipeline_kernel(mask_ref, x_ref,
                          we1, be1, we2, be2,
                          wu1, bu1, wu2, bu2, wu3, bu3,
                          wd1, bd1, wd2, bd2, wd3, bd3,
                          o_ref, xpad_ref, patch_ref, *, W, BHW):
    halo = W + 1
    # Zero only the halo strips (interior is fully overwritten by every conv's
    # staging) and the patch scratch once (stale rows must be finite: a NaN
    # times the zero weight padding would poison the MXU accumulate).
    xpad_ref[:, 0:halo] = jnp.zeros((CMAX, halo), jnp.float32)
    xpad_ref[:, halo + BHW:BHW + 2 * halo] = jnp.zeros((CMAX, halo), jnp.float32)
    patch_ref[...] = jnp.zeros((9 * CMAX, BHW), jnp.bfloat16)

    conv = functools.partial(_conv3x3, xpad_ref, patch_ref, mask_ref, W=W, BHW=BHW)

    x = x_ref[...]                         # (3, B*HW)

    # ---- VAEncoder: image + style condition -> latent (4, B*HW) ----
    h = conv(x, we1, be1, "relu")          # style FiLM folded into be1
    latent = conv(h, we2, be2, "none")

    # ---- UNet core: latent + timestep embedding (+ fused residual add) ----
    u = conv(latent, wu1, bu1, "silu")     # timestep FiLM folded into bu1
    u = conv(u, wu2, bu2, "silu")
    u = conv(u, wu3, bu3, "none")
    unet_out = latent + u

    # ---- VAEDecoder: latent + style condition -> image (3, B*HW) ----
    d = conv(unet_out, wd1, bd1, "relu")   # style FiLM folded into bd1
    d = conv(d, wd2, bd2, "relu")
    o_ref[...] = conv(d, wd3, bd3, "sigmoid")


def _pack_conv_weight(w):
    """(cout, 9*cin) f32 -> (cout, 9*CMAX) bf16, tap-major, zero-padded to CMAX."""
    cout, k9 = w.shape
    cin = k9 // 9
    wp = jnp.zeros((cout, 9, CMAX), jnp.float32)
    wp = wp.at[:, :, :cin].set(w.reshape(cout, 9, cin))
    return wp.reshape(cout, 9 * CMAX).astype(jnp.bfloat16)


def _fused_pipeline(params, x_flat, mask, s_enc, temb, s_dec, *, H, W):
    """x_flat: (3, B*HW); mask: (9, B*HW); conds: (HIDDEN, B*HW) pre-broadcast."""
    cin0, BHW = x_flat.shape

    conv_names = ("enc_conv1", "enc_conv2", "unet_conv1", "unet_conv2",
                  "unet_conv3", "dec_conv1", "dec_conv2", "dec_conv3")
    cond_map = {"enc_conv1": s_enc, "unet_conv1": temb, "dec_conv1": s_dec}

    conv_args, conv_specs = [], []
    for name in conv_names:
        w = _pack_conv_weight(params[name + "_w"])        # bf16, padded K
        b = params[name + "_b"]                           # (cout, 1) f32
        if name in cond_map:
            b = b + cond_map[name]                        # -> (cout, B*HW)
        conv_args += [w, b]
        conv_specs += [pl.BlockSpec(w.shape, lambda i: (0, 0)),
                       pl.BlockSpec(b.shape, lambda i: (0, 0))]
    cout_final = params["dec_conv3_w"].shape[0]

    kern = functools.partial(fused_pipeline_kernel, W=W, BHW=BHW)
    return pl.pallas_call(
        kern,
        out_shape=jax.ShapeDtypeStruct((cout_final, BHW), jnp.float32),
        grid=(1,),
        in_specs=[
            pl.BlockSpec((9, BHW), lambda i: (0, 0)),        # tap boundary masks
            pl.BlockSpec((cin0, BHW), lambda i: (0, 0)),     # image, batch in lanes
        ] + conv_specs,
        out_specs=pl.BlockSpec((cout_final, BHW), lambda i: (0, 0)),
        scratch_shapes=[
            pltpu.VMEM((CMAX, BHW + 2 * (W + 1)), jnp.float32),   # flat-padded act
            pltpu.VMEM((9 * CMAX, BHW), jnp.bfloat16),            # im2col patches
        ],
        compiler_params=pltpu.CompilerParams(
            dimension_semantics=("arbitrary",)),
    )(mask, x_flat, *conv_args)


# -----------------------------------------------------------------------------
# Parameter initialization (deterministic, in-script)
# -----------------------------------------------------------------------------
def _conv_params(key, cin, cout):
    kw, kb = jax.random.split(key)
    scale = 1.0 / math.sqrt(9 * cin)
    w = jax.random.uniform(kw, (cout, 9 * cin), jnp.float32, -scale, scale)
    b = jax.random.uniform(kb, (cout, 1), jnp.float32, -scale, scale)
    return w, b


def _linear_params(key, din, dout):
    kw, kb = jax.random.split(key)
    scale = 1.0 / math.sqrt(din)
    w = jax.random.uniform(kw, (din, dout), jnp.float32, -scale, scale)
    b = jax.random.uniform(kb, (1, dout), jnp.float32, -scale, scale)
    return w, b


def init_pipeline_params(key, *, in_channels=3, latent_channels=4,
                         out_channels=3, cond_dim=256, hidden=HIDDEN):
    ks = jax.random.split(key, 12)
    p = {}
    # VAEncoder
    p["enc_style_w"], p["enc_style_b"] = _linear_params(ks[0], cond_dim, hidden)
    p["enc_conv1_w"], p["enc_conv1_b"] = _conv_params(ks[1], in_channels, hidden)
    p["enc_conv2_w"], p["enc_conv2_b"] = _conv_params(ks[2], hidden, latent_channels)
    # UNetModel (timestep MLP + residual conv core)
    p["t_lin1_w"], p["t_lin1_b"] = _linear_params(ks[3], TIME_DIM, hidden)
    p["t_lin2_w"], p["t_lin2_b"] = _linear_params(ks[4], hidden, hidden)
    p["unet_conv1_w"], p["unet_conv1_b"] = _conv_params(ks[5], latent_channels, hidden)
    p["unet_conv2_w"], p["unet_conv2_b"] = _conv_params(ks[6], hidden, hidden)
    p["unet_conv3_w"], p["unet_conv3_b"] = _conv_params(ks[7], hidden, latent_channels)
    # VAEDecoder
    p["dec_style_w"], p["dec_style_b"] = _linear_params(ks[8], cond_dim, hidden)
    p["dec_conv1_w"], p["dec_conv1_b"] = _conv_params(ks[9], latent_channels, hidden)
    p["dec_conv2_w"], p["dec_conv2_b"] = _conv_params(ks[10], hidden, hidden)
    p["dec_conv3_w"], p["dec_conv3_b"] = _conv_params(ks[11], hidden, out_channels)
    return p


# -----------------------------------------------------------------------------
# Forward pass (tiny MLP glue in plain JAX, fused conv pipeline in Pallas)
# -----------------------------------------------------------------------------
def timestep_embedding(t, dim):
    half = dim // 2
    freqs = jnp.exp(-math.log(10000.0) * jnp.arange(half, dtype=jnp.float32) / half)
    args = t.astype(jnp.float32)[:, None] * freqs[None, :]
    return jnp.concatenate([jnp.cos(args), jnp.sin(args)], axis=-1)


def _make_tap_masks(H, W):
    """mask[t, p] = 1.0 iff tap (dy,dx) of output pixel p stays inside the image."""
    y = jnp.repeat(jnp.arange(H), W)
    x = jnp.tile(jnp.arange(W), H)
    rows = []
    for dy in (-1, 0, 1):
        for dx in (-1, 0, 1):
            rows.append((y + dy >= 0) & (y + dy < H) & (x + dx >= 0) & (x + dx < W))
    return jnp.stack(rows, axis=0).astype(jnp.float32)   # (9, H*W)


def style_transfer_forward(params, x_nchw, style_condition, timesteps):
    """x_nchw: [B,3,H,W], style_condition: [B,256], timesteps: [B] -> [B,3,H,W]."""
    B, C, H, W = x_nchw.shape
    HW = H * W
    # Fold the batch into the lane axis: (C, B*H*W), images contiguous.
    x_flat = jnp.transpose(x_nchw, (1, 0, 2, 3)).reshape(C, B * HW)

    # Tiny conditioning MLPs in plain jnp: XLA fuses these; a pallas_call per
    # 256x16 matmul would be pure launch overhead.
    s_enc = style_condition @ params["enc_style_w"] + params["enc_style_b"]
    temb = timestep_embedding(timesteps, TIME_DIM)
    temb = temb @ params["t_lin1_w"] + params["t_lin1_b"]
    temb = temb * jax.nn.sigmoid(temb)                        # SiLU
    temb = temb @ params["t_lin2_w"] + params["t_lin2_b"]
    s_dec = style_condition @ params["dec_style_w"] + params["dec_style_b"]

    # Pre-broadcast per-image FiLM vectors to (HIDDEN, B*HW) so they fold
    # straight into the first conv bias of each stage (batch lives in lanes).
    def bcast(c):                                             # (B, HIDDEN) -> (HIDDEN, B*HW)
        return jnp.repeat(c.T, HW, axis=1)

    mask = jnp.tile(_make_tap_masks(H, W), (1, B))            # (9, B*HW)

    out_flat = _fused_pipeline(params, x_flat, mask,
                               bcast(s_enc), bcast(temb), bcast(s_dec), H=H, W=W)
    return jnp.transpose(out_flat.reshape(-1, B, H, W), (1, 0, 2, 3))   # [B,3,H,W]


# -----------------------------------------------------------------------------
if __name__ == "__main__":
    key = jax.random.PRNGKey(0)
    kx, ks, kp = jax.random.split(key, 3)

    B, H, W = 2, 16, 16
    x = jax.random.normal(kx, (B, 3, H, W), jnp.float32)       # [B,3,H,W] NCHW
    style = jax.random.normal(ks, (B, 256), jnp.float32)       # [B,256]
    timesteps = jnp.array([10.0, 500.0], jnp.float32)          # [B]

    params = init_pipeline_params(kp)

    fwd = jax.jit(style_transfer_forward)
    out = fwd(params, x, style, timesteps)
    jax.block_until_ready(out)

    assert out.shape == (B, 3, H, W), out.shape
    assert out.dtype == jnp.float32
    assert bool(jnp.all(jnp.isfinite(out)))
    print("KERNEL_OK")
</pallas_src>

<mosaic_0001>
module attributes {stable_mosaic.version = 11 : i64} {
  func.func @fused_pipeline_kernel(%arg0: i32, %arg1: memref<9x512xf32, #tpu.memory_space<vmem>>, %arg2: memref<3x512xf32, #tpu.memory_space<vmem>>, %arg3: memref<16x144xbf16, #tpu.memory_space<vmem>>, %arg4: memref<16x512xf32, #tpu.memory_space<vmem>>, %arg5: memref<4x144xbf16, #tpu.memory_space<vmem>>, %arg6: memref<4x1xf32, #tpu.memory_space<vmem>>, %arg7: memref<16x144xbf16, #tpu.memory_space<vmem>>, %arg8: memref<16x512xf32, #tpu.memory_space<vmem>>, %arg9: memref<16x144xbf16, #tpu.memory_space<vmem>>, %arg10: memref<16x1xf32, #tpu.memory_space<vmem>>, %arg11: memref<4x144xbf16, #tpu.memory_space<vmem>>, %arg12: memref<4x1xf32, #tpu.memory_space<vmem>>, %arg13: memref<16x144xbf16, #tpu.memory_space<vmem>>, %arg14: memref<16x512xf32, #tpu.memory_space<vmem>>, %arg15: memref<16x144xbf16, #tpu.memory_space<vmem>>, %arg16: memref<16x1xf32, #tpu.memory_space<vmem>>, %arg17: memref<3x144xbf16, #tpu.memory_space<vmem>>, %arg18: memref<3x1xf32, #tpu.memory_space<vmem>>, %arg19: memref<3x512xf32, #tpu.memory_space<vmem>>, %arg20: memref<16x546xf32, #tpu.memory_space<vmem>>, %arg21: memref<144x512xbf16, #tpu.memory_space<vmem>>) attributes {dimension_semantics = [#tpu.dimension_semantics<arbitrary>], iteration_bounds = array<i64: 1>, scalar_prefetch = 0 : i64, scratch_operands = 2 : i64, tpu.core_type = #tpu.core_type<tc>, window_params = [{pipeline_mode = #tpu.pipeline_mode<synchronous>, transform_indices = @transform_0, window_bounds = array<i64: 9, 512>}, {pipeline_mode = #tpu.pipeline_mode<synchronous>, transform_indices = @transform_1, window_bounds = array<i64: 3, 512>}, {pipeline_mode = #tpu.pipeline_mode<synchronous>, transform_indices = @transform_2, window_bounds = array<i64: 16, 144>}, {pipeline_mode = #tpu.pipeline_mode<synchronous>, transform_indices = @transform_3, window_bounds = array<i64: 16, 512>}, {pipeline_mode = #tpu.pipeline_mode<synchronous>, transform_indices = @transform_4, window_bounds = array<i64: 4, 144>}, {pipeline_mode = #tpu.pipeline_mode<synchronous>, transform_indices = @transform_5, window_bounds = array<i64: 4, 1>}, {pipeline_mode = #tpu.pipeline_mode<synchronous>, transform_indices = @transform_6, window_bounds = array<i64: 16, 144>}, {pipeline_mode = #tpu.pipeline_mode<synchronous>, transform_indices = @transform_7, window_bounds = array<i64: 16, 512>}, {pipeline_mode = #tpu.pipeline_mode<synchronous>, transform_indices = @transform_8, window_bounds = array<i64: 16, 144>}, {pipeline_mode = #tpu.pipeline_mode<synchronous>, transform_indices = @transform_9, window_bounds = array<i64: 16, 1>}, {pipeline_mode = #tpu.pipeline_mode<synchronous>, transform_indices = @transform_10, window_bounds = array<i64: 4, 144>}, {pipeline_mode = #tpu.pipeline_mode<synchronous>, transform_indices = @transform_11, window_bounds = array<i64: 4, 1>}, {pipeline_mode = #tpu.pipeline_mode<synchronous>, transform_indices = @transform_12, window_bounds = array<i64: 16, 144>}, {pipeline_mode = #tpu.pipeline_mode<synchronous>, transform_indices = @transform_13, window_bounds = array<i64: 16, 512>}, {pipeline_mode = #tpu.pipeline_mode<synchronous>, transform_indices = @transform_14, window_bounds = array<i64: 16, 144>}, {pipeline_mode = #tpu.pipeline_mode<synchronous>, transform_indices = @transform_15, window_bounds = array<i64: 16, 1>}, {pipeline_mode = #tpu.pipeline_mode<synchronous>, transform_indices = @transform_16, window_bounds = array<i64: 3, 144>}, {pipeline_mode = #tpu.pipeline_mode<synchronous>, transform_indices = @transform_17, window_bounds = array<i64: 3, 1>}, {pipeline_mode = #tpu.pipeline_mode<synchronous>, transform_indices = @transform_18, window_bounds = array<i64: 3, 512>}]} {
    %cst = arith.constant 0.000000e+00 : f32
    %0 = vector.broadcast %cst : f32 to vector<16x17xf32>
    %c0 = arith.constant 0 : index
    %c0_0 = arith.constant 0 : index
    %1 = vector.load %arg20[%c0, %c0_0] : memref<16x546xf32, #tpu.memory_space<vmem>>, vector<16x17xf32>
    tpu.vector_store %arg20[%c0, %c0_0], %0 {strides = array<i32>} : memref<16x546xf32, #tpu.memory_space<vmem>>, vector<16x17xf32>,
    %cst_1 = arith.constant 0.000000e+00 : f32
    %2 = vector.broadcast %cst_1 : f32 to vector<16x17xf32>
    %c0_2 = arith.constant 0 : index
    %c529 = arith.constant 529 : index
    %3 = vector.load %arg20[%c0_2, %c529] : memref<16x546xf32, #tpu.memory_space<vmem>>, vector<16x17xf32>
    tpu.vector_store %arg20[%c0_2, %c529], %2 {strides = array<i32>} : memref<16x546xf32, #tpu.memory_space<vmem>>, vector<16x17xf32>,
    %cst_3 = arith.constant 0.000000e+00 : bf16
    %4 = vector.broadcast %cst_3 : bf16 to vector<144x512xbf16>
    %c0_4 = arith.constant 0 : index
    %c0_5 = arith.constant 0 : index
    %5 = vector.load %arg21[%c0_4, %c0_5] : memref<144x512xbf16, #tpu.memory_space<vmem>>, vector<144x512xbf16>
    tpu.vector_store %arg21[%c0_4, %c0_5], %4 {strides = array<i32>} : memref<144x512xbf16, #tpu.memory_space<vmem>>, vector<144x512xbf16>,
    %c0_6 = arith.constant 0 : index
    %c0_7 = arith.constant 0 : index
    %6 = vector.load %arg2[%c0_6, %c0_7] : memref<3x512xf32, #tpu.memory_space<vmem>>, vector<3x512xf32>
    %c0_8 = arith.constant 0 : index
    %c17 = arith.constant 17 : index
    %7 = vector.load %arg20[%c0_8, %c17] : memref<16x546xf32, #tpu.memory_space<vmem>>, vector<3x512xf32>
    tpu.vector_store %arg20[%c0_8, %c17], %6 {strides = array<i32>} : memref<16x546xf32, #tpu.memory_space<vmem>>, vector<3x512xf32>,
    %c0_9 = arith.constant 0 : index
    %c0_10 = arith.constant 0 : index
    %8 = vector.load %arg20[%c0_9, %c0_10] : memref<16x546xf32, #tpu.memory_space<vmem>>, vector<3x512xf32>
    %c0_11 = arith.constant 0 : index
    %c0_12 = arith.constant 0 : index
    %9 = vector.load %arg1[%c0_11, %c0_12] : memref<9x512xf32, #tpu.memory_space<vmem>>, vector<1x512xf32>
    %10 = vector.broadcast %9 : vector<1x512xf32> to vector<3x512xf32>
    %11 = arith.mulf %8, %10 : vector<3x512xf32>
    %12 = arith.truncf %11 : vector<3x512xf32> to vector<3x512xbf16>
    %c0_13 = arith.constant 0 : index
    %c0_14 = arith.constant 0 : index
    %13 = vector.load %arg21[%c0_13, %c0_14] : memref<144x512xbf16, #tpu.memory_space<vmem>>, vector<3x512xbf16>
    tpu.vector_store %arg21[%c0_13, %c0_14], %12 {strides = array<i32>} : memref<144x512xbf16, #tpu.memory_space<vmem>>, vector<3x512xbf16>,
    %c0_15 = arith.constant 0 : index
    %c1 = arith.constant 1 : index
    %14 = vector.load %arg20[%c0_15, %c1] : memref<16x546xf32, #tpu.memory_space<vmem>>, vector<3x512xf32>
    %c1_16 = arith.constant 1 : index
    %c0_17 = arith.constant 0 : index
    %15 = vector.load %arg1[%c1_16, %c0_17] : memref<9x512xf32, #tpu.memory_space<vmem>>, vector<1x512xf32>
    %16 = vector.broadcast %15 : vector<1x512xf32> to vector<3x512xf32>
    %17 = arith.mulf %14, %16 : vector<3x512xf32>
    %18 = arith.truncf %17 : vector<3x512xf32> to vector<3x512xbf16>
    %c16 = arith.constant 16 : index
    %c0_18 = arith.constant 0 : index
    %19 = vector.load %arg21[%c16, %c0_18] : memref<144x512xbf16, #tpu.memory_space<vmem>>, vector<3x512xbf16>
    tpu.vector_store %arg21[%c16, %c0_18], %18 {strides = array<i32>} : memref<144x512xbf16, #tpu.memory_space<vmem>>, vector<3x512xbf16>,
    %c0_19 = arith.constant 0 : index
    %c2 = arith.constant 2 : index
    %20 = vector.load %arg20[%c0_19, %c2] : memref<16x546xf32, #tpu.memory_space<vmem>>, vector<3x512xf32>
    %c2_20 = arith.constant 2 : index
    %c0_21 = arith.constant 0 : index
    %21 = vector.load %arg1[%c2_20, %c0_21] : memref<9x512xf32, #tpu.memory_space<vmem>>, vector<1x512xf32>
    %22 = vector.broadcast %21 : vector<1x512xf32> to vector<3x512xf32>
    %23 = arith.mulf %20, %22 : vector<3x512xf32>
    %24 = arith.truncf %23 : vector<3x512xf32> to vector<3x512xbf16>
    %c32 = arith.constant 32 : index
    %c0_22 = arith.constant 0 : index
    %25 = vector.load %arg21[%c32, %c0_22] : memref<144x512xbf16, #tpu.memory_space<vmem>>, vector<3x512xbf16>
    tpu.vector_store %arg21[%c32, %c0_22], %24 {strides = array<i32>} : memref<144x512xbf16, #tpu.memory_space<vmem>>, vector<3x512xbf16>,
    %c0_23 = arith.constant 0 : index
    %c16_24 = arith.constant 16 : index
    %26 = vector.load %arg20[%c0_23, %c16_24] : memref<16x546xf32, #tpu.memory_space<vmem>>, vector<3x512xf32>
    %c3 = arith.constant 3 : index
    %c0_25 = arith.constant 0 : index
    %27 = vector.load %arg1[%c3, %c0_25] : memref<9x512xf32, #tpu.memory_space<vmem>>, vector<1x512xf32>
    %28 = vector.broadcast %27 : vector<1x512xf32> to vector<3x512xf32>
    %29 = arith.mulf %26, %28 : vector<3x512xf32>
    %30 = arith.truncf %29 : vector<3x512xf32> to vector<3x512xbf16>
    %c48 = arith.constant 48 : index
    %c0_26 = arith.constant 0 : index
    %31 = vector.load %arg21[%c48, %c0_26] : memref<144x512xbf16, #tpu.memory_space<vmem>>, vector<3x512xbf16>
    tpu.vector_store %arg21[%c48, %c0_26], %30 {strides = array<i32>} : memref<144x512xbf16, #tpu.memory_space<vmem>>, vector<3x512xbf16>,
    %c0_27 = arith.constant 0 : index
    %c17_28 = arith.constant 17 : index
    %32 = vector.load %arg20[%c0_27, %c17_28] : memref<16x546xf32, #tpu.memory_space<vmem>>, vector<3x512xf32>
    %33 = arith.truncf %32 : vector<3x512xf32> to vector<3x512xbf16>
    %c64 = arith.constant 64 : index
    %c0_29 = arith.constant 0 : index
    %34 = vector.load %arg21[%c64, %c0_29] : memref<144x512xbf16, #tpu.memory_space<vmem>>, vector<3x512xbf16>
    tpu.vector_store %arg21[%c64, %c0_29], %33 {strides = array<i32>} : memref<144x512xbf16, #tpu.memory_space<vmem>>, vector<3x512xbf16>,
    %c0_30 = arith.constant 0 : index
    %c18 = arith.constant 18 : index
    %35 = vector.load %arg20[%c0_30, %c18] : memref<16x546xf32, #tpu.memory_space<vmem>>, vector<3x512xf32>
    %c5 = arith.constant 5 : index
    %c0_31 = arith.constant 0 : index
    %36 = vector.load %arg1[%c5, %c0_31] : memref<9x512xf32, #tpu.memory_space<vmem>>, vector<1x512xf32>
    %37 = vector.broadcast %36 : vector<1x512xf32> to vector<3x512xf32>
    %38 = arith.mulf %35, %37 : vector<3x512xf32>
    %39 = arith.truncf %38 : vector<3x512xf32> to vector<3x512xbf16>
    %c80 = arith.constant 80 : index
    %c0_32 = arith.constant 0 : index
    %40 = vector.load %arg21[%c80, %c0_32] : memref<144x512xbf16, #tpu.memory_space<vmem>>, vector<3x512xbf16>
    tpu.vector_store %arg21[%c80, %c0_32], %39 {strides = array<i32>} : memref<144x512xbf16, #tpu.memory_space<vmem>>, vector<3x512xbf16>,
    %c0_33 = arith.constant 0 : index
    %c32_34 = arith.constant 32 : index
    %41 = vector.load %arg20[%c0_33, %c32_34] : memref<16x546xf32, #tpu.memory_space<vmem>>, vector<3x512xf32>
    %c6 = arith.constant 6 : index
    %c0_35 = arith.constant 0 : index
    %42 = vector.load %arg1[%c6, %c0_35] : memref<9x512xf32, #tpu.memory_space<vmem>>, vector<1x512xf32>
    %43 = vector.broadcast %42 : vector<1x512xf32> to vector<3x512xf32>
    %44 = arith.mulf %41, %43 : vector<3x512xf32>
    %45 = arith.truncf %44 : vector<3x512xf32> to vector<3x512xbf16>
    %c96 = arith.constant 96 : index
    %c0_36 = arith.constant 0 : index
    %46 = vector.load %arg21[%c96, %c0_36] : memref<144x512xbf16, #tpu.memory_space<vmem>>, vector<3x512xbf16>
    tpu.vector_store %arg21[%c96, %c0_36], %45 {strides = array<i32>} : memref<144x512xbf16, #tpu.memory_space<vmem>>, vector<3x512xbf16>,
    %c0_37 = arith.constant 0 : index
    %c33 = arith.constant 33 : index
    %47 = vector.load %arg20[%c0_37, %c33] : memref<16x546xf32, #tpu.memory_space<vmem>>, vector<3x512xf32>
    %c7 = arith.constant 7 : index
    %c0_38 = arith.constant 0 : index
    %48 = vector.load %arg1[%c7, %c0_38] : memref<9x512xf32, #tpu.memory_space<vmem>>, vector<1x512xf32>
    %49 = vector.broadcast %48 : vector<1x512xf32> to vector<3x512xf32>
    %50 = arith.mulf %47, %49 : vector<3x512xf32>
    %51 = arith.truncf %50 : vector<3x512xf32> to vector<3x512xbf16>
    %c112 = arith.constant 112 : index
    %c0_39 = arith.constant 0 : index
    %52 = vector.load %arg21[%c112, %c0_39] : memref<144x512xbf16, #tpu.memory_space<vmem>>, vector<3x512xbf16>
    tpu.vector_store %arg21[%c112, %c0_39], %51 {strides = array<i32>} : memref<144x512xbf16, #tpu.memory_space<vmem>>, vector<3x512xbf16>,
    %c0_40 = arith.constant 0 : index
    %c34 = arith.constant 34 : index
    %53 = vector.load %arg20[%c0_40, %c34] : memref<16x546xf32, #tpu.memory_space<vmem>>, vector<3x512xf32>
    %c8 = arith.constant 8 : index
    %c0_41 = arith.constant 0 : index
    %54 = vector.load %arg1[%c8, %c0_41] : memref<9x512xf32, #tpu.memory_space<vmem>>, vector<1x512xf32>
    %55 = vector.broadcast %54 : vector<1x512xf32> to vector<3x512xf32>
    %56 = arith.mulf %53, %55 : vector<3x512xf32>
    %57 = arith.truncf %56 : vector<3x512xf32> to vector<3x512xbf16>
    %c128 = arith.constant 128 : index
    %c0_42 = arith.constant 0 : index
    %58 = vector.load %arg21[%c128, %c0_42] : memref<144x512xbf16, #tpu.memory_space<vmem>>, vector<3x512xbf16>
    tpu.vector_store %arg21[%c128, %c0_42], %57 {strides = array<i32>} : memref<144x512xbf16, #tpu.memory_space<vmem>>, vector<3x512xbf16>,
    %c0_43 = arith.constant 0 : index
    %c0_44 = arith.constant 0 : index
    %59 = vector.load %arg3[%c0_43, %c0_44] : memref<16x144xbf16, #tpu.memory_space<vmem>>, vector<16x144xbf16>
    %c0_45 = arith.constant 0 : index
    %c0_46 = arith.constant 0 : index
    %60 = vector.load %arg21[%c0_45, %c0_46] : memref<144x512xbf16, #tpu.memory_space<vmem>>, vector<144x512xbf16>
    %cst_47 = arith.constant dense<0.000000e+00> : vector<16x512xf32>
    %61 = tpu.matmul %59, %60, %cst_47 {dimension_numbers = #tpu.dot_dimension_numbers<[1], [0], [0], [1], [0, 0, 1, 1], [], []>} : vector<16x144xbf16>, vector<144x512xbf16>, vector<16x512xf32> -> vector<16x512xf32>
    %c0_48 = arith.constant 0 : index
    %c0_49 = arith.constant 0 : index
    %62 = vector.load %arg4[%c0_48, %c0_49] : memref<16x512xf32, #tpu.memory_space<vmem>>, vector<16x512xf32>
    %63 = arith.addf %61, %62 : vector<16x512xf32>
    %cst_50 = arith.constant 0.000000e+00 : f32
    %64 = vector.broadcast %cst_50 : f32 to vector<16x512xf32>
    %65 = arith.maximumf %63, %64 : vector<16x512xf32>
    %c0_51 = arith.constant 0 : index
    %c17_52 = arith.constant 17 : index
    %66 = vector.load %arg20[%c0_51, %c17_52] : memref<16x546xf32, #tpu.memory_space<vmem>>, vector<16x512xf32>
    tpu.vector_store %arg20[%c0_51, %c17_52], %65 {strides = array<i32>} : memref<16x546xf32, #tpu.memory_space<vmem>>, vector<16x512xf32>,
    %c0_53 = arith.constant 0 : index
    %c0_54 = arith.constant 0 : index
    %67 = vector.load %arg20[%c0_53, %c0_54] : memref<16x546xf32, #tpu.memory_space<vmem>>, vector<16x512xf32>
    %c0_55 = arith.constant 0 : index
    %c0_56 = arith.constant 0 : index
    %68 = vector.load %arg1[%c0_55, %c0_56] : memref<9x512xf32, #tpu.memory_space<vmem>>, vector<1x512xf32>
    %69 = vector.broadcast %68 : vector<1x512xf32> to vector<16x512xf32>
    %70 = arith.mulf %67, %69 : vector<16x512xf32>
    %71 = arith.truncf %70 : vector<16x512xf32> to vector<16x512xbf16>
    %c0_57 = arith.constant 0 : index
    %c0_58 = arith.constant 0 : index
    %72 = vector.load %arg21[%c0_57, %c0_58] : memref<144x512xbf16, #tpu.memory_space<vmem>>, vector<16x512xbf16>
    tpu.vector_store %arg21[%c0_57, %c0_58], %71 {strides = array<i32>} : memref<144x512xbf16, #tpu.memory_space<vmem>>, vector<16x512xbf16>,
    %c0_59 = arith.constant 0 : index
    %c1_60 = arith.constant 1 : index
    %73 = vector.load %arg20[%c0_59, %c1_60] : memref<16x546xf32, #tpu.memory_space<vmem>>, vector<16x512xf32>
    %c1_61 = arith.constant 1 : index
    %c0_62 = arith.constant 0 : index
    %74 = vector.load %arg1[%c1_61, %c0_62] : memref<9x512xf32, #tpu.memory_space<vmem>>, vector<1x512xf32>
    %75 = vector.broadcast %74 : vector<1x512xf32> to vector<16x512xf32>
    %76 = arith.mulf %73, %75 : vector<16x512xf32>
    %77 = arith.truncf %76 : vector<16x512xf32> to vector<16x512xbf16>
    %c16_63 = arith.constant 16 : index
    %c0_64 = arith.constant 0 : index
    %78 = vector.load %arg21[%c16_63, %c0_64] : memref<144x512xbf16, #tpu.memory_space<vmem>>, vector<16x512xbf16>
    tpu.vector_store %arg21[%c16_63, %c0_64], %77 {strides = array<i32>} : memref<144x512xbf16, #tpu.memory_space<vmem>>, vector<16x512xbf16>,
    %c0_65 = arith.constant 0 : index
    %c2_66 = arith.constant 2 : index
    %79 = vector.load %arg20[%c0_65, %c2_66] : memref<16x546xf32, #tpu.memory_space<vmem>>, vector<16x512xf32>
    %c2_67 = arith.constant 2 : index
    %c0_68 = arith.constant 0 : index
    %80 = vector.load %arg1[%c2_67, %c0_68] : memref<9x512xf32, #tpu.memory_space<vmem>>, vector<1x512xf32>
    %81 = vector.broadcast %80 : vector<1x512xf32> to vector<16x512xf32>
    %82 = arith.mulf %79, %81 : vector<16x512xf32>
    %83 = arith.truncf %82 : vector<16x512xf32> to vector<16x512xbf16>
    %c32_69 = arith.constant 32 : index
    %c0_70 = arith.constant 0 : index
    %84 = vector.load %arg21[%c32_69, %c0_70] : memref<144x512xbf16, #tpu.memory_space<vmem>>, vector<16x512xbf16>
    tpu.vector_store %arg21[%c32_69, %c0_70], %83 {strides = array<i32>} : memref<144x512xbf16, #tpu.memory_space<vmem>>, vector<16x512xbf16>,
    %c0_71 = arith.constant 0 : index
    %c16_72 = arith.constant 16 : index
    %85 = vector.load %arg20[%c0_71, %c16_72] : memref<16x546xf32, #tpu.memory_space<vmem>>, vector<16x512xf32>
    %c3_73 = arith.constant 3 : index
    %c0_74 = arith.constant 0 : index
    %86 = vector.load %arg1[%c3_73, %c0_74] : memref<9x512xf32, #tpu.memory_space<vmem>>, vector<1x512xf32>
    %87 = vector.broadcast %86 : vector<1x512xf32> to vector<16x512xf32>
    %88 = arith.mulf %85, %87 : vector<16x512xf32>
    %89 = arith.truncf %88 : vector<16x512xf32> to vector<16x512xbf16>
    %c48_75 = arith.constant 48 : index
    %c0_76 = arith.constant 0 : index
    %90 = vector.load %arg21[%c48_75, %c0_76] : memref<144x512xbf16, #tpu.memory_space<vmem>>, vector<16x512xbf16>
    tpu.vector_store %arg21[%c48_75, %c0_76], %89 {strides = array<i32>} : memref<144x512xbf16, #tpu.memory_space<vmem>>, vector<16x512xbf16>,
    %c0_77 = arith.constant 0 : index
    %c17_78 = arith.constant 17 : index
    %91 = vector.load %arg20[%c0_77, %c17_78] : memref<16x546xf32, #tpu.memory_space<vmem>>, vector<16x512xf32>
    %92 = arith.truncf %91 : vector<16x512xf32> to vector<16x512xbf16>
    %c64_79 = arith.constant 64 : index
    %c0_80 = arith.constant 0 : index
    %93 = vector.load %arg21[%c64_79, %c0_80] : memref<144x512xbf16, #tpu.memory_space<vmem>>, vector<16x512xbf16>
    tpu.vector_store %arg21[%c64_79, %c0_80], %92 {strides = array<i32>} : memref<144x512xbf16, #tpu.memory_space<vmem>>, vector<16x512xbf16>,
    %c0_81 = arith.constant 0 : index
    %c18_82 = arith.constant 18 : index
    %94 = vector.load %arg20[%c0_81, %c18_82] : memref<16x546xf32, #tpu.memory_space<vmem>>, vector<16x512xf32>
    %c5_83 = arith.constant 5 : index
    %c0_84 = arith.constant 0 : index
    %95 = vector.load %arg1[%c5_83, %c0_84] : memref<9x512xf32, #tpu.memory_space<vmem>>, vector<1x512xf32>
    %96 = vector.broadcast %95 : vector<1x512xf32> to vector<16x512xf32>
    %97 = arith.mulf %94, %96 : vector<16x512xf32>
    %98 = arith.truncf %97 : vector<16x512xf32> to vector<16x512xbf16>
    %c80_85 = arith.constant 80 : index
    %c0_86 = arith.constant 0 : index
    %99 = vector.load %arg21[%c80_85, %c0_86] : memref<144x512xbf16, #tpu.memory_space<vmem>>, vector<16x512xbf16>
    tpu.vector_store %arg21[%c80_85, %c0_86], %98 {strides = array<i32>} : memref<144x512xbf16, #tpu.memory_space<vmem>>, vector<16x512xbf16>,
    %c0_87 = arith.constant 0 : index
    %c32_88 = arith.constant 32 : index
    %100 = vector.load %arg20[%c0_87, %c32_88] : memref<16x546xf32, #tpu.memory_space<vmem>>, vector<16x512xf32>
    %c6_89 = arith.constant 6 : index
    %c0_90 = arith.constant 0 : index
    %101 = vector.load %arg1[%c6_89, %c0_90] : memref<9x512xf32, #tpu.memory_space<vmem>>, vector<1x512xf32>
    %102 = vector.broadcast %101 : vector<1x512xf32> to vector<16x512xf32>
    %103 = arith.mulf %100, %102 : vector<16x512xf32>
    %104 = arith.truncf %103 : vector<16x512xf32> to vector<16x512xbf16>
    %c96_91 = arith.constant 96 : index
    %c0_92 = arith.constant 0 : index
    %105 = vector.load %arg21[%c96_91, %c0_92] : memref<144x512xbf16, #tpu.memory_space<vmem>>, vector<16x512xbf16>
    tpu.vector_store %arg21[%c96_91, %c0_92], %104 {strides = array<i32>} : memref<144x512xbf16, #tpu.memory_space<vmem>>, vector<16x512xbf16>,
    %c0_93 = arith.constant 0 : index
    %c33_94 = arith.constant 33 : index
    %106 = vector.load %arg20[%c0_93, %c33_94] : memref<16x546xf32, #tpu.memory_space<vmem>>, vector<16x512xf32>
    %c7_95 = arith.constant 7 : index
    %c0_96 = arith.constant 0 : index
    %107 = vector.load %arg1[%c7_95, %c0_96] : memref<9x512xf32, #tpu.memory_space<vmem>>, vector<1x512xf32>
    %108 = vector.broadcast %107 : vector<1x512xf32> to vector<16x512xf32>
    %109 = arith.mulf %106, %108 : vector<16x512xf32>
    %110 = arith.truncf %109 : vector<16x512xf32> to vector<16x512xbf16>
    %c112_97 = arith.constant 112 : index
    %c0_98 = arith.constant 0 : index
    %111 = vector.load %arg21[%c112_97, %c0_98] : memref<144x512xbf16, #tpu.memory_space<vmem>>, vector<16x512xbf16>
    tpu.vector_store %arg21[%c112_97, %c0_98], %110 {strides = array<i32>} : memref<144x512xbf16, #tpu.memory_space<vmem>>, vector<16x512xbf16>,
    %c0_99 = arith.constant 0 : index
    %c34_100 = arith.constant 34 : index
    %112 = vector.load %arg20[%c0_99, %c34_100] : memref<16x546xf32, #tpu.memory_space<vmem>>, vector<16x512xf32>
    %c8_101 = arith.constant 8 : index
    %c0_102 = arith.constant 0 : index
    %113 = vector.load %arg1[%c8_101, %c0_102] : memref<9x512xf32, #tpu.memory_space<vmem>>, vector<1x512xf32>
    %114 = vector.broadcast %113 : vector<1x512xf32> to vector<16x512xf32>
    %115 = arith.mulf %112, %114 : vector<16x512xf32>
    %116 = arith.truncf %115 : vector<16x512xf32> to vector<16x512xbf16>
    %c128_103 = arith.constant 128 : index
    %c0_104 = arith.constant 0 : index
    %117 = vector.load %arg21[%c128_103, %c0_104] : memref<144x512xbf16, #tpu.memory_space<vmem>>, vector<16x512xbf16>
    tpu.vector_store %arg21[%c128_103, %c0_104], %116 {strides = array<i32>} : memref<144x512xbf16, #tpu.memory_space<vmem>>, vector<16x512xbf16>,
    %c0_105 = arith.constant 0 : index
    %c0_106 = arith.constant 0 : index
    %118 = vector.load %arg5[%c0_105, %c0_106] : memref<4x144xbf16, #tpu.memory_space<vmem>>, vector<4x144xbf16>
    %c0_107 = arith.constant 0 : index
    %c0_108 = arith.constant 0 : index
    %119 = vector.load %arg21[%c0_107, %c0_108] : memref<144x512xbf16, #tpu.memory_space<vmem>>, vector<144x512xbf16>
    %cst_109 = arith.constant dense<0.000000e+00> : vector<4x512xf32>
    %120 = tpu.matmul %118, %119, %cst_109 {dimension_numbers = #tpu.dot_dimension_numbers<[1], [0], [0], [1], [0, 0, 1, 1], [], []>} : vector<4x144xbf16>, vector<144x512xbf16>, vector<4x512xf32> -> vector<4x512xf32>
    %c0_110 = arith.constant 0 : index
    %c0_111 = arith.constant 0 : index
    %121 = vector.load %arg6[%c0_110, %c0_111] : memref<4x1xf32, #tpu.memory_space<vmem>>, vector<4x1xf32>
    %122 = vector.broadcast %121 : vector<4x1xf32> to vector<4x512xf32>
    %123 = arith.addf %120, %122 : vector<4x512xf32>
    %c0_112 = arith.constant 0 : index
    %c17_113 = arith.constant 17 : index
    %124 = vector.load %arg20[%c0_112, %c17_113] : memref<16x546xf32, #tpu.memory_space<vmem>>, vector<4x512xf32>
    tpu.vector_store %arg20[%c0_112, %c17_113], %123 {strides = array<i32>} : memref<16x546xf32, #tpu.memory_space<vmem>>, vector<4x512xf32>,
    %c0_114 = arith.constant 0 : index
    %c0_115 = arith.constant 0 : index
    %125 = vector.load %arg20[%c0_114, %c0_115] : memref<16x546xf32, #tpu.memory_space<vmem>>, vector<4x512xf32>
    %c0_116 = arith.constant 0 : index
    %c0_117 = arith.constant 0 : index
    %126 = vector.load %arg1[%c0_116, %c0_117] : memref<9x512xf32, #tpu.memory_space<vmem>>, vector<1x512xf32>
    %127 = vector.broadcast %126 : vector<1x512xf32> to vector<4x512xf32>
    %128 = arith.mulf %125, %127 : vector<4x512xf32>
    %129 = arith.truncf %128 : vector<4x512xf32> to vector<4x512xbf16>
    %c0_118 = arith.constant 0 : index
    %c0_119 = arith.constant 0 : index
    %130 = vector.load %arg21[%c0_118, %c0_119] : memref<144x512xbf16, #tpu.memory_space<vmem>>, vector<4x512xbf16>
    tpu.vector_store %arg21[%c0_118, %c0_119], %129 {strides = array<i32>} : memref<144x512xbf16, #tpu.memory_space<vmem>>, vector<4x512xbf16>,
    %c0_120 = arith.constant 0 : index
    %c1_121 = arith.constant 1 : index
    %131 = vector.load %arg20[%c0_120, %c1_121] : memref<16x546xf32, #tpu.memory_space<vmem>>, vector<4x512xf32>
    %c1_122 = arith.constant 1 : index
    %c0_123 = arith.constant 0 : index
    %132 = vector.load %arg1[%c1_122, %c0_123] : memref<9x512xf32, #tpu.memory_space<vmem>>, vector<1x512xf32>
    %133 = vector.broadcast %132 : vector<1x512xf32> to vector<4x512xf32>
    %134 = arith.mulf %131, %133 : vector<4x512xf32>
    %135 = arith.truncf %134 : vector<4x512xf32> to vector<4x512xbf16>
    %c16_124 = arith.constant 16 : index
    %c0_125 = arith.constant 0 : index
    %136 = vector.load %arg21[%c16_124, %c0_125] : memref<144x512xbf16, #tpu.memory_space<vmem>>, vector<4x512xbf16>
    tpu.vector_store %arg21[%c16_124, %c0_125], %135 {strides = array<i32>} : memref<144x512xbf16, #tpu.memory_space<vmem>>, vector<4x512xbf16>,
    %c0_126 = arith.constant 0 : index
    %c2_127 = arith.constant 2 : index
    %137 = vector.load %arg20[%c0_126, %c2_127] : memref<16x546xf32, #tpu.memory_space<vmem>>, vector<4x512xf32>
    %c2_128 = arith.constant 2 : index
    %c0_129 = arith.constant 0 : index
    %138 = vector.load %arg1[%c2_128, %c0_129] : memref<9x512xf32, #tpu.memory_space<vmem>>, vector<1x512xf32>
    %139 = vector.broadcast %138 : vector<1x512xf32> to vector<4x512xf32>
    %140 = arith.mulf %137, %139 : vector<4x512xf32>
    %141 = arith.truncf %140 : vector<4x512xf32> to vector<4x512xbf16>
    %c32_130 = arith.constant 32 : index
    %c0_131 = arith.constant 0 : index
    %142 = vector.load %arg21[%c32_130, %c0_131] : memref<144x512xbf16, #tpu.memory_space<vmem>>, vector<4x512xbf16>
    tpu.vector_store %arg21[%c32_130, %c0_131], %141 {strides = array<i32>} : memref<144x512xbf16, #tpu.memory_space<vmem>>, vector<4x512xbf16>,
    %c0_132 = arith.constant 0 : index
    %c16_133 = arith.constant 16 : index
    %143 = vector.load %arg20[%c0_132, %c16_133] : memref<16x546xf32, #tpu.memory_space<vmem>>, vector<4x512xf32>
    %c3_134 = arith.constant 3 : index
    %c0_135 = arith.constant 0 : index
    %144 = vector.load %arg1[%c3_134, %c0_135] : memref<9x512xf32, #tpu.memory_space<vmem>>, vector<1x512xf32>
    %145 = vector.broadcast %144 : vector<1x512xf32> to vector<4x512xf32>
    %146 = arith.mulf %143, %145 : vector<4x512xf32>
    %147 = arith.truncf %146 : vector<4x512xf32> to vector<4x512xbf16>
    %c48_136 = arith.constant 48 : index
    %c0_137 = arith.constant 0 : index
    %148 = vector.load %arg21[%c48_136, %c0_137] : memref<144x512xbf16, #tpu.memory_space<vmem>>, vector<4x512xbf16>
    tpu.vector_store %arg21[%c48_136, %c0_137], %147 {strides = array<i32>} : memref<144x512xbf16, #tpu.memory_space<vmem>>, vector<4x512xbf16>,
    %c0_138 = arith.constant 0 : index
    %c17_139 = arith.constant 17 : index
    %149 = vector.load %arg20[%c0_138, %c17_139] : memref<16x546xf32, #tpu.memory_space<vmem>>, vector<4x512xf32>
    %150 = arith.truncf %149 : vector<4x512xf32> to vector<4x512xbf16>
    %c64_140 = arith.constant 64 : index
    %c0_141 = arith.constant 0 : index
    %151 = vector.load %arg21[%c64_140, %c0_141] : memref<144x512xbf16, #tpu.memory_space<vmem>>, vector<4x512xbf16>
    tpu.vector_store %arg21[%c64_140, %c0_141], %150 {strides = array<i32>} : memref<144x512xbf16, #tpu.memory_space<vmem>>, vector<4x512xbf16>,
    %c0_142 = arith.constant 0 : index
    %c18_143 = arith.constant 18 : index
    %152 = vector.load %arg20[%c0_142, %c18_143] : memref<16x546xf32, #tpu.memory_space<vmem>>, vector<4x512xf32>
    %c5_144 = arith.constant 5 : index
    %c0_145 = arith.constant 0 : index
    %153 = vector.load %arg1[%c5_144, %c0_145] : memref<9x512xf32, #tpu.memory_space<vmem>>, vector<1x512xf32>
    %154 = vector.broadcast %153 : vector<1x512xf32> to vector<4x512xf32>
    %155 = arith.mulf %152, %154 : vector<4x512xf32>
    %156 = arith.truncf %155 : vector<4x512xf32> to vector<4x512xbf16>
    %c80_146 = arith.constant 80 : index
    %c0_147 = arith.constant 0 : index
    %157 = vector.load %arg21[%c80_146, %c0_147] : memref<144x512xbf16, #tpu.memory_space<vmem>>, vector<4x512xbf16>
    tpu.vector_store %arg21[%c80_146, %c0_147], %156 {strides = array<i32>} : memref<144x512xbf16, #tpu.memory_space<vmem>>, vector<4x512xbf16>,
    %c0_148 = arith.constant 0 : index
    %c32_149 = arith.constant 32 : index
    %158 = vector.load %arg20[%c0_148, %c32_149] : memref<16x546xf32, #tpu.memory_space<vmem>>, vector<4x512xf32>
    %c6_150 = arith.constant 6 : index
    %c0_151 = arith.constant 0 : index
    %159 = vector.load %arg1[%c6_150, %c0_151] : memref<9x512xf32, #tpu.memory_space<vmem>>, vector<1x512xf32>
    %160 = vector.broadcast %159 : vector<1x512xf32> to vector<4x512xf32>
    %161 = arith.mulf %158, %160 : vector<4x512xf32>
    %162 = arith.truncf %161 : vector<4x512xf32> to vector<4x512xbf16>
    %c96_152 = arith.constant 96 : index
    %c0_153 = arith.constant 0 : index
    %163 = vector.load %arg21[%c96_152, %c0_153] : memref<144x512xbf16, #tpu.memory_space<vmem>>, vector<4x512xbf16>
    tpu.vector_store %arg21[%c96_152, %c0_153], %162 {strides = array<i32>} : memref<144x512xbf16, #tpu.memory_space<vmem>>, vector<4x512xbf16>,
    %c0_154 = arith.constant 0 : index
    %c33_155 = arith.constant 33 : index
    %164 = vector.load %arg20[%c0_154, %c33_155] : memref<16x546xf32, #tpu.memory_space<vmem>>, vector<4x512xf32>
    %c7_156 = arith.constant 7 : index
    %c0_157 = arith.constant 0 : index
    %165 = vector.load %arg1[%c7_156, %c0_157] : memref<9x512xf32, #tpu.memory_space<vmem>>, vector<1x512xf32>
    %166 = vector.broadcast %165 : vector<1x512xf32> to vector<4x512xf32>
    %167 = arith.mulf %164, %166 : vector<4x512xf32>
    %168 = arith.truncf %167 : vector<4x512xf32> to vector<4x512xbf16>
    %c112_158 = arith.constant 112 : index
    %c0_159 = arith.constant 0 : index
    %169 = vector.load %arg21[%c112_158, %c0_159] : memref<144x512xbf16, #tpu.memory_space<vmem>>, vector<4x512xbf16>
    tpu.vector_store %arg21[%c112_158, %c0_159], %168 {strides = array<i32>} : memref<144x512xbf16, #tpu.memory_space<vmem>>, vector<4x512xbf16>,
    %c0_160 = arith.constant 0 : index
    %c34_161 = arith.constant 34 : index
    %170 = vector.load %arg20[%c0_160, %c34_161] : memref<16x546xf32, #tpu.memory_space<vmem>>, vector<4x512xf32>
    %c8_162 = arith.constant 8 : index
    %c0_163 = arith.constant 0 : index
    %171 = vector.load %arg1[%c8_162, %c0_163] : memref<9x512xf32, #tpu.memory_space<vmem>>, vector<1x512xf32>
    %172 = vector.broadcast %171 : vector<1x512xf32> to vector<4x512xf32>
    %173 = arith.mulf %170, %172 : vector<4x512xf32>
    %174 = arith.truncf %173 : vector<4x512xf32> to vector<4x512xbf16>
    %c128_164 = arith.constant 128 : index
    %c0_165 = arith.constant 0 : index
    %175 = vector.load %arg21[%c128_164, %c0_165] : memref<144x512xbf16, #tpu.memory_space<vmem>>, vector<4x512xbf16>
    tpu.vector_store %arg21[%c128_164, %c0_165], %174 {strides = array<i32>} : memref<144x512xbf16, #tpu.memory_space<vmem>>, vector<4x512xbf16>,
    %c0_166 = arith.constant 0 : index
    %c0_167 = arith.constant 0 : index
    %176 = vector.load %arg7[%c0_166, %c0_167] : memref<16x144xbf16, #tpu.memory_space<vmem>>, vector<16x144xbf16>
    %c0_168 = arith.constant 0 : index
    %c0_169 = arith.constant 0 : index
    %177 = vector.load %arg21[%c0_168, %c0_169] : memref<144x512xbf16, #tpu.memory_space<vmem>>, vector<144x512xbf16>
    %cst_170 = arith.constant dense<0.000000e+00> : vector<16x512xf32>
    %178 = tpu.matmul %176, %177, %cst_170 {dimension_numbers = #tpu.dot_dimension_numbers<[1], [0], [0], [1], [0, 0, 1, 1], [], []>} : vector<16x144xbf16>, vector<144x512xbf16>, vector<16x512xf32> -> vector<16x512xf32>
    %c0_171 = arith.constant 0 : index
    %c0_172 = arith.constant 0 : index
    %179 = vector.load %arg8[%c0_171, %c0_172] : memref<16x512xf32, #tpu.memory_space<vmem>>, vector<16x512xf32>
    %180 = arith.addf %178, %179 : vector<16x512xf32>
    %181 = arith.negf %180 : vector<16x512xf32>
    %182 = math.exp %181 : vector<16x512xf32>
    %cst_173 = arith.constant 1.000000e+00 : f32
    %183 = vector.broadcast %cst_173 : f32 to vector<16x512xf32>
    %184 = arith.addf %183, %182 : vector<16x512xf32>
    %185 = arith.divf %183, %184 : vector<16x512xf32>
    %186 = arith.mulf %180, %185 : vector<16x512xf32>
    %c0_174 = arith.constant 0 : index
    %c17_175 = arith.constant 17 : index
    %187 = vector.load %arg20[%c0_174, %c17_175] : memref<16x546xf32, #tpu.memory_space<vmem>>, vector<16x512xf32>
    tpu.vector_store %arg20[%c0_174, %c17_175], %186 {strides = array<i32>} : memref<16x546xf32, #tpu.memory_space<vmem>>, vector<16x512xf32>,
    %c0_176 = arith.constant 0 : index
    %c0_177 = arith.constant 0 : index
    %188 = vector.load %arg20[%c0_176, %c0_177] : memref<16x546xf32, #tpu.memory_space<vmem>>, vector<16x512xf32>
    %c0_178 = arith.constant 0 : index
    %c0_179 = arith.constant 0 : index
    %189 = vector.load %arg1[%c0_178, %c0_179] : memref<9x512xf32, #tpu.memory_space<vmem>>, vector<1x512xf32>
    %190 = vector.broadcast %189 : vector<1x512xf32> to vector<16x512xf32>
    %191 = arith.mulf %188, %190 : vector<16x512xf32>
    %192 = arith.truncf %191 : vector<16x512xf32> to vector<16x512xbf16>
    %c0_180 = arith.constant 0 : index
    %c0_181 = arith.constant 0 : index
    %193 = vector.load %arg21[%c0_180, %c0_181] : memref<144x512xbf16, #tpu.memory_space<vmem>>, vector<16x512xbf16>
    tpu.vector_store %arg21[%c0_180, %c0_181], %192 {strides = array<i32>} : memref<144x512xbf16, #tpu.memory_space<vmem>>, vector<16x512xbf16>,
    %c0_182 = arith.constant 0 : index
    %c1_183 = arith.constant 1 : index
    %194 = vector.load %arg20[%c0_182, %c1_183] : memref<16x546xf32, #tpu.memory_space<vmem>>, vector<16x512xf32>
    %c1_184 = arith.constant 1 : index
    %c0_185 = arith.constant 0 : index
    %195 = vector.load %arg1[%c1_184, %c0_185] : memref<9x512xf32, #tpu.memory_space<vmem>>, vector<1x512xf32>
    %196 = vector.broadcast %195 : vector<1x512xf32> to vector<16x512xf32>
    %197 = arith.mulf %194, %196 : vector<16x512xf32>
    %198 = arith.truncf %197 : vector<16x512xf32> to vector<16x512xbf16>
    %c16_186 = arith.constant 16 : index
    %c0_187 = arith.constant 0 : index
    %199 = vector.load %arg21[%c16_186, %c0_187] : memref<144x512xbf16, #tpu.memory_space<vmem>>, vector<16x512xbf16>
    tpu.vector_store %arg21[%c16_186, %c0_187], %198 {strides = array<i32>} : memref<144x512xbf16, #tpu.memory_space<vmem>>, vector<16x512xbf16>,
    %c0_188 = arith.constant 0 : index
    %c2_189 = arith.constant 2 : index
    %200 = vector.load %arg20[%c0_188, %c2_189] : memref<16x546xf32, #tpu.memory_space<vmem>>, vector<16x512xf32>
    %c2_190 = arith.constant 2 : index
    %c0_191 = arith.constant 0 : index
    %201 = vector.load %arg1[%c2_190, %c0_191] : memref<9x512xf32, #tpu.memory_space<vmem>>, vector<1x512xf32>
    %202 = vector.broadcast %201 : vector<1x512xf32> to vector<16x512xf32>
    %203 = arith.mulf %200, %202 : vector<16x512xf32>
    %204 = arith.truncf %203 : vector<16x512xf32> to vector<16x512xbf16>
    %c32_192 = arith.constant 32 : index
    %c0_193 = arith.constant 0 : index
    %205 = vector.load %arg21[%c32_192, %c0_193] : memref<144x512xbf16, #tpu.memory_space<vmem>>, vector<16x512xbf16>
    tpu.vector_store %arg21[%c32_192, %c0_193], %204 {strides = array<i32>} : memref<144x512xbf16, #tpu.memory_space<vmem>>, vector<16x512xbf16>,
    %c0_194 = arith.constant 0 : index
    %c16_195 = arith.constant 16 : index
    %206 = vector.load %arg20[%c0_194, %c16_195] : memref<16x546xf32, #tpu.memory_space<vmem>>, vector<16x512xf32>
    %c3_196 = arith.constant 3 : index
    %c0_197 = arith.constant 0 : index
    %207 = vector.load %arg1[%c3_196, %c0_197] : memref<9x512xf32, #tpu.memory_space<vmem>>, vector<1x512xf32>
    %208 = vector.broadcast %207 : vector<1x512xf32> to vector<16x512xf32>
    %209 = arith.mulf %206, %208 : vector<16x512xf32>
    %210 = arith.truncf %209 : vector<16x512xf32> to vector<16x512xbf16>
    %c48_198 = arith.constant 48 : index
    %c0_199 = arith.constant 0 : index
    %211 = vector.load %arg21[%c48_198, %c0_199] : memref<144x512xbf16, #tpu.memory_space<vmem>>, vector<16x512xbf16>
    tpu.vector_store %arg21[%c48_198, %c0_199], %210 {strides = array<i32>} : memref<144x512xbf16, #tpu.memory_space<vmem>>, vector<16x512xbf16>,
    %c0_200 = arith.constant 0 : index
    %c17_201 = arith.constant 17 : index
    %212 = vector.load %arg20[%c0_200, %c17_201] : memref<16x546xf32, #tpu.memory_space<vmem>>, vector<16x512xf32>
    %213 = arith.truncf %212 : vector<16x512xf32> to vector<16x512xbf16>
    %c64_202 = arith.constant 64 : index
    %c0_203 = arith.constant 0 : index
    %214 = vector.load %arg21[%c64_202, %c0_203] : memref<144x512xbf16, #tpu.memory_space<vmem>>, vector<16x512xbf16>
    tpu.vector_store %arg21[%c64_202, %c0_203], %213 {strides = array<i32>} : memref<144x512xbf16, #tpu.memory_space<vmem>>, vector<16x512xbf16>,
    %c0_204 = arith.constant 0 : index
    %c18_205 = arith.constant 18 : index
    %215 = vector.load %arg20[%c0_204, %c18_205] : memref<16x546xf32, #tpu.memory_space<vmem>>, vector<16x512xf32>
    %c5_206 = arith.constant 5 : index
    %c0_207 = arith.constant 0 : index
    %216 = vector.load %arg1[%c5_206, %c0_207] : memref<9x512xf32, #tpu.memory_space<vmem>>, vector<1x512xf32>
    %217 = vector.broadcast %216 : vector<1x512xf32> to vector<16x512xf32>
    %218 = arith.mulf %215, %217 : vector<16x512xf32>
    %219 = arith.truncf %218 : vector<16x512xf32> to vector<16x512xbf16>
    %c80_208 = arith.constant 80 : index
    %c0_209 = arith.constant 0 : index
    %220 = vector.load %arg21[%c80_208, %c0_209] : memref<144x512xbf16, #tpu.memory_space<vmem>>, vector<16x512xbf16>
    tpu.vector_store %arg21[%c80_208, %c0_209], %219 {strides = array<i32>} : memref<144x512xbf16, #tpu.memory_space<vmem>>, vector<16x512xbf16>,
    %c0_210 = arith.constant 0 : index
    %c32_211 = arith.constant 32 : index
    %221 = vector.load %arg20[%c0_210, %c32_211] : memref<16x546xf32, #tpu.memory_space<vmem>>, vector<16x512xf32>
    %c6_212 = arith.constant 6 : index
    %c0_213 = arith.constant 0 : index
    %222 = vector.load %arg1[%c6_212, %c0_213] : memref<9x512xf32, #tpu.memory_space<vmem>>, vector<1x512xf32>
    %223 = vector.broadcast %222 : vector<1x512xf32> to vector<16x512xf32>
    %224 = arith.mulf %221, %223 : vector<16x512xf32>
    %225 = arith.truncf %224 : vector<16x512xf32> to vector<16x512xbf16>
    %c96_214 = arith.constant 96 : index
    %c0_215 = arith.constant 0 : index
    %226 = vector.load %arg21[%c96_214, %c0_215] : memref<144x512xbf16, #tpu.memory_space<vmem>>, vector<16x512xbf16>
    tpu.vector_store %arg21[%c96_214, %c0_215], %225 {strides = array<i32>} : memref<144x512xbf16, #tpu.memory_space<vmem>>, vector<16x512xbf16>,
    %c0_216 = arith.constant 0 : index
    %c33_217 = arith.constant 33 : index
    %227 = vector.load %arg20[%c0_216, %c33_217] : memref<16x546xf32, #tpu.memory_space<vmem>>, vector<16x512xf32>
    %c7_218 = arith.constant 7 : index
    %c0_219 = arith.constant 0 : index
    %228 = vector.load %arg1[%c7_218, %c0_219] : memref<9x512xf32, #tpu.memory_space<vmem>>, vector<1x512xf32>
    %229 = vector.broadcast %228 : vector<1x512xf32> to vector<16x512xf32>
    %230 = arith.mulf %227, %229 : vector<16x512xf32>
    %231 = arith.truncf %230 : vector<16x512xf32> to vector<16x512xbf16>
    %c112_220 = arith.constant 112 : index
    %c0_221 = arith.constant 0 : index
    %232 = vector.load %arg21[%c112_220, %c0_221] : memref<144x512xbf16, #tpu.memory_space<vmem>>, vector<16x512xbf16>
    tpu.vector_store %arg21[%c112_220, %c0_221], %231 {strides = array<i32>} : memref<144x512xbf16, #tpu.memory_space<vmem>>, vector<16x512xbf16>,
    %c0_222 = arith.constant 0 : index
    %c34_223 = arith.constant 34 : index
    %233 = vector.load %arg20[%c0_222, %c34_223] : memref<16x546xf32, #tpu.memory_space<vmem>>, vector<16x512xf32>
    %c8_224 = arith.constant 8 : index
    %c0_225 = arith.constant 0 : index
    %234 = vector.load %arg1[%c8_224, %c0_225] : memref<9x512xf32, #tpu.memory_space<vmem>>, vector<1x512xf32>
    %235 = vector.broadcast %234 : vector<1x512xf32> to vector<16x512xf32>
    %236 = arith.mulf %233, %235 : vector<16x512xf32>
    %237 = arith.truncf %236 : vector<16x512xf32> to vector<16x512xbf16>
    %c128_226 = arith.constant 128 : index
    %c0_227 = arith.constant 0 : index
    %238 = vector.load %arg21[%c128_226, %c0_227] : memref<144x512xbf16, #tpu.memory_space<vmem>>, vector<16x512xbf16>
    tpu.vector_store %arg21[%c128_226, %c0_227], %237 {strides = array<i32>} : memref<144x512xbf16, #tpu.memory_space<vmem>>, vector<16x512xbf16>,
    %c0_228 = arith.constant 0 : index
    %c0_229 = arith.constant 0 : index
    %239 = vector.load %arg9[%c0_228, %c0_229] : memref<16x144xbf16, #tpu.memory_space<vmem>>, vector<16x144xbf16>
    %c0_230 = arith.constant 0 : index
    %c0_231 = arith.constant 0 : index
    %240 = vector.load %arg21[%c0_230, %c0_231] : memref<144x512xbf16, #tpu.memory_space<vmem>>, vector<144x512xbf16>
    %cst_232 = arith.constant dense<0.000000e+00> : vector<16x512xf32>
    %241 = tpu.matmul %239, %240, %cst_232 {dimension_numbers = #tpu.dot_dimension_numbers<[1], [0], [0], [1], [0, 0, 1, 1], [], []>} : vector<16x144xbf16>, vector<144x512xbf16>, vector<16x512xf32> -> vector<16x512xf32>
    %c0_233 = arith.constant 0 : index
    %c0_234 = arith.constant 0 : index
    %242 = vector.load %arg10[%c0_233, %c0_234] : memref<16x1xf32, #tpu.memory_space<vmem>>, vector<16x1xf32>
    %243 = vector.broadcast %242 : vector<16x1xf32> to vector<16x512xf32>
    %244 = arith.addf %241, %243 : vector<16x512xf32>
    %245 = arith.negf %244 : vector<16x512xf32>
    %246 = math.exp %245 : vector<16x512xf32>
    %cst_235 = arith.constant 1.000000e+00 : f32
    %247 = vector.broadcast %cst_235 : f32 to vector<16x512xf32>
    %248 = arith.addf %247, %246 : vector<16x512xf32>
    %249 = arith.divf %247, %248 : vector<16x512xf32>
    %250 = arith.mulf %244, %249 : vector<16x512xf32>
    %c0_236 = arith.constant 0 : index
    %c17_237 = arith.constant 17 : index
    %251 = vector.load %arg20[%c0_236, %c17_237] : memref<16x546xf32, #tpu.memory_space<vmem>>, vector<16x512xf32>
    tpu.vector_store %arg20[%c0_236, %c17_237], %250 {strides = array<i32>} : memref<16x546xf32, #tpu.memory_space<vmem>>, vector<16x512xf32>,
    %c0_238 = arith.constant 0 : index
    %c0_239 = arith.constant 0 : index
    %252 = vector.load %arg20[%c0_238, %c0_239] : memref<16x546xf32, #tpu.memory_space<vmem>>, vector<16x512xf32>
    %c0_240 = arith.constant 0 : index
    %c0_241 = arith.constant 0 : index
    %253 = vector.load %arg1[%c0_240, %c0_241] : memref<9x512xf32, #tpu.memory_space<vmem>>, vector<1x512xf32>
    %254 = vector.broadcast %253 : vector<1x512xf32> to vector<16x512xf32>
    %255 = arith.mulf %252, %254 : vector<16x512xf32>
    %256 = arith.truncf %255 : vector<16x512xf32> to vector<16x512xbf16>
    %c0_242 = arith.constant 0 : index
    %c0_243 = arith.constant 0 : index
    %257 = vector.load %arg21[%c0_242, %c0_243] : memref<144x512xbf16, #tpu.memory_space<vmem>>, vector<16x512xbf16>
    tpu.vector_store %arg21[%c0_242, %c0_243], %256 {strides = array<i32>} : memref<144x512xbf16, #tpu.memory_space<vmem>>, vector<16x512xbf16>,
    %c0_244 = arith.constant 0 : index
    %c1_245 = arith.constant 1 : index
    %258 = vector.load %arg20[%c0_244, %c1_245] : memref<16x546xf32, #tpu.memory_space<vmem>>, vector<16x512xf32>
    %c1_246 = arith.constant 1 : index
    %c0_247 = arith.constant 0 : index
    %259 = vector.load %arg1[%c1_246, %c0_247] : memref<9x512xf32, #tpu.memory_space<vmem>>, vector<1x512xf32>
    %260 = vector.broadcast %259 : vector<1x512xf32> to vector<16x512xf32>
    %261 = arith.mulf %258, %260 : vector<16x512xf32>
    %262 = arith.truncf %261 : vector<16x512xf32> to vector<16x512xbf16>
    %c16_248 = arith.constant 16 : index
    %c0_249 = arith.constant 0 : index
    %263 = vector.load %arg21[%c16_248, %c0_249] : memref<144x512xbf16, #tpu.memory_space<vmem>>, vector<16x512xbf16>
    tpu.vector_store %arg21[%c16_248, %c0_249], %262 {strides = array<i32>} : memref<144x512xbf16, #tpu.memory_space<vmem>>, vector<16x512xbf16>,
    %c0_250 = arith.constant 0 : index
    %c2_251 = arith.constant 2 : index
    %264 = vector.load %arg20[%c0_250, %c2_251] : memref<16x546xf32, #tpu.memory_space<vmem>>, vector<16x512xf32>
    %c2_252 = arith.constant 2 : index
    %c0_253 = arith.constant 0 : index
    %265 = vector.load %arg1[%c2_252, %c0_253] : memref<9x512xf32, #tpu.memory_space<vmem>>, vector<1x512xf32>
    %266 = vector.broadcast %265 : vector<1x512xf32> to vector<16x512xf32>
    %267 = arith.mulf %264, %266 : vector<16x512xf32>
    %268 = arith.truncf %267 : vector<16x512xf32> to vector<16x512xbf16>
    %c32_254 = arith.constant 32 : index
    %c0_255 = arith.constant 0 : index
    %269 = vector.load %arg21[%c32_254, %c0_255] : memref<144x512xbf16, #tpu.memory_space<vmem>>, vector<16x512xbf16>
    tpu.vector_store %arg21[%c32_254, %c0_255], %268 {strides = array<i32>} : memref<144x512xbf16, #tpu.memory_space<vmem>>, vector<16x512xbf16>,
    %c0_256 = arith.constant 0 : index
    %c16_257 = arith.constant 16 : index
    %270 = vector.load %arg20[%c0_256, %c16_257] : memref<16x546xf32, #tpu.memory_space<vmem>>, vector<16x512xf32>
    %c3_258 = arith.constant 3 : index
    %c0_259 = arith.constant 0 : index
    %271 = vector.load %arg1[%c3_258, %c0_259] : memref<9x512xf32, #tpu.memory_space<vmem>>, vector<1x512xf32>
    %272 = vector.broadcast %271 : vector<1x512xf32> to vector<16x512xf32>
    %273 = arith.mulf %270, %272 : vector<16x512xf32>
    %274 = arith.truncf %273 : vector<16x512xf32> to vector<16x512xbf16>
    %c48_260 = arith.constant 48 : index
    %c0_261 = arith.constant 0 : index
    %275 = vector.load %arg21[%c48_260, %c0_261] : memref<144x512xbf16, #tpu.memory_space<vmem>>, vector<16x512xbf16>
    tpu.vector_store %arg21[%c48_260, %c0_261], %274 {strides = array<i32>} : memref<144x512xbf16, #tpu.memory_space<vmem>>, vector<16x512xbf16>,
    %c0_262 = arith.constant 0 : index
    %c17_263 = arith.constant 17 : index
    %276 = vector.load %arg20[%c0_262, %c17_263] : memref<16x546xf32, #tpu.memory_space<vmem>>, vector<16x512xf32>
    %277 = arith.truncf %276 : vector<16x512xf32> to vector<16x512xbf16>
    %c64_264 = arith.constant 64 : index
    %c0_265 = arith.constant 0 : index
    %278 = vector.load %arg21[%c64_264, %c0_265] : memref<144x512xbf16, #tpu.memory_space<vmem>>, vector<16x512xbf16>
    tpu.vector_store %arg21[%c64_264, %c0_265], %277 {strides = array<i32>} : memref<144x512xbf16, #tpu.memory_space<vmem>>, vector<16x512xbf16>,
    %c0_266 = arith.constant 0 : index
    %c18_267 = arith.constant 18 : index
    %279 = vector.load %arg20[%c0_266, %c18_267] : memref<16x546xf32, #tpu.memory_space<vmem>>, vector<16x512xf32>
    %c5_268 = arith.constant 5 : index
    %c0_269 = arith.constant 0 : index
    %280 = vector.load %arg1[%c5_268, %c0_269] : memref<9x512xf32, #tpu.memory_space<vmem>>, vector<1x512xf32>
    %281 = vector.broadcast %280 : vector<1x512xf32> to vector<16x512xf32>
    %282 = arith.mulf %279, %281 : vector<16x512xf32>
    %283 = arith.truncf %282 : vector<16x512xf32> to vector<16x512xbf16>
    %c80_270 = arith.constant 80 : index
    %c0_271 = arith.constant 0 : index
    %284 = vector.load %arg21[%c80_270, %c0_271] : memref<144x512xbf16, #tpu.memory_space<vmem>>, vector<16x512xbf16>
    tpu.vector_store %arg21[%c80_270, %c0_271], %283 {strides = array<i32>} : memref<144x512xbf16, #tpu.memory_space<vmem>>, vector<16x512xbf16>,
    %c0_272 = arith.constant 0 : index
    %c32_273 = arith.constant 32 : index
    %285 = vector.load %arg20[%c0_272, %c32_273] : memref<16x546xf32, #tpu.memory_space<vmem>>, vector<16x512xf32>
    %c6_274 = arith.constant 6 : index
    %c0_275 = arith.constant 0 : index
    %286 = vector.load %arg1[%c6_274, %c0_275] : memref<9x512xf32, #tpu.memory_space<vmem>>, vector<1x512xf32>
    %287 = vector.broadcast %286 : vector<1x512xf32> to vector<16x512xf32>
    %288 = arith.mulf %285, %287 : vector<16x512xf32>
    %289 = arith.truncf %288 : vector<16x512xf32> to vector<16x512xbf16>
    %c96_276 = arith.constant 96 : index
    %c0_277 = arith.constant 0 : index
    %290 = vector.load %arg21[%c96_276, %c0_277] : memref<144x512xbf16, #tpu.memory_space<vmem>>, vector<16x512xbf16>
    tpu.vector_store %arg21[%c96_276, %c0_277], %289 {strides = array<i32>} : memref<144x512xbf16, #tpu.memory_space<vmem>>, vector<16x512xbf16>,
    %c0_278 = arith.constant 0 : index
    %c33_279 = arith.constant 33 : index
    %291 = vector.load %arg20[%c0_278, %c33_279] : memref<16x546xf32, #tpu.memory_space<vmem>>, vector<16x512xf32>
    %c7_280 = arith.constant 7 : index
    %c0_281 = arith.constant 0 : index
    %292 = vector.load %arg1[%c7_280, %c0_281] : memref<9x512xf32, #tpu.memory_space<vmem>>, vector<1x512xf32>
    %293 = vector.broadcast %292 : vector<1x512xf32> to vector<16x512xf32>
    %294 = arith.mulf %291, %293 : vector<16x512xf32>
    %295 = arith.truncf %294 : vector<16x512xf32> to vector<16x512xbf16>
    %c112_282 = arith.constant 112 : index
    %c0_283 = arith.constant 0 : index
    %296 = vector.load %arg21[%c112_282, %c0_283] : memref<144x512xbf16, #tpu.memory_space<vmem>>, vector<16x512xbf16>
    tpu.vector_store %arg21[%c112_282, %c0_283], %295 {strides = array<i32>} : memref<144x512xbf16, #tpu.memory_space<vmem>>, vector<16x512xbf16>,
    %c0_284 = arith.constant 0 : index
    %c34_285 = arith.constant 34 : index
    %297 = vector.load %arg20[%c0_284, %c34_285] : memref<16x546xf32, #tpu.memory_space<vmem>>, vector<16x512xf32>
    %c8_286 = arith.constant 8 : index
    %c0_287 = arith.constant 0 : index
    %298 = vector.load %arg1[%c8_286, %c0_287] : memref<9x512xf32, #tpu.memory_space<vmem>>, vector<1x512xf32>
    %299 = vector.broadcast %298 : vector<1x512xf32> to vector<16x512xf32>
    %300 = arith.mulf %297, %299 : vector<16x512xf32>
    %301 = arith.truncf %300 : vector<16x512xf32> to vector<16x512xbf16>
    %c128_288 = arith.constant 128 : index
    %c0_289 = arith.constant 0 : index
    %302 = vector.load %arg21[%c128_288, %c0_289] : memref<144x512xbf16, #tpu.memory_space<vmem>>, vector<16x512xbf16>
    tpu.vector_store %arg21[%c128_288, %c0_289], %301 {strides = array<i32>} : memref<144x512xbf16, #tpu.memory_space<vmem>>, vector<16x512xbf16>,
    %c0_290 = arith.constant 0 : index
    %c0_291 = arith.constant 0 : index
    %303 = vector.load %arg11[%c0_290, %c0_291] : memref<4x144xbf16, #tpu.memory_space<vmem>>, vector<4x144xbf16>
    %c0_292 = arith.constant 0 : index
    %c0_293 = arith.constant 0 : index
    %304 = vector.load %arg21[%c0_292, %c0_293] : memref<144x512xbf16, #tpu.memory_space<vmem>>, vector<144x512xbf16>
    %cst_294 = arith.constant dense<0.000000e+00> : vector<4x512xf32>
    %305 = tpu.matmul %303, %304, %cst_294 {dimension_numbers = #tpu.dot_dimension_numbers<[1], [0], [0], [1], [0, 0, 1, 1], [], []>} : vector<4x144xbf16>, vector<144x512xbf16>, vector<4x512xf32> -> vector<4x512xf32>
    %c0_295 = arith.constant 0 : index
    %c0_296 = arith.constant 0 : index
    %306 = vector.load %arg12[%c0_295, %c0_296] : memref<4x1xf32, #tpu.memory_space<vmem>>, vector<4x1xf32>
    %307 = vector.broadcast %306 : vector<4x1xf32> to vector<4x512xf32>
    %308 = arith.addf %305, %307 : vector<4x512xf32>
    %309 = arith.addf %123, %308 : vector<4x512xf32>
    %c0_297 = arith.constant 0 : index
    %c17_298 = arith.constant 17 : index
    %310 = vector.load %arg20[%c0_297, %c17_298] : memref<16x546xf32, #tpu.memory_space<vmem>>, vector<4x512xf32>
    tpu.vector_store %arg20[%c0_297, %c17_298], %309 {strides = array<i32>} : memref<16x546xf32, #tpu.memory_space<vmem>>, vector<4x512xf32>,
    %c0_299 = arith.constant 0 : index
    %c0_300 = arith.constant 0 : index
    %311 = vector.load %arg20[%c0_299, %c0_300] : memref<16x546xf32, #tpu.memory_space<vmem>>, vector<4x512xf32>
    %c0_301 = arith.constant 0 : index
    %c0_302 = arith.constant 0 : index
    %312 = vector.load %arg1[%c0_301, %c0_302] : memref<9x512xf32, #tpu.memory_space<vmem>>, vector<1x512xf32>
    %313 = vector.broadcast %312 : vector<1x512xf32> to vector<4x512xf32>
    %314 = arith.mulf %311, %313 : vector<4x512xf32>
    %315 = arith.truncf %314 : vector<4x512xf32> to vector<4x512xbf16>
    %c0_303 = arith.constant 0 : index
    %c0_304 = arith.constant 0 : index
    %316 = vector.load %arg21[%c0_303, %c0_304] : memref<144x512xbf16, #tpu.memory_space<vmem>>, vector<4x512xbf16>
    tpu.vector_store %arg21[%c0_303, %c0_304], %315 {strides = array<i32>} : memref<144x512xbf16, #tpu.memory_space<vmem>>, vector<4x512xbf16>,
    %c0_305 = arith.constant 0 : index
    %c1_306 = arith.constant 1 : index
    %317 = vector.load %arg20[%c0_305, %c1_306] : memref<16x546xf32, #tpu.memory_space<vmem>>, vector<4x512xf32>
    %c1_307 = arith.constant 1 : index
    %c0_308 = arith.constant 0 : index
    %318 = vector.load %arg1[%c1_307, %c0_308] : memref<9x512xf32, #tpu.memory_space<vmem>>, vector<1x512xf32>
    %319 = vector.broadcast %318 : vector<1x512xf32> to vector<4x512xf32>
    %320 = arith.mulf %317, %319 : vector<4x512xf32>
    %321 = arith.truncf %320 : vector<4x512xf32> to vector<4x512xbf16>
    %c16_309 = arith.constant 16 : index
    %c0_310 = arith.constant 0 : index
    %322 = vector.load %arg21[%c16_309, %c0_310] : memref<144x512xbf16, #tpu.memory_space<vmem>>, vector<4x512xbf16>
    tpu.vector_store %arg21[%c16_309, %c0_310], %321 {strides = array<i32>} : memref<144x512xbf16, #tpu.memory_space<vmem>>, vector<4x512xbf16>,
    %c0_311 = arith.constant 0 : index
    %c2_312 = arith.constant 2 : index
    %323 = vector.load %arg20[%c0_311, %c2_312] : memref<16x546xf32, #tpu.memory_space<vmem>>, vector<4x512xf32>
    %c2_313 = arith.constant 2 : index
    %c0_314 = arith.constant 0 : index
    %324 = vector.load %arg1[%c2_313, %c0_314] : memref<9x512xf32, #tpu.memory_space<vmem>>, vector<1x512xf32>
    %325 = vector.broadcast %324 : vector<1x512xf32> to vector<4x512xf32>
    %326 = arith.mulf %323, %325 : vector<4x512xf32>
    %327 = arith.truncf %326 : vector<4x512xf32> to vector<4x512xbf16>
    %c32_315 = arith.constant 32 : index
    %c0_316 = arith.constant 0 : index
    %328 = vector.load %arg21[%c32_315, %c0_316] : memref<144x512xbf16, #tpu.memory_space<vmem>>, vector<4x512xbf16>
    tpu.vector_store %arg21[%c32_315, %c0_316], %327 {strides = array<i32>} : memref<144x512xbf16, #tpu.memory_space<vmem>>, vector<4x512xbf16>,
    %c0_317 = arith.constant 0 : index
    %c16_318 = arith.constant 16 : index
    %329 = vector.load %arg20[%c0_317, %c16_318] : memref<16x546xf32, #tpu.memory_space<vmem>>, vector<4x512xf32>
    %c3_319 = arith.constant 3 : index
    %c0_320 = arith.constant 0 : index
    %330 = vector.load %arg1[%c3_319, %c0_320] : memref<9x512xf32, #tpu.memory_space<vmem>>, vector<1x512xf32>
    %331 = vector.broadcast %330 : vector<1x512xf32> to vector<4x512xf32>
    %332 = arith.mulf %329, %331 : vector<4x512xf32>
    %333 = arith.truncf %332 : vector<4x512xf32> to vector<4x512xbf16>
    %c48_321 = arith.constant 48 : index
    %c0_322 = arith.constant 0 : index
    %334 = vector.load %arg21[%c48_321, %c0_322] : memref<144x512xbf16, #tpu.memory_space<vmem>>, vector<4x512xbf16>
    tpu.vector_store %arg21[%c48_321, %c0_322], %333 {strides = array<i32>} : memref<144x512xbf16, #tpu.memory_space<vmem>>, vector<4x512xbf16>,
    %c0_323 = arith.constant 0 : index
    %c17_324 = arith.constant 17 : index
    %335 = vector.load %arg20[%c0_323, %c17_324] : memref<16x546xf32, #tpu.memory_space<vmem>>, vector<4x512xf32>
    %336 = arith.truncf %335 : vector<4x512xf32> to vector<4x512xbf16>
    %c64_325 = arith.constant 64 : index
    %c0_326 = arith.constant 0 : index
    %337 = vector.load %arg21[%c64_325, %c0_326] : memref<144x512xbf16, #tpu.memory_space<vmem>>, vector<4x512xbf16>
    tpu.vector_store %arg21[%c64_325, %c0_326], %336 {strides = array<i32>} : memref<144x512xbf16, #tpu.memory_space<vmem>>, vector<4x512xbf16>,
    %c0_327 = arith.constant 0 : index
    %c18_328 = arith.constant 18 : index
    %338 = vector.load %arg20[%c0_327, %c18_328] : memref<16x546xf32, #tpu.memory_space<vmem>>, vector<4x512xf32>
    %c5_329 = arith.constant 5 : index
    %c0_330 = arith.constant 0 : index
    %339 = vector.load %arg1[%c5_329, %c0_330] : memref<9x512xf32, #tpu.memory_space<vmem>>, vector<1x512xf32>
    %340 = vector.broadcast %339 : vector<1x512xf32> to vector<4x512xf32>
    %341 = arith.mulf %338, %340 : vector<4x512xf32>
    %342 = arith.truncf %341 : vector<4x512xf32> to vector<4x512xbf16>
    %c80_331 = arith.constant 80 : index
    %c0_332 = arith.constant 0 : index
    %343 = vector.load %arg21[%c80_331, %c0_332] : memref<144x512xbf16, #tpu.memory_space<vmem>>, vector<4x512xbf16>
    tpu.vector_store %arg21[%c80_331, %c0_332], %342 {strides = array<i32>} : memref<144x512xbf16, #tpu.memory_space<vmem>>, vector<4x512xbf16>,
    %c0_333 = arith.constant 0 : index
    %c32_334 = arith.constant 32 : index
    %344 = vector.load %arg20[%c0_333, %c32_334] : memref<16x546xf32, #tpu.memory_space<vmem>>, vector<4x512xf32>
    %c6_335 = arith.constant 6 : index
    %c0_336 = arith.constant 0 : index
    %345 = vector.load %arg1[%c6_335, %c0_336] : memref<9x512xf32, #tpu.memory_space<vmem>>, vector<1x512xf32>
    %346 = vector.broadcast %345 : vector<1x512xf32> to vector<4x512xf32>
    %347 = arith.mulf %344, %346 : vector<4x512xf32>
    %348 = arith.truncf %347 : vector<4x512xf32> to vector<4x512xbf16>
    %c96_337 = arith.constant 96 : index
    %c0_338 = arith.constant 0 : index
    %349 = vector.load %arg21[%c96_337, %c0_338] : memref<144x512xbf16, #tpu.memory_space<vmem>>, vector<4x512xbf16>
    tpu.vector_store %arg21[%c96_337, %c0_338], %348 {strides = array<i32>} : memref<144x512xbf16, #tpu.memory_space<vmem>>, vector<4x512xbf16>,
    %c0_339 = arith.constant 0 : index
    %c33_340 = arith.constant 33 : index
    %350 = vector.load %arg20[%c0_339, %c33_340] : memref<16x546xf32, #tpu.memory_space<vmem>>, vector<4x512xf32>
    %c7_341 = arith.constant 7 : index
    %c0_342 = arith.constant 0 : index
    %351 = vector.load %arg1[%c7_341, %c0_342] : memref<9x512xf32, #tpu.memory_space<vmem>>, vector<1x512xf32>
    %352 = vector.broadcast %351 : vector<1x512xf32> to vector<4x512xf32>
    %353 = arith.mulf %350, %352 : vector<4x512xf32>
    %354 = arith.truncf %353 : vector<4x512xf32> to vector<4x512xbf16>
    %c112_343 = arith.constant 112 : index
    %c0_344 = arith.constant 0 : index
    %355 = vector.load %arg21[%c112_343, %c0_344] : memref<144x512xbf16, #tpu.memory_space<vmem>>, vector<4x512xbf16>
    tpu.vector_store %arg21[%c112_343, %c0_344], %354 {strides = array<i32>} : memref<144x512xbf16, #tpu.memory_space<vmem>>, vector<4x512xbf16>,
    %c0_345 = arith.constant 0 : index
    %c34_346 = arith.constant 34 : index
    %356 = vector.load %arg20[%c0_345, %c34_346] : memref<16x546xf32, #tpu.memory_space<vmem>>, vector<4x512xf32>
    %c8_347 = arith.constant 8 : index
    %c0_348 = arith.constant 0 : index
    %357 = vector.load %arg1[%c8_347, %c0_348] : memref<9x512xf32, #tpu.memory_space<vmem>>, vector<1x512xf32>
    %358 = vector.broadcast %357 : vector<1x512xf32> to vector<4x512xf32>
    %359 = arith.mulf %356, %358 : vector<4x512xf32>
    %360 = arith.truncf %359 : vector<4x512xf32> to vector<4x512xbf16>
    %c128_349 = arith.constant 128 : index
    %c0_350 = arith.constant 0 : index
    %361 = vector.load %arg21[%c128_349, %c0_350] : memref<144x512xbf16, #tpu.memory_space<vmem>>, vector<4x512xbf16>
    tpu.vector_store %arg21[%c128_349, %c0_350], %360 {strides = array<i32>} : memref<144x512xbf16, #tpu.memory_space<vmem>>, vector<4x512xbf16>,
    %c0_351 = arith.constant 0 : index
    %c0_352 = arith.constant 0 : index
    %362 = vector.load %arg13[%c0_351, %c0_352] : memref<16x144xbf16, #tpu.memory_space<vmem>>, vector<16x144xbf16>
    %c0_353 = arith.constant 0 : index
    %c0_354 = arith.constant 0 : index
    %363 = vector.load %arg21[%c0_353, %c0_354] : memref<144x512xbf16, #tpu.memory_space<vmem>>, vector<144x512xbf16>
    %cst_355 = arith.constant dense<0.000000e+00> : vector<16x512xf32>
    %364 = tpu.matmul %362, %363, %cst_355 {dimension_numbers = #tpu.dot_dimension_numbers<[1], [0], [0], [1], [0, 0, 1, 1], [], []>} : vector<16x144xbf16>, vector<144x512xbf16>, vector<16x512xf32> -> vector<16x512xf32>
    %c0_356 = arith.constant 0 : index
    %c0_357 = arith.constant 0 : index
    %365 = vector.load %arg14[%c0_356, %c0_357] : memref<16x512xf32, #tpu.memory_space<vmem>>, vector<16x512xf32>
    %366 = arith.addf %364, %365 : vector<16x512xf32>
    %cst_358 = arith.constant 0.000000e+00 : f32
    %367 = vector.broadcast %cst_358 : f32 to vector<16x512xf32>
    %368 = arith.maximumf %366, %367 : vector<16x512xf32>
    %c0_359 = arith.constant 0 : index
    %c17_360 = arith.constant 17 : index
    %369 = vector.load %arg20[%c0_359, %c17_360] : memref<16x546xf32, #tpu.memory_space<vmem>>, vector<16x512xf32>
    tpu.vector_store %arg20[%c0_359, %c17_360], %368 {strides = array<i32>} : memref<16x546xf32, #tpu.memory_space<vmem>>, vector<16x512xf32>,
    %c0_361 = arith.constant 0 : index
    %c0_362 = arith.constant 0 : index
    %370 = vector.load %arg20[%c0_361, %c0_362] : memref<16x546xf32, #tpu.memory_space<vmem>>, vector<16x512xf32>
    %c0_363 = arith.constant 0 : index
    %c0_364 = arith.constant 0 : index
    %371 = vector.load %arg1[%c0_363, %c0_364] : memref<9x512xf32, #tpu.memory_space<vmem>>, vector<1x512xf32>
    %372 = vector.broadcast %371 : vector<1x512xf32> to vector<16x512xf32>
    %373 = arith.mulf %370, %372 : vector<16x512xf32>
    %374 = arith.truncf %373 : vector<16x512xf32> to vector<16x512xbf16>
    %c0_365 = arith.constant 0 : index
    %c0_366 = arith.constant 0 : index
    %375 = vector.load %arg21[%c0_365, %c0_366] : memref<144x512xbf16, #tpu.memory_space<vmem>>, vector<16x512xbf16>
    tpu.vector_store %arg21[%c0_365, %c0_366], %374 {strides = array<i32>} : memref<144x512xbf16, #tpu.memory_space<vmem>>, vector<16x512xbf16>,
    %c0_367 = arith.constant 0 : index
    %c1_368 = arith.constant 1 : index
    %376 = vector.load %arg20[%c0_367, %c1_368] : memref<16x546xf32, #tpu.memory_space<vmem>>, vector<16x512xf32>
    %c1_369 = arith.constant 1 : index
    %c0_370 = arith.constant 0 : index
    %377 = vector.load %arg1[%c1_369, %c0_370] : memref<9x512xf32, #tpu.memory_space<vmem>>, vector<1x512xf32>
    %378 = vector.broadcast %377 : vector<1x512xf32> to vector<16x512xf32>
    %379 = arith.mulf %376, %378 : vector<16x512xf32>
    %380 = arith.truncf %379 : vector<16x512xf32> to vector<16x512xbf16>
    %c16_371 = arith.constant 16 : index
    %c0_372 = arith.constant 0 : index
    %381 = vector.load %arg21[%c16_371, %c0_372] : memref<144x512xbf16, #tpu.memory_space<vmem>>, vector<16x512xbf16>
    tpu.vector_store %arg21[%c16_371, %c0_372], %380 {strides = array<i32>} : memref<144x512xbf16, #tpu.memory_space<vmem>>, vector<16x512xbf16>,
    %c0_373 = arith.constant 0 : index
    %c2_374 = arith.constant 2 : index
    %382 = vector.load %arg20[%c0_373, %c2_374] : memref<16x546xf32, #tpu.memory_space<vmem>>, vector<16x512xf32>
    %c2_375 = arith.constant 2 : index
    %c0_376 = arith.constant 0 : index
    %383 = vector.load %arg1[%c2_375, %c0_376] : memref<9x512xf32, #tpu.memory_space<vmem>>, vector<1x512xf32>
    %384 = vector.broadcast %383 : vector<1x512xf32> to vector<16x512xf32>
    %385 = arith.mulf %382, %384 : vector<16x512xf32>
    %386 = arith.truncf %385 : vector<16x512xf32> to vector<16x512xbf16>
    %c32_377 = arith.constant 32 : index
    %c0_378 = arith.constant 0 : index
    %387 = vector.load %arg21[%c32_377, %c0_378] : memref<144x512xbf16, #tpu.memory_space<vmem>>, vector<16x512xbf16>
    tpu.vector_store %arg21[%c32_377, %c0_378], %386 {strides = array<i32>} : memref<144x512xbf16, #tpu.memory_space<vmem>>, vector<16x512xbf16>,
    %c0_379 = arith.constant 0 : index
    %c16_380 = arith.constant 16 : index
    %388 = vector.load %arg20[%c0_379, %c16_380] : memref<16x546xf32, #tpu.memory_space<vmem>>, vector<16x512xf32>
    %c3_381 = arith.constant 3 : index
    %c0_382 = arith.constant 0 : index
    %389 = vector.load %arg1[%c3_381, %c0_382] : memref<9x512xf32, #tpu.memory_space<vmem>>, vector<1x512xf32>
    %390 = vector.broadcast %389 : vector<1x512xf32> to vector<16x512xf32>
    %391 = arith.mulf %388, %390 : vector<16x512xf32>
    %392 = arith.truncf %391 : vector<16x512xf32> to vector<16x512xbf16>
    %c48_383 = arith.constant 48 : index
    %c0_384 = arith.constant 0 : index
    %393 = vector.load %arg21[%c48_383, %c0_384] : memref<144x512xbf16, #tpu.memory_space<vmem>>, vector<16x512xbf16>
    tpu.vector_store %arg21[%c48_383, %c0_384], %392 {strides = array<i32>} : memref<144x512xbf16, #tpu.memory_space<vmem>>, vector<16x512xbf16>,
    %c0_385 = arith.constant 0 : index
    %c17_386 = arith.constant 17 : index
    %394 = vector.load %arg20[%c0_385, %c17_386] : memref<16x546xf32, #tpu.memory_space<vmem>>, vector<16x512xf32>
    %395 = arith.truncf %394 : vector<16x512xf32> to vector<16x512xbf16>
    %c64_387 = arith.constant 64 : index
    %c0_388 = arith.constant 0 : index
    %396 = vector.load %arg21[%c64_387, %c0_388] : memref<144x512xbf16, #tpu.memory_space<vmem>>, vector<16x512xbf16>
    tpu.vector_store %arg21[%c64_387, %c0_388], %395 {strides = array<i32>} : memref<144x512xbf16, #tpu.memory_space<vmem>>, vector<16x512xbf16>,
    %c0_389 = arith.constant 0 : index
    %c18_390 = arith.constant 18 : index
    %397 = vector.load %arg20[%c0_389, %c18_390] : memref<16x546xf32, #tpu.memory_space<vmem>>, vector<16x512xf32>
    %c5_391 = arith.constant 5 : index
    %c0_392 = arith.constant 0 : index
    %398 = vector.load %arg1[%c5_391, %c0_392] : memref<9x512xf32, #tpu.memory_space<vmem>>, vector<1x512xf32>
    %399 = vector.broadcast %398 : vector<1x512xf32> to vector<16x512xf32>
    %400 = arith.mulf %397, %399 : vector<16x512xf32>
    %401 = arith.truncf %400 : vector<16x512xf32> to vector<16x512xbf16>
    %c80_393 = arith.constant 80 : index
    %c0_394 = arith.constant 0 : index
    %402 = vector.load %arg21[%c80_393, %c0_394] : memref<144x512xbf16, #tpu.memory_space<vmem>>, vector<16x512xbf16>
    tpu.vector_store %arg21[%c80_393, %c0_394], %401 {strides = array<i32>} : memref<144x512xbf16, #tpu.memory_space<vmem>>, vector<16x512xbf16>,
    %c0_395 = arith.constant 0 : index
    %c32_396 = arith.constant 32 : index
    %403 = vector.load %arg20[%c0_395, %c32_396] : memref<16x546xf32, #tpu.memory_space<vmem>>, vector<16x512xf32>
    %c6_397 = arith.constant 6 : index
    %c0_398 = arith.constant 0 : index
    %404 = vector.load %arg1[%c6_397, %c0_398] : memref<9x512xf32, #tpu.memory_space<vmem>>, vector<1x512xf32>
    %405 = vector.broadcast %404 : vector<1x512xf32> to vector<16x512xf32>
    %406 = arith.mulf %403, %405 : vector<16x512xf32>
    %407 = arith.truncf %406 : vector<16x512xf32> to vector<16x512xbf16>
    %c96_399 = arith.constant 96 : index
    %c0_400 = arith.constant 0 : index
    %408 = vector.load %arg21[%c96_399, %c0_400] : memref<144x512xbf16, #tpu.memory_space<vmem>>, vector<16x512xbf16>
    tpu.vector_store %arg21[%c96_399, %c0_400], %407 {strides = array<i32>} : memref<144x512xbf16, #tpu.memory_space<vmem>>, vector<16x512xbf16>,
    %c0_401 = arith.constant 0 : index
    %c33_402 = arith.constant 33 : index
    %409 = vector.load %arg20[%c0_401, %c33_402] : memref<16x546xf32, #tpu.memory_space<vmem>>, vector<16x512xf32>
    %c7_403 = arith.constant 7 : index
    %c0_404 = arith.constant 0 : index
    %410 = vector.load %arg1[%c7_403, %c0_404] : memref<9x512xf32, #tpu.memory_space<vmem>>, vector<1x512xf32>
    %411 = vector.broadcast %410 : vector<1x512xf32> to vector<16x512xf32>
    %412 = arith.mulf %409, %411 : vector<16x512xf32>
    %413 = arith.truncf %412 : vector<16x512xf32> to vector<16x512xbf16>
    %c112_405 = arith.constant 112 : index
    %c0_406 = arith.constant 0 : index
    %414 = vector.load %arg21[%c112_405, %c0_406] : memref<144x512xbf16, #tpu.memory_space<vmem>>, vector<16x512xbf16>
    tpu.vector_store %arg21[%c112_405, %c0_406], %413 {strides = array<i32>} : memref<144x512xbf16, #tpu.memory_space<vmem>>, vector<16x512xbf16>,
    %c0_407 = arith.constant 0 : index
    %c34_408 = arith.constant 34 : index
    %415 = vector.load %arg20[%c0_407, %c34_408] : memref<16x546xf32, #tpu.memory_space<vmem>>, vector<16x512xf32>
    %c8_409 = arith.constant 8 : index
    %c0_410 = arith.constant 0 : index
    %416 = vector.load %arg1[%c8_409, %c0_410] : memref<9x512xf32, #tpu.memory_space<vmem>>, vector<1x512xf32>
    %417 = vector.broadcast %416 : vector<1x512xf32> to vector<16x512xf32>
    %418 = arith.mulf %415, %417 : vector<16x512xf32>
    %419 = arith.truncf %418 : vector<16x512xf32> to vector<16x512xbf16>
    %c128_411 = arith.constant 128 : index
    %c0_412 = arith.constant 0 : index
    %420 = vector.load %arg21[%c128_411, %c0_412] : memref<144x512xbf16, #tpu.memory_space<vmem>>, vector<16x512xbf16>
    tpu.vector_store %arg21[%c128_411, %c0_412], %419 {strides = array<i32>} : memref<144x512xbf16, #tpu.memory_space<vmem>>, vector<16x512xbf16>,
    %c0_413 = arith.constant 0 : index
    %c0_414 = arith.constant 0 : index
    %421 = vector.load %arg15[%c0_413, %c0_414] : memref<16x144xbf16, #tpu.memory_space<vmem>>, vector<16x144xbf16>
    %c0_415 = arith.constant 0 : index
    %c0_416 = arith.constant 0 : index
    %422 = vector.load %arg21[%c0_415, %c0_416] : memref<144x512xbf16, #tpu.memory_space<vmem>>, vector<144x512xbf16>
    %cst_417 = arith.constant dense<0.000000e+00> : vector<16x512xf32>
    %423 = tpu.matmul %421, %422, %cst_417 {dimension_numbers = #tpu.dot_dimension_numbers<[1], [0], [0], [1], [0, 0, 1, 1], [], []>} : vector<16x144xbf16>, vector<144x512xbf16>, vector<16x512xf32> -> vector<16x512xf32>
    %c0_418 = arith.constant 0 : index
    %c0_419 = arith.constant 0 : index
    %424 = vector.load %arg16[%c0_418, %c0_419] : memref<16x1xf32, #tpu.memory_space<vmem>>, vector<16x1xf32>
    %425 = vector.broadcast %424 : vector<16x1xf32> to vector<16x512xf32>
    %426 = arith.addf %423, %425 : vector<16x512xf32>
    %cst_420 = arith.constant 0.000000e+00 : f32
    %427 = vector.broadcast %cst_420 : f32 to vector<16x512xf32>
    %428 = arith.maximumf %426, %427 : vector<16x512xf32>
    %c0_421 = arith.constant 0 : index
    %c17_422 = arith.constant 17 : index
    %429 = vector.load %arg20[%c0_421, %c17_422] : memref<16x546xf32, #tpu.memory_space<vmem>>, vector<16x512xf32>
    tpu.vector_store %arg20[%c0_421, %c17_422], %428 {strides = array<i32>} : memref<16x546xf32, #tpu.memory_space<vmem>>, vector<16x512xf32>,
    %c0_423 = arith.constant 0 : index
    %c0_424 = arith.constant 0 : index
    %430 = vector.load %arg20[%c0_423, %c0_424] : memref<16x546xf32, #tpu.memory_space<vmem>>, vector<16x512xf32>
    %c0_425 = arith.constant 0 : index
    %c0_426 = arith.constant 0 : index
    %431 = vector.load %arg1[%c0_425, %c0_426] : memref<9x512xf32, #tpu.memory_space<vmem>>, vector<1x512xf32>
    %432 = vector.broadcast %431 : vector<1x512xf32> to vector<16x512xf32>
    %433 = arith.mulf %430, %432 : vector<16x512xf32>
    %434 = arith.truncf %433 : vector<16x512xf32> to vector<16x512xbf16>
    %c0_427 = arith.constant 0 : index
    %c0_428 = arith.constant 0 : index
    %435 = vector.load %arg21[%c0_427, %c0_428] : memref<144x512xbf16, #tpu.memory_space<vmem>>, vector<16x512xbf16>
    tpu.vector_store %arg21[%c0_427, %c0_428], %434 {strides = array<i32>} : memref<144x512xbf16, #tpu.memory_space<vmem>>, vector<16x512xbf16>,
    %c0_429 = arith.constant 0 : index
    %c1_430 = arith.constant 1 : index
    %436 = vector.load %arg20[%c0_429, %c1_430] : memref<16x546xf32, #tpu.memory_space<vmem>>, vector<16x512xf32>
    %c1_431 = arith.constant 1 : index
    %c0_432 = arith.constant 0 : index
    %437 = vector.load %arg1[%c1_431, %c0_432] : memref<9x512xf32, #tpu.memory_space<vmem>>, vector<1x512xf32>
    %438 = vector.broadcast %437 : vector<1x512xf32> to vector<16x512xf32>
    %439 = arith.mulf %436, %438 : vector<16x512xf32>
    %440 = arith.truncf %439 : vector<16x512xf32> to vector<16x512xbf16>
    %c16_433 = arith.constant 16 : index
    %c0_434 = arith.constant 0 : index
    %441 = vector.load %arg21[%c16_433, %c0_434] : memref<144x512xbf16, #tpu.memory_space<vmem>>, vector<16x512xbf16>
    tpu.vector_store %arg21[%c16_433, %c0_434], %440 {strides = array<i32>} : memref<144x512xbf16, #tpu.memory_space<vmem>>, vector<16x512xbf16>,
    %c0_435 = arith.constant 0 : index
    %c2_436 = arith.constant 2 : index
    %442 = vector.load %arg20[%c0_435, %c2_436] : memref<16x546xf32, #tpu.memory_space<vmem>>, vector<16x512xf32>
    %c2_437 = arith.constant 2 : index
    %c0_438 = arith.constant 0 : index
    %443 = vector.load %arg1[%c2_437, %c0_438] : memref<9x512xf32, #tpu.memory_space<vmem>>, vector<1x512xf32>
    %444 = vector.broadcast %443 : vector<1x512xf32> to vector<16x512xf32>
    %445 = arith.mulf %442, %444 : vector<16x512xf32>
    %446 = arith.truncf %445 : vector<16x512xf32> to vector<16x512xbf16>
    %c32_439 = arith.constant 32 : index
    %c0_440 = arith.constant 0 : index
    %447 = vector.load %arg21[%c32_439, %c0_440] : memref<144x512xbf16, #tpu.memory_space<vmem>>, vector<16x512xbf16>
    tpu.vector_store %arg21[%c32_439, %c0_440], %446 {strides = array<i32>} : memref<144x512xbf16, #tpu.memory_space<vmem>>, vector<16x512xbf16>,
    %c0_441 = arith.constant 0 : index
    %c16_442 = arith.constant 16 : index
    %448 = vector.load %arg20[%c0_441, %c16_442] : memref<16x546xf32, #tpu.memory_space<vmem>>, vector<16x512xf32>
    %c3_443 = arith.constant 3 : index
    %c0_444 = arith.constant 0 : index
    %449 = vector.load %arg1[%c3_443, %c0_444] : memref<9x512xf32, #tpu.memory_space<vmem>>, vector<1x512xf32>
    %450 = vector.broadcast %449 : vector<1x512xf32> to vector<16x512xf32>
    %451 = arith.mulf %448, %450 : vector<16x512xf32>
    %452 = arith.truncf %451 : vector<16x512xf32> to vector<16x512xbf16>
    %c48_445 = arith.constant 48 : index
    %c0_446 = arith.constant 0 : index
    %453 = vector.load %arg21[%c48_445, %c0_446] : memref<144x512xbf16, #tpu.memory_space<vmem>>, vector<16x512xbf16>
    tpu.vector_store %arg21[%c48_445, %c0_446], %452 {strides = array<i32>} : memref<144x512xbf16, #tpu.memory_space<vmem>>, vector<16x512xbf16>,
    %c0_447 = arith.constant 0 : index
    %c17_448 = arith.constant 17 : index
    %454 = vector.load %arg20[%c0_447, %c17_448] : memref<16x546xf32, #tpu.memory_space<vmem>>, vector<16x512xf32>
    %455 = arith.truncf %454 : vector<16x512xf32> to vector<16x512xbf16>
    %c64_449 = arith.constant 64 : index
    %c0_450 = arith.constant 0 : index
    %456 = vector.load %arg21[%c64_449, %c0_450] : memref<144x512xbf16, #tpu.memory_space<vmem>>, vector<16x512xbf16>
    tpu.vector_store %arg21[%c64_449, %c0_450], %455 {strides = array<i32>} : memref<144x512xbf16, #tpu.memory_space<vmem>>, vector<16x512xbf16>,
    %c0_451 = arith.constant 0 : index
    %c18_452 = arith.constant 18 : index
    %457 = vector.load %arg20[%c0_451, %c18_452] : memref<16x546xf32, #tpu.memory_space<vmem>>, vector<16x512xf32>
    %c5_453 = arith.constant 5 : index
    %c0_454 = arith.constant 0 : index
    %458 = vector.load %arg1[%c5_453, %c0_454] : memref<9x512xf32, #tpu.memory_space<vmem>>, vector<1x512xf32>
    %459 = vector.broadcast %458 : vector<1x512xf32> to vector<16x512xf32>
    %460 = arith.mulf %457, %459 : vector<16x512xf32>
    %461 = arith.truncf %460 : vector<16x512xf32> to vector<16x512xbf16>
    %c80_455 = arith.constant 80 : index
    %c0_456 = arith.constant 0 : index
    %462 = vector.load %arg21[%c80_455, %c0_456] : memref<144x512xbf16, #tpu.memory_space<vmem>>, vector<16x512xbf16>
    tpu.vector_store %arg21[%c80_455, %c0_456], %461 {strides = array<i32>} : memref<144x512xbf16, #tpu.memory_space<vmem>>, vector<16x512xbf16>,
    %c0_457 = arith.constant 0 : index
    %c32_458 = arith.constant 32 : index
    %463 = vector.load %arg20[%c0_457, %c32_458] : memref<16x546xf32, #tpu.memory_space<vmem>>, vector<16x512xf32>
    %c6_459 = arith.constant 6 : index
    %c0_460 = arith.constant 0 : index
    %464 = vector.load %arg1[%c6_459, %c0_460] : memref<9x512xf32, #tpu.memory_space<vmem>>, vector<1x512xf32>
    %465 = vector.broadcast %464 : vector<1x512xf32> to vector<16x512xf32>
    %466 = arith.mulf %463, %465 : vector<16x512xf32>
    %467 = arith.truncf %466 : vector<16x512xf32> to vector<16x512xbf16>
    %c96_461 = arith.constant 96 : index
    %c0_462 = arith.constant 0 : index
    %468 = vector.load %arg21[%c96_461, %c0_462] : memref<144x512xbf16, #tpu.memory_space<vmem>>, vector<16x512xbf16>
    tpu.vector_store %arg21[%c96_461, %c0_462], %467 {strides = array<i32>} : memref<144x512xbf16, #tpu.memory_space<vmem>>, vector<16x512xbf16>,
    %c0_463 = arith.constant 0 : index
    %c33_464 = arith.constant 33 : index
    %469 = vector.load %arg20[%c0_463, %c33_464] : memref<16x546xf32, #tpu.memory_space<vmem>>, vector<16x512xf32>
    %c7_465 = arith.constant 7 : index
    %c0_466 = arith.constant 0 : index
    %470 = vector.load %arg1[%c7_465, %c0_466] : memref<9x512xf32, #tpu.memory_space<vmem>>, vector<1x512xf32>
    %471 = vector.broadcast %470 : vector<1x512xf32> to vector<16x512xf32>
    %472 = arith.mulf %469, %471 : vector<16x512xf32>
    %473 = arith.truncf %472 : vector<16x512xf32> to vector<16x512xbf16>
    %c112_467 = arith.constant 112 : index
    %c0_468 = arith.constant 0 : index
    %474 = vector.load %arg21[%c112_467, %c0_468] : memref<144x512xbf16, #tpu.memory_space<vmem>>, vector<16x512xbf16>
    tpu.vector_store %arg21[%c112_467, %c0_468], %473 {strides = array<i32>} : memref<144x512xbf16, #tpu.memory_space<vmem>>, vector<16x512xbf16>,
    %c0_469 = arith.constant 0 : index
    %c34_470 = arith.constant 34 : index
    %475 = vector.load %arg20[%c0_469, %c34_470] : memref<16x546xf32, #tpu.memory_space<vmem>>, vector<16x512xf32>
    %c8_471 = arith.constant 8 : index
    %c0_472 = arith.constant 0 : index
    %476 = vector.load %arg1[%c8_471, %c0_472] : memref<9x512xf32, #tpu.memory_space<vmem>>, vector<1x512xf32>
    %477 = vector.broadcast %476 : vector<1x512xf32> to vector<16x512xf32>
    %478 = arith.mulf %475, %477 : vector<16x512xf32>
    %479 = arith.truncf %478 : vector<16x512xf32> to vector<16x512xbf16>
    %c128_473 = arith.constant 128 : index
    %c0_474 = arith.constant 0 : index
    %480 = vector.load %arg21[%c128_473, %c0_474] : memref<144x512xbf16, #tpu.memory_space<vmem>>, vector<16x512xbf16>
    tpu.vector_store %arg21[%c128_473, %c0_474], %479 {strides = array<i32>} : memref<144x512xbf16, #tpu.memory_space<vmem>>, vector<16x512xbf16>,
    %c0_475 = arith.constant 0 : index
    %c0_476 = arith.constant 0 : index
    %481 = vector.load %arg17[%c0_475, %c0_476] : memref<3x144xbf16, #tpu.memory_space<vmem>>, vector<3x144xbf16>
    %c0_477 = arith.constant 0 : index
    %c0_478 = arith.constant 0 : index
    %482 = vector.load %arg21[%c0_477, %c0_478] : memref<144x512xbf16, #tpu.memory_space<vmem>>, vector<144x512xbf16>
    %cst_479 = arith.constant dense<0.000000e+00> : vector<3x512xf32>
    %483 = tpu.matmul %481, %482, %cst_479 {dimension_numbers = #tpu.dot_dimension_numbers<[1], [0], [0], [1], [0, 0, 1, 1], [], []>} : vector<3x144xbf16>, vector<144x512xbf16>, vector<3x512xf32> -> vector<3x512xf32>
    %c0_480 = arith.constant 0 : index
    %c0_481 = arith.constant 0 : index
    %484 = vector.load %arg18[%c0_480, %c0_481] : memref<3x1xf32, #tpu.memory_space<vmem>>, vector<3x1xf32>
    %485 = vector.broadcast %484 : vector<3x1xf32> to vector<3x512xf32>
    %486 = arith.addf %483, %485 : vector<3x512xf32>
    %487 = arith.negf %486 : vector<3x512xf32>
    %488 = math.exp %487 : vector<3x512xf32>
    %cst_482 = arith.constant 1.000000e+00 : f32
    %489 = vector.broadcast %cst_482 : f32 to vector<3x512xf32>
    %490 = arith.addf %489, %488 : vector<3x512xf32>
    %491 = arith.divf %489, %490 : vector<3x512xf32>
    %c0_483 = arith.constant 0 : index
    %c0_484 = arith.constant 0 : index
    %492 = vector.load %arg19[%c0_483, %c0_484] : memref<3x512xf32, #tpu.memory_space<vmem>>, vector<3x512xf32>
    tpu.vector_store %arg19[%c0_483, %c0_484], %491 {strides = array<i32>} : memref<3x512xf32, #tpu.memory_space<vmem>>, vector<3x512xf32>,
    return
  }
  func.func @transform_0(%arg0: i32) -> (i32, i32) {
    %c0_i32 = arith.constant 0 : i32
    %c0_i32_0 = arith.constant 0 : i32
    %c0_i32_1 = arith.constant 0 : i32
    return %c0_i32, %c0_i32_0 : i32, i32
  }
  func.func @transform_1(%arg0: i32) -> (i32, i32) {
    %c0_i32 = arith.constant 0 : i32
    %c0_i32_0 = arith.constant 0 : i32
    %c0_i32_1 = arith.constant 0 : i32
    return %c0_i32, %c0_i32_0 : i32, i32
  }
  func.func @transform_2(%arg0: i32) -> (i32, i32) {
    %c0_i32 = arith.constant 0 : i32
    %c0_i32_0 = arith.constant 0 : i32
    %c0_i32_1 = arith.constant 0 : i32
    return %c0_i32, %c0_i32_0 : i32, i32
  }
  func.func @transform_3(%arg0: i32) -> (i32, i32) {
    %c0_i32 = arith.constant 0 : i32
    %c0_i32_0 = arith.constant 0 : i32
    %c0_i32_1 = arith.constant 0 : i32
    return %c0_i32, %c0_i32_0 : i32, i32
  }
  func.func @transform_4(%arg0: i32) -> (i32, i32) {
    %c0_i32 = arith.constant 0 : i32
    %c0_i32_0 = arith.constant 0 : i32
    %c0_i32_1 = arith.constant 0 : i32
    return %c0_i32, %c0_i32_0 : i32, i32
  }
  func.func @transform_5(%arg0: i32) -> (i32, i32) {
    %c0_i32 = arith.constant 0 : i32
    %c0_i32_0 = arith.constant 0 : i32
    %c0_i32_1 = arith.constant 0 : i32
    return %c0_i32, %c0_i32_0 : i32, i32
  }
  func.func @transform_6(%arg0: i32) -> (i32, i32) {
    %c0_i32 = arith.constant 0 : i32
    %c0_i32_0 = arith.constant 0 : i32
    %c0_i32_1 = arith.constant 0 : i32
    return %c0_i32, %c0_i32_0 : i32, i32
  }
  func.func @transform_7(%arg0: i32) -> (i32, i32) {
    %c0_i32 = arith.constant 0 : i32
    %c0_i32_0 = arith.constant 0 : i32
    %c0_i32_1 = arith.constant 0 : i32
    return %c0_i32, %c0_i32_0 : i32, i32
  }
  func.func @transform_8(%arg0: i32) -> (i32, i32) {
    %c0_i32 = arith.constant 0 : i32
    %c0_i32_0 = arith.constant 0 : i32
    %c0_i32_1 = arith.constant 0 : i32
    return %c0_i32, %c0_i32_0 : i32, i32
  }
  func.func @transform_9(%arg0: i32) -> (i32, i32) {
    %c0_i32 = arith.constant 0 : i32
    %c0_i32_0 = arith.constant 0 : i32
    %c0_i32_1 = arith.constant 0 : i32
    return %c0_i32, %c0_i32_0 : i32, i32
  }
  func.func @transform_10(%arg0: i32) -> (i32, i32) {
    %c0_i32 = arith.constant 0 : i32
    %c0_i32_0 = arith.constant 0 : i32
    %c0_i32_1 = arith.constant 0 : i32
    return %c0_i32, %c0_i32_0 : i32, i32
  }
  func.func @transform_11(%arg0: i32) -> (i32, i32) {
    %c0_i32 = arith.constant 0 : i32
    %c0_i32_0 = arith.constant 0 : i32
    %c0_i32_1 = arith.constant 0 : i32
    return %c0_i32, %c0_i32_0 : i32, i32
  }
  func.func @transform_12(%arg0: i32) -> (i32, i32) {
    %c0_i32 = arith.constant 0 : i32
    %c0_i32_0 = arith.constant 0 : i32
    %c0_i32_1 = arith.constant 0 : i32
    return %c0_i32, %c0_i32_0 : i32, i32
  }
  func.func @transform_13(%arg0: i32) -> (i32, i32) {
    %c0_i32 = arith.constant 0 : i32
    %c0_i32_0 = arith.constant 0 : i32
    %c0_i32_1 = arith.constant 0 : i32
    return %c0_i32, %c0_i32_0 : i32, i32
  }
  func.func @transform_14(%arg0: i32) -> (i32, i32) {
    %c0_i32 = arith.constant 0 : i32
    %c0_i32_0 = arith.constant 0 : i32
    %c0_i32_1 = arith.constant 0 : i32
    return %c0_i32, %c0_i32_0 : i32, i32
  }
  func.func @transform_15(%arg0: i32) -> (i32, i32) {
    %c0_i32 = arith.constant 0 : i32
    %c0_i32_0 = arith.constant 0 : i32
    %c0_i32_1 = arith.constant 0 : i32
    return %c0_i32, %c0_i32_0 : i32, i32
  }
  func.func @transform_16(%arg0: i32) -> (i32, i32) {
    %c0_i32 = arith.constant 0 : i32
    %c0_i32_0 = arith.constant 0 : i32
    %c0_i32_1 = arith.constant 0 : i32
    return %c0_i32, %c0_i32_0 : i32, i32
  }
  func.func @transform_17(%arg0: i32) -> (i32, i32) {
    %c0_i32 = arith.constant 0 : i32
    %c0_i32_0 = arith.constant 0 : i32
    %c0_i32_1 = arith.constant 0 : i32
    return %c0_i32, %c0_i32_0 : i32, i32
  }
  func.func @transform_18(%arg0: i32) -> (i32, i32) {
    %c0_i32 = arith.constant 0 : i32
    %c0_i32_0 = arith.constant 0 : i32
    %c0_i32_1 = arith.constant 0 : i32
    return %c0_i32, %c0_i32_0 : i32, i32
  }
}

</mosaic_0001>

<bundles_post_ra>
// kernel: style_transfer_forward.1
= control target key start
LH: loop header
LB: loop body
LE: loop exit
PB: predicated region body
PF: predicated region fallthrough
CT: control target
= control target key end

     0   :  { %s10240_s20 = smov 33   ;;  %s10241_s23 = smov 17   ;;  %vm60_vm0 = vcmask 138240   ;;  %v10248_v42 = vmov 0.0   ;;  %vm63_vm1 = vcmask 277640   ;;  %v10249_v44 = vmov 0   ;;  %s14699_s0 = inlined_call_operand.vmem [shape: f32[9,512], index: 0, kind: input, shape index: {}]   ;;  %s14700_s1 = inlined_call_operand.vmem [shape: f32[3,512], index: 1, kind: input, shape index: {}]   ;;  %s14701_s4 = inlined_call_operand.vmem [shape: bf16[4,144], index: 4, kind: input, shape index: {}]   ;;  %s14702_s2 = inlined_call_operand.vmem [shape: bf16[16,144], index: 2, kind: input, shape index: {}]   ;;  %s14703_s3 = inlined_call_operand.vmem [shape: f32[16,512], index: 3, kind: input, shape index: {}]   ;;  %s14704_s10 = inlined_call_operand.vmem [shape: bf16[4,144], index: 10, kind: input, shape index: {}]   ;;  %s14705_s5 = inlined_call_operand.vmem [shape: f32[4,1], index: 5, kind: input, shape index: {}]   ;;  %s14706_s6 = inlined_call_operand.vmem [shape: bf16[16,144], index: 6, kind: input, shape index: {}]   ;;  %s14707_s7 = inlined_call_operand.vmem [shape: f32[16,512], index: 7, kind: input, shape index: {}]   ;;  %s14708_s9 = inlined_call_operand.vmem [shape: f32[16,1], index: 9, kind: input, shape index: {}]   ;;  %s14709_s8 = inlined_call_operand.vmem [shape: bf16[16,144], index: 8, kind: input, shape index: {}]   ;;  %s14710_s11 = inlined_call_operand.vmem [shape: f32[4,1], index: 11, kind: input, shape index: {}]   ;;  %s14711_s16 = inlined_call_operand.vmem [shape: bf16[3,144], index: 16, kind: input, shape index: {}]   ;;  %s14712_s12 = inlined_call_operand.vmem [shape: bf16[16,144], index: 12, kind: input, shape index: {}]   ;;  %s14713_s13 = inlined_call_operand.vmem [shape: f32[16,512], index: 13, kind: input, shape index: {}]   ;;  %s14714_s15 = inlined_call_operand.vmem [shape: f32[16,1], index: 15, kind: input, shape index: {}]   ;;  %s14715_s14 = inlined_call_operand.vmem [shape: bf16[16,144], index: 14, kind: input, shape index: {}]   ;;  %s14716_s17 = inlined_call_operand.vmem [shape: f32[3,1], index: 17, kind: input, shape index: {}]   ;;  %s14717_s18 = inlined_call_operand.vmem [shape: f32[3,512], index: 18, kind: output, shape index: {}]  }
   0x1   :  { %14758 = sst [smem:[#allocation7_spill]] %s14699_s0  ;;  %s10242_s25 = smov 32   ;;  %61 = vst.msk [vmem:[#allocation2] sm:$0xff] %vm60_vm0, %v10248_v42  ;;  %10157 = vset.pattern.permute.xlu2 %v10249_v44  ;;  %10158 = vset.pattern.permute.xlu0 %v10249_v44  ;;  %vm129_vm2 = vcmask 1042568   ;;  %vm134_vm3 = vcmask 133120   ;;  %vm533_vm4 = vcmask 269312  }
   0x2   :  { %14759 = sst [smem:[#allocation8_spill]] %s14700_s1  ;;  %s14733_s28 = smov 34   ;;  %62 = vst.msk [vmem:[#allocation2 + $0x28] sm:$0xff] %vm60_vm0, %v10248_v42  ;;  %10159 = vset.pattern.permute.xlu1 %v10249_v44  ;;  %vm471_vm5 = vcmask 261120   ;;  %vm157_vm6 = vsmask.f32 1280 }
   0x3   :  { %14760 = sst [smem:[#allocation9_spill]] %s14701_s4  ;;  %s14744_s19 = smov 18   ;;  %64 = vst.msk [vmem:[#allocation2 + $0x20] sm:$0xff] %vm63_vm1, %v10248_v42  ;;  %vm160_vm7 = vsmask.f32 5376  ;;  %vm14736_vm8 = vcmask 277504  }
   0x4   :  { %14761 = sst [smem:[#allocation10_spill]] %s14712_s12  ;;  %s10245_s22 = smov 16   ;;  %65 = vst.msk [vmem:[#allocation2 + $0x48] sm:$0xff] %vm63_vm1, %v10248_v42  ;;  %vm156_vm9 = vcmask 1041408   ;;  %vm159_vm10 = vcmask 1045508   ;;  %vm409_vm14 = vcmask 146432  }
   0x5   :  { %s14762_s29 = sld [smem:[#allocation7_spill]]  ;;  %s10246_s24 = smov 2   ;;  %82 = vst [vmem:[#allocation3 + $0x80] sm:$0xff] %v10249_v44  ;;  %vm10477_vm11 = vmand %vm156_vm9, %vm157_vm6  ;;  %vm314_vm15 = vcmask 130048   ;;  %vm252_vm1 = vcmask 15360   ;;  %vm14750_vm6 = vcmask 908288  }
   0x6   :  { %s14763_s12 = sld [smem:[#allocation8_spill]]  ;;  %s10247_s30 = smov 1   ;;  %66 = vst [vmem:[#allocation3] sm:$0xff] %v10249_v44  ;;  %vm161_vm12 = vmand %vm159_vm10, %vm160_vm7  ;;  %vm14749_vm7 = vcmask 777216   ;;  %vm14748_vm9 = vcmask 785408   ;;  %vm14732_vm10 = vcmask 769024  }
   0x7   :  { %s14764_s4 = sld [smem:[#allocation9_spill]]  ;;  %67 = vst [vmem:[#allocation3 + $0x8] sm:$0xff] %v10249_v44  ;;  %s10250_s0 = smov 111   ;;  %vm10492_vm13 = vmor %vm161_vm12, %vm10477_vm11  ;;  %vm439_vm11 = vcmask 900096   ;;  %vm14731_vm12 = vcmask 916480  }
   0x8   :  { %68 = vst [vmem:[#allocation3 + $0x10] sm:$0xff] %v10249_v44  ;;  %s14729_s1 = smov 95   ;;  %s14721_s26 = smov 94  }
   0x9   :  { %69 = vst [vmem:[#allocation3 + $0x18] sm:$0xff] %v10249_v44  ;;  %s14737_s27 = smov 110   ;;  %s14727_s21 = smov 112  }
   0xa   :  { %70 = vst [vmem:[#allocation3 + $0x20] sm:$0xff] %v10249_v44 }
   0xb   :  { %v8546_v0 = vld [vmem:[%s14762_s29 + $0x7] ss:$8 sm:$0xf]  ;;  %v8545_v10 = vld [vmem:[%s14762_s29 + $0x6] ss:$8 sm:$0xf] }
   0xc   :  { %v103_v1 = vld [vmem:[%s14763_s12 + $0x8] sm:$0x77]  ;;  %v521_v2 = vperm.slane %v8546_v0, 0  ;;  %v102_v3 = vld [vmem:[%s14763_s12] sm:$0x77]  ;;  %v522_v4 = vperm.slane %v8546_v0, 1 }
   0xd   :  { %108 = vst [vmem:[#allocation1 + $0x10] ss:$2 sm:$0xff] %v103_v1  ;;  %v1752_v5 = vld [vmem:[%s14764_s4] sm:$0xf]  ;;  %v459_v11 = vperm.slane %v8545_v10, 0  ;;  %v524_v12 = vperm.slane %v8546_v0, 3 }
   0xe   :  { %106 = vst [vmem:[#allocation1] ss:$2 sm:$0xff] %v102_v3  ;;  %525 = vrot.lane.b32.xlu2 %v521_v2, %s10240_s20  ;;  %v523_v13 = vperm.slane %v8546_v0, 2  ;;  %v462_v14 = vperm.slane %v8545_v10, 3  ;;  %v461_v16 = vperm.slane %v8545_v10, 2  ;;  %v460_v17 = vperm.slane %v8545_v10, 1 }
   0xf   :  { %v8547_v15 = vld [vmem:[%s14762_s29 + $0x20] ss:$8 sm:$0xf]  ;;  %v8544_v19 = vld [vmem:[%s14762_s29 + $0x5] ss:$8 sm:$0xf] }
  0x10   :  { %v585_v18 = vperm.slane %v8547_v15, 2  ;;  %v584_v20 = vperm.slane %v8547_v15, 1  ;;  %v583_v21 = vperm.slane %v8547_v15, 0  ;;  %v398_v22 = vperm.slane %v8544_v19, 1  ;;  %71 = vst [vmem:[#allocation3 + $0x28] sm:$0xff] %v10249_v44  ;;  %s14742_s12 = smov 96  }
  0x11   :  { %v8543_v23 = vld [vmem:[%s14762_s29 + $0x3] ss:$8 sm:$0xf]  ;;  %v397_v24 = vperm.slane %v8544_v19, 0  ;;  %v586_v25 = vperm.slane %v8547_v15, 3  ;;  %v400_v27 = vperm.slane %v8544_v19, 3 }
  0x12   :  { %v302_v26 = vperm.slane %v8543_v23, 0  ;;  %v399_v28 = vperm.slane %v8544_v19, 2  ;;  %v305_v29 = vperm.slane %v8543_v23, 3  ;;  %v304_v30 = vperm.slane %v8543_v23, 2  ;;  %72 = vst [vmem:[#allocation3 + $0x30] sm:$0xff] %v10249_v44  ;;  %s14725_s4 = smov 126  }
  0x13   :  { %v303_v31 = vperm.slane %v8543_v23, 1  ;;  %v8542_v32 = vld [vmem:[%s14762_s29 + $0x2] ss:$8 sm:$0xf]  ;;  %73 = vst [vmem:[#allocation3 + $0x38] sm:$0xff] %v10249_v44 }
  0x14   :  { %v111_v6 = vld.sshfl [vmem:[#allocation1 + $0x10] sm:$0xff pattern:$0x75316420]  ;;  %v112_v7 = vld.sshfl [vmem:[#allocation1 + $0x18] sm:$0xff pattern:$0x75316420] }
  0x15   :  { %117 = vrot.lane.b32.xlu1 %v111_v6, %s10241_s23  ;;  %v109_v8 = vld.sshfl [vmem:[#allocation1] sm:$0xff pattern:$0x75316420]  ;;  %v110_v9 = vld.sshfl [vmem:[#allocation1 + $0x8] sm:$0xff pattern:$0x75316420] }
  0x16   :  { %113 = vrot.lane.b32.xlu0 %v109_v8, %s10241_s23  ;;  %1796 = vst [vmem:[#allocation1] ss:$4 sm:$0xff] %v1752_v5  ;;  %527 = vrot.lane.b32.xlu2 %v522_v4, %s10240_s20  ;;  %v242_v33 = vperm.slane %v8542_v32, 2  ;;  %v241_v34 = vperm.slane %v8542_v32, 1  ;;  %v240_v35 = vperm.slane %v8542_v32, 0  ;;  %v243_v39 = vperm.slane %v8542_v32, 3 }
  0x17   :  { %v8541_v36 = vld [vmem:[%s14762_s29 + $0x1] ss:$8 sm:$0xf]  ;;  %74 = vst [vmem:[#allocation3 + $0x40] sm:$0xff] %v10249_v44 }
  0x18   :  { %v178_v37 = vperm.slane %v8541_v36, 1  ;;  %v177_v38 = vperm.slane %v8541_v36, 0  ;;  %v180_v40 = vperm.slane %v8541_v36, 3  ;;  %v179_v41 = vperm.slane %v8541_v36, 2  ;;  %75 = vst [vmem:[#allocation3 + $0x48] sm:$0xff] %v10249_v44 }
  0x19   :  { %76 = vst [vmem:[#allocation3 + $0x50] sm:$0xff] %v10249_v44 }
  0x1a   :  { %77 = vst [vmem:[#allocation3 + $0x58] sm:$0xff] %v10249_v44 }
  0x1b   :  { %78 = vst [vmem:[#allocation3 + $0x60] sm:$0xff] %v10249_v44 }
  0x1c   :  { %79 = vst [vmem:[#allocation3 + $0x68] sm:$0xff] %v10249_v44 }
  0x1d   :  { %119 = vrot.lane.b32.xlu1 %v112_v7, %s10241_s23  ;;  %80 = vst [vmem:[#allocation3 + $0x70] sm:$0xff] %v10249_v44 }
  0x1e   :  { %115 = vrot.lane.b32.xlu0 %v110_v9, %s10241_s23  ;;  %463 = vrot.lane.b32.xlu2 %v459_v11, %s10242_s25  ;;  %81 = vst [vmem:[#allocation3 + $0x78] sm:$0xff] %v10249_v44  ;;  %v140_v11 = vld [vmem:[%s14762_s29] ss:$8 sm:$0xf] }
  0x1f   :  { %83 = vst [vmem:[#allocation3 + $0x88] sm:$0xff] %v10249_v44  ;;  %v142_v19 = vperm.slane %v140_v11, 0 }
  0x20   :  { %84 = vst [vmem:[#allocation3 + $0x90] sm:$0xff] %v10249_v44 }
  0x21   :  { %85 = vst [vmem:[#allocation3 + $0x98] sm:$0xff] %v10249_v44 }
  0x22   :  { %86 = vst [vmem:[#allocation3 + $0xa0] sm:$0xff] %v10249_v44 }
  0x23   :  { %87 = vst [vmem:[#allocation3 + $0xa8] sm:$0xff] %v10249_v44 }
  0x24   :  { %88 = vst [vmem:[#allocation3 + $0xb0] sm:$0xff] %v10249_v44 }
  0x25   :  { %531 = vrot.lane.b32.xlu1 %v524_v12, %s10240_s20  ;;  %89 = vst [vmem:[#allocation3 + $0xb8] sm:$0xff] %v10249_v44 }
  0x26   :  { %529 = vrot.lane.b32.xlu0 %v523_v13, %s10240_s20  ;;  %469 = vrot.lane.b32.xlu2 %v462_v14, %s10242_s25  ;;  %90 = vst [vmem:[#allocation3 + $0xc0] sm:$0xff] %v10249_v44 }
  0x27   :  { %91 = vst [vmem:[#allocation3 + $0xc8] sm:$0xff] %v10249_v44 }
  0x28   :  { %92 = vst [vmem:[#allocation3 + $0xd0] sm:$0xff] %v10249_v44 }
  0x29   :  { %93 = vst [vmem:[#allocation3 + $0xd8] sm:$0xff] %v10249_v44 }
  0x2a   :  { %94 = vst [vmem:[#allocation3 + $0xe0] sm:$0xff] %v10249_v44 }
  0x2b   :  { %95 = vst [vmem:[#allocation3 + $0xe8] sm:$0xff] %v10249_v44 }
  0x2c   :  { %96 = vst [vmem:[#allocation3 + $0xf0] sm:$0xff] %v10249_v44 }
  0x2d   :  { %467 = vrot.lane.b32.xlu1 %v461_v16, %s10242_s25  ;;  %97 = vst [vmem:[#allocation3 + $0xf8] sm:$0xff] %v10249_v44 }
  0x2e   :  { %465 = vrot.lane.b32.xlu0 %v460_v17, %s10242_s25  ;;  %591 = vrot.lane.b32.xlu2 %v585_v18, %s14733_s28  ;;  %98 = vst [vmem:[#allocation3 + $0x100] sm:$0xff] %v10249_v44 }
  0x2f   :  { %99 = vst [vmem:[#allocation3 + $0x108] sm:$0xff] %v10249_v44 }
  0x30   :  { %100 = vst [vmem:[#allocation3 + $0x110] sm:$0xff] %v10249_v44 }
  0x31   :  { %101 = vst [vmem:[#allocation3 + $0x118] sm:$0xff] %v10249_v44 }
  0x35   :  { %589 = vrot.lane.b32.xlu1 %v584_v20, %s14733_s28  ;;  %v145_v20 = vperm.slane %v140_v11, 3 }
  0x36   :  { %587 = vrot.lane.b32.xlu0 %v583_v21, %s14733_s28  ;;  %403 = vrot.lane.b32.xlu2 %v398_v22, %s14744_s19 }
  0x3d   :  { %401 = vrot.lane.b32.xlu1 %v397_v24, %s14744_s19 }
  0x3e   :  { %593 = vrot.lane.b32.xlu0 %v586_v25, %s14733_s28  ;;  %306 = vrot.lane.b32.xlu2 %v302_v26, %s10245_s22  ;;  %v143_v26 = vperm.slane %v140_v11, 1 }
  0x45   :  { %407 = vrot.lane.b32.xlu1 %v400_v27, %s14744_s19 }
  0x46   :  { %405 = vrot.lane.b32.xlu0 %v399_v28, %s14744_s19  ;;  %312 = vrot.lane.b32.xlu2 %v305_v29, %s10245_s22  ;;  %v144_v29 = vperm.slane %v140_v11, 2 }
  0x4d   :  { %310 = vrot.lane.b32.xlu1 %v304_v30, %s10245_s22 }
  0x4e   :  { %308 = vrot.lane.b32.xlu0 %v303_v31, %s10245_s22  ;;  %248 = vrot.lane.b32.xlu2 %v242_v33, %s10246_s24 }
  0x55   :  { %246 = vrot.lane.b32.xlu1 %v241_v34, %s10246_s24 }
  0x56   :  { %244 = vrot.lane.b32.xlu0 %v240_v35, %s10246_s24  ;;  %183 = vrot.lane.b32.xlu2 %v178_v37, %s10247_s30 }
  0x5d   :  { %181 = vrot.lane.b32.xlu1 %v177_v38, %s10247_s30 }
  0x5e   :  { %250 = vrot.lane.b32.xlu0 %v243_v39, %s10246_s24 }
  0x65   :  { %187 = vrot.lane.b32.xlu1 %v180_v40, %s10247_s30 }
  0x66   :  { %185 = vrot.lane.b32.xlu0 %v179_v41, %s10247_s30 }
  0x68   :  { %v10417_v43 = vpop.permute.xlu2 %525 }
  0x70   :  { %v528_v45 = vpop.permute.xlu2 %527 }
  0x71   :  { %v534_v8 = vsel %vm533_vm4, %v10417_v43, %v528_v45 }
  0x78   :  { %v10434_v48 = vpop.permute.xlu2 %463 }
  0x80   :  { %v470_v54 = vpop.permute.xlu2 %469 }
  0x87   :  { %v118_v46 = vpop.permute.xlu1 %117 }
  0x88   :  { %v114_v47 = vpop.permute.xlu0 %113  ;;  %v10457_v18 = vpop.permute.xlu2 %591 }
  0x89   :  { %130 = vst.msk [vmem:[#allocation2] sm:$0x7] %vm129_vm2, %v114_v47  ;;  %vm14741_vm2 = vcmask 7168  }
  0x8f   :  { %v120_v49 = vpop.permute.xlu1 %119 }
  0x90   :  { %v123_v50 = vsel %vm60_vm0, %v118_v46, %v120_v49  ;;  %135 = vst.msk [vmem:[#allocation2 + $0x20] sm:$0x7] %vm134_vm3, %v120_v49  ;;  %v116_v51 = vpop.permute.xlu0 %115  ;;  %v356_v60 = vld [vmem:[#allocation2] sm:$0x7]  ;;  %vm218_vm3 = vcmask 1043456  }
  0x91   :  { %133 = vst [vmem:[#allocation2 + $0x18] sm:$0x7] %v123_v50  ;;  %v121_v52 = vsel %vm60_vm0, %v114_v47, %v116_v51  ;;  %v122_v53 = vsel %vm60_vm0, %v116_v51, %v118_v46  ;;  %v513_v9 = vld [vmem:[#allocation2] sm:$0x7] }
  0x92   :  { %131 = vst [vmem:[#allocation2 + $0x8] sm:$0x7] %v121_v52  ;;  %v542_v17 = vmul.f32 %v10417_v43, %v513_v9  ;;  %v451_v28 = vld [vmem:[#allocation2] sm:$0x7] }
  0x93   :  { %132 = vst [vmem:[#allocation2 + $0x10] sm:$0x7] %v122_v53  ;;  %v136_v40 = vld [vmem:[#allocation2] sm:$0x7]  ;;  %v480_v49 = vmul.f32 %v10434_v48, %v451_v28 }
  0x94   :  { %v575_v41 = vld [vmem:[#allocation2] sm:$0x7] }
  0x97   :  { %v517_v55 = vld [vmem:[#allocation2 + $0x20] sm:$0x7]  ;;  %v532_v56 = vpop.permute.xlu1 %531 }
  0x98   :  { %v546_v57 = vmul.f32 %v532_v56, %v517_v55  ;;  %v530_v58 = vpop.permute.xlu0 %529  ;;  %v359_v59 = vld [vmem:[#allocation2 + $0x18] sm:$0x7]  ;;  %v455_v7 = vld [vmem:[#allocation2 + $0x20] sm:$0x7]  ;;  %v150_v55 = vmul.f32 %v142_v19, %v136_v40 }
  0x99   :  { %v357_v61 = vld [vmem:[#allocation2 + $0x8] sm:$0x7]  ;;  %v516_v4 = vld [vmem:[#allocation2 + $0x18] sm:$0x7]  ;;  %v535_v5 = vsel %vm533_vm4, %v528_v45, %v530_v58  ;;  %v536_v6 = vsel %vm533_vm4, %v530_v58, %v532_v56  ;;  %v484_v15 = vmul.f32 %v470_v54, %v455_v7  ;;  %v404_v56 = vpop.permute.xlu2 %403  ;;  %v393_v19 = vld [vmem:[#allocation2 + $0x20] sm:$0x7] }
  0x9a   :  { %v358_v62 = vld [vmem:[#allocation2 + $0x10] sm:$0x7]  ;;  %v361_v63 = vpack.c.bf16 %v357_v61, %v356_v60  ;;  %v549_v1 = vpack.c.bf16 %v546_v57, %v546_v57  ;;  %v514_v2 = vld [vmem:[#allocation2 + $0x8] sm:$0x7]  ;;  %v545_v13 = vmul.f32 %v536_v6, %v516_v4  ;;  %v454_v30 = vld [vmem:[#allocation2 + $0x18] sm:$0x7] }
  0x9b   :  { %v362_v0 = vpack.c.bf16 %v359_v59, %v358_v62  ;;  %v515_v3 = vld [vmem:[#allocation2 + $0x10] sm:$0x7]  ;;  %v543_v10 = vmul.f32 %v534_v8, %v514_v2  ;;  %v487_v25 = vpack.c.bf16 %v484_v15, %v484_v15  ;;  %v137_v32 = vld [vmem:[#allocation2 + $0x8] sm:$0x7]  ;;  %v139_v36 = vld [vmem:[#allocation2 + $0x18] sm:$0x7] }
  0x9c   :  { %367 = vrot.lane.b32.xlu2 %v361_v63, %s10250_s0  ;;  %557 = vrot.lane.b32.xlu1 %v549_v1, %s14729_s1  ;;  %v544_v12 = vmul.f32 %v535_v5, %v515_v3  ;;  %v453_v31 = vld [vmem:[#allocation2 + $0x10] sm:$0x7]  ;;  %v452_v34 = vld [vmem:[#allocation2 + $0x8] sm:$0x7]  ;;  %v151_v43 = vmul.f32 %v143_v26, %v137_v32  ;;  %v153_v50 = vmul.f32 %v145_v20, %v139_v36  ;;  %v579_v1 = vld [vmem:[#allocation2 + $0x20] sm:$0x7] }
  0x9d   :  { %369 = vrot.lane.b32.xlu0 %v362_v0, %s10250_s0  ;;  %v547_v21 = vpack.c.bf16 %v543_v10, %v542_v17  ;;  %v138_v37 = vld [vmem:[#allocation2 + $0x10] sm:$0x7]  ;;  %v576_v45 = vld [vmem:[#allocation2 + $0x8] sm:$0x7]  ;;  %v166_v0 = vld [vmem:[#allocation3 + $0x8] sm:$0x33] }
  0x9e   :  { %v548_v24 = vpack.c.bf16 %v545_v13, %v544_v12  ;;  %v152_v51 = vmul.f32 %v144_v29, %v138_v37  ;;  %v154_v58 = vpack.c.bf16 %v151_v43, %v150_v55  ;;  %v163_v61 = vld [vmem:[#allocation3] sm:$0x33]  ;;  %v578_v4 = vld [vmem:[#allocation2 + $0x18] sm:$0x7]  ;;  %v389_v15 = vld [vmem:[#allocation2] sm:$0x7] }
  0x9f   :  { %v468_v14 = vpop.permute.xlu1 %467  ;;  %v577_v3 = vld [vmem:[#allocation2 + $0x10] sm:$0x7]  ;;  %v294_v36 = vld [vmem:[#allocation2] sm:$0x7]  ;;  %v233_v55 = vld [vmem:[#allocation2 + $0x8] sm:$0x7] }
  0xa0   :  { %v466_v16 = vpop.permute.xlu0 %465  ;;  %v474_v22 = vsel %vm471_vm5, %v468_v14, %v470_v54  ;;  %v155_v59 = vpack.c.bf16 %v153_v50, %v152_v51  ;;  %v164_v7 = vsel %vm10492_vm13, %v154_v58, %v163_v61  ;;  %v8550_v60 = vld [vmem:[%s14702_s2] sm:$0xf] }
  0xa1   :  { %v473_v23 = vsel %vm471_vm5, %v466_v16, %v468_v14  ;;  %v472_v27 = vsel %vm471_vm5, %v10434_v48, %v466_v16  ;;  %v483_v33 = vmul.f32 %v474_v22, %v454_v30  ;;  %165 = vst [vmem:[#allocation3] sm:$0x33] %v164_v7  ;;  %v307_v14 = vpop.permute.xlu2 %306  ;;  %v390_v16 = vld [vmem:[#allocation2 + $0x8] sm:$0x7] }
  0xa2   :  { %v482_v35 = vmul.f32 %v473_v23, %v453_v31  ;;  %v481_v38 = vmul.f32 %v472_v27, %v452_v34  ;;  %v167_v10 = vsel %vm10492_vm13, %v155_v59, %v166_v0  ;;  %v391_v23 = vld [vmem:[#allocation2 + $0x10] sm:$0x7]  ;;  %v298_v59 = vld [vmem:[#allocation2 + $0x20] sm:$0x7] }
  0xa3   :  { %168 = vst [vmem:[#allocation3 + $0x8] sm:$0x33] %v167_v10  ;;  %v169_v10 = vld [vmem:[#allocation2] sm:$0x7] }
  0xa4   :  { %553 = vrot.lane.b32.xlu2 %v547_v21, %s14729_s1  ;;  %495 = vrot.lane.b32.xlu1 %v487_v25, %s14742_s12  ;;  %v486_v53 = vpack.c.bf16 %v483_v33, %v482_v35  ;;  %v485_v57 = vpack.c.bf16 %v481_v38, %v480_v49  ;;  %v297_v33 = vld [vmem:[#allocation2 + $0x18] sm:$0x7]  ;;  %v295_v38 = vld [vmem:[#allocation2 + $0x8] sm:$0x7] }
  0xa5   :  { %555 = vrot.lane.b32.xlu0 %v548_v24, %s14729_s1  ;;  %v392_v24 = vld [vmem:[#allocation2 + $0x18] sm:$0x7]  ;;  %s14771_s1 = smov 112  }
  0xa7   :  { %v590_v39 = vpop.permute.xlu1 %589 }
  0xa8   :  { %v588_v42 = vpop.permute.xlu0 %587  ;;  %v597_v62 = vsel %vm14736_vm8, %v590_v39, %v10457_v18 }
  0xa9   :  { %v596_v46 = vsel %vm14736_vm8, %v588_v42, %v590_v39  ;;  %v604_v47 = vmul.f32 %v588_v42, %v575_v41  ;;  %v606_v8 = vmul.f32 %v597_v62, %v577_v3  ;;  %v313_v31 = vpop.permute.xlu2 %312  ;;  %v296_v39 = vld [vmem:[#allocation2 + $0x10] sm:$0x7]  ;;  %v323_v42 = vmul.f32 %v307_v14, %v294_v36 }
  0xaa   :  { %v605_v52 = vmul.f32 %v596_v46, %v576_v45  ;;  %v360_v46 = vld [vmem:[#allocation2 + $0x20] sm:$0x7] }
  0xab   :  { %v363_v50 = vpack.c.bf16 %v360_v46, %v360_v46 }
  0xac   :  { %493 = vrot.lane.b32.xlu2 %v486_v53, %s14742_s12  ;;  %v609_v48 = vpack.c.bf16 %v605_v52, %v604_v47  ;;  %491 = vrot.lane.b32.xlu1 %v485_v57, %s14742_s12  ;;  %v232_v53 = vld [vmem:[#allocation2] sm:$0x7] }
  0xae   :  { %615 = vrot.lane.b32.xlu0 %v609_v48, %s14721_s26 }
  0xaf   :  { %v402_v63 = vpop.permute.xlu1 %401 }
  0xb0   :  { %v594_v2 = vpop.permute.xlu0 %593  ;;  %v410_v12 = vsel %vm409_vm14, %v402_v63, %v404_v56  ;;  %v418_v17 = vmul.f32 %v402_v63, %v389_v15  ;;  %v327_v63 = vmul.f32 %v313_v31, %v298_v59 }
  0xb1   :  { %v598_v5 = vsel %vm14736_vm8, %v10457_v18, %v594_v2  ;;  %v608_v6 = vmul.f32 %v594_v2, %v579_v1  ;;  %v419_v18 = vmul.f32 %v410_v12, %v390_v16  ;;  %v249_v52 = vpop.permute.xlu2 %248  ;;  %v234_v1 = vld [vmem:[#allocation2 + $0x10] sm:$0x7]  ;;  %v235_v2 = vld [vmem:[#allocation2 + $0x18] sm:$0x7] }
  0xb2   :  { %v607_v9 = vmul.f32 %v598_v5, %v578_v4  ;;  %v171_v16 = vld [vmem:[#allocation2 + $0x10] sm:$0x7] }
  0xb3   :  { %v611_v11 = vpack.c.bf16 %v608_v6, %v608_v6  ;;  %v423_v29 = vpack.c.bf16 %v419_v18, %v418_v17  ;;  %v172_v18 = vld [vmem:[#allocation2 + $0x18] sm:$0x7] }
  0xb4   :  { %v610_v13 = vpack.c.bf16 %v607_v9, %v606_v8  ;;  %v330_v8 = vpack.c.bf16 %v327_v63, %v327_v63 }
  0xb5   :  { %619 = vrot.lane.b32.xlu2 %v611_v11, %s14721_s26  ;;  %v170_v11 = vld [vmem:[#allocation2 + $0x8] sm:$0x7] }
  0xb6   :  { %617 = vrot.lane.b32.xlu1 %v610_v13, %s14721_s26  ;;  %s14723_s26 = smov 127  }
  0xb7   :  { %v408_v20 = vpop.permute.xlu1 %407 }
  0xb8   :  { %v406_v21 = vpop.permute.xlu0 %405  ;;  %v422_v22 = vmul.f32 %v408_v20, %v393_v19 }
  0xb9   :  { %v411_v44 = vsel %vm409_vm14, %v404_v56, %v406_v21  ;;  %v412_v25 = vsel %vm409_vm14, %v406_v21, %v408_v20  ;;  %v184_v6 = vpop.permute.xlu2 %183 }
  0xba   :  { %v420_v26 = vmul.f32 %v411_v44, %v391_v23  ;;  %v421_v27 = vmul.f32 %v412_v25, %v392_v24  ;;  %v425_v28 = vpack.c.bf16 %v422_v22, %v422_v22  ;;  %v236_v44 = vld [vmem:[#allocation2 + $0x20] sm:$0x7] }
  0xbb   :  { %v173_v24 = vld [vmem:[#allocation2 + $0x20] sm:$0x7] }
  0xbc   :  { %v424_v30 = vpack.c.bf16 %v421_v27, %v420_v26 }
  0xbd   :  { %429 = vrot.lane.b32.xlu2 %v423_v29, %s14737_s27 }
  0xbe   :  { %431 = vrot.lane.b32.xlu0 %v424_v30, %s14737_s27  ;;  %433 = vrot.lane.b32.xlu1 %v425_v28, %s14737_s27 }
  0xbf   :  { %v311_v32 = vpop.permute.xlu1 %310 }
  0xc0   :  { %v317_v34 = vsel %vm314_vm15, %v311_v32, %v313_v31  ;;  %v309_v35 = vpop.permute.xlu0 %308 }
  0xc1   :  { %v326_v37 = vmul.f32 %v317_v34, %v297_v33  ;;  %v315_v40 = vsel %vm314_vm15, %v307_v14, %v309_v35  ;;  %v316_v41 = vsel %vm314_vm15, %v309_v35, %v311_v32 }
  0xc2   :  { %v324_v43 = vmul.f32 %v315_v40, %v295_v38  ;;  %v325_v45 = vmul.f32 %v316_v41, %v296_v39 }
  0xc4   :  { %v329_v47 = vpack.c.bf16 %v326_v37, %v325_v45  ;;  %v328_v49 = vpack.c.bf16 %v324_v43, %v323_v42  ;;  %v383_v37 = vld [vmem:[#allocation3 + $0x80] sm:$0x33] }
  0xc5   :  { %v569_v45 = vld [vmem:[#allocation3 + $0xe0] sm:$0x33] }
  0xc6   :  { %336 = vrot.lane.b32.xlu0 %v329_v47, %s14727_s21  ;;  %334 = vrot.lane.b32.xlu2 %v328_v49, %s14727_s21 }
  0xc7   :  { %371 = vrot.lane.b32.xlu1 %v363_v50, %s10250_s0  ;;  %v247_v51 = vpop.permute.xlu1 %246 }
  0xc8   :  { %v245_v54 = vpop.permute.xlu0 %244  ;;  %v254_v61 = vsel %vm252_vm1, %v247_v51, %v249_v52 }
  0xc9   :  { %v253_v56 = vsel %vm252_vm1, %v245_v54, %v247_v51  ;;  %v261_v57 = vmul.f32 %v245_v54, %v232_v53  ;;  %v263_v4 = vmul.f32 %v254_v61, %v234_v1  ;;  %v572_v51 = vld [vmem:[#allocation3 + $0xe8] sm:$0x33]  ;;  %v507_v1 = vld [vmem:[#allocation3 + $0xc0] sm:$0x33] }
  0xca   :  { %v262_v48 = vmul.f32 %v253_v56, %v233_v55  ;;  %v510_v55 = vld [vmem:[#allocation3 + $0xc8] sm:$0x33] }
  0xcc   :  { %v266_v58 = vpack.c.bf16 %v262_v48, %v261_v57 }
  0xce   :  { %272 = vrot.lane.b32.xlu2 %v266_v58, %s14725_s4 }
  0xcf   :  { %v182_v62 = vpop.permute.xlu1 %181 }
  0xd0   :  { %v251_v0 = vpop.permute.xlu0 %250  ;;  %v190_v9 = vsel %vm14741_vm2, %v182_v62, %v184_v6  ;;  %v198_v13 = vmul.f32 %v182_v62, %v169_v10 }
  0xd1   :  { %v255_v3 = vsel %vm252_vm1, %v249_v52, %v251_v0  ;;  %v199_v14 = vmul.f32 %v190_v9, %v170_v11  ;;  %v265_v25 = vmul.f32 %v251_v0, %v236_v44  ;;  %v9869_v44 = vld [vmem:[#allocation3 + $0xcc] sm:$0xf0] }
  0xd2   :  { %v264_v5 = vmul.f32 %v255_v3, %v235_v2  ;;  %v9873_v3 = vld [vmem:[#allocation3 + $0xec] sm:$0xf0] }
  0xd3   :  { %v203_v22 = vpack.c.bf16 %v199_v14, %v198_v13  ;;  %v268_v27 = vpack.c.bf16 %v265_v25, %v265_v25  ;;  %v9870_v14 = vld [vmem:[#allocation3 + $0xd4] sm:$0xf0] }
  0xd4   :  { %v267_v7 = vpack.c.bf16 %v264_v5, %v263_v4  ;;  %v9874_v5 = vld [vmem:[#allocation3 + $0xf4] sm:$0xf0] }
  0xd6   :  { %274 = vrot.lane.b32.xlu0 %v267_v7, %s14725_s4  ;;  %338 = vrot.lane.b32.xlu2 %v330_v8, %s14727_s21  ;;  %s14773_s21 = smov 127  }
  0xd7   :  { %v188_v12 = vpop.permute.xlu1 %187 }
  0xd8   :  { %v186_v15 = vpop.permute.xlu0 %185  ;;  %v202_v26 = vmul.f32 %v188_v12, %v173_v24 }
  0xd9   :  { %v191_v17 = vsel %vm14741_vm2, %v184_v6, %v186_v15  ;;  %v192_v19 = vsel %vm14741_vm2, %v186_v15, %v188_v12 }
  0xda   :  { %v200_v20 = vmul.f32 %v191_v17, %v171_v16  ;;  %v201_v21 = vmul.f32 %v192_v19, %v172_v18  ;;  %v205_v28 = vpack.c.bf16 %v202_v26, %v202_v26  ;;  %v631_v19 = vld [vmem:[#allocation3 + $0x100] sm:$0x33] }
  0xdc   :  { %v204_v23 = vpack.c.bf16 %v201_v21, %v200_v20  ;;  %v634_v20 = vld [vmem:[#allocation3 + $0x108] sm:$0x33] }
  0xde   :  { %209 = vrot.lane.b32.xlu0 %v203_v22, %s14723_s26  ;;  %211 = vrot.lane.b32.xlu1 %v204_v23, %s14723_s26 }
  0xe6   :  { %276 = vrot.lane.b32.xlu0 %v268_v27, %s14725_s4  ;;  %213 = vrot.lane.b32.xlu1 %v205_v28, %s14723_s26  ;;  %s14769_s4 = smov 95   ;;  %s14772_s26 = smov 126  }
  0xf6   :  { %v368_v29 = vpop.permute.xlu2 %367 }
  0xf7   :  { %v373_v34 = vrot.slane %v368_v29, 4 }
  0xfe   :  { %v554_v30 = vpop.permute.xlu2 %553 }
  0xff   :  { %v559_v42 = vrot.slane %v554_v30, 4 }
 0x106   :  { %v494_v31 = vpop.permute.xlu2 %493 }
 0x107   :  { %v498_v50 = vrot.slane %v494_v31, 4 }
 0x10e   :  { %v558_v36 = vpop.permute.xlu1 %557 }
 0x10f   :  { %v10537_v32 = vpop.permute.xlu0 %369  ;;  %v10539_v33 = vpop.permute.xlu2 %619  ;;  %v561_v43 = vrot.slane %v558_v36, 4 }
 0x110   :  { %v374_v35 = vrot.slane %v10537_v32, 4  ;;  %v623_v16 = vrot.slane %v10539_v33, 4 }
 0x112   :  { %v376_v38 = vsel %vm218_vm3, %v373_v34, %v374_v35 }
 0x113   :  { %v378_v39 = vsel %vm14750_vm6, %v368_v29, %v376_v38  ;;  %v445_v38 = vld [vmem:[#allocation3 + $0xa0] sm:$0x33] }
 0x114   :  { %v384_v40 = vsel %vm10492_vm13, %v378_v39, %v383_v37  ;;  %v448_v39 = vld [vmem:[#allocation3 + $0xa8] sm:$0x33] }
 0x115   :  { %385 = vst [vmem:[#allocation3 + $0x80] sm:$0x33] %v384_v40  ;;  %v8672_v40 = vld [vmem:[#allocation3 + $0xf0] sm:$0xf0] }
 0x116   :  { %v496_v49 = vpop.permute.xlu1 %495 }
 0x117   :  { %v556_v41 = vpop.permute.xlu0 %555  ;;  %v10548_v47 = vpop.permute.xlu2 %429  ;;  %v499_v52 = vrot.slane %v496_v49, 4 }
 0x118   :  { %v560_v46 = vrot.slane %v556_v41, 4  ;;  %v435_v34 = vrot.slane %v10548_v47, 4 }
 0x119   :  { %v503_v48 = vsel %vm218_vm3, %v498_v50, %v499_v52  ;;  %v9841_v52 = vld [vmem:[%s14702_s2 + $0x4] sm:$0xf] }
 0x11a   :  { %v562_v53 = vsel %vm218_vm3, %v559_v42, %v560_v46  ;;  %v565_v54 = vsel %vm218_vm3, %v560_v46, %v561_v43  ;;  %v504_v61 = vsel %vm14748_vm9, %v494_v31, %v503_v48  ;;  %v9877_v43 = vld [vmem:[#allocation3 + $0x10c] sm:$0xf0]  ;;  %v9878_v46 = vld [vmem:[#allocation3 + $0x114] sm:$0xf0] }
 0x11b   :  { %v564_v56 = vsel %vm14749_vm7, %v554_v30, %v562_v53  ;;  %v566_v57 = vsel %vm14749_vm7, %v556_v41, %v565_v54  ;;  %v511_v62 = vsel %vm10492_vm13, %v504_v61, %v510_v55  ;;  %v8552_v53 = vld [vmem:[%s14702_s2 + $0x8] sm:$0xf0] }
 0x11c   :  { %v570_v58 = vsel %vm10492_vm13, %v564_v56, %v569_v45  ;;  %v573_v59 = vsel %vm10492_vm13, %v566_v57, %v572_v51  ;;  %512 = vst [vmem:[#allocation3 + $0xc8] sm:$0x33] %v511_v62  ;;  %v8688_v45 = vld [vmem:[#allocation3 + $0x110] sm:$0xf0] }
 0x11d   :  { %571 = vst [vmem:[#allocation3 + $0xe0] sm:$0x33] %v570_v58 }
 0x11e   :  { %574 = vst [vmem:[#allocation3 + $0xe8] sm:$0x33] %v573_v59  ;;  %v492_v63 = vpop.permute.xlu1 %491 }
 0x11f   :  { %v497_v0 = vrot.slane %v492_v63, 4 }
 0x120   :  { %v10562_v2 = vpop.permute.xlu2 %334  ;;  %v616_v11 = vpop.permute.xlu0 %615 }
 0x121   :  { %v500_v4 = vsel %vm218_vm3, %v497_v0, %v498_v50  ;;  %v621_v17 = vrot.slane %v616_v11, 4 }
 0x122   :  { %v502_v6 = vsel %vm14748_vm9, %v492_v63, %v500_v4  ;;  %v10595_v63 = vor.u32 %v9841_v52, %v8552_v53  ;;  %v8632_v52 = vld [vmem:[#allocation3 + $0x98] sm:$0xf0] }
 0x123   :  { %v508_v8 = vsel %vm10492_vm13, %v502_v6, %v507_v1  ;;  %v8662_v13 = vld [vmem:[#allocation3 + $0xc8] sm:$0xf]  ;;  %v8680_v1 = vld [vmem:[#allocation3 + $0xf8] sm:$0xf0]  ;;  %v340_v6 = vrot.slane %v10562_v2, 4 }
 0x124   :  { %v8670_v7 = vld [vmem:[#allocation3 + $0xe0] sm:$0xf]  ;;  %509 = vst [vmem:[#allocation3 + $0xc0] sm:$0x33] %v508_v8  ;;  %v8663_v21 = vor.u32 %v9870_v14, %v8662_v13  ;;  %v9871_v51 = vld [vmem:[#allocation3 + $0xe4] sm:$0xf] }
 0x125   :  { %v8671_v9 = vor.u32 %v9873_v3, %v8670_v7  ;;  %v8678_v10 = vld [vmem:[#allocation3 + $0xe8] sm:$0xf]  ;;  %v8675_v61 = vor.u32 %v9871_v51, %v8672_v40  ;;  %v9872_v0 = vld [vmem:[#allocation3 + $0xec] sm:$0xf]  ;;  %v350_v8 = vld [vmem:[#allocation3 + $0x60] sm:$0x33] }
 0x126   :  { %v8679_v12 = vor.u32 %v9874_v5, %v8678_v10  ;;  %v8656_v5 = vld [vmem:[#allocation3 + $0xd0] sm:$0xf0]  ;;  %v386_v13 = vld [vmem:[#allocation3 + $0x88] sm:$0x33]  ;;  %v8648_v40 = vld [vmem:[#allocation3 + $0xb8] sm:$0xf0] }
 0x127   :  { %875 = vmatpush.bf16.msra.mxu0 %v8671_v9 }
 0x128   :  { %931 = vmatpush.bf16.msra.mxu1 %v8679_v12  ;;  %v618_v15 = vpop.permute.xlu1 %617  ;;  %v10571_v24 = vpop.permute.xlu2 %272  ;;  %v353_v12 = vld [vmem:[#allocation3 + $0x68] sm:$0x33] }
 0x129   :  { %v622_v18 = vrot.slane %v618_v15, 4 }
 0x12b   :  { %v624_v22 = vsel %vm218_vm3, %v621_v17, %v622_v18  ;;  %v627_v23 = vsel %vm218_vm3, %v622_v18, %v623_v16  ;;  %v8654_v29 = vld [vmem:[#allocation3 + $0xc0] sm:$0xf]  ;;  %v9867_v4 = vld [vmem:[#allocation3 + $0xc4] sm:$0xf] }
 0x12c   :  { %v626_v25 = vsel %vm14732_vm10, %v616_v11, %v624_v22  ;;  %v628_v26 = vsel %vm14732_vm10, %v618_v15, %v627_v23  ;;  %932 = vmatpush.bf16.msra.mxu1 %v8663_v21  ;;  %v8655_v30 = vor.u32 %v9869_v44, %v8654_v29  ;;  %v8664_v11 = vld [vmem:[#allocation3 + $0xd8] sm:$0xf0]  ;;  %v8683_v15 = vor.u32 %v9872_v0, %v8680_v1  ;;  %v8640_v21 = vld [vmem:[#allocation3 + $0xb0] sm:$0xf0] }
 0x12d   :  { %v632_v27 = vsel %vm10492_vm13, %v626_v25, %v631_v19  ;;  %v635_v28 = vsel %vm10492_vm13, %v628_v26, %v634_v20  ;;  %v8659_v18 = vor.u32 %v9867_v4, %v8656_v5  ;;  %v9865_v19 = vld [vmem:[#allocation3 + $0xac] sm:$0xf0]  ;;  %v9868_v20 = vld [vmem:[#allocation3 + $0xcc] sm:$0xf]  ;;  %v9866_v25 = vld [vmem:[#allocation3 + $0xb4] sm:$0xf0] }
 0x12e   :  { %633 = vst [vmem:[#allocation3 + $0x100] sm:$0x33] %v632_v27  ;;  %876 = vmatpush.bf16.msra.mxu0 %v8655_v30  ;;  %v9861_v30 = vld [vmem:[#allocation3 + $0x8c] sm:$0xf0]  ;;  %v288_v4 = vld [vmem:[#allocation3 + $0x40] sm:$0x33] }
 0x12f   :  { %636 = vst [vmem:[#allocation3 + $0x108] sm:$0x33] %v635_v28  ;;  %vm14746_vm10 = vcmask 1039360  }
 0x130   :  { %v432_v31 = vpop.permute.xlu0 %431  ;;  %v434_v33 = vpop.permute.xlu1 %433 }
 0x131   :  { %v436_v36 = vrot.slane %v432_v31, 4  ;;  %v437_v37 = vrot.slane %v434_v33, 4 }
 0x133   :  { %v438_v41 = vsel %vm218_vm3, %v435_v34, %v436_v36  ;;  %v441_v42 = vsel %vm218_vm3, %v436_v36, %v437_v37  ;;  %v8667_v34 = vor.u32 %v9868_v20, %v8664_v11  ;;  %v8622_v37 = vld [vmem:[#allocation3 + $0x80] sm:$0xf] }
 0x134   :  { %v440_v49 = vsel %vm439_vm11, %v10548_v47, %v438_v41  ;;  %v442_v50 = vsel %vm439_vm11, %v432_v31, %v441_v42  ;;  %v339_v47 = vpop.permute.xlu2 %338  ;;  %v8624_v41 = vld [vmem:[#allocation3 + $0x90] sm:$0xf0]  ;;  %v8623_v42 = vor.u32 %v9861_v30, %v8622_v37  ;;  %v291_v30 = vld [vmem:[#allocation3 + $0x48] sm:$0x33] }
 0x135   :  { %v446_v54 = vsel %vm10492_vm13, %v440_v49, %v445_v38  ;;  %v449_v55 = vsel %vm10492_vm13, %v442_v50, %v448_v39  ;;  %v8686_v56 = vld [vmem:[#allocation3 + $0x100] sm:$0xf]  ;;  %v9875_v57 = vld [vmem:[#allocation3 + $0x104] sm:$0xf]  ;;  %v342_v7 = vrot.slane %v339_v47, 4 }
 0x136   :  { %447 = vst [vmem:[#allocation3 + $0xa0] sm:$0x33] %v446_v54  ;;  %v8687_v48 = vor.u32 %v9877_v43, %v8686_v56  ;;  %v8691_v58 = vor.u32 %v9875_v57, %v8688_v45  ;;  %v8694_v59 = vld [vmem:[#allocation3 + $0x108] sm:$0xf]  ;;  %v8608_v49 = vld [vmem:[#allocation3 + $0x70] sm:$0xf0] }
 0x137   :  { %450 = vst [vmem:[#allocation3 + $0xa8] sm:$0x33] %v449_v55  ;;  %v8695_v62 = vor.u32 %v9878_v46, %v8694_v59  ;;  %v9857_v46 = vld [vmem:[#allocation3 + $0x6c] sm:$0xf0]  ;;  %v9862_v50 = vld [vmem:[#allocation3 + $0x94] sm:$0xf0] }
 0x138   :  { %v337_v3 = vpop.permute.xlu0 %336  ;;  %896 = vmatpush.bf16.msra.mxu2 %v8687_v48  ;;  %924 = vmatpush.bf16.msra.mxu3 %v8691_v58  ;;  %v9858_v59 = vld [vmem:[#allocation3 + $0x74] sm:$0xf0]  ;;  %v8708_v37 = vld [vmem:[%s14762_s29 + $0x6] ss:$8 sm:$0xf] }
 0x139   :  { %v341_v9 = vrot.slane %v337_v3, 4  ;;  %v372_v10 = vpop.permute.xlu1 %371 }
 0x13a   :  { %v375_v14 = vrot.slane %v372_v10, 4 }
 0x13b   :  { %v343_v16 = vsel %vm218_vm3, %v340_v6, %v341_v9  ;;  %v346_v17 = vsel %vm218_vm3, %v341_v9, %v342_v7  ;;  %8701 = vmatmul.msk.bf16.vlgmr.msra.gmra.mxu3 %vm314_vm15, %v10595_v63  ;;  %8700 = vmatmul.msk.bf16.vlgmr.msra.gmra.mxu2 %vm314_vm15, %v10595_v63 }
 0x13c   :  { %903 = vmatpush.bf16.msrb.mxu2 %v8675_v61  ;;  %952 = vmatpush.bf16.msrb.mxu3 %v8695_v62  ;;  %v345_v22 = vsel %vm14731_vm12, %v10562_v2, %v343_v16  ;;  %v347_v23 = vsel %vm14731_vm12, %v337_v3, %v346_v17  ;;  %v379_v44 = vsel %vm218_vm3, %v374_v35, %v375_v14  ;;  %vm14747_vm12 = vcmask 1031168   ;;  %v8616_v61 = vld [vmem:[#allocation3 + $0x78] sm:$0xf0]  ;;  %v226_v14 = vld [vmem:[#allocation3 + $0x20] sm:$0x33] }
 0x13d   :  { %v351_v26 = vsel %vm10492_vm13, %v345_v22, %v350_v8  ;;  %v354_v27 = vsel %vm10492_vm13, %v347_v23, %v353_v12  ;;  %v380_v28 = vsel %vm14750_vm6, %v10537_v32, %v379_v44  ;;  %v8638_v29 = vld [vmem:[#allocation3 + $0xa0] sm:$0xf]  ;;  %v9863_v2 = vld [vmem:[#allocation3 + $0xa4] sm:$0xf]  ;;  %v278_v62 = vrot.slane %v10571_v24, 4 }
 0x13e   :  { %352 = vst [vmem:[#allocation3 + $0x60] sm:$0x33] %v351_v26  ;;  %v387_v31 = vsel %vm10492_vm13, %v380_v28, %v386_v13  ;;  %v8639_v35 = vor.u32 %v9865_v19, %v8638_v29  ;;  %v8646_v33 = vld [vmem:[#allocation3 + $0xa8] sm:$0xf]  ;;  %v8643_v36 = vor.u32 %v9863_v2, %v8640_v21  ;;  %v9864_v39 = vld [vmem:[#allocation3 + $0xac] sm:$0xf] }
 0x13f   :  { %355 = vst [vmem:[#allocation3 + $0x68] sm:$0x33] %v354_v27  ;;  %v8647_v38 = vor.u32 %v9866_v25, %v8646_v33  ;;  %v9859_v32 = vld [vmem:[#allocation3 + $0x84] sm:$0xf]  ;;  %v8651_v43 = vor.u32 %v9864_v39, %v8648_v40  ;;  %v9853_v16 = vld [vmem:[#allocation3 + $0x4c] sm:$0xf0] }
 0x140   :  { %959 = vmatpush.bf16.msra.mxu3 %v8683_v15  ;;  %904 = vmatpush.bf16.msrb.mxu2 %v8659_v18  ;;  %388 = vst [vmem:[#allocation3 + $0x88] sm:$0x33] %v387_v31  ;;  %v8627_v45 = vor.u32 %v9859_v32, %v8624_v41  ;;  %v8592_v17 = vld [vmem:[#allocation3 + $0x50] sm:$0xf0]  ;;  %v229_v31 = vld [vmem:[#allocation3 + $0x28] sm:$0x33] }
 0x141   :  { %877 = vmatpush.bf16.msra.mxu0 %v8639_v35  ;;  %933 = vmatpush.bf16.msra.mxu1 %v8647_v38  ;;  %v8709_v23 = vld [vmem:[%s14762_s29 + $0x7] ss:$8 sm:$0xf]  ;;  %v9849_v35 = vld [vmem:[#allocation3 + $0x2c] sm:$0xf0] }
 0x142   :  { %v1588_v26 = vperm.slane %v8709_v23, 0  ;;  %v1589_v27 = vperm.slane %v8709_v23, 1  ;;  %v1590_v28 = vperm.slane %v8709_v23, 2 }
 0x144   :  { %960 = vmatpush.bf16.msra.mxu3 %v8667_v34  ;;  %905 = vmatpush.bf16.msrb.mxu2 %v8643_v36  ;;  %v8576_v36 = vld [vmem:[#allocation3 + $0x30] sm:$0xf0] }
 0x145   :  { %878 = vmatpush.bf16.msra.mxu0 %v8623_v42  ;;  %v8606_v51 = vld [vmem:[#allocation3 + $0x60] sm:$0xf]  ;;  %v9855_v53 = vld [vmem:[#allocation3 + $0x64] sm:$0xf]  ;;  %1592 = vrot.lane.b32.xlu1 %v1588_v26, %s10240_s20 }
 0x146   :  { %v8607_v54 = vor.u32 %v9857_v46, %v8606_v51  ;;  %v8611_v55 = vor.u32 %v9855_v53, %v8608_v49  ;;  %v8614_v1 = vld [vmem:[#allocation3 + $0x68] sm:$0xf]  ;;  %v9856_v3 = vld [vmem:[#allocation3 + $0x6c] sm:$0xf]  ;;  %1594 = vrot.lane.b32.xlu2 %v1589_v27, %s10240_s20  ;;  %1596 = vrot.lane.b32.xlu0 %v1590_v28, %s10240_s20  ;;  %v8560_v46 = vld [vmem:[#allocation3 + $0x10] sm:$0xf0] }
 0x147   :  { %v8630_v56 = vld [vmem:[#allocation3 + $0x88] sm:$0xf]  ;;  %v9860_v57 = vld [vmem:[#allocation3 + $0x8c] sm:$0xf]  ;;  %v8615_v7 = vor.u32 %v9858_v59, %v8614_v1  ;;  %v8619_v8 = vor.u32 %v9856_v3, %v8616_v61  ;;  %v9843_v51 = vld [vmem:[#allocation3 + $0x4] sm:$0xf] }
 0x148   :  { %961 = vmatpush.bf16.msra.mxu3 %v8651_v43  ;;  %906 = vmatpush.bf16.msrb.mxu2 %v8627_v45  ;;  %v275_v47 = vpop.permute.xlu0 %274  ;;  %v8631_v48 = vor.u32 %v9862_v50, %v8630_v56  ;;  %v8635_v58 = vor.u32 %v9860_v57, %v8632_v52  ;;  %v8558_v43 = vld [vmem:[#allocation3] sm:$0xf]  ;;  %v9845_v45 = vld [vmem:[#allocation3 + $0xc] sm:$0xf0]  ;;  %v1591_v52 = vperm.slane %v8709_v23, 3  ;;  %v1500_v53 = vperm.slane %v8708_v37, 0 }
 0x149   :  { %879 = vmatpush.bf16.msra.mxu0 %v8607_v54  ;;  %v279_v0 = vrot.slane %v275_v47, 4  ;;  %v8696_v54 = vld [vmem:[#allocation3 + $0x118] sm:$0xf0]  ;;  %v9876_v56 = vld [vmem:[#allocation3 + $0x10c] sm:$0xf] }
 0x14a   :  { %934 = vmatpush.bf16.msra.mxu1 %v8631_v48  ;;  %v9842_v57 = vld [vmem:[%s14702_s2 + $0x4] sm:$0xf0]  ;;  %v8563_v48 = vor.u32 %v9843_v51, %v8560_v46  ;;  %v9854_v61 = vld [vmem:[#allocation3 + $0x54] sm:$0xf0]  ;;  %v675_v46 = vld [vmem:[%s14703_s3] sm:$0xff]  ;;  %s14770_s2 = smov 94  }
 0x14b   :  { %v281_v5 = vsel %vm218_vm3, %v278_v62, %v279_v0  ;;  %8702 = vmatmul.msk.bf16.vlgmr.msrb.gmra.mxu3 %vm314_vm15, %v10595_v63  ;;  %v8551_v59 = vor.u32 %v9842_v57, %v8550_v60  ;;  %v8600_v62 = vld [vmem:[#allocation3 + $0x58] sm:$0xf0]  ;;  %v9850_v3 = vld [vmem:[#allocation3 + $0x34] sm:$0xf0]  ;;  %v679_v57 = vld [vmem:[%s14703_s3 + $0x20] sm:$0xff] }
 0x14c   :  { %907 = vmatpush.bf16.msrb.mxu2 %v8611_v55  ;;  %962 = vmatpush.bf16.msra.mxu3 %v8635_v58  ;;  %v283_v6 = vsel %vm14747_vm12, %v10571_v24, %v281_v5  ;;  %v1501_v55 = vperm.slane %v8708_v37, 1  ;;  %v8699_v58 = vor.u32 %v9876_v56, %v8696_v54  ;;  %v8706_v23 = vld [vmem:[%s14762_s29 + $0x3] ss:$8 sm:$0xf] }
 0x14d   :  { %v289_v9 = vsel %vm10492_vm13, %v283_v6, %v288_v4  ;;  %1598 = vrot.lane.b32.xlu1 %v1591_v52, %s10240_s20  ;;  %v8584_v4 = vld [vmem:[#allocation3 + $0x38] sm:$0xf0]  ;;  %v1270_v26 = vperm.slane %v8706_v23, 2  ;;  %v8710_v27 = vld [vmem:[%s14762_s29 + $0x20] ss:$8 sm:$0xf] }
 0x14e   :  { %290 = vst [vmem:[#allocation3 + $0x40] sm:$0x33] %v289_v9  ;;  %935 = vmatpush.bf16.msra.mxu1 %v8615_v7  ;;  %1504 = vrot.lane.b32.xlu2 %v1500_v53, %s10242_s25  ;;  %v1502_v7 = vperm.slane %v8708_v37, 2  ;;  %v8707_v9 = vld [vmem:[%s14762_s29 + $0x5] ss:$8 sm:$0xf] }
 0x14f   :  { %1506 = vrot.lane.b32.xlu0 %v1501_v55, %s10242_s25  ;;  %v1271_v28 = vperm.slane %v8706_v23, 3  ;;  %v676_v53 = vld [vmem:[%s14703_s3 + $0x8] sm:$0xff] }
 0x150   :  { %963 = vmatpush.bf16.msra.mxu3 %v8619_v8  ;;  %v210_v10 = vpop.permute.xlu0 %209  ;;  %v212_v11 = vpop.permute.xlu1 %211  ;;  %v1503_v8 = vperm.slane %v8708_v37, 3 }
 0x151   :  { %v215_v12 = vrot.slane %v210_v10, 4  ;;  %v216_v13 = vrot.slane %v212_v11, 4 }
 0x153   :  { %v219_v15 = vsel %vm218_vm3, %v215_v12, %v216_v13  ;;  %v1412_v12 = vperm.slane %v8707_v9, 0 }
 0x154   :  { %v221_v24 = vsel %vm14746_vm10, %v210_v10, %v219_v15  ;;  %v9846_v15 = vld [vmem:[#allocation3 + $0x14] sm:$0xf0] }
 0x155   :  { %v227_v18 = vsel %vm10492_vm13, %v221_v24, %v226_v14  ;;  %v8590_v19 = vld [vmem:[#allocation3 + $0x40] sm:$0xf]  ;;  %v9851_v20 = vld [vmem:[#allocation3 + $0x44] sm:$0xf]  ;;  %1508 = vrot.lane.b32.xlu1 %v1502_v7, %s10242_s25  ;;  %v8568_v24 = vld [vmem:[#allocation3 + $0x18] sm:$0xf0] }
 0x156   :  { %228 = vst [vmem:[#allocation3 + $0x20] sm:$0x33] %v227_v18  ;;  %v8591_v21 = vor.u32 %v9853_v16, %v8590_v19  ;;  %v8595_v22 = vor.u32 %v9851_v20, %v8592_v17  ;;  %1510 = vrot.lane.b32.xlu2 %v1503_v8, %s10242_s25  ;;  %v8566_v16 = vld [vmem:[#allocation3 + $0x8] sm:$0xf]  ;;  %v9844_v17 = vld [vmem:[#allocation3 + $0xc] sm:$0xf] }
 0x157   :  { %1416 = vrot.lane.b32.xlu0 %v1412_v12, %s14744_s19  ;;  %v8567_v18 = vor.u32 %v9846_v15, %v8566_v16  ;;  %v8571_v19 = vor.u32 %v9844_v17, %v8568_v24  ;;  %v1413_v20 = vperm.slane %v8707_v9, 1  ;;  %v681_v12 = vld [vmem:[%s14703_s3 + $0x30] sm:$0xff] }
 0x158   :  { %v277_v44 = vpop.permute.xlu0 %276  ;;  %880 = vmatpush.bf16.msra.mxu0 %v8591_v21  ;;  %908 = vmatpush.bf16.msrb.mxu2 %v8595_v22  ;;  %v214_v25 = vpop.permute.xlu1 %213  ;;  %v1414_v21 = vperm.slane %v8707_v9, 2  ;;  %v1415_v22 = vperm.slane %v8707_v9, 3 }
 0x159   :  { %v280_v29 = vrot.slane %v277_v44, 4  ;;  %v217_v2 = vrot.slane %v214_v25, 4  ;;  %v1268_v44 = vperm.slane %v8706_v23, 0  ;;  %v1269_v25 = vperm.slane %v8706_v23, 1 }
 0x15b   :  { %v284_v33 = vsel %vm218_vm3, %v279_v0, %v280_v29  ;;  %v222_v34 = vsel %vm218_vm3, %v216_v13, %v217_v2  ;;  %v1676_v29 = vperm.slane %v8710_v27, 0  ;;  %v1677_v2 = vperm.slane %v8710_v27, 1 }
 0x15c   :  { %v285_v38 = vsel %vm14747_vm12, %v275_v47, %v284_v33  ;;  %v223_v39 = vsel %vm14746_vm10, %v212_v11, %v222_v34  ;;  %v8559_v47 = vor.u32 %v9845_v45, %v8558_v43 }
 0x15d   :  { %v292_v40 = vsel %vm10492_vm13, %v285_v38, %v291_v30  ;;  %v230_v32 = vsel %vm10492_vm13, %v223_v39, %v229_v31  ;;  %v8574_v41 = vld [vmem:[#allocation3 + $0x20] sm:$0xf]  ;;  %v9847_v42 = vld [vmem:[#allocation3 + $0x24] sm:$0xf]  ;;  %1418 = vrot.lane.b32.xlu1 %v1413_v20, %s14744_s19  ;;  %v1679_v30 = vperm.slane %v8710_v27, 3  ;;  %vm14735_vm13 = vcmask 1047688  }
 0x15e   :  { %293 = vst [vmem:[#allocation3 + $0x48] sm:$0x33] %v292_v40  ;;  %v8575_v49 = vor.u32 %v9849_v35, %v8574_v41  ;;  %v8579_v50 = vor.u32 %v9847_v42, %v8576_v36  ;;  %1420 = vrot.lane.b32.xlu2 %v1414_v21, %s14744_s19  ;;  %v8705_v31 = vld [vmem:[%s14762_s29 + $0x2] ss:$8 sm:$0xf] }
 0x15f   :  { %231 = vst [vmem:[#allocation3 + $0x28] sm:$0x33] %v230_v32  ;;  %1422 = vrot.lane.b32.xlu0 %v1415_v22, %s14744_s19  ;;  %v1181_v35 = vperm.slane %v8705_v31, 1  ;;  %v1180_v33 = vperm.slane %v8705_v31, 0  ;;  %v1182_v34 = vperm.slane %v8705_v31, 2  ;;  %v1183_v38 = vperm.slane %v8705_v31, 3 }
 0x160   :  { %881 = vmatpush.bf16.msra.mxu0 %v8575_v49  ;;  %909 = vmatpush.bf16.msrb.mxu2 %v8579_v50  ;;  %v8704_v36 = vld [vmem:[%s14762_s29 + $0x1] ss:$8 sm:$0xf] }
 0x161   :  { %v1092_v37 = vperm.slane %v8704_v36, 0  ;;  %v1093_v39 = vperm.slane %v8704_v36, 1  ;;  %v1094_v40 = vperm.slane %v8704_v36, 2  ;;  %v1095_v41 = vperm.slane %v8704_v36, 3 }
 0x164   :  { %882 = vmatpush.bf16.msra.mxu0 %v8559_v47  ;;  %910 = vmatpush.bf16.msrb.mxu2 %v8563_v48 }
 0x165   :  { %v8598_v0 = vld [vmem:[#allocation3 + $0x48] sm:$0xf]  ;;  %v9852_v1 = vld [vmem:[#allocation3 + $0x4c] sm:$0xf]  ;;  %1272 = vrot.lane.b32.xlu1 %v1268_v44, %s10245_s22 }
 0x166   :  { %v8599_v5 = vor.u32 %v9854_v61, %v8598_v0  ;;  %v8603_v6 = vor.u32 %v9852_v1, %v8600_v62  ;;  %v8582_v10 = vld [vmem:[#allocation3 + $0x28] sm:$0xf]  ;;  %v9848_v11 = vld [vmem:[#allocation3 + $0x2c] sm:$0xf]  ;;  %1274 = vrot.lane.b32.xlu2 %v1269_v25, %s10245_s22 }
 0x167   :  { %883 = vmatmul.bf16.vlgmr.msra.gmra.mxu0 %v8551_v59  ;;  %911 = vmatmul.bf16.vlgmr.msrb.gmra.mxu2 %v8551_v59  ;;  %v8583_v13 = vor.u32 %v9850_v3, %v8582_v10  ;;  %v8587_v14 = vor.u32 %v9848_v11, %v8584_v4  ;;  %v680_v3 = vld [vmem:[%s14703_s3 + $0x28] sm:$0xff] }
 0x168   :  { %980 = vmatpush.bf16.msrb.mxu0 %v8699_v58  ;;  %936 = vmatpush.bf16.msra.mxu1 %v8599_v5 }
 0x169   :  { %964 = vmatpush.bf16.msra.mxu3 %v8603_v6  ;;  %1276 = vrot.lane.b32.xlu0 %v1270_v26, %s10245_s22 }
 0x16c   :  { %937 = vmatpush.bf16.msra.mxu1 %v8583_v13 }
 0x16d   :  { %965 = vmatpush.bf16.msra.mxu3 %v8587_v14  ;;  %1278 = vrot.lane.b32.xlu1 %v1271_v28, %s10245_s22  ;;  %v678_v14 = vld [vmem:[%s14703_s3 + $0x18] sm:$0xff] }
 0x16e   :  { %1680 = vrot.lane.b32.xlu2 %v1676_v29, %s14733_s28 }
 0x170   :  { %938 = vmatpush.bf16.msra.mxu1 %v8567_v18 }
 0x171   :  { %966 = vmatpush.bf16.msra.mxu3 %v8571_v19  ;;  %1682 = vrot.lane.b32.xlu0 %v1677_v2, %s14733_s28  ;;  %v682_v19 = vld [vmem:[%s14703_s3 + $0x38] sm:$0xff] }
 0x173   :  { %939 = vmatmul.bf16.vlgmr.msra.gmra.mxu1 %v8551_v59 }
 0x174   :  { %967 = vmatmul.bf16.vlgmr.msra.gmra.mxu3 %v8551_v59  ;;  %v677_v59 = vld [vmem:[%s14703_s3 + $0x10] sm:$0xff]  ;;  %s14790_s3 = smov 96  }
 0x176   :  { %1686 = vrot.lane.b32.xlu2 %v1679_v30, %s14733_s28 }
 0x177   :  { %8703 = vmatmul.msk.bf16.vlgmr.msrb.gmra.mxu0 %vm314_vm15, %v10595_v63  ;;  %v1678_v63 = vperm.slane %v8710_v27, 2 }
 0x179   :  { %1684 = vrot.lane.b32.xlu1 %v1678_v63, %s14733_s28  ;;  %1184 = vrot.lane.b32.xlu0 %v1180_v33, %s10246_s24 }
 0x17e   :  { %1188 = vrot.lane.b32.xlu2 %v1182_v34, %s10246_s24 }
 0x181   :  { %1186 = vrot.lane.b32.xlu1 %v1181_v35, %s10246_s24  ;;  %1190 = vrot.lane.b32.xlu0 %v1183_v38, %s10246_s24 }
 0x186   :  { %1098 = vrot.lane.b32.xlu2 %v1093_v39, %s10247_s30 }
 0x189   :  { %1096 = vrot.lane.b32.xlu1 %v1092_v37, %s10247_s30  ;;  %1100 = vrot.lane.b32.xlu0 %v1094_v40, %s10247_s30 }
 0x191   :  { %1102 = vrot.lane.b32.xlu1 %v1095_v41, %s10247_s30 }
 0x1a0   :  { %v10702_v60 = vpop.permute.xlu2 %1594 }
 0x1a8   :  { %v10714_v10 = vpop.permute.xlu2 %1504 }
 0x1b0   :  { %v10729_v26 = vpop.permute.xlu2 %1510 }
 0x1b7   :  { %v10733_v2 = vpop.permute.xlu1 %1592 }
 0x1b8   :  { %v10735_v63 = vpop.permute.xlu2 %1420  ;;  %v10737_v30 = vpop.permute.xlu0 %1596 }
 0x1be   :  { %v926_v32 = vpop.f32.mrf.mxu3  ;;  %v898_v42 = vpop.f32.mrf.mxu2 }
 0x1bf   :  { %v10739_v31 = vpop.permute.xlu1 %1598 }
 0x1c0   :  { %v10741_v35 = vpop.permute.xlu2 %1274 }
 0x1c1   :  { %v10743_v33 = vpop.permute.xlu0 %1506 }
 0x1c6   :  { %v928_v43 = vpop.f32.mrf.mxu3  ;;  %v900_v45 = vpop.f32.mrf.mxu2 }
 0x1c7   :  { %v10745_v34 = vpop.permute.xlu1 %1508 }
 0x1c8   :  { %v10747_v36 = vpop.permute.xlu2 %1680 }
 0x1c9   :  { %v10749_v37 = vpop.permute.xlu0 %1416 }
 0x1ce   :  { %v954_v49 = vpop.f32.mrf.mxu3 }
 0x1cf   :  { %v10751_v38 = vpop.permute.xlu1 %1418 }
 0x1d0   :  { %v10753_v39 = vpop.permute.xlu2 %1686 }
 0x1d1   :  { %v10755_v40 = vpop.permute.xlu0 %1422 }
 0x1d6   :  { %v956_v48 = vpop.f32.mrf.mxu3 }
 0x1d8   :  { %v1189_v41 = vpop.permute.xlu2 %1188 }
 0x1e4   :  { %v884_v50 = vpop.f32.mrf.mxu0 }
 0x1e5   :  { %v885_v51 = vadd.f32 %v884_v50, %v675_v46 }
 0x1e7   :  { %v899_v52 = vadd.f32 %v898_v42, %v885_v51  ;;  %v10759_v42 = vpop.permute.xlu0 %1276 }
 0x1e9   :  { %v987_v54 = vmax.f32 %v899_v52, 0.0 }
 0x1ea   :  { %v912_v55 = vpop.f32.mrf.mxu2 }
 0x1eb   :  { %v913_v56 = vadd.f32 %v912_v55, %v676_v53  ;;  %1003 = vrot.lane.b32.xlu2 %v987_v54, %s10241_s23 }
 0x1ec   :  { %v886_v47 = vpop.f32.mrf.mxu0 }
 0x1ed   :  { %v927_v58 = vadd.f32 %v926_v32, %v913_v56  ;;  %v887_v62 = vadd.f32 %v886_v47, %v679_v57  ;;  %v10757_v32 = vpop.permute.xlu1 %1272  ;;  %v10783_v57 = vld [vmem:[%s14762_s29] ss:$8 sm:$0xf] }
 0x1ee   :  { %v1056_v47 = vperm.slane %v10783_v57, 0 }
 0x1ef   :  { %v988_v61 = vmax.f32 %v927_v58, 0.0  ;;  %v901_v5 = vadd.f32 %v900_v45, %v887_v62  ;;  %v10763_v45 = vpop.permute.xlu2 %1098  ;;  %v10765_v46 = vpop.permute.xlu0 %1682  ;;  %v10795_v62 = vsel %vm471_vm5, %v10714_v10, %v10743_v33 }
 0x1f0   :  { %v940_v0 = vpop.f32.mrf.mxu1 }
 0x1f1   :  { %v941_v1 = vadd.f32 %v940_v0, %v677_v59  ;;  %1005 = vrot.lane.b32.xlu0 %v988_v61, %s10241_s23  ;;  %v991_v13 = vmax.f32 %v901_v5, 0.0  ;;  %v1057_v61 = vperm.slane %v10783_v57, 1  ;;  %v10800_v0 = vsel %vm409_vm14, %v10749_v37, %v10751_v38 }
 0x1f2   :  { %v914_v4 = vpop.f32.mrf.mxu2 }
 0x1f3   :  { %v955_v6 = vadd.f32 %v954_v49, %v941_v1  ;;  %v915_v9 = vadd.f32 %v914_v4, %v680_v3 }
 0x1f4   :  { %v982_v7 = vpop.f32.mrf.mxu0 }
 0x1f5   :  { %v989_v8 = vmax.f32 %v955_v6, 0.0  ;;  %v929_v16 = vadd.f32 %v928_v43, %v915_v9  ;;  %v10761_v43 = vpop.permute.xlu1 %1278 }
 0x1f7   :  { %v968_v11 = vpop.f32.mrf.mxu3  ;;  %1007 = vrot.lane.b32.xlu1 %v989_v8, %s10241_s23  ;;  %v992_v21 = vmax.f32 %v929_v16, 0.0  ;;  %v10770_v51 = vpop.permute.xlu0 %1184  ;;  %v1059_v16 = vperm.slane %v10783_v57, 3 }
 0x1f8   :  { %v942_v15 = vpop.f32.mrf.mxu1  ;;  %v969_v24 = vadd.f32 %v968_v11, %v678_v14 }
 0x1f9   :  { %v943_v17 = vadd.f32 %v942_v15, %v681_v12  ;;  %1011 = vrot.lane.b32.xlu0 %v991_v13, %s10241_s23  ;;  %v1058_v12 = vperm.slane %v10783_v57, 2 }
 0x1fa   :  { %v983_v44 = vadd.f32 %v982_v7, %v969_v24 }
 0x1fb   :  { %v957_v18 = vadd.f32 %v956_v48, %v943_v17  ;;  %v10826_v17 = vsel %vm533_vm4, %v10733_v2, %v10702_v60 }
 0x1fc   :  { %v984_v23 = vpop.f32.mrf.mxu0  ;;  %v990_v28 = vmax.f32 %v983_v44, 0.0 }
 0x1fd   :  { %v993_v20 = vmax.f32 %v957_v18, 0.0  ;;  %v10767_v49 = vpop.permute.xlu1 %1684 }
 0x1ff   :  { %v970_v22 = vpop.f32.mrf.mxu3  ;;  %1015 = vrot.lane.b32.xlu2 %v993_v20, %s10241_s23  ;;  %1013 = vrot.lane.b32.xlu1 %v992_v21, %s10241_s23  ;;  %v10772_v53 = vpop.permute.xlu0 %1190 }
 0x200   :  { %v971_v25 = vadd.f32 %v970_v22, %v682_v19  ;;  %v10835_v19 = vsel %vm14736_vm8, %v10747_v36, %v10765_v46 }
 0x202   :  { %v985_v27 = vadd.f32 %v984_v23, %v971_v25 }
 0x204   :  { %v994_v29 = vmax.f32 %v985_v27, 0.0 }
 0x205   :  { %v1187_v52 = vpop.permute.xlu1 %1186 }
 0x206   :  { %1017 = vrot.lane.b32.xlu0 %v994_v29, %s10241_s23 }
 0x207   :  { %1009 = vrot.lane.b32.xlu2 %v990_v28, %s10241_s23  ;;  %v10778_v56 = vpop.permute.xlu0 %1100 }
 0x20d   :  { %v10774_v54 = vpop.permute.xlu1 %1096 }
 0x215   :  { %v10788_v58 = vpop.permute.xlu1 %1102 }
 0x245   :  { %v1004_v50 = vpop.permute.xlu2 %1003 }
 0x246   :  { %1036 = vst.msk [vmem:[#allocation2] sm:$0xff] %vm14735_vm13, %v1004_v50 }
 0x24d   :  { %v10786_v48 = vld [vmem:[#allocation2] sm:$0xff] }
 0x24e   :  { %v1064_v4 = vmul.f32 %v10786_v48, %v1056_v47  ;;  %v1520_v5 = vmul.f32 %v10714_v10, %v10786_v48  ;;  %v1432_v6 = vmul.f32 %v10749_v37, %v10786_v48  ;;  %v1608_v44 = vmul.f32 %v10733_v2, %v10786_v48 }
 0x259   :  { %v10776_v55 = vpop.permute.xlu2 %1015 }
 0x261   :  { %v1010_v59 = vpop.permute.xlu2 %1009 }
 0x262   :  { %1040 = vst.msk [vmem:[#allocation2 + $0x20] sm:$0xff] %vm60_vm0, %v1010_v59 }
 0x263   :  { %v1006_v1 = vpop.permute.xlu0 %1005 }
 0x264   :  { %v10803_v3 = vsel %vm60_vm0, %v1004_v50, %v1006_v1  ;;  %v1696_v50 = vmul.f32 %v10747_v36, %v10786_v48 }
 0x265   :  { %1037 = vst [vmem:[#allocation2 + $0x8] sm:$0xff] %v10803_v3  ;;  %v1354_v7 = vpack.c.bf16 %v10803_v3, %v10786_v48  ;;  %v1065_v8 = vmul.f32 %v1057_v61, %v10803_v3  ;;  %v1521_v9 = vmul.f32 %v10795_v62, %v10803_v3  ;;  %v1433_v11 = vmul.f32 %v10800_v0, %v10803_v3 }
 0x266   :  { %v1609_v18 = vmul.f32 %v10826_v17, %v10803_v3  ;;  %v1697_v27 = vmul.f32 %v10835_v19, %v10803_v3 }
 0x267   :  { %1366 = vrot.lane.b32.xlu2 %v1354_v7, %s10250_s0  ;;  %v1072_v13 = vpack.c.bf16 %v1065_v8, %v1064_v4  ;;  %v1530_v14 = vpack.c.bf16 %v1521_v9, %v1520_v5  ;;  %v1442_v15 = vpack.c.bf16 %v1433_v11, %v1432_v6  ;;  %v10861_v5 = vsel %vm314_vm15, %v10757_v32, %v10741_v35 }
 0x268   :  { %v1618_v28 = vpack.c.bf16 %v1609_v18, %v1608_v44  ;;  %v1706_v4 = vpack.c.bf16 %v1697_v27, %v1696_v50  ;;  %v10874_v9 = vsel %vm252_vm1, %v10770_v51, %v1187_v52  ;;  %v1200_v18 = vmul.f32 %v10770_v51, %v10786_v48 }
 0x269   :  { %v1008_v24 = vpop.permute.xlu1 %1007  ;;  %1076 = vst [vmem:[#allocation3] sm:$0xff] %v1072_v13  ;;  %1542 = vrot.lane.b32.xlu0 %v1530_v14, %s14742_s12  ;;  %1454 = vrot.lane.b32.xlu1 %v1442_v15, %s14737_s27  ;;  %v1288_v15 = vmul.f32 %v10757_v32, %v10786_v48  ;;  %v1105_v27 = vsel %vm14741_vm2, %v10763_v45, %v10778_v56 }
 0x26a   :  { %v10838_v20 = vsel %vm60_vm0, %v1006_v1, %v1008_v24  ;;  %v10841_v21 = vsel %vm60_vm0, %v1008_v24, %v1010_v59  ;;  %v1193_v59 = vsel %vm252_vm1, %v1187_v52, %v1189_v41  ;;  %v1194_v1 = vsel %vm252_vm1, %v1189_v41, %v10772_v53 }
 0x26b   :  { %1038 = vst [vmem:[#allocation2 + $0x10] sm:$0xff] %v10838_v20  ;;  %v1012_v22 = vpop.permute.xlu0 %1011  ;;  %v1066_v23 = vmul.f32 %v1058_v12, %v10838_v20  ;;  %v1067_v25 = vmul.f32 %v1059_v16, %v10841_v21  ;;  %v10864_v6 = vmul.f32 %v1193_v59, %v10838_v20  ;;  %v10867_v7 = vmul.f32 %v1194_v1, %v10841_v21 }
 0x26c   :  { %1039 = vst [vmem:[#allocation2 + $0x18] sm:$0xff] %v10841_v21  ;;  %v1289_v41 = vmul.f32 %v10861_v5, %v10803_v3  ;;  %v1201_v24 = vmul.f32 %v10874_v9, %v10803_v3 }
 0x26d   :  { %1041 = vst.msk [vmem:[#allocation2 + $0x28] sm:$0xff] %vm14735_vm13, %v1012_v22  ;;  %v1073_v29 = vpack.c.bf16 %v1067_v25, %v1066_v23  ;;  %v1211_v13 = vpack.c.bf16 %v10867_v7, %v10864_v6  ;;  %v10899_v25 = vld [vmem:[#allocation2 + $0x20] sm:$0xff]  ;;  %vm14774_vm13 = vcmask 769024  }
 0x26e   :  { %v1298_v44 = vpack.c.bf16 %v1289_v41, %v1288_v15  ;;  %v1210_v57 = vpack.c.bf16 %v1201_v24, %v1200_v18  ;;  %v10932_v15 = vmul.f32 %v1105_v27, %v10838_v20  ;;  %v10950_v24 = vsel %vm314_vm15, %v10759_v42, %v10761_v43 }
 0x26f   :  { %1630 = vrot.lane.b32.xlu2 %v1618_v28, %s14769_s4  ;;  %1077 = vst [vmem:[#allocation3 + $0x8] sm:$0xff] %v1073_v29  ;;  %v1112_v18 = vmul.f32 %v10786_v48, %v10774_v54 }
 0x271   :  { %v1014_v8 = vpop.permute.xlu1 %1013  ;;  %1718 = vrot.lane.b32.xlu0 %v1706_v4, %s14770_s2 }
 0x272   :  { %v10877_v11 = vsel %vm60_vm0, %v1012_v22, %v1014_v8  ;;  %v10895_v22 = vsel %vm60_vm0, %v1014_v8, %v10776_v55  ;;  %v1524_v8 = vmul.f32 %v10729_v26, %v10899_v25 }
 0x273   :  { %v1069_v14 = vmul.f32 %v1057_v61, %v10877_v11  ;;  %v1070_v50 = vmul.f32 %v1058_v12, %v10895_v22  ;;  %v10929_v12 = vsel %vm14741_vm2, %v10774_v54, %v10763_v45 }
 0x274   :  { %v10888_v23 = vld [vmem:[#allocation2 + $0x28] sm:$0xff]  ;;  %v1113_v45 = vmul.f32 %v10929_v12, %v10803_v3  ;;  %v1118_v7 = vmul.f32 %v10929_v12, %v10877_v11 }
 0x275   :  { %v1068_v52 = vmul.f32 %v1056_v47, %v10888_v23  ;;  %v1357_v61 = vpack.c.bf16 %v10877_v11, %v10888_v23  ;;  %v1106_v47 = vsel %vm14741_vm2, %v10778_v56, %v10788_v58  ;;  %v1526_v56 = vmul.f32 %v10795_v62, %v10877_v11 }
 0x276   :  { %v10943_v62 = vsel %vm314_vm15, %v10741_v35, %v10759_v42  ;;  %v1532_v35 = vpack.c.bf16 %v1524_v8, %v1524_v8 }
 0x277   :  { %v1074_v28 = vpack.c.bf16 %v1069_v14, %v1068_v52  ;;  %1372 = vrot.lane.b32.xlu1 %v1357_v61, %s10250_s0  ;;  %1310 = vrot.lane.b32.xlu2 %v1298_v44, %s14771_s1  ;;  %v1525_v14 = vmul.f32 %v10714_v10, %v10888_v23  ;;  %v1426_v10 = vsel %vm409_vm14, %v10735_v63, %v10755_v40 }
 0x278   :  { %v1018_v29 = vpop.permute.xlu0 %1017  ;;  %v10961_v44 = vmul.f32 %v1193_v59, %v10895_v22  ;;  %v1122_v59 = vpack.c.bf16 %v1113_v45, %v1112_v18 }
 0x279   :  { %v10912_v4 = vsel %vm60_vm0, %v10776_v55, %v1018_v29  ;;  %1045 = vst.msk [vmem:[#allocation2 + $0x48] sm:$0xff] %vm60_vm0, %v1018_v29  ;;  %1222 = vrot.lane.b32.xlu0 %v1210_v57, %s14772_s26  ;;  %v1425_v55 = vsel %vm409_vm14, %v10751_v38, %v10735_v63  ;;  %v1533_v61 = vpack.c.bf16 %v1526_v56, %v1525_v14 }
 0x27a   :  { %1078 = vst [vmem:[#allocation3 + $0x10] sm:$0xff] %v1074_v28  ;;  %v1071_v41 = vmul.f32 %v1059_v16, %v10912_v4  ;;  %v10935_v16 = vmul.f32 %v1106_v47, %v10841_v21  ;;  %v10955_v52 = vmul.f32 %v1425_v55, %v10895_v22  ;;  %v10958_v63 = vmul.f32 %v1426_v10, %v10912_v4 }
 0x27b   :  { %v10964_v3 = vmul.f32 %v1194_v1, %v10912_v4  ;;  %v10972_v28 = vmul.f32 %v10943_v62, %v10895_v22  ;;  %v10976_v29 = vmul.f32 %v10950_v24, %v10912_v4  ;;  %v1436_v57 = vmul.f32 %v10899_v25, %v10755_v40 }
 0x27c   :  { %v1075_v38 = vpack.c.bf16 %v1071_v41, %v1070_v50  ;;  %v1446_v42 = vpack.c.bf16 %v10958_v63, %v10955_v52  ;;  %v1123_v48 = vpack.c.bf16 %v10935_v16, %v10932_v15  ;;  %v1434_v8 = vmul.f32 %v1425_v55, %v10838_v20 }
 0x27d   :  { %v1214_v1 = vpack.c.bf16 %v10964_v3, %v10961_v44  ;;  %v1302_v50 = vpack.c.bf16 %v10976_v29, %v10972_v28  ;;  %v1435_v41 = vmul.f32 %v1426_v10, %v10841_v21  ;;  %v10990_v14 = vmul.f32 %v1105_v27, %v10895_v22 }
 0x27e   :  { %1079 = vst [vmem:[#allocation3 + $0x18] sm:$0xff] %v1075_v38  ;;  %v10993_v56 = vmul.f32 %v1106_v47, %v10912_v4  ;;  %v1444_v45 = vpack.c.bf16 %v1436_v57, %v1436_v57  ;;  %v1355_v55 = vpack.c.bf16 %v10841_v21, %v10838_v20  ;;  %v1613_v27 = vmul.f32 %v10733_v2, %v10888_v23 }
 0x27f   :  { %1546 = vrot.lane.b32.xlu1 %v1532_v35, %s14742_s12  ;;  %1548 = vrot.lane.b32.xlu2 %v1533_v61, %s14742_s12  ;;  %v1443_v18 = vpack.c.bf16 %v1435_v41, %v1434_v8  ;;  %v1614_v47 = vmul.f32 %v10826_v17, %v10877_v11  ;;  %v1701_v10 = vmul.f32 %v10747_v36, %v10888_v23 }
 0x280   :  { %v1126_v38 = vpack.c.bf16 %v10993_v56, %v10990_v14  ;;  %v1702_v35 = vmul.f32 %v10835_v19, %v10877_v11  ;;  %v1612_v61 = vmul.f32 %v10739_v31, %v10899_v25  ;;  %v1514_v2 = vsel %vm471_vm5, %v10745_v34, %v10729_v26 }
 0x281   :  { %1134 = vrot.lane.b32.xlu0 %v1122_v59, %s14773_s21  ;;  %v1621_v59 = vpack.c.bf16 %v1614_v47, %v1613_v27  ;;  %v1513_v36 = vsel %vm471_vm5, %v10743_v33, %v10745_v34  ;;  %v1523_v19 = vmul.f32 %v1514_v2, %v10841_v21  ;;  %v1205_v41 = vmul.f32 %v10770_v51, %v10888_v23 }
 0x282   :  { %v1709_v57 = vpack.c.bf16 %v1702_v35, %v1701_v10  ;;  %v1620_v8 = vpack.c.bf16 %v1612_v61, %v1612_v61  ;;  %v1522_v17 = vmul.f32 %v1513_v36, %v10838_v20  ;;  %v1602_v33 = vsel %vm533_vm4, %v10737_v30, %v10739_v31 }
 0x283   :  { %v1438_v10 = vmul.f32 %v10800_v0, %v10877_v11  ;;  %v1358_v61 = vpack.c.bf16 %v10912_v4, %v10895_v22  ;;  %v1204_v52 = vmul.f32 %v10899_v25, %v10772_v53 }
 0x284   :  { %v1531_v27 = vpack.c.bf16 %v1523_v19, %v1522_v17  ;;  %v1290_v17 = vmul.f32 %v10943_v62, %v10838_v20  ;;  %v1291_v19 = vmul.f32 %v10950_v24, %v10841_v21 }
 0x285   :  { %v1212_v3 = vpack.c.bf16 %v1204_v52, %v1204_v52 }
 0x287   :  { %1458 = vrot.lane.b32.xlu1 %v1444_v45, %s14737_s27  ;;  %1456 = vrot.lane.b32.xlu2 %v1443_v18, %s14737_s27  ;;  %v1206_v45 = vmul.f32 %v10874_v9, %v10877_v11  ;;  %v1601_v18 = vsel %vm533_vm4, %v10702_v60, %v10737_v30  ;;  %v1293_v60 = vmul.f32 %v10757_v32, %v10888_v23 }
 0x288   :  { %v1610_v34 = vmul.f32 %v1601_v18, %v10838_v20  ;;  %v1294_v9 = vmul.f32 %v10861_v5, %v10877_v11  ;;  %v1437_v30 = vmul.f32 %v10749_v37, %v10888_v23  ;;  %v1690_v5 = vsel %vm14736_vm8, %v10767_v49, %v10753_v39 }
 0x289   :  { %1368 = vrot.lane.b32.xlu0 %v1355_v55, %s10250_s0  ;;  %v1611_v55 = vmul.f32 %v1602_v33, %v10841_v21  ;;  %v1213_v47 = vpack.c.bf16 %v1206_v45, %v1205_v41  ;;  %v1689_v37 = vsel %vm14736_vm8, %v10765_v46, %v10767_v49  ;;  %v1299_v46 = vpack.c.bf16 %v1291_v19, %v1290_v17 }
 0x28a   :  { %v1301_v35 = vpack.c.bf16 %v1294_v9, %v1293_v60  ;;  %v1445_v32 = vpack.c.bf16 %v1438_v10, %v1437_v30  ;;  %v1698_v0 = vmul.f32 %v1689_v37, %v10838_v20  ;;  %v1527_v20 = vmul.f32 %v1513_v36, %v10895_v22 }
 0x28b   :  { %v1619_v51 = vpack.c.bf16 %v1611_v55, %v1610_v34  ;;  %v1615_v24 = vmul.f32 %v1601_v18, %v10895_v22  ;;  %v1292_v11 = vmul.f32 %v10899_v25, %v10761_v43  ;;  %vm14775_vm8 = vcmask 916480  }
 0x28d   :  { %v1300_v12 = vpack.c.bf16 %v1292_v11, %v1292_v11 }
 0x28f   :  { %1636 = vrot.lane.b32.xlu1 %v1621_v59, %s14769_s4  ;;  %1724 = vrot.lane.b32.xlu2 %v1709_v57, %s14770_s2  ;;  %v11048_v59 = vld [vmem:[#allocation2 + $0x48] sm:$0xff]  ;;  %v1699_v57 = vmul.f32 %v1690_v5, %v10841_v21 }
 0x290   :  { %v1441_v49 = vmul.f32 %v11048_v59, %v10755_v40  ;;  %v1617_v62 = vmul.f32 %v10739_v31, %v11048_v59  ;;  %v1616_v40 = vmul.f32 %v1602_v33, %v10912_v4  ;;  %v1117_v31 = vmul.f32 %v10774_v54, %v10888_v23 }
 0x291   :  { %1634 = vrot.lane.b32.xlu0 %v1620_v8, %s14769_s4  ;;  %v1529_v8 = vmul.f32 %v10729_v26, %v11048_v59  ;;  %v1707_v41 = vpack.c.bf16 %v1699_v57, %v1698_v0  ;;  %v1528_v26 = vmul.f32 %v1514_v2, %v10912_v4  ;;  %v1704_v2 = vmul.f32 %v1690_v5, %v10912_v4 }
 0x292   :  { %v1447_v34 = vpack.c.bf16 %v1441_v49, %v1441_v49  ;;  %v1623_v36 = vpack.c.bf16 %v1617_v62, %v1617_v62  ;;  %v1622_v55 = vpack.c.bf16 %v1616_v40, %v1615_v24  ;;  %v1356_v23 = vpack.c.bf16 %v10899_v25, %v10899_v25 }
 0x293   :  { %v1535_v45 = vpack.c.bf16 %v1529_v8, %v1529_v8  ;;  %v1534_v21 = vpack.c.bf16 %v1528_v26, %v1527_v20  ;;  %v1359_v4 = vpack.c.bf16 %v11048_v59, %v11048_v59  ;;  %v1297_v16 = vmul.f32 %v11048_v59, %v10761_v43 }
 0x294   :  { %v1209_v63 = vmul.f32 %v11048_v59, %v10772_v53  ;;  %v1116_v43 = vmul.f32 %v10899_v25, %v10788_v58  ;;  %v1121_v28 = vmul.f32 %v11048_v59, %v10788_v58  ;;  %v1700_v53 = vmul.f32 %v10753_v39, %v10899_v25 }
 0x295   :  { %v1303_v44 = vpack.c.bf16 %v1297_v16, %v1297_v16  ;;  %v1705_v18 = vmul.f32 %v10753_v39, %v11048_v59 }
 0x296   :  { %v1708_v56 = vpack.c.bf16 %v1700_v53, %v1700_v53 }
 0x297   :  { %1544 = vrot.lane.b32.xlu1 %v1531_v27, %s14742_s12  ;;  %1228 = vrot.lane.b32.xlu2 %v1213_v47, %s14772_s26  ;;  %v1703_v27 = vmul.f32 %v1689_v37, %v10895_v22  ;;  %v1711_v60 = vpack.c.bf16 %v1705_v18, %v1705_v18 }
 0x299   :  { %1632 = vrot.lane.b32.xlu0 %v1619_v51, %s14769_s4  ;;  %v1710_v6 = vpack.c.bf16 %v1704_v2, %v1703_v27 }
 0x29f   :  { %1316 = vrot.lane.b32.xlu1 %v1301_v35, %s14771_s1  ;;  %1374 = vrot.lane.b32.xlu2 %v1358_v61, %s10250_s0 }
 0x2a1   :  { %1460 = vrot.lane.b32.xlu0 %v1445_v32, %s14737_s27 }
 0x2a7   :  { %1720 = vrot.lane.b32.xlu1 %v1707_v41, %s14770_s2  ;;  %1552 = vrot.lane.b32.xlu2 %v1535_v45, %s14742_s12 }
 0x2a9   :  { %1312 = vrot.lane.b32.xlu0 %v1299_v46, %s14771_s1 }
 0x2af   :  { %1224 = vrot.lane.b32.xlu1 %v1211_v13, %s14772_s26  ;;  %1464 = vrot.lane.b32.xlu2 %v1447_v34, %s14737_s27  ;;  %v1125_v13 = vpack.c.bf16 %v1118_v7, %v1117_v31 }
 0x2b1   :  { %1550 = vrot.lane.b32.xlu0 %v1534_v21, %s14742_s12 }
 0x2b7   :  { %1640 = vrot.lane.b32.xlu1 %v1623_v36, %s14769_s4  ;;  %1638 = vrot.lane.b32.xlu2 %v1622_v55, %s14769_s4 }
 0x2b9   :  { %1726 = vrot.lane.b32.xlu0 %v1710_v6, %s14770_s2 }
 0x2bf   :  { %1462 = vrot.lane.b32.xlu1 %v1446_v42, %s14737_s27  ;;  %1140 = vrot.lane.b32.xlu2 %v1125_v13, %s14773_s21  ;;  %v1215_v42 = vpack.c.bf16 %v1209_v63, %v1209_v63 }
 0x2c1   :  { %v11098_v22 = vpop.permute.xlu2 %1366  ;;  %1230 = vrot.lane.b32.xlu0 %v1214_v1, %s14772_s26  ;;  %v1124_v1 = vpack.c.bf16 %v1116_v43, %v1116_v43 }
 0x2c2   :  { %v1378_v8 = vrot.slane %v11098_v22, 4 }
 0x2c7   :  { %1136 = vrot.lane.b32.xlu1 %v1123_v48, %s14773_s21  ;;  %1318 = vrot.lane.b32.xlu2 %v1302_v50, %s14771_s1  ;;  %v1127_v50 = vpack.c.bf16 %v1121_v28, %v1121_v28 }
 0x2c9   :  { %v11112_v54 = vpop.permute.xlu2 %1630  ;;  %1142 = vrot.lane.b32.xlu0 %v1126_v38, %s14773_s21 }
 0x2ca   :  { %v1642_v55 = vrot.slane %v11112_v54, 4 }
 0x2cf   :  { %1370 = vrot.lane.b32.xlu1 %v1356_v23, %s10250_s0  ;;  %1376 = vrot.lane.b32.xlu2 %v1359_v4, %s10250_s0 }
 0x2d1   :  { %v11126_v15 = vpop.permute.xlu2 %1310  ;;  %1314 = vrot.lane.b32.xlu0 %v1300_v12, %s14771_s1 }
 0x2d7   :  { %1320 = vrot.lane.b32.xlu1 %v1303_v44, %s14771_s1  ;;  %1226 = vrot.lane.b32.xlu2 %v1212_v3, %s14772_s26 }
 0x2d9   :  { %v11137_v48 = vpop.permute.xlu2 %1548  ;;  %1232 = vrot.lane.b32.xlu0 %v1215_v42, %s14772_s26 }
 0x2db   :  { %v1543_v29 = vpop.permute.xlu0 %1542  ;;  %v1455_v14 = vpop.permute.xlu1 %1454 }
 0x2dc   :  { %v1466_v33 = vrot.slane %v1455_v14, 4  ;;  %v1554_v24 = vrot.slane %v1543_v29, 4 }
 0x2df   :  { %1138 = vrot.lane.b32.xlu1 %v1124_v1, %s14773_s21  ;;  %1144 = vrot.lane.b32.xlu2 %v1127_v50, %s14773_s21 }
 0x2e1   :  { %v1457_v38 = vpop.permute.xlu2 %1456  ;;  %1722 = vrot.lane.b32.xlu0 %v1708_v56, %s14770_s2 }
 0x2e2   :  { %v1467_v58 = vrot.slane %v1457_v38, 4 }
 0x2e3   :  { %v11151_v47 = vpop.permute.xlu0 %1718 }
 0x2e4   :  { %v1472_v25 = vsel %vm218_vm3, %v1466_v33, %v1467_v58 }
 0x2e5   :  { %v1473_v51 = vsel %vm439_vm11, %v1455_v14, %v1472_v25  ;;  %v1322_v14 = vrot.slane %v11126_v15, 4 }
 0x2e6   :  { %1484 = vst [vmem:[#allocation3 + $0xa0] sm:$0xff] %v1473_v51 }
 0x2e7   :  { %1728 = vrot.lane.b32.xlu1 %v1711_v60, %s14770_s2 }
 0x2e9   :  { %v1373_v9 = vpop.permute.xlu1 %1372  ;;  %v11156_v30 = vpop.permute.xlu2 %1724 }
 0x2ea   :  { %v1381_v5 = vrot.slane %v1373_v9, 4 }
 0x2eb   :  { %v11158_v10 = vpop.permute.xlu0 %1222 }
 0x2f1   :  { %v1547_v35 = vpop.permute.xlu1 %1546  ;;  %v11160_v61 = vpop.permute.xlu2 %1228 }
 0x2f2   :  { %v1556_v2 = vrot.slane %v1547_v35, 4 }
 0x2f3   :  { %v11162_v39 = vpop.permute.xlu0 %1134 }
 0x2f9   :  { %v1459_v59 = vpop.permute.xlu1 %1458  ;;  %v11164_v32 = vpop.permute.xlu2 %1374 }
 0x2fa   :  { %v1468_v37 = vrot.slane %v1459_v59, 4  ;;  %v1382_v0 = vrot.slane %v11164_v32, 4 }
 0x2fb   :  { %v11167_v57 = vpop.permute.xlu0 %1368 }
 0x2fc   :  { %v1474_v17 = vsel %vm218_vm3, %v1467_v58, %v1468_v37  ;;  %v1388_v19 = vsel %vm218_vm3, %v1381_v5, %v1382_v0  ;;  %v1379_v41 = vrot.slane %v11167_v57, 4 }
 0x2fd   :  { %v1475_v45 = vsel %vm439_vm11, %v1457_v38, %v1474_v17  ;;  %v1389_v46 = vsel %vm14750_vm6, %v1373_v9, %v1388_v19 }
 0x2fe   :  { %1485 = vst [vmem:[#allocation3 + $0xa8] sm:$0xff] %v1475_v45  ;;  %v1384_v49 = vsel %vm218_vm3, %v1378_v8, %v1379_v41  ;;  %v1557_v45 = vrot.slane %v11137_v48, 4 }
 0x2ff   :  { %1398 = vst [vmem:[#allocation3 + $0x90] sm:$0xff] %v1389_v46  ;;  %v1385_v26 = vsel %vm14750_vm6, %v11098_v22, %v1384_v49 }
 0x300   :  { %1396 = vst [vmem:[#allocation3 + $0x80] sm:$0xff] %v1385_v26 }
 0x301   :  { %v1637_v34 = vpop.permute.xlu1 %1636  ;;  %v11182_v20 = vpop.permute.xlu2 %1552 }
 0x302   :  { %v1645_v44 = vrot.slane %v1637_v34, 4  ;;  %v1559_v49 = vrot.slane %v11182_v20, 4 }
 0x303   :  { %v1635_v21 = vpop.permute.xlu0 %1634 }
 0x304   :  { %v1644_v6 = vrot.slane %v1635_v21, 4 }
 0x309   :  { %v1545_v62 = vpop.permute.xlu1 %1544  ;;  %v11184_v40 = vpop.permute.xlu2 %1464 }
 0x30a   :  { %v1555_v36 = vrot.slane %v1545_v62, 4 }
 0x30b   :  { %v1633_v27 = vpop.permute.xlu0 %1632 }
 0x30c   :  { %v1560_v31 = vsel %vm218_vm3, %v1554_v24, %v1555_v36  ;;  %v1562_v7 = vsel %vm218_vm3, %v1555_v36, %v1556_v2  ;;  %v1643_v13 = vrot.slane %v1633_v27, 4 }
 0x30d   :  { %v1561_v22 = vsel %vm14748_vm9, %v1543_v29, %v1560_v31  ;;  %v1563_v11 = vsel %vm14748_vm9, %v1545_v62, %v1562_v7  ;;  %v1733_v7 = vrot.slane %v11156_v30, 4 }
 0x30e   :  { %1572 = vst [vmem:[#allocation3 + $0xc0] sm:$0xff] %v1561_v22  ;;  %v1648_v23 = vsel %vm218_vm3, %v1642_v55, %v1643_v13  ;;  %v1650_v4 = vsel %vm218_vm3, %v1643_v13, %v1644_v6 }
 0x30f   :  { %1573 = vst [vmem:[#allocation3 + $0xc8] sm:$0xff] %v1563_v11  ;;  %v1649_v12 = vsel %vm14749_vm7, %v11112_v54, %v1648_v23  ;;  %v1651_v16 = vsel %vm14749_vm7, %v1633_v27, %v1650_v4  ;;  %v1730_v54 = vrot.slane %v11151_v47, 4 }
 0x310   :  { %1660 = vst [vmem:[#allocation3 + $0xe0] sm:$0xff] %v1649_v12 }
 0x311   :  { %1661 = vst [vmem:[#allocation3 + $0xe8] sm:$0xff] %v1651_v16  ;;  %v1317_v52 = vpop.permute.xlu1 %1316  ;;  %v1639_v63 = vpop.permute.xlu2 %1638 }
 0x312   :  { %v1646_v3 = vrot.slane %v1639_v63, 4  ;;  %v1325_v8 = vrot.slane %v1317_v52, 4 }
 0x313   :  { %v11196_v42 = vpop.permute.xlu0 %1460 }
 0x314   :  { %v1652_v43 = vsel %vm218_vm3, %v1645_v44, %v1646_v3 }
 0x315   :  { %v1653_v28 = vsel %vm14749_vm7, %v1637_v34, %v1652_v43  ;;  %v8809_v12 = vld [vmem:[#allocation3 + $0xc0] sm:$0xf]  ;;  %v9903_v16 = vld [vmem:[#allocation3 + $0xc4] sm:$0xf] }
 0x316   :  { %1662 = vst [vmem:[#allocation3 + $0xf0] sm:$0xff] %v1653_v28 }
 0x317   :  { %v8825_v18 = vld [vmem:[#allocation3 + $0xe0] sm:$0xf]  ;;  %v9907_v25 = vld [vmem:[#allocation3 + $0xe4] sm:$0xf] }
 0x319   :  { %v11200_v29 = vpop.permute.xlu1 %1720  ;;  %v11202_v53 = vpop.permute.xlu2 %1140 }
 0x31a   :  { %v1731_v1 = vrot.slane %v11200_v29, 4 }
 0x31b   :  { %v11206_v50 = vpop.permute.xlu0 %1312 }
 0x31c   :  { %v1736_v56 = vsel %vm218_vm3, %v1730_v54, %v1731_v1  ;;  %v1323_v38 = vrot.slane %v11206_v50, 4  ;;  %v1469_v54 = vrot.slane %v11196_v42, 4 }
 0x31d   :  { %v1737_v33 = vsel %vm14774_vm13, %v11151_v47, %v1736_v56  ;;  %v9909_v58 = vld [vmem:[#allocation3 + $0xec] sm:$0xf0]  ;;  %v8827_v51 = vld [vmem:[#allocation3 + $0xf0] sm:$0xf0]  ;;  %v1234_v47 = vrot.slane %v11158_v10, 4 }
 0x31e   :  { %1748 = vst [vmem:[#allocation3 + $0x100] sm:$0xff] %v1737_v33  ;;  %v1328_v60 = vsel %vm218_vm3, %v1322_v14, %v1323_v38  ;;  %v8826_v9 = vor.u32 %v9909_v58, %v8825_v18  ;;  %v8830_v35 = vor.u32 %v9907_v25, %v8827_v51  ;;  %v1237_v18 = vrot.slane %v11160_v61, 4 }
 0x31f   :  { %v1329_v59 = vsel %vm14775_vm8, %v11126_v15, %v1328_v60 }
 0x320   :  { %1340 = vst [vmem:[#allocation3 + $0x60] sm:$0xff] %v1329_v59  ;;  %1982 = vmatpush.bf16.msra.mxu2 %v8826_v9  ;;  %2008 = vmatpush.bf16.msra.mxu0 %v8830_v35  ;;  %v8833_v35 = vld [vmem:[#allocation3 + $0xe8] sm:$0xf] }
 0x321   :  { %v1225_v5 = vpop.permute.xlu1 %1224  ;;  %v11220_v37 = vpop.permute.xlu2 %1318 }
 0x322   :  { %v1235_v17 = vrot.slane %v1225_v5, 4  ;;  %v1326_v19 = vrot.slane %v11220_v37, 4 }
 0x323   :  { %v1551_v46 = vpop.permute.xlu0 %1550 }
 0x324   :  { %v1240_v26 = vsel %vm218_vm3, %v1234_v47, %v1235_v17  ;;  %v1332_v15 = vsel %vm218_vm3, %v1325_v8, %v1326_v19  ;;  %v1558_v34 = vrot.slane %v1551_v46, 4 }
 0x325   :  { %v1241_v21 = vsel %vm14747_vm12, %v11158_v10, %v1240_v26  ;;  %v1333_v62 = vsel %vm14775_vm8, %v1317_v52, %v1332_v15  ;;  %v8841_v47 = vld [vmem:[#allocation3 + $0x100] sm:$0xf] }
 0x326   :  { %1252 = vst [vmem:[#allocation3 + $0x40] sm:$0xff] %v1241_v21  ;;  %v1564_v24 = vsel %vm218_vm3, %v1557_v45, %v1558_v34  ;;  %v1566_v2 = vsel %vm218_vm3, %v1558_v34, %v1559_v49  ;;  %v11272_v34 = vld.sshfl [vmem:[#allocation1 + $0x8] sm:$0xff pattern:$0x73625140]  ;;  %v5084_v21 = vld [vmem:[%s14704_s10] sm:$0xf] }
 0x327   :  { %1342 = vst [vmem:[#allocation3 + $0x70] sm:$0xff] %v1333_v62  ;;  %v1565_v20 = vsel %vm14748_vm9, %v11137_v48, %v1564_v24  ;;  %v1567_v36 = vsel %vm14748_vm9, %v1551_v46, %v1566_v2  ;;  %v8817_v2 = vld [vmem:[#allocation3 + $0xc8] sm:$0xf]  ;;  %s14780_s10 = smov 34  }
 0x328   :  { %1574 = vst [vmem:[#allocation3 + $0xd0] sm:$0xff] %v1565_v20  ;;  %v11279_v20 = vld.sshfl [vmem:[#allocation1] sm:$0xff pattern:$0x73625140] }
 0x329   :  { %1575 = vst [vmem:[#allocation3 + $0xd8] sm:$0xff] %v1567_v36  ;;  %v1641_v55 = vpop.permute.xlu1 %1640  ;;  %v1377_v27 = vpop.permute.xlu2 %1376 }
 0x32a   :  { %v1647_v6 = vrot.slane %v1641_v55, 4  ;;  %v1383_v31 = vrot.slane %v1377_v27, 4  ;;  %5128 = vst [vmem:[#allocation1] ss:$4 sm:$0xff] %v5084_v21 }
 0x32b   :  { %v11238_v10 = vpop.permute.xlu0 %1726 }
 0x32c   :  { %v1654_v13 = vsel %vm218_vm3, %v1646_v3, %v1647_v6  ;;  %v1390_v22 = vsel %vm218_vm3, %v1382_v0, %v1383_v31  ;;  %v1734_v48 = vrot.slane %v11238_v10, 4  ;;  %v8793_v31 = vld [vmem:[#allocation3 + $0xa0] sm:$0xf] }
 0x32d   :  { %v1655_v11 = vsel %vm14749_vm7, %v1639_v63, %v1654_v13  ;;  %v1391_v23 = vsel %vm14750_vm6, %v11164_v32, %v1390_v22  ;;  %v1471_v32 = vrot.slane %v11184_v40, 4  ;;  %v1149_v13 = vrot.slane %v11202_v53, 4 }
 0x32e   :  { %1663 = vst [vmem:[#allocation3 + $0xf8] sm:$0xff] %v1655_v11  ;;  %v1740_v4 = vsel %vm218_vm3, %v1733_v7, %v1734_v48  ;;  %v9899_v7 = vld [vmem:[#allocation3 + $0xa4] sm:$0xf] }
 0x32f   :  { %1399 = vst [vmem:[#allocation3 + $0x98] sm:$0xff] %v1391_v23  ;;  %v1741_v52 = vsel %vm14774_vm13, %v11156_v30, %v1740_v4  ;;  %v9905_v44 = vld [vmem:[#allocation3 + $0xcc] sm:$0xf0]  ;;  %v8811_v0 = vld [vmem:[#allocation3 + $0xd0] sm:$0xf0]  ;;  %vm14776_vm13 = vmmov %vm14775_vm8 }
 0x330   :  { %1750 = vst [vmem:[#allocation3 + $0x110] sm:$0xff] %v1741_v52  ;;  %v8810_v3 = vor.u32 %v9905_v44, %v8809_v12  ;;  %v8814_v43 = vor.u32 %v9903_v16, %v8811_v0  ;;  %v9906_v46 = vld [vmem:[#allocation3 + $0xd4] sm:$0xf0]  ;;  %v9908_v4 = vld [vmem:[#allocation3 + $0xec] sm:$0xf] }
 0x331   :  { %v1463_v63 = vpop.permute.xlu1 %1462  ;;  %v1227_v28 = vpop.permute.xlu2 %1226  ;;  %v8818_v55 = vor.u32 %v9906_v46, %v8817_v2  ;;  %v8801_v44 = vld [vmem:[#allocation3 + $0xa8] sm:$0xf]  ;;  %v8763_v46 = vld [vmem:[#allocation3 + $0x70] sm:$0xf0] }
 0x332   :  { %v1470_v14 = vrot.slane %v1463_v63, 4  ;;  %v1236_v56 = vrot.slane %v1227_v28, 4  ;;  %1983 = vmatpush.bf16.msra.mxu2 %v8810_v3  ;;  %2009 = vmatpush.bf16.msra.mxu0 %v8814_v43 }
 0x333   :  { %v11257_v33 = vpop.permute.xlu0 %1230 }
 0x334   :  { %v1476_v30 = vsel %vm218_vm3, %v1469_v54, %v1470_v14  ;;  %v1478_v58 = vsel %vm218_vm3, %v1470_v14, %v1471_v32  ;;  %v1242_v25 = vsel %vm218_vm3, %v1235_v17, %v1236_v56  ;;  %v1238_v51 = vrot.slane %v11257_v33, 4  ;;  %v9911_v17 = vld [vmem:[#allocation3 + $0x104] sm:$0xf]  ;;  %v8819_v54 = vld [vmem:[#allocation3 + $0xd8] sm:$0xf0] }
 0x335   :  { %v1477_v40 = vsel %vm439_vm11, %v11196_v42, %v1476_v30  ;;  %v1479_v60 = vsel %vm439_vm11, %v1463_v63, %v1478_v58  ;;  %v1243_v9 = vsel %vm14747_vm12, %v1225_v5, %v1242_v25  ;;  %v9910_v59 = vld [vmem:[#allocation3 + $0xf4] sm:$0xf0]  ;;  %v8835_v27 = vld [vmem:[#allocation3 + $0xf8] sm:$0xf0]  ;;  %v9895_v30 = vld [vmem:[#allocation3 + $0x84] sm:$0xf] }
 0x336   :  { %1486 = vst [vmem:[#allocation3 + $0xb0] sm:$0xff] %v1477_v40  ;;  %v1244_v8 = vsel %vm218_vm3, %v1237_v18, %v1238_v51  ;;  %v8834_v45 = vor.u32 %v9910_v59, %v8833_v35  ;;  %v8838_v0 = vor.u32 %v9908_v4, %v8835_v27  ;;  %v8777_v18 = vld [vmem:[#allocation3 + $0x80] sm:$0xf]  ;;  %v9904_v58 = vld [vmem:[#allocation3 + $0xcc] sm:$0xf] }
 0x337   :  { %1487 = vst [vmem:[#allocation3 + $0xb8] sm:$0xff] %v1479_v60  ;;  %v1245_v49 = vsel %vm14747_vm12, %v11160_v61, %v1244_v8  ;;  %v9913_v42 = vld [vmem:[#allocation3 + $0x10c] sm:$0xf0]  ;;  %v8843_v26 = vld [vmem:[#allocation3 + $0x110] sm:$0xf0]  ;;  %v1146_v61 = vrot.slane %v11162_v39, 4 }
 0x338   :  { %1253 = vst [vmem:[#allocation3 + $0x48] sm:$0xff] %v1243_v9  ;;  %2034 = vmatpush.bf16.msrb.mxu3 %v8834_v45  ;;  %v8842_v5 = vor.u32 %v9913_v42, %v8841_v47  ;;  %v8846_v15 = vor.u32 %v9911_v17, %v8843_v26  ;;  %v9897_v40 = vld [vmem:[#allocation3 + $0x8c] sm:$0xf0]  ;;  %v8779_v60 = vld [vmem:[#allocation3 + $0x90] sm:$0xf0]  ;;  %v8822_v9 = vor.u32 %v9904_v58, %v8819_v54 }
 0x339   :  { %1254 = vst [vmem:[#allocation3 + $0x50] sm:$0xff] %v1245_v49  ;;  %v11277_v62 = vpop.permute.xlu1 %1136  ;;  %v1145_v24 = vpop.permute.xlu2 %1144  ;;  %v8778_v59 = vor.u32 %v9897_v40, %v8777_v18  ;;  %v8782_v47 = vor.u32 %v9895_v30, %v8779_v60  ;;  %v9893_v45 = vld [vmem:[#allocation3 + $0x6c] sm:$0xf0]  ;;  %v9900_v42 = vld [vmem:[#allocation3 + $0xac] sm:$0xf] }
 0x33a   :  { %v1147_v36 = vrot.slane %v11277_v62, 4  ;;  %2002 = vmatpush.bf16.msrb.mxu1 %v8842_v5  ;;  %v1151_v11 = vrot.slane %v1145_v24, 4  ;;  %v8761_v5 = vld [vmem:[#allocation3 + $0x60] sm:$0xf]  ;;  %v9881_v30 = vld [vmem:[#allocation3 + $0xc] sm:$0xf0] }
 0x33b   :  { %v1143_v6 = vpop.permute.xlu0 %1142  ;;  %v8762_v2 = vor.u32 %v9893_v45, %v8761_v5  ;;  %v8715_v58 = vld [vmem:[#allocation3 + $0x10] sm:$0xf0] }
 0x33c   :  { %v1152_v22 = vsel %vm218_vm3, %v1146_v61, %v1147_v36  ;;  %2035 = vmatpush.bf16.msrb.mxu3 %v8818_v55  ;;  %v1150_v23 = vrot.slane %v1143_v6, 4 }
 0x33d   :  { %v1153_v12 = vsel %vm14746_vm10, %v11162_v39, %v1152_v22  ;;  %v9901_v16 = vld [vmem:[#allocation3 + $0xac] sm:$0xf0]  ;;  %8855 = vmatmul.msk.bf16.vlgmr.msrb.gmra.mxu1 %vm314_vm15, %v11272_v34  ;;  %v8795_v52 = vld [vmem:[#allocation3 + $0xb0] sm:$0xf0] }
 0x33e   :  { %2028 = vmatpush.bf16.msra.mxu1 %v8846_v15  ;;  %1164 = vst [vmem:[#allocation3 + $0x20] sm:$0xff] %v1153_v12  ;;  %v1156_v3 = vsel %vm218_vm3, %v1149_v13, %v1150_v23  ;;  %v1158_v43 = vsel %vm218_vm3, %v1150_v23, %v1151_v11  ;;  %v8794_v63 = vor.u32 %v9901_v16, %v8793_v31  ;;  %v9902_v32 = vld [vmem:[#allocation3 + $0xb4] sm:$0xf0]  ;;  %v9891_v15 = vld [vmem:[#allocation3 + $0x64] sm:$0xf] }
 0x33f   :  { %v8798_v28 = vor.u32 %v9899_v7, %v8795_v52  ;;  %v1157_v14 = vsel %vm14746_vm10, %v11202_v53, %v1156_v3  ;;  %v1159_v39 = vsel %vm14746_vm10, %v1143_v6, %v1158_v43  ;;  %v8802_v56 = vor.u32 %v9902_v32, %v8801_v44  ;;  %v8803_v53 = vld [vmem:[#allocation3 + $0xb8] sm:$0xf0]  ;;  %v8745_v6 = vld [vmem:[#allocation3 + $0x40] sm:$0xf]  ;;  %v9887_v31 = vld [vmem:[#allocation3 + $0x44] sm:$0xf] }
 0x340   :  { %1166 = vst [vmem:[#allocation3 + $0x30] sm:$0xff] %v1157_v14  ;;  %1984 = vmatpush.bf16.msra.mxu2 %v8794_v63  ;;  %v8806_v21 = vor.u32 %v9900_v42, %v8803_v53  ;;  %v8766_v61 = vor.u32 %v9891_v15, %v8763_v46  ;;  %v9889_v55 = vld [vmem:[#allocation3 + $0x4c] sm:$0xf0]  ;;  %v8747_v27 = vld [vmem:[#allocation3 + $0x50] sm:$0xf0] }
 0x341   :  { %2010 = vmatpush.bf16.msra.mxu0 %v8798_v28  ;;  %1167 = vst [vmem:[#allocation3 + $0x38] sm:$0xff] %v1159_v39  ;;  %2036 = vmatpush.bf16.msrb.mxu3 %v8802_v56  ;;  %v1371_v25 = vpop.permute.xlu1 %1370  ;;  %v8746_v13 = vor.u32 %v9889_v55, %v8745_v6  ;;  %v8750_v22 = vor.u32 %v9887_v31, %v8747_v27  ;;  %v9898_v12 = vld [vmem:[#allocation3 + $0x94] sm:$0xf0]  ;;  %v11312_v16 = vld [vmem:[%s14762_s29 + $0x7] ss:$8 sm:$0xf] }
 0x342   :  { %2060 = vmatpush.bf16.msrb.mxu1 %v8838_v0  ;;  %v1380_v35 = vrot.slane %v1371_v25, 4  ;;  %v2445_v3 = vperm.slane %v11312_v16, 0  ;;  %v2447_v43 = vperm.slane %v11312_v16, 2  ;;  %v8787_v39 = vld [vmem:[#allocation3 + $0x98] sm:$0xf0] }
 0x343   :  { %v1315_v8 = vpop.permute.xlu0 %1314  ;;  %v11333_v25 = vld [vmem:[%s14762_s29 + $0x6] ss:$8 sm:$0xf] }
 0x344   :  { %v1386_v17 = vsel %vm218_vm3, %v1379_v41, %v1380_v35  ;;  %1985 = vmatpush.bf16.msra.mxu2 %v8778_v59  ;;  %v1324_v49 = vrot.slane %v1315_v8, 4  ;;  %2449 = vrot.lane.b32.xlu1 %v2445_v3, %s10240_s20 }
 0x345   :  { %2011 = vmatpush.bf16.msra.mxu0 %v8782_v47  ;;  %v1387_v26 = vsel %vm14750_vm6, %v11167_v57, %v1386_v17  ;;  %v8729_v11 = vld [vmem:[#allocation3 + $0x20] sm:$0xf]  ;;  %v9883_v0 = vld [vmem:[#allocation3 + $0x24] sm:$0xf]  ;;  %2453 = vrot.lane.b32.xlu0 %v2447_v43, %s10240_s20  ;;  %v2448_v47 = vperm.slane %v11312_v16, 3 }
 0x346   :  { %2061 = vmatpush.bf16.msrb.mxu1 %v8822_v9  ;;  %1397 = vst [vmem:[#allocation3 + $0x88] sm:$0xff] %v1387_v26  ;;  %v1330_v24 = vsel %vm218_vm3, %v1323_v38, %v1324_v49  ;;  %v9879_v9 = vld [vmem:[#allocation3 + $0x4] sm:$0xf] }
 0x347   :  { %v1331_v41 = vsel %vm14775_vm8, %v11206_v50, %v1330_v24  ;;  %v9885_v23 = vld [vmem:[#allocation3 + $0x2c] sm:$0xf0]  ;;  %v8731_v38 = vld [vmem:[#allocation3 + $0x30] sm:$0xf0]  ;;  %v1789_v50 = vld [vmem:[%s14705_s5] sm:$0xf]  ;;  %v8718_v59 = vor.u32 %v9879_v9, %v8715_v58 }
 0x348   :  { %1341 = vst [vmem:[#allocation3 + $0x68] sm:$0xff] %v1331_v41  ;;  %1986 = vmatpush.bf16.msra.mxu2 %v8762_v2  ;;  %v8730_v28 = vor.u32 %v9885_v23, %v8729_v11  ;;  %v8734_v32 = vor.u32 %v9883_v0, %v8731_v38  ;;  %1792 = vperm.xlu2 %10157, %v1789_v50   ;;  %v8753_v24 = vld [vmem:[#allocation3 + $0x48] sm:$0xf]  ;;  %vm14777_vm8 = vcmask 769024   ;;  %v9888_v2 = vld [vmem:[#allocation3 + $0x4c] sm:$0xf] }
 0x349   :  { %2012 = vmatpush.bf16.msra.mxu0 %v8766_v61  ;;  %v1321_v57 = vpop.permute.xlu1 %1320  ;;  %v9886_v6 = vld [vmem:[#allocation3 + $0x34] sm:$0xf0]  ;;  %s14781_s5 = smov 110  }
 0x34a   :  { %2062 = vmatpush.bf16.msrb.mxu1 %v8806_v21  ;;  %v1327_v7 = vrot.slane %v1321_v57, 4  ;;  %v2392_v57 = vperm.slane %v11333_v25, 2  ;;  %v9882_v38 = vld [vmem:[#allocation3 + $0x14] sm:$0xf0] }
 0x34b   :  { %v1233_v4 = vpop.permute.xlu0 %1232 }
 0x34c   :  { %v1334_v52 = vsel %vm218_vm3, %v1326_v19, %v1327_v7  ;;  %1987 = vmatpush.bf16.msra.mxu2 %v8746_v13  ;;  %v1239_v44 = vrot.slane %v1233_v4, 4  ;;  %2455 = vrot.lane.b32.xlu1 %v2448_v47, %s10240_s20  ;;  %v8723_v4 = vld [vmem:[#allocation3 + $0x18] sm:$0xf0] }
 0x34d   :  { %2013 = vmatpush.bf16.msra.mxu0 %v8750_v22  ;;  %v1335_v63 = vsel %vm14776_vm13, %v11220_v37, %v1334_v52  ;;  %v8785_v54 = vld [vmem:[#allocation3 + $0x88] sm:$0xf]  ;;  %v9896_v14 = vld [vmem:[#allocation3 + $0x8c] sm:$0xf]  ;;  %8856 = vmatmul.msk.bf16.vlgmr.msra.gmra.mxu1 %vm314_vm15, %v11272_v34  ;;  %vm14778_vm13 = vmmov %vm14777_vm8 }
 0x34e   :  { %1343 = vst [vmem:[#allocation3 + $0x78] sm:$0xff] %v1335_v63  ;;  %v1246_v19 = vsel %vm218_vm3, %v1238_v51, %v1239_v44  ;;  %v8786_v56 = vor.u32 %v9898_v12, %v8785_v54  ;;  %v8790_v18 = vor.u32 %v9896_v14, %v8787_v39  ;;  %v8713_v51 = vld [vmem:[#allocation3] sm:$0xf]  ;;  %v8739_v22 = vld [vmem:[#allocation3 + $0x38] sm:$0xf0] }
 0x34f   :  { %v1247_v37 = vsel %vm14747_vm12, %v11257_v33, %v1246_v19  ;;  %v8714_v60 = vor.u32 %v9881_v30, %v8713_v51  ;;  %v2391_v33 = vperm.slane %v11333_v25, 1  ;;  %v8769_v46 = vld [vmem:[#allocation3 + $0x68] sm:$0xf]  ;;  %v9892_v42 = vld [vmem:[#allocation3 + $0x6c] sm:$0xf] }
 0x350   :  { %1255 = vst [vmem:[#allocation3 + $0x58] sm:$0xff] %v1247_v37  ;;  %1988 = vmatpush.bf16.msra.mxu2 %v8730_v28  ;;  %2037 = vmatpush.bf16.msrb.mxu3 %v8786_v56  ;;  %v8721_v12 = vld [vmem:[#allocation3 + $0x8] sm:$0xf]  ;;  %v8862_v28 = vld [vmem:[%s14762_s29 + $0x5] ss:$8 sm:$0xf] }
 0x351   :  { %2014 = vmatpush.bf16.msra.mxu0 %v8734_v32  ;;  %2063 = vmatpush.bf16.msrb.mxu1 %v8790_v18  ;;  %v1139_v40 = vpop.permute.xlu1 %1138  ;;  %v8722_v50 = vor.u32 %v9882_v38, %v8721_v12  ;;  %v2446_v32 = vperm.slane %v11312_v16, 1  ;;  %v2335_v54 = vperm.slane %v8862_v28, 0  ;;  %v2336_v14 = vperm.slane %v8862_v28, 1  ;;  %v8861_v39 = vld [vmem:[%s14762_s29 + $0x3] ss:$8 sm:$0xf] }
 0x352   :  { %v1148_v35 = vrot.slane %v1139_v40, 4  ;;  %2396 = vrot.lane.b32.xlu0 %v2391_v33, %s10242_s25  ;;  %v2252_v19 = vperm.slane %v8861_v39, 0  ;;  %v2254_v16 = vperm.slane %v8861_v39, 2  ;;  %v2255_v56 = vperm.slane %v8861_v39, 3 }
 0x353   :  { %v1723_v53 = vpop.permute.xlu0 %1722  ;;  %2451 = vrot.lane.b32.xlu2 %v2446_v32, %s10240_s20  ;;  %v2393_v18 = vperm.slane %v11333_v25, 3  ;;  %v8860_v30 = vld [vmem:[%s14762_s29 + $0x2] ss:$8 sm:$0xf]  ;;  %v2337_v37 = vperm.slane %v8862_v28, 2  ;;  %v2253_v40 = vperm.slane %v8861_v39, 1 }
 0x354   :  { %v1154_v8 = vsel %vm218_vm3, %v1147_v36, %v1148_v35  ;;  %1989 = vmatpush.bf16.msra.mxu2 %v8714_v60  ;;  %v1732_v45 = vrot.slane %v1723_v53, 4  ;;  %2398 = vrot.lane.b32.xlu1 %v2392_v57, %s10242_s25  ;;  %v2198_v58 = vperm.slane %v8860_v30, 1  ;;  %v2197_v60 = vperm.slane %v8860_v30, 0 }
 0x355   :  { %2015 = vmatpush.bf16.msra.mxu0 %v8718_v59  ;;  %v1155_v17 = vsel %vm14746_vm10, %v11277_v62, %v1154_v8  ;;  %v9894_v49 = vld [vmem:[#allocation3 + $0x74] sm:$0xf0]  ;;  %v8771_v26 = vld [vmem:[#allocation3 + $0x78] sm:$0xf0] }
 0x356   :  { %1165 = vst [vmem:[#allocation3 + $0x28] sm:$0xff] %v1155_v17  ;;  %v1738_v5 = vsel %vm218_vm3, %v1731_v1, %v1732_v45  ;;  %v8770_v15 = vor.u32 %v9894_v49, %v8769_v46  ;;  %v8774_v21 = vor.u32 %v9892_v42, %v8771_v26  ;;  %v2199_v49 = vperm.slane %v8860_v30, 2  ;;  %v8859_v26 = vld [vmem:[%s14762_s29 + $0x1] ss:$8 sm:$0xf] }
 0x357   :  { %v1739_v36 = vsel %vm14777_vm8, %v11200_v29, %v1738_v5  ;;  %1990 = vmatmul.bf16.vlgmr.msra.gmra.mxu2 %v11279_v20  ;;  %v9890_v62 = vld [vmem:[#allocation3 + $0x54] sm:$0xf0]  ;;  %v8755_v61 = vld [vmem:[#allocation3 + $0x58] sm:$0xf0]  ;;  %v2142_v57 = vperm.slane %v8859_v26, 0  ;;  %vm14740_vm8 = vcmask 1043592  }
 0x358   :  { %2016 = vmatmul.bf16.vlgmr.msra.gmra.mxu0 %v11279_v20  ;;  %1749 = vst [vmem:[#allocation3 + $0x108] sm:$0xff] %v1739_v36  ;;  %2038 = vmatpush.bf16.msrb.mxu3 %v8770_v15  ;;  %v8754_v1 = vor.u32 %v9890_v62, %v8753_v24  ;;  %v8758_v41 = vor.u32 %v9888_v2, %v8755_v61  ;;  %v2143_v15 = vperm.slane %v8859_v26, 1  ;;  %v8865_v2 = vld [vmem:[%s14762_s29 + $0x20] ss:$8 sm:$0xf] }
 0x359   :  { %2064 = vmatpush.bf16.msrb.mxu1 %v8774_v21  ;;  %v1729_v55 = vpop.permute.xlu1 %1728  ;;  %v2501_v38 = vperm.slane %v8865_v2, 1 }
 0x35a   :  { %v1735_v27 = vrot.slane %v1729_v55, 4  ;;  %2339 = vrot.lane.b32.xlu0 %v2335_v54, %s14744_s19 }
 0x35c   :  { %v1742_v29 = vsel %vm218_vm3, %v1734_v48, %v1735_v27  ;;  %2039 = vmatpush.bf16.msrb.mxu3 %v8754_v1  ;;  %v9880_v48 = vld [vmem:[#allocation3 + $0xc] sm:$0xf]  ;;  %2341 = vrot.lane.b32.xlu1 %v2336_v14, %s14744_s19 }
 0x35d   :  { %2065 = vmatpush.bf16.msrb.mxu1 %v8758_v41  ;;  %v1743_v31 = vsel %vm14778_vm13, %v11238_v10, %v1742_v29  ;;  %v8737_v7 = vld [vmem:[#allocation3 + $0x28] sm:$0xf]  ;;  %v9884_v13 = vld [vmem:[#allocation3 + $0x2c] sm:$0xf]  ;;  %v8726_v52 = vor.u32 %v9880_v48, %v8723_v4  ;;  %v2500_v41 = vperm.slane %v8865_v2, 0  ;;  %vm14739_vm13 = vcmask 134144  }
 0x35e   :  { %1751 = vst [vmem:[#allocation3 + $0x118] sm:$0xff] %v1743_v31  ;;  %v8738_v11 = vor.u32 %v9886_v6, %v8737_v7  ;;  %v8742_v23 = vor.u32 %v9884_v13, %v8739_v22  ;;  %v2503_v31 = vperm.slane %v8865_v2, 3  ;;  %v2200_v7 = vperm.slane %v8860_v30, 3 }
 0x35f   :  { %v8849_v44 = vld [vmem:[#allocation3 + $0x108] sm:$0xf]  ;;  %v9912_v0 = vld [vmem:[#allocation3 + $0x10c] sm:$0xf]  ;;  %v2145_v22 = vperm.slane %v8859_v26, 3 }
 0x360   :  { %2040 = vmatpush.bf16.msrb.mxu3 %v8738_v11  ;;  %v2144_v11 = vperm.slane %v8859_v26, 2 }
 0x361   :  { %2066 = vmatpush.bf16.msrb.mxu1 %v8742_v23  ;;  %v2502_v23 = vperm.slane %v8865_v2, 2 }
 0x364   :  { %2041 = vmatpush.bf16.msrb.mxu3 %v8722_v50  ;;  %2256 = vrot.lane.b32.xlu1 %v2252_v19, %s10245_s22 }
 0x365   :  { %2067 = vmatpush.bf16.msrb.mxu1 %v8726_v52  ;;  %v9914_v10 = vld [vmem:[#allocation3 + $0x114] sm:$0xf0]  ;;  %v8851_v3 = vld [vmem:[#allocation3 + $0x118] sm:$0xf0] }
 0x366   :  { %v8850_v43 = vor.u32 %v9914_v10, %v8849_v44  ;;  %v8854_v63 = vor.u32 %v9912_v0, %v8851_v3 }
 0x367   :  { %2042 = vmatmul.bf16.vlgmr.msrb.gmra.mxu3 %v11279_v20 }
 0x368   :  { %2068 = vmatmul.bf16.vlgmr.msrb.gmra.mxu1 %v11279_v20  ;;  %2054 = vmatpush.bf16.msrb.mxu2 %v8850_v43  ;;  %v2338_v20 = vperm.slane %v8862_v28, 3 }
 0x369   :  { %2080 = vmatpush.bf16.msrb.mxu0 %v8854_v63 }
 0x36a   :  { %2345 = vrot.lane.b32.xlu0 %v2338_v20, %s14744_s19 }
 0x36b   :  { %8857 = vmatmul.msk.bf16.vlgmr.msrb.gmra.mxu2 %vm314_vm15, %v11272_v34 }
 0x36c   :  { %8858 = vmatmul.msk.bf16.vlgmr.msrb.gmra.mxu0 %vm314_vm15, %v11272_v34  ;;  %v2390_v34 = vperm.slane %v11333_v25, 0  ;;  %2262 = vrot.lane.b32.xlu1 %v2255_v56, %s10245_s22 }
 0x36e   :  { %2394 = vrot.lane.b32.xlu2 %v2390_v34, %s10242_s25 }
 0x372   :  { %2260 = vrot.lane.b32.xlu0 %v2254_v16, %s10245_s22 }
 0x376   :  { %2400 = vrot.lane.b32.xlu2 %v2393_v18, %s10242_s25 }
 0x37a   :  { %2203 = vrot.lane.b32.xlu0 %v2198_v58, %s10246_s24 }
 0x37e   :  { %2343 = vrot.lane.b32.xlu2 %v2337_v37, %s14744_s19  ;;  %v11455_v37 = vld [vmem:[%s14762_s29] ss:$8 sm:$0xf] }
 0x386   :  { %2258 = vrot.lane.b32.xlu2 %v2253_v40, %s10245_s22 }
 0x38e   :  { %2201 = vrot.lane.b32.xlu2 %v2197_v60, %s10246_s24 }
 0x3a2   :  { %v1793_v35 = vpop.permute.xlu2 %1792 }
 0x3ad   :  { %v11421_v12 = vpop.permute.xlu2 %2451 }
 0x3b6   :  { %v2450_v4 = vpop.permute.xlu1 %2449 }
 0x3b7   :  { %v11423_v48 = vpop.permute.xlu0 %2453 }
 0x3ba   :  { %v2004_v51 = vpop.f32.mrf.mxu1 }
 0x3be   :  { %v11425_v50 = vpop.permute.xlu1 %2455 }
 0x3c2   :  { %v2006_v25 = vpop.f32.mrf.mxu1 }
 0x3c4   :  { %v11427_v44 = vpop.permute.xlu0 %2396 }
 0x3c6   :  { %v11429_v10 = vpop.permute.xlu1 %2398 }
 0x3c8   :  { %v2395_v52 = vpop.permute.xlu2 %2394 }
 0x3c9   :  { %v2402_v25 = vsel %vm471_vm5, %v2395_v52, %v11427_v44 }
 0x3ca   :  { %v2030_v9 = vpop.f32.mrf.mxu1 }
 0x3cc   :  { %v2340_v3 = vpop.permute.xlu0 %2339 }
 0x3ce   :  { %v11433_v43 = vpop.permute.xlu1 %2341 }
 0x3cf   :  { %v2347_v60 = vsel %vm409_vm14, %v2340_v3, %v11433_v43 }
 0x3d0   :  { %v11431_v0 = vpop.permute.xlu2 %2400 }
 0x3d2   :  { %v2032_v59 = vpop.f32.mrf.mxu1 }
 0x3d5   :  { %v2017_v47 = vpop.f32.mrf.mxu0 }
 0x3d6   :  { %v2018_v33 = vadd.f32 %v2017_v47, %v1793_v35  ;;  %v2257_v32 = vpop.permute.xlu1 %2256 }
 0x3d8   :  { %v11389_v53 = vadd.f32 %v2030_v9, %v2018_v33  ;;  %v11435_v63 = vpop.permute.xlu2 %2343 }
 0x3da   :  { %2092 = vrot.lane.b32.xlu1 %v11389_v53, %s10241_s23  ;;  %v1991_v8 = vpop.f32.mrf.mxu2 }
 0x3db   :  { %v1992_v45 = vadd.f32 %v1991_v8, %v1793_v35 }
 0x3dc   :  { %v11437_v28 = vpop.permute.xlu0 %2345 }
 0x3dd   :  { %v2019_v46 = vpop.f32.mrf.mxu0  ;;  %v11393_v17 = vadd.f32 %v2004_v51, %v1992_v45 }
 0x3de   :  { %v11443_v20 = vpop.permute.xlu1 %2262 }
 0x3df   :  { %2090 = vrot.lane.b32.xlu0 %v11393_v17, %s10241_s23 }
 0x3e0   :  { %v11439_v54 = vpop.permute.xlu2 %2258 }
 0x3e2   :  { %2205 = vrot.lane.b32.xlu1 %v2199_v49, %s10246_s24  ;;  %v1993_v42 = vpop.f32.mrf.mxu2  ;;  %v2119_v49 = vperm.slane %v11455_v37, 0 }
 0x3e4   :  { %v11441_v14 = vpop.permute.xlu0 %2260 }
 0x3e5   :  { %v2069_v5 = vpop.f32.mrf.mxu1 }
 0x3e6   :  { %v2070_v21 = vadd.f32 %v2069_v5, %v1793_v35  ;;  %v2120_v5 = vperm.slane %v11455_v37, 1 }
 0x3e8   :  { %v11445_v39 = vpop.permute.xlu2 %2201 }
 0x3e9   :  { %v2082_v24 = vpop.f32.mrf.mxu0 }
 0x3ea   :  { %v11401_v36 = vadd.f32 %v2082_v24, %v2070_v21  ;;  %2148 = vrot.lane.b32.xlu1 %v2143_v15, %s10247_s30  ;;  %v2043_v62 = vpop.f32.mrf.mxu3 }
 0x3eb   :  { %v2044_v1 = vadd.f32 %v2043_v62, %v1793_v35  ;;  %v2457_v62 = vsel %vm533_vm4, %v2450_v4, %v11421_v12 }
 0x3ec   :  { %2096 = vrot.lane.b32.xlu0 %v11401_v36, %s10241_s23  ;;  %v11447_v34 = vpop.permute.xlu0 %2203 }
 0x3ed   :  { %v2071_v61 = vpop.f32.mrf.mxu1 }
 0x3ee   :  { %v2056_v55 = vpop.f32.mrf.mxu2 }
 0x3ef   :  { %v11409_v27 = vadd.f32 %v2056_v55, %v2044_v1 }
 0x3f1   :  { %14779 = vst [vmem:[#allocation4_spill] sm:$0xff] %v11409_v27  ;;  %v2084_v29 = vpop.f32.mrf.mxu0  ;;  %2094 = vrot.lane.b32.xlu2 %v11409_v27, %s10241_s23 }
 0x3f2   :  { %2504 = vrot.lane.b32.xlu1 %v2500_v41, %s14780_s10  ;;  %v2045_v6 = vpop.f32.mrf.mxu3 }
 0x3f4   :  { %2146 = vrot.lane.b32.xlu0 %v2142_v57, %s10247_s30 }
 0x3f6   :  { %v2058_v13 = vpop.f32.mrf.mxu2 }
 0x3f9   :  { %2207 = vrot.lane.b32.xlu2 %v2200_v7, %s10246_s24 }
 0x3fa   :  { %2510 = vrot.lane.b32.xlu1 %v2503_v31, %s14780_s10 }
 0x3fc   :  { %2152 = vrot.lane.b32.xlu0 %v2145_v22, %s10247_s30 }
 0x401   :  { %2150 = vrot.lane.b32.xlu2 %v2144_v11, %s10247_s30  ;;  %v2264_v11 = vsel %vm314_vm15, %v2257_v32, %v11439_v54 }
 0x404   :  { %2508 = vrot.lane.b32.xlu0 %v2502_v23, %s14780_s10 }
 0x409   :  { %2506 = vrot.lane.b32.xlu2 %v2501_v38, %s14780_s10 }
 0x44b   :  { %v2095_v16 = vpop.permute.xlu2 %2094 }
 0x44c   :  { %v2093_v19 = vpop.permute.xlu1 %2092 }
 0x44d   :  { %v2099_v56 = vsel %vm60_vm0, %v2093_v19, %v2095_v16 }
 0x44e   :  { %2109 = vst [vmem:[#allocation2 + $0x10] sm:$0xf] %v2099_v56 }
 0x451   :  { %v2091_v18 = vpop.permute.xlu0 %2090 }
 0x452   :  { %v2098_v30 = vsel %vm60_vm0, %v2091_v18, %v2093_v19  ;;  %2107 = vst.msk [vmem:[#allocation2] sm:$0xf] %vm14740_vm8, %v2091_v18 }
 0x453   :  { %2108 = vst [vmem:[#allocation2 + $0x8] sm:$0xf] %v2098_v30 }
 0x454   :  { %v2206_v18 = vpop.permute.xlu1 %2205 }
 0x455   :  { %v2302_v23 = vld [vmem:[#allocation2 + $0x10] sm:$0xf] }
 0x459   :  { %v2300_v58 = vld [vmem:[#allocation2] sm:$0xf] }
 0x45a   :  { %v2383_v51 = vld [vmem:[#allocation2] sm:$0xf]  ;;  %v2301_v9 = vld [vmem:[#allocation2 + $0x8] sm:$0xf] }
 0x45b   :  { %v2328_v40 = vld [vmem:[#allocation2] sm:$0xf]  ;;  %v2384_v35 = vld [vmem:[#allocation2 + $0x8] sm:$0xf]  ;;  %v2410_v59 = vmul.f32 %v2395_v52, %v2383_v51  ;;  %v2305_v8 = vpack.c.bf16 %v2301_v9, %v2300_v58  ;;  %v2121_v58 = vperm.slane %v11455_v37, 2  ;;  %v2122_v51 = vperm.slane %v11455_v37, 3 }
 0x45c   :  { %v2329_v47 = vld [vmem:[#allocation2 + $0x8] sm:$0xf]  ;;  %v2355_v33 = vmul.f32 %v2340_v3, %v2328_v40  ;;  %v2411_v45 = vmul.f32 %v2402_v25, %v2384_v35  ;;  %v2438_v42 = vld [vmem:[#allocation2] sm:$0xf]  ;;  %v2459_v40 = vsel %vm533_vm4, %v11423_v48, %v11425_v50  ;;  %v2440_v25 = vld [vmem:[#allocation2 + $0x10] sm:$0xf] }
 0x45d   :  { %v2356_v46 = vmul.f32 %v2347_v60, %v2329_v47  ;;  %v2439_v26 = vld [vmem:[#allocation2 + $0x8] sm:$0xf]  ;;  %2311 = vrot.lane.b32.xlu2 %v2305_v8, %s10250_s0  ;;  %v2113_v61 = vld [vmem:[#allocation2] sm:$0xf]  ;;  %v2465_v1 = vmul.f32 %v2450_v4, %v2438_v42  ;;  %v2115_v60 = vld [vmem:[#allocation2 + $0x10] sm:$0xf]  ;;  %v11485_v8 = vpop.permute.xlu2 %2207 }
 0x45e   :  { %v2097_v15 = vpop.permute.xlu0 %2096  ;;  %v2415_v21 = vpack.c.bf16 %v2411_v45, %v2410_v59  ;;  %v2466_v41 = vmul.f32 %v2457_v62, %v2439_v26  ;;  %v2114_v55 = vld [vmem:[#allocation2 + $0x8] sm:$0xf]  ;;  %v2127_v57 = vmul.f32 %v2119_v49, %v2113_v61  ;;  %v2245_v7 = vld [vmem:[#allocation2] sm:$0xf]  ;;  %v2458_v59 = vsel %vm533_vm4, %v11421_v12, %v11423_v48  ;;  %v2385_v49 = vld [vmem:[#allocation2 + $0x10] sm:$0xf] }
 0x45f   :  { %v2360_v24 = vpack.c.bf16 %v2356_v46, %v2355_v33  ;;  %v2100_v2 = vsel %vm60_vm0, %v2095_v16, %v2097_v15  ;;  %2112 = vst.msk [vmem:[#allocation2 + $0x20] sm:$0xf] %vm14739_vm13, %v2097_v15  ;;  %v2128_v29 = vmul.f32 %v2120_v5, %v2114_v55  ;;  %v2246_v13 = vld [vmem:[#allocation2 + $0x8] sm:$0xf]  ;;  %v2272_v3 = vmul.f32 %v2257_v32, %v2245_v7 }
 0x460   :  { %2110 = vst [vmem:[#allocation2 + $0x18] sm:$0xf] %v2100_v2  ;;  %2421 = vrot.lane.b32.xlu1 %v2415_v21, %s14742_s12  ;;  %v2470_v31 = vpack.c.bf16 %v2466_v41, %v2465_v1  ;;  %v2273_v19 = vmul.f32 %v2264_v11, %v2246_v13  ;;  %v2467_v37 = vmul.f32 %v2458_v59, %v2440_v25  ;;  %v2247_v2 = vld [vmem:[#allocation2 + $0x10] sm:$0xf]  ;;  %v2136_v25 = vld [vmem:[#allocation2 + $0x8] sm:$0xf] }
 0x461   :  { %2366 = vrot.lane.b32.xlu0 %v2360_v24, %s14781_s5  ;;  %v2131_v6 = vpack.c.bf16 %v2128_v29, %v2127_v57  ;;  %v2404_v46 = vsel %vm471_vm5, %v11429_v10, %v11431_v0  ;;  %v2403_v12 = vsel %vm471_vm5, %v11427_v44, %v11429_v10  ;;  %v2349_v61 = vsel %vm409_vm14, %v11435_v63, %v11437_v28  ;;  %v2149_v44 = vpop.permute.xlu1 %2148  ;;  %v2330_v41 = vld [vmem:[#allocation2 + $0x10] sm:$0xf]  ;;  %v2190_v29 = vld [vmem:[#allocation2] sm:$0xf] }
 0x462   :  { %v2277_v9 = vpack.c.bf16 %v2273_v19, %v2272_v3  ;;  %v2412_v24 = vmul.f32 %v2403_v12, %v2385_v49  ;;  %v2265_v55 = vsel %vm314_vm15, %v11439_v54, %v11441_v14  ;;  %v2209_v13 = vsel %vm252_vm1, %v11445_v39, %v11447_v34 }
 0x463   :  { %2133 = vst [vmem:[#allocation3] sm:$0x33] %v2131_v6  ;;  %v2191_v6 = vld [vmem:[#allocation2 + $0x8] sm:$0xf]  ;;  %v2274_v7 = vmul.f32 %v2265_v55, %v2247_v2  ;;  %v2210_v3 = vsel %vm252_vm1, %v11447_v34, %v2206_v18  ;;  %vm14782_vm13 = vcmask 277504  }
 0x464   :  { %v2218_v54 = vmul.f32 %v2209_v13, %v2191_v6  ;;  %vm14783_vm8 = vmmov %vm14782_vm13  ;;  %v2495_v2 = vld [vmem:[#allocation2 + $0x10] sm:$0xf] }
 0x465   :  { %2476 = vrot.lane.b32.xlu2 %v2470_v31, %s14769_s4  ;;  %v2348_v31 = vsel %vm409_vm14, %v11433_v43, %v11435_v63  ;;  %v2151_v11 = vpop.permute.xlu2 %2150  ;;  %v2192_v63 = vld [vmem:[#allocation2 + $0x10] sm:$0xf] }
 0x466   :  { %v2442_v22 = vld [vmem:[#allocation2 + $0x20] sm:$0xf]  ;;  %v2147_v21 = vpop.permute.xlu0 %2146  ;;  %v2155_v59 = vsel %vm14741_vm2, %v2149_v44, %v2151_v11 }
 0x467   :  { %v2303_v38 = vld [vmem:[#allocation2 + $0x18] sm:$0xf]  ;;  %v2469_v52 = vmul.f32 %v11425_v50, %v2442_v22  ;;  %v2387_v30 = vld [vmem:[#allocation2 + $0x20] sm:$0xf]  ;;  %v2129_v50 = vmul.f32 %v2121_v58, %v2115_v60  ;;  %v2357_v22 = vmul.f32 %v2348_v31, %v2330_v41  ;;  %v2219_v58 = vmul.f32 %v2210_v3, %v2192_v63 }
 0x468   :  { %v2306_v4 = vpack.c.bf16 %v2303_v38, %v2302_v23  ;;  %v2441_v56 = vld [vmem:[#allocation2 + $0x18] sm:$0xf]  ;;  %v2414_v47 = vmul.f32 %v11431_v0, %v2387_v30  ;;  %v2266_v0 = vsel %vm314_vm15, %v11441_v14, %v11443_v20  ;;  %v2217_v38 = vmul.f32 %v11445_v39, %v2190_v29  ;;  %v2332_v43 = vld [vmem:[#allocation2 + $0x20] sm:$0xf] }
 0x469   :  { %v2472_v16 = vpack.c.bf16 %v2469_v52, %v2469_v52  ;;  %v2116_v32 = vld [vmem:[#allocation2 + $0x18] sm:$0xf]  ;;  %v2468_v35 = vmul.f32 %v2459_v40, %v2441_v56  ;;  %v2211_v14 = vsel %vm252_vm1, %v2206_v18, %v11485_v8  ;;  %v2154_v39 = vsel %vm14741_vm2, %v2147_v21, %v2149_v44  ;;  %v2135_v40 = vld [vmem:[#allocation2] sm:$0xf] }
 0x46a   :  { %2313 = vrot.lane.b32.xlu0 %v2306_v4, %s10250_s0  ;;  %v2386_v33 = vld [vmem:[#allocation2 + $0x18] sm:$0xf]  ;;  %v2130_v45 = vmul.f32 %v2122_v51, %v2116_v32  ;;  %v2417_v48 = vpack.c.bf16 %v2414_v47, %v2414_v47  ;;  %v2359_v30 = vmul.f32 %v11437_v28, %v2332_v43  ;;  %v2505_v51 = vpop.permute.xlu1 %2504  ;;  %v2162_v60 = vmul.f32 %v2147_v21, %v2135_v40  ;;  %v2304_v49 = vld [vmem:[#allocation2 + $0x20] sm:$0xf] }
 0x46b   :  { %2480 = vrot.lane.b32.xlu1 %v2472_v16, %s14769_s4  ;;  %v2471_v42 = vpack.c.bf16 %v2468_v35, %v2467_v37  ;;  %v2413_v26 = vmul.f32 %v2404_v46, %v2386_v33  ;;  %v2248_v15 = vld [vmem:[#allocation2 + $0x18] sm:$0xf]  ;;  %v2222_v16 = vpack.c.bf16 %v2218_v54, %v2217_v38  ;;  %v2163_v32 = vmul.f32 %v2154_v39, %v2136_v25  ;;  %v2137_v37 = vld [vmem:[#allocation2 + $0x10] sm:$0xf]  ;;  %v2194_v55 = vld [vmem:[#allocation2 + $0x20] sm:$0xf] }
 0x46c   :  { %v2132_v5 = vpack.c.bf16 %v2130_v45, %v2129_v50  ;;  %v2331_v62 = vld [vmem:[#allocation2 + $0x18] sm:$0xf]  ;;  %v2275_v1 = vmul.f32 %v2266_v0, %v2248_v15  ;;  %v2362_v18 = vpack.c.bf16 %v2359_v30, %v2359_v30  ;;  %v2164_v45 = vmul.f32 %v2155_v59, %v2137_v37  ;;  %v2249_v0 = vld [vmem:[#allocation2 + $0x20] sm:$0xf] }
 0x46d   :  { %2283 = vrot.lane.b32.xlu2 %v2277_v9, %s14771_s1  ;;  %v2416_v10 = vpack.c.bf16 %v2413_v26, %v2412_v24  ;;  %v2358_v57 = vmul.f32 %v2349_v61, %v2331_v62  ;;  %v2193_v4 = vld [vmem:[#allocation2 + $0x18] sm:$0xf]  ;;  %v2507_v35 = vpop.permute.xlu2 %2506  ;;  %v2167_v28 = vpack.c.bf16 %v2163_v32, %v2162_v60  ;;  %v2494_v26 = vld [vmem:[#allocation2 + $0x8] sm:$0xf]  ;;  %v2307_v62 = vpack.c.bf16 %v2304_v49, %v2304_v49  ;;  %v2139_v31 = vld [vmem:[#allocation2 + $0x20] sm:$0xf] }
 0x46e   :  { %2134 = vst [vmem:[#allocation3 + $0x8] sm:$0x33] %v2132_v5  ;;  %v2278_v23 = vpack.c.bf16 %v2275_v1, %v2274_v7  ;;  %v2153_v19 = vpop.permute.xlu0 %2152  ;;  %v2220_v56 = vmul.f32 %v2211_v14, %v2193_v4  ;;  %v2138_v47 = vld [vmem:[#allocation2 + $0x18] sm:$0xf]  ;;  %v2512_v50 = vsel %vm14782_vm13, %v2505_v51, %v2507_v35  ;;  %v2276_v41 = vmul.f32 %v11443_v20, %v2249_v0  ;;  %v2497_v7 = vld [vmem:[#allocation2 + $0x20] sm:$0xf] }
 0x46f   :  { %v2361_v52 = vpack.c.bf16 %v2358_v57, %v2357_v22  ;;  %v2156_v34 = vsel %vm14741_vm2, %v2151_v11, %v2153_v19  ;;  %v2521_v12 = vmul.f32 %v2512_v50, %v2494_v26  ;;  %vm14784_vm2 = vmmov %vm14783_vm8  ;;  %v2496_v61 = vld [vmem:[#allocation2 + $0x18] sm:$0xf]  ;;  %v2221_v29 = vmul.f32 %v11485_v8, %v2194_v55 }
 0x470   :  { %v2223_v9 = vpack.c.bf16 %v2220_v56, %v2219_v58  ;;  %v2165_v33 = vmul.f32 %v2156_v34, %v2138_v47  ;;  %v2279_v6 = vpack.c.bf16 %v2276_v41, %v2276_v41  ;;  %v2166_v13 = vmul.f32 %v2153_v19, %v2139_v31  ;;  %v8974_v31 = vld [vmem:[#allocation3 + $0xd0] sm:$0xf0] }
 0x471   :  { %v2224_v22 = vpack.c.bf16 %v2221_v29, %v2221_v29 }
 0x472   :  { %2478 = vrot.lane.b32.xlu0 %v2471_v42, %s14769_s4  ;;  %v2493_v42 = vld [vmem:[#allocation2] sm:$0xf]  ;;  %v2168_v15 = vpack.c.bf16 %v2165_v33, %v2164_v45 }
 0x473   :  { %2425 = vrot.lane.b32.xlu1 %v2417_v48, %s14742_s12  ;;  %v2520_v5 = vmul.f32 %v2505_v51, %v2493_v42  ;;  %v2511_v48 = vpop.permute.xlu1 %2510 }
 0x474   :  { %v2524_v11 = vmul.f32 %v2511_v48, %v2497_v7 }
 0x475   :  { %2423 = vrot.lane.b32.xlu2 %v2416_v10, %s14742_s12  ;;  %v2525_v44 = vpack.c.bf16 %v2521_v12, %v2520_v5 }
 0x476   :  { %v2509_v46 = vpop.permute.xlu0 %2508  ;;  %v2527_v20 = vpack.c.bf16 %v2524_v11, %v2524_v11 }
 0x477   :  { %v2513_v21 = vsel %vm14783_vm8, %v2507_v35, %v2509_v46  ;;  %v2514_v24 = vsel %vm14784_vm2, %v2509_v46, %v2511_v48  ;;  %vm14785_vm2 = vcmask 916480   ;;  %vm14786_vm8 = vcmask 769024  }
 0x478   :  { %v2522_v10 = vmul.f32 %v2513_v21, %v2495_v2  ;;  %v2523_v1 = vmul.f32 %v2514_v24, %v2496_v61  ;;  %v8990_v2 = vld [vmem:[#allocation3 + $0xf0] sm:$0xf0]  ;;  %vm14787_vm13 = vmmov %vm14785_vm2 }
 0x47a   :  { %2285 = vrot.lane.b32.xlu0 %v2278_v23, %s14771_s1  ;;  %v2526_v57 = vpack.c.bf16 %v2523_v1, %v2522_v10  ;;  %v2169_v23 = vpack.c.bf16 %v2166_v13, %v2166_v13 }
 0x47b   :  { %2368 = vrot.lane.b32.xlu1 %v2361_v52, %s14781_s5 }
 0x47d   :  { %2228 = vrot.lane.b32.xlu2 %v2222_v16, %s14772_s26 }
 0x482   :  { %2230 = vrot.lane.b32.xlu0 %v2223_v9, %s14772_s26 }
 0x483   :  { %2370 = vrot.lane.b32.xlu1 %v2362_v18, %s14781_s5 }
 0x485   :  { %2173 = vrot.lane.b32.xlu2 %v2167_v28, %s14773_s21 }
 0x48a   :  { %2175 = vrot.lane.b32.xlu0 %v2168_v15, %s14773_s21  ;;  %v9947_v15 = vld [vmem:[#allocation3 + $0xec] sm:$0xf0] }
 0x48b   :  { %2315 = vrot.lane.b32.xlu1 %v2307_v62, %s10250_s0 }
 0x48d   :  { %2531 = vrot.lane.b32.xlu2 %v2525_v44, %s14770_s2 }
 0x492   :  { %2533 = vrot.lane.b32.xlu0 %v2526_v57, %s14770_s2 }
 0x493   :  { %2287 = vrot.lane.b32.xlu1 %v2279_v6, %s14771_s1  ;;  %v9943_v6 = vld [vmem:[#allocation3 + $0xcc] sm:$0xf0] }
 0x495   :  { %2232 = vrot.lane.b32.xlu2 %v2224_v22, %s14772_s26 }
 0x49a   :  { %2177 = vrot.lane.b32.xlu0 %v2169_v23, %s14773_s21 }
 0x49b   :  { %2535 = vrot.lane.b32.xlu1 %v2527_v20, %s14770_s2 }
 0x4b7   :  { %v2312_v38 = vpop.permute.xlu2 %2311 }
 0x4b8   :  { %v2317_v39 = vrot.slane %v2312_v38, 4 }
 0x4bf   :  { %v2477_v8 = vpop.permute.xlu2 %2476 }
 0x4c0   :  { %v2482_v32 = vrot.slane %v2477_v8, 4 }
 0x4c7   :  { %v2284_v54 = vpop.permute.xlu2 %2283 }
 0x4c8   :  { %v2289_v49 = vrot.slane %v2284_v54, 4 }
 0x4cf   :  { %v2424_v14 = vpop.permute.xlu2 %2423 }
 0x4d0   :  { %v2428_v4 = vrot.slane %v2424_v14, 4 }
 0x4d2   :  { %v2422_v52 = vpop.permute.xlu1 %2421 }
 0x4d3   :  { %v2427_v43 = vrot.slane %v2422_v52, 4  ;;  %v2367_v63 = vpop.permute.xlu0 %2366 }
 0x4d4   :  { %v2372_v5 = vrot.slane %v2367_v63, 4 }
 0x4d5   :  { %v2430_v3 = vsel %vm218_vm3, %v2427_v43, %v2428_v4  ;;  %v8958_v43 = vld [vmem:[#allocation3 + $0xb0] sm:$0xf0] }
 0x4d6   :  { %v2431_v19 = vsel %vm14748_vm9, %v2422_v52, %v2430_v3 }
 0x4d7   :  { %2436 = vst [vmem:[#allocation3 + $0xc0] sm:$0x33] %v2431_v19  ;;  %v11542_v16 = vpop.permute.xlu2 %2228 }
 0x4d8   :  { %v2234_v57 = vrot.slane %v11542_v16, 4 }
 0x4dc   :  { %v11544_v56 = vpop.permute.xlu0 %2313 }
 0x4dd   :  { %v2318_v30 = vrot.slane %v11544_v56, 4  ;;  %v2481_v58 = vpop.permute.xlu1 %2480 }
 0x4de   :  { %v2484_v9 = vrot.slane %v2481_v58, 4  ;;  %v8972_v41 = vld [vmem:[#allocation3 + $0xc0] sm:$0xf]  ;;  %v9941_v55 = vld [vmem:[#allocation3 + $0xc4] sm:$0xf] }
 0x4df   :  { %v2320_v51 = vsel %vm218_vm3, %v2317_v39, %v2318_v30  ;;  %v11551_v25 = vpop.permute.xlu2 %2173  ;;  %v8973_v11 = vor.u32 %v9943_v6, %v8972_v41  ;;  %v8977_v23 = vor.u32 %v9941_v55, %v8974_v31  ;;  %v9923_v41 = vld [vmem:[#allocation3 + $0x2c] sm:$0xf0]  ;;  %v8894_v31 = vld [vmem:[#allocation3 + $0x30] sm:$0xf0] }
 0x4e0   :  { %v2321_v40 = vsel %vm14750_vm6, %v2312_v38, %v2320_v51 }
 0x4e1   :  { %2326 = vst [vmem:[#allocation3 + $0x80] sm:$0x33] %v2321_v40 }
 0x4e4   :  { %v2479_v60 = vpop.permute.xlu0 %2478 }
 0x4e5   :  { %v2483_v34 = vrot.slane %v2479_v60, 4  ;;  %v2426_v18 = vpop.permute.xlu1 %2425 }
 0x4e6   :  { %v2429_v35 = vrot.slane %v2426_v18, 4  ;;  %v8942_v18 = vld [vmem:[#allocation3 + $0x90] sm:$0xf0] }
 0x4e7   :  { %v2485_v59 = vsel %vm218_vm3, %v2482_v32, %v2483_v34  ;;  %v2487_v47 = vsel %vm218_vm3, %v2483_v34, %v2484_v9  ;;  %v11558_v50 = vpop.permute.xlu2 %2531  ;;  %v9935_v34 = vld [vmem:[#allocation3 + $0x8c] sm:$0xf0] }
 0x4e8   :  { %v2486_v28 = vsel %vm14749_vm7, %v2477_v8, %v2485_v59  ;;  %v2488_v33 = vsel %vm14749_vm7, %v2479_v60, %v2487_v47  ;;  %v2432_v37 = vsel %vm218_vm3, %v2428_v4, %v2429_v35  ;;  %v9939_v4 = vld [vmem:[#allocation3 + $0xac] sm:$0xf0]  ;;  %v8940_v51 = vld [vmem:[#allocation3 + $0x80] sm:$0xf]  ;;  %v9933_v40 = vld [vmem:[#allocation3 + $0x84] sm:$0xf] }
 0x4e9   :  { %2491 = vst [vmem:[#allocation3 + $0xe0] sm:$0x33] %v2486_v28  ;;  %v2433_v45 = vsel %vm14748_vm9, %v2424_v14, %v2432_v37  ;;  %v2179_v60 = vrot.slane %v11551_v25, 4  ;;  %v8941_v59 = vor.u32 %v9935_v34, %v8940_v51  ;;  %v8945_v47 = vor.u32 %v9933_v40, %v8942_v18  ;;  %v8870_v51 = vld [vmem:[%s14706_s6 + $0x8] sm:$0xf0] }
 0x4ea   :  { %2492 = vst [vmem:[#allocation3 + $0xe8] sm:$0x33] %v2488_v33 }
 0x4eb   :  { %2437 = vst [vmem:[#allocation3 + $0xc8] sm:$0x33] %v2433_v45 }
 0x4ec   :  { %v11561_v46 = vpop.permute.xlu0 %2285 }
 0x4ed   :  { %v2290_v42 = vrot.slane %v11561_v46, 4  ;;  %v2369_v26 = vpop.permute.xlu1 %2368 }
 0x4ee   :  { %v2373_v12 = vrot.slane %v2369_v26, 4 }
 0x4ef   :  { %v2292_v48 = vsel %vm218_vm3, %v2289_v49, %v2290_v42  ;;  %v2233_v1 = vpop.permute.xlu2 %2232 }
 0x4f0   :  { %v2293_v21 = vsel %vm14785_vm2, %v2284_v54, %v2292_v48  ;;  %v2375_v24 = vsel %vm218_vm3, %v2372_v5, %v2373_v12  ;;  %v8988_v62 = vld [vmem:[#allocation3 + $0xe0] sm:$0xf]  ;;  %v9945_v0 = vld [vmem:[#allocation3 + $0xe4] sm:$0xf]  ;;  %v2236_v7 = vrot.slane %v2233_v1, 4  ;;  %vm14788_vm2 = vmmov %vm14786_vm8 }
 0x4f1   :  { %2298 = vst [vmem:[#allocation3 + $0x60] sm:$0x33] %v2293_v21  ;;  %v2376_v61 = vsel %vm439_vm11, %v2367_v63, %v2375_v24  ;;  %v8989_v44 = vor.u32 %v9947_v15, %v8988_v62  ;;  %v8993_v10 = vor.u32 %v9945_v0, %v8990_v2  ;;  %v9931_v5 = vld [vmem:[#allocation3 + $0x6c] sm:$0xf0]  ;;  %v2537_v62 = vrot.slane %v11558_v50, 4 }
 0x4f2   :  { %2381 = vst [vmem:[#allocation3 + $0xa0] sm:$0x33] %v2376_v61  ;;  %v9927_v2 = vld [vmem:[#allocation3 + $0x4c] sm:$0xf0]  ;;  %v8910_v61 = vld [vmem:[#allocation3 + $0x50] sm:$0xf0] }
 0x4f3   :  { %2786 = vmatpush.bf16.msra.mxu2 %v8989_v44  ;;  %2814 = vmatpush.bf16.msra.mxu0 %v8993_v10  ;;  %v9946_v34 = vld [vmem:[#allocation3 + $0xec] sm:$0xf] }
 0x4f4   :  { %v2231_v29 = vpop.permute.xlu0 %2230 }
 0x4f5   :  { %v2235_v13 = vrot.slane %v2231_v29, 4  ;;  %v2371_v22 = vpop.permute.xlu1 %2370 }
 0x4f6   :  { %v2374_v20 = vrot.slane %v2371_v22, 4 }
 0x4f7   :  { %v2237_v38 = vsel %vm218_vm3, %v2234_v57, %v2235_v13  ;;  %v2239_v8 = vsel %vm218_vm3, %v2235_v13, %v2236_v7  ;;  %2787 = vmatpush.bf16.msra.mxu2 %v8973_v11  ;;  %2815 = vmatpush.bf16.msra.mxu0 %v8977_v23  ;;  %v8876_v11 = vld [vmem:[#allocation3] sm:$0xf]  ;;  %v9917_v23 = vld [vmem:[#allocation3 + $0x4] sm:$0xf] }
 0x4f8   :  { %v2238_v54 = vsel %vm14747_vm12, %v11542_v16, %v2237_v38  ;;  %v2240_v14 = vsel %vm14747_vm12, %v2231_v29, %v2239_v8  ;;  %v2377_v52 = vsel %vm218_vm3, %v2373_v12, %v2374_v20  ;;  %v8924_v33 = vld [vmem:[#allocation3 + $0x60] sm:$0xf]  ;;  %v9929_v37 = vld [vmem:[#allocation3 + $0x64] sm:$0xf]  ;;  %v8926_v12 = vld [vmem:[#allocation3 + $0x70] sm:$0xf0] }
 0x4f9   :  { %2243 = vst [vmem:[#allocation3 + $0x40] sm:$0x33] %v2238_v54  ;;  %v2378_v63 = vsel %vm439_vm11, %v2369_v26, %v2377_v52  ;;  %v8956_v3 = vld [vmem:[#allocation3 + $0xa0] sm:$0xf]  ;;  %v9937_v19 = vld [vmem:[#allocation3 + $0xa4] sm:$0xf]  ;;  %v8925_v48 = vor.u32 %v9931_v5, %v8924_v33  ;;  %v8929_v15 = vor.u32 %v9929_v37, %v8926_v12 }
 0x4fa   :  { %2244 = vst [vmem:[#allocation3 + $0x48] sm:$0x33] %v2240_v14  ;;  %v8957_v39 = vor.u32 %v9939_v4, %v8956_v3  ;;  %v8961_v58 = vor.u32 %v9937_v19, %v8958_v43  ;;  %v9916_v20 = vld [vmem:[%s14706_s6 + $0x4] sm:$0xf0] }
 0x4fb   :  { %2382 = vst [vmem:[#allocation3 + $0xa8] sm:$0x33] %v2378_v63  ;;  %v9919_v54 = vld [vmem:[#allocation3 + $0xc] sm:$0xf0]  ;;  %v9006_v63 = vld [vmem:[#allocation3 + $0x110] sm:$0xf0] }
 0x4fc   :  { %2788 = vmatpush.bf16.msra.mxu2 %v8957_v39  ;;  %2816 = vmatpush.bf16.msra.mxu0 %v8961_v58  ;;  %v11578_v16 = vpop.permute.xlu0 %2175  ;;  %v8877_v52 = vor.u32 %v9919_v54, %v8876_v11  ;;  %v9951_v43 = vld [vmem:[#allocation3 + $0x10c] sm:$0xf0]  ;;  %v8996_v39 = vld [vmem:[#allocation3 + $0xe8] sm:$0xf]  ;;  %v9915_v58 = vld [vmem:[%s14706_s6 + $0x4] sm:$0xf] }
 0x4fd   :  { %v2180_v32 = vrot.slane %v11578_v16, 4  ;;  %v2316_v9 = vpop.permute.xlu1 %2315  ;;  %v11622_v33 = vor.u32 %v9915_v58, %v8870_v51  ;;  %v9936_v11 = vld [vmem:[#allocation3 + $0x94] sm:$0xf0]  ;;  %v8918_v51 = vld [vmem:[#allocation3 + $0x58] sm:$0xf0] }
 0x4fe   :  { %v2319_v35 = vrot.slane %v2316_v9, 4  ;;  %v9932_v54 = vld [vmem:[#allocation3 + $0x74] sm:$0xf0] }
 0x4ff   :  { %v2182_v28 = vsel %vm218_vm3, %v2179_v60, %v2180_v32  ;;  %v9928_v58 = vld [vmem:[#allocation3 + $0x54] sm:$0xf0] }
 0x500   :  { %v2183_v45 = vsel %vm14746_vm10, %v11551_v25, %v2182_v28  ;;  %v2322_v49 = vsel %vm218_vm3, %v2318_v30, %v2319_v35  ;;  %2789 = vmatpush.bf16.msra.mxu2 %v8941_v59  ;;  %2817 = vmatpush.bf16.msra.mxu0 %v8945_v47  ;;  %v8908_v21 = vld [vmem:[#allocation3 + $0x40] sm:$0xf]  ;;  %v9925_v24 = vld [vmem:[#allocation3 + $0x44] sm:$0xf]  ;;  %v9948_v47 = vld [vmem:[#allocation3 + $0xf4] sm:$0xf0] }
 0x501   :  { %2188 = vst [vmem:[#allocation3 + $0x20] sm:$0x33] %v2183_v45  ;;  %v2323_v26 = vsel %vm14750_vm6, %v11544_v56, %v2322_v49  ;;  %v8909_v10 = vor.u32 %v9927_v2, %v8908_v21  ;;  %v8913_v1 = vor.u32 %v9925_v24, %v8910_v61  ;;  %v8998_v28 = vld [vmem:[#allocation3 + $0xf8] sm:$0xf0]  ;;  %v8980_v45 = vld [vmem:[#allocation3 + $0xc8] sm:$0xf] }
 0x502   :  { %2327 = vst [vmem:[#allocation3 + $0x88] sm:$0x33] %v2323_v26  ;;  %v9001_v37 = vor.u32 %v9946_v34, %v8998_v28  ;;  %v9942_v49 = vld [vmem:[#allocation3 + $0xcc] sm:$0xf]  ;;  %v8982_v21 = vld [vmem:[#allocation3 + $0xd8] sm:$0xf0] }
 0x503   :  { %v9035_v26 = vld [vmem:[%s14762_s29 + $0x7] ss:$8 sm:$0xf]  ;;  %v9034_v2 = vld [vmem:[%s14762_s29 + $0x6] ss:$8 sm:$0xf] }
 0x504   :  { %2790 = vmatpush.bf16.msra.mxu2 %v8925_v48  ;;  %2818 = vmatpush.bf16.msra.mxu0 %v8929_v15  ;;  %v2534_v25 = vpop.permute.xlu0 %2533  ;;  %v3650_v5 = vperm.slane %v9035_v26, 0  ;;  %v3652_v12 = vperm.slane %v9035_v26, 2  ;;  %v3651_v48 = vperm.slane %v9035_v26, 1  ;;  %v9944_v15 = vld [vmem:[#allocation3 + $0xd4] sm:$0xf0] }
 0x505   :  { %v2538_v0 = vrot.slane %v2534_v25, 4  ;;  %v2288_v30 = vpop.permute.xlu1 %2287  ;;  %v8981_v24 = vor.u32 %v9944_v15, %v8980_v45  ;;  %v9924_v34 = vld [vmem:[#allocation3 + $0x34] sm:$0xf0]  ;;  %v8884_v28 = vld [vmem:[#allocation3 + $0x8] sm:$0xf] }
 0x506   :  { %v2291_v44 = vrot.slane %v2288_v30, 4  ;;  %3654 = vrot.lane.b32.xlu1 %v3650_v5, %s10240_s20  ;;  %v9938_v30 = vld [vmem:[#allocation3 + $0xac] sm:$0xf]  ;;  %3658 = vrot.lane.b32.xlu0 %v3652_v12, %s10240_s20  ;;  %v9920_v45 = vld [vmem:[#allocation3 + $0x14] sm:$0xf0] }
 0x507   :  { %v2540_v56 = vsel %vm218_vm3, %v2537_v62, %v2538_v0  ;;  %v8964_v62 = vld [vmem:[#allocation3 + $0xa8] sm:$0xf]  ;;  %3656 = vrot.lane.b32.xlu2 %v3651_v48, %s10240_s20 }
 0x508   :  { %v2541_v55 = vsel %vm14786_vm8, %v11558_v50, %v2540_v56  ;;  %v2294_v57 = vsel %vm218_vm3, %v2290_v42, %v2291_v44  ;;  %2791 = vmatpush.bf16.msra.mxu2 %v8909_v10  ;;  %2819 = vmatpush.bf16.msra.mxu0 %v8913_v1  ;;  %v8892_v29 = vld [vmem:[#allocation3 + $0x20] sm:$0xf]  ;;  %v9921_v6 = vld [vmem:[#allocation3 + $0x24] sm:$0xf]  ;;  %v8868_v42 = vld [vmem:[%s14706_s6] sm:$0xf] }
 0x509   :  { %2546 = vst [vmem:[#allocation3 + $0x100] sm:$0x33] %v2541_v55  ;;  %v2295_v7 = vsel %vm14787_vm13, %v11561_v46, %v2294_v57  ;;  %v8893_v13 = vor.u32 %v9923_v41, %v8892_v29  ;;  %v8897_v22 = vor.u32 %v9921_v6, %v8894_v31  ;;  %v8878_v46 = vld [vmem:[#allocation3 + $0x10] sm:$0xf0]  ;;  %v11610_v19 = vor.u32 %v9916_v20, %v8868_v42  ;;  %v9014_v10 = vld [vmem:[#allocation3 + $0x118] sm:$0xf0] }
 0x50a   :  { %2299 = vst [vmem:[#allocation3 + $0x68] sm:$0x33] %v2295_v7  ;;  %v8881_v4 = vor.u32 %v9917_v23, %v8878_v46  ;;  %v9940_v1 = vld [vmem:[#allocation3 + $0xb4] sm:$0xf0]  ;;  %v8966_v41 = vld [vmem:[#allocation3 + $0xb8] sm:$0xf0] }
 0x50b   :  { %v8965_v57 = vor.u32 %v9940_v1, %v8964_v62  ;;  %v8969_v29 = vor.u32 %v9938_v30, %v8966_v41  ;;  %v3653_v6 = vperm.slane %v9035_v26, 3  ;;  %v8948_v31 = vld [vmem:[#allocation3 + $0x88] sm:$0xf]  ;;  %v9934_v7 = vld [vmem:[#allocation3 + $0x8c] sm:$0xf]  ;;  %v8885_v26 = vor.u32 %v9920_v45, %v8884_v28  ;;  %s14824_s6 = smov 18  }
 0x50c   :  { %2792 = vmatpush.bf16.msra.mxu2 %v8893_v13  ;;  %2820 = vmatpush.bf16.msra.mxu0 %v8897_v22  ;;  %v2178_v50 = vpop.permute.xlu0 %2177  ;;  %v3563_v13 = vperm.slane %v9034_v2, 1  ;;  %v3562_v22 = vperm.slane %v9034_v2, 0  ;;  %v8950_v23 = vld [vmem:[#allocation3 + $0x98] sm:$0xf0] }
 0x50d   :  { %v2181_v38 = vrot.slane %v2178_v50, 4  ;;  %v2536_v8 = vpop.permute.xlu1 %2535  ;;  %v8949_v50 = vor.u32 %v9936_v11, %v8948_v31  ;;  %v8953_v42 = vor.u32 %v9934_v7, %v8950_v23  ;;  %v8934_v46 = vld [vmem:[#allocation3 + $0x78] sm:$0xf0]  ;;  %v9032_v12 = vld [vmem:[%s14762_s29 + $0x3] ss:$8 sm:$0xf] }
 0x50e   :  { %v2539_v14 = vrot.slane %v2536_v8, 4  ;;  %3660 = vrot.lane.b32.xlu1 %v3653_v6, %s10240_s20  ;;  %3568 = vrot.lane.b32.xlu0 %v3563_v13, %s10242_s25  ;;  %v9033_v8 = vld [vmem:[%s14762_s29 + $0x5] ss:$8 sm:$0xf]  ;;  %v3330_v48 = vperm.slane %v9032_v12, 0  ;;  %v3332_v15 = vperm.slane %v9032_v12, 2 }
 0x50f   :  { %v2184_v3 = vsel %vm218_vm3, %v2180_v32, %v2181_v38  ;;  %3566 = vrot.lane.b32.xlu2 %v3562_v22, %s10242_s25  ;;  %v2591_v6 = vld [vmem:[%s14707_s7 + $0x28] sm:$0xff] }
 0x510   :  { %v2185_v40 = vsel %vm14746_vm10, %v11578_v16, %v2184_v3  ;;  %v2542_v60 = vsel %vm218_vm3, %v2538_v0, %v2539_v14  ;;  %2793 = vmatpush.bf16.msra.mxu2 %v8877_v52  ;;  %2821 = vmatpush.bf16.msra.mxu0 %v8881_v4  ;;  %v9004_v9 = vld [vmem:[#allocation3 + $0x100] sm:$0xf]  ;;  %v9949_v32 = vld [vmem:[#allocation3 + $0x104] sm:$0xf]  ;;  %v8997_v16 = vor.u32 %v9948_v47, %v8996_v39  ;;  %v9952_v0 = vld [vmem:[#allocation3 + $0x114] sm:$0xf0] }
 0x511   :  { %2189 = vst [vmem:[#allocation3 + $0x28] sm:$0x33] %v2185_v40  ;;  %v2543_v18 = vsel %vm14788_vm2, %v2534_v25, %v2542_v60  ;;  %v9005_v35 = vor.u32 %v9951_v43, %v9004_v9  ;;  %v9009_v59 = vor.u32 %v9949_v32, %v9006_v63  ;;  %v8985_v25 = vor.u32 %v9942_v49, %v8982_v21  ;;  %v8932_v20 = vld [vmem:[#allocation3 + $0x68] sm:$0xf]  ;;  %v9930_v38 = vld [vmem:[#allocation3 + $0x6c] sm:$0xf] }
 0x512   :  { %2547 = vst [vmem:[#allocation3 + $0x108] sm:$0x33] %v2543_v18  ;;  %v8933_v14 = vor.u32 %v9932_v54, %v8932_v20  ;;  %v8937_v52 = vor.u32 %v9930_v38, %v8934_v46  ;;  %v3564_v4 = vperm.slane %v9034_v2, 2  ;;  %v8916_v43 = vld [vmem:[#allocation3 + $0x48] sm:$0xf]  ;;  %v3474_v3 = vperm.slane %v9033_v8, 0 }
 0x513   :  { %2794 = vmatmul.bf16.vlgmr.msra.gmra.mxu2 %v11610_v19  ;;  %2807 = vmatpush.bf16.msra.mxu3 %v9005_v35  ;;  %v9926_v63 = vld [vmem:[#allocation3 + $0x4c] sm:$0xf]  ;;  %v3565_v39 = vperm.slane %v9034_v2, 3  ;;  %v8917_v40 = vor.u32 %v9928_v58, %v8916_v43  ;;  %v8902_v18 = vld [vmem:[#allocation3 + $0x38] sm:$0xf0]  ;;  %v3475_v47 = vperm.slane %v9033_v8, 1 }
 0x514   :  { %2822 = vmatmul.bf16.vlgmr.msra.gmra.mxu0 %v11610_v19  ;;  %2835 = vmatpush.bf16.msra.mxu1 %v9009_v59  ;;  %v8921_v60 = vor.u32 %v9926_v63, %v8918_v51  ;;  %v8886_v49 = vld [vmem:[#allocation3 + $0x18] sm:$0xf0]  ;;  %v3333_v21 = vperm.slane %v9032_v12, 3  ;;  %v2590_v38 = vld [vmem:[%s14707_s7 + $0x20] sm:$0xff] }
 0x515   :  { %v9036_v43 = vld [vmem:[%s14762_s29 + $0x20] ss:$8 sm:$0xf] }
 0x516   :  { %9018 = vmatmul.msk.bf16.vlgmr.msra.gmra.mxu3 %vm314_vm15, %v11622_v33  ;;  %3570 = vrot.lane.b32.xlu1 %v3564_v4, %s10242_s25  ;;  %v3740_v51 = vperm.slane %v9036_v43, 2  ;;  %v3739_v28 = vperm.slane %v9036_v43, 1 }
 0x517   :  { %2842 = vmatpush.bf16.msrb.mxu3 %v8997_v16  ;;  %9019 = vmatmul.msk.bf16.vlgmr.msra.gmra.mxu1 %vm314_vm15, %v11622_v33  ;;  %v3477_v16 = vperm.slane %v9033_v8, 3 }
 0x518   :  { %2870 = vmatpush.bf16.msrb.mxu1 %v9001_v37  ;;  %v8900_v9 = vld [vmem:[#allocation3 + $0x28] sm:$0xf]  ;;  %v9922_v32 = vld [vmem:[#allocation3 + $0x2c] sm:$0xf]  ;;  %3478 = vrot.lane.b32.xlu0 %v3474_v3, %s14744_s19  ;;  %v3476_v37 = vperm.slane %v9033_v8, 2  ;;  %v3738_v3 = vperm.slane %v9036_v43, 0 }
 0x519   :  { %v9012_v61 = vld [vmem:[#allocation3 + $0x108] sm:$0xf]  ;;  %v9950_v44 = vld [vmem:[#allocation3 + $0x10c] sm:$0xf]  ;;  %3572 = vrot.lane.b32.xlu2 %v3565_v39, %s10242_s25  ;;  %v8901_v35 = vor.u32 %v9924_v34, %v8900_v9  ;;  %v8905_v59 = vor.u32 %v9922_v32, %v8902_v18  ;;  %v3741_v34 = vperm.slane %v9036_v43, 3 }
 0x51a   :  { %v9013_v56 = vor.u32 %v9952_v0, %v9012_v61  ;;  %v9017_v55 = vor.u32 %v9950_v44, %v9014_v10  ;;  %v9030_v44 = vld [vmem:[%s14762_s29 + $0x1] ss:$8 sm:$0xf] }
 0x51b   :  { %2843 = vmatpush.bf16.msrb.mxu3 %v8981_v24  ;;  %v3331_v24 = vperm.slane %v9032_v12, 1  ;;  %v3154_v10 = vperm.slane %v9030_v44, 0  ;;  %v3155_v13 = vperm.slane %v9030_v44, 1  ;;  %v3156_v39 = vperm.slane %v9030_v44, 2 }
 0x51c   :  { %2871 = vmatpush.bf16.msrb.mxu1 %v8985_v25  ;;  %2863 = vmatpush.bf16.msrb.mxu2 %v9013_v56  ;;  %v9031_v25 = vld [vmem:[%s14762_s29 + $0x2] ss:$8 sm:$0xf] }
 0x51d   :  { %2891 = vmatpush.bf16.msrb.mxu0 %v9017_v55  ;;  %v3243_v62 = vperm.slane %v9031_v25, 1  ;;  %v3244_v30 = vperm.slane %v9031_v25, 2  ;;  %v3242_v2 = vperm.slane %v9031_v25, 0  ;;  %v2586_v56 = vld [vmem:[%s14707_s7] sm:$0xff]  ;;  %v3245_v22 = vperm.slane %v9031_v25, 3  ;;  %v2589_v25 = vld [vmem:[%s14707_s7 + $0x18] sm:$0xff] }
 0x51e   :  { %3480 = vrot.lane.b32.xlu1 %v3475_v47, %s14744_s19 }
 0x51f   :  { %2844 = vmatpush.bf16.msrb.mxu3 %v8965_v57 }
 0x520   :  { %2872 = vmatpush.bf16.msrb.mxu1 %v8969_v29  ;;  %3484 = vrot.lane.b32.xlu0 %v3477_v16, %s14744_s19 }
 0x521   :  { %3482 = vrot.lane.b32.xlu2 %v3476_v37, %s14744_s19 }
 0x523   :  { %2845 = vmatpush.bf16.msrb.mxu3 %v8949_v50  ;;  %9020 = vmatmul.msk.bf16.vlgmr.msrb.gmra.mxu2 %vm314_vm15, %v11622_v33  ;;  %v3157_v50 = vperm.slane %v9030_v44, 3 }
 0x524   :  { %2873 = vmatpush.bf16.msrb.mxu1 %v8953_v42  ;;  %9021 = vmatmul.msk.bf16.vlgmr.msrb.gmra.mxu0 %vm314_vm15, %v11622_v33  ;;  %v9918_v33 = vld [vmem:[#allocation3 + $0xc] sm:$0xf] }
 0x525   :  { %v8889_v5 = vor.u32 %v9918_v33, %v8886_v49 }
 0x526   :  { %3334 = vrot.lane.b32.xlu1 %v3330_v48, %s10245_s22 }
 0x527   :  { %2846 = vmatpush.bf16.msrb.mxu3 %v8933_v14 }
 0x528   :  { %2874 = vmatpush.bf16.msrb.mxu1 %v8937_v52  ;;  %3338 = vrot.lane.b32.xlu0 %v3332_v15, %s10245_s22 }
 0x529   :  { %3336 = vrot.lane.b32.xlu2 %v3331_v24, %s10245_s22 }
 0x52b   :  { %2847 = vmatpush.bf16.msrb.mxu3 %v8917_v40 }
 0x52c   :  { %2875 = vmatpush.bf16.msrb.mxu1 %v8921_v60 }
 0x52e   :  { %3340 = vrot.lane.b32.xlu1 %v3333_v21, %s10245_s22 }
 0x52f   :  { %2848 = vmatpush.bf16.msrb.mxu3 %v8901_v35 }
 0x530   :  { %2876 = vmatpush.bf16.msrb.mxu1 %v8905_v59  ;;  %3248 = vrot.lane.b32.xlu0 %v3243_v62, %s10246_s24 }
 0x531   :  { %3246 = vrot.lane.b32.xlu2 %v3242_v2, %s10246_s24 }
 0x533   :  { %2849 = vmatpush.bf16.msrb.mxu3 %v8885_v26 }
 0x534   :  { %2877 = vmatpush.bf16.msrb.mxu1 %v8889_v5 }
 0x536   :  { %2850 = vmatmul.bf16.vlgmr.msrb.gmra.mxu3 %v11610_v19  ;;  %3250 = vrot.lane.b32.xlu1 %v3244_v30, %s10246_s24 }
 0x537   :  { %2878 = vmatmul.bf16.vlgmr.msrb.gmra.mxu1 %v11610_v19  ;;  %v2587_v19 = vld [vmem:[%s14707_s7 + $0x8] sm:$0xff] }
 0x538   :  { %3158 = vrot.lane.b32.xlu0 %v3154_v10, %s10247_s30 }
 0x539   :  { %3252 = vrot.lane.b32.xlu2 %v3245_v22, %s10246_s24 }
 0x53e   :  { %3160 = vrot.lane.b32.xlu1 %v3155_v13, %s10247_s30 }
 0x540   :  { %3164 = vrot.lane.b32.xlu0 %v3157_v50, %s10247_s30 }
 0x541   :  { %3162 = vrot.lane.b32.xlu2 %v3156_v39, %s10247_s30 }
 0x546   :  { %3742 = vrot.lane.b32.xlu1 %v3738_v3, %s14780_s10 }
 0x548   :  { %3746 = vrot.lane.b32.xlu0 %v3740_v51, %s14780_s10 }
 0x549   :  { %3744 = vrot.lane.b32.xlu2 %v3739_v28, %s14780_s10 }
 0x54e   :  { %3748 = vrot.lane.b32.xlu1 %v3741_v34, %s14780_s10 }
 0x591   :  { %v2823_v0 = vpop.f32.mrf.mxu0 }
 0x592   :  { %v2824_v61 = vadd.f32 %v2823_v0, %v2587_v19 }
 0x594   :  { %v2837_v1 = vpop.f32.mrf.mxu1 }
 0x595   :  { %v11679_v41 = vadd.f32 %v2837_v1, %v2824_v61 }
 0x596   :  { %v2795_v55 = vpop.f32.mrf.mxu2 }
 0x597   :  { %v9023_v57 = vmul.f32 -1.442695, %v11679_v41  ;;  %v2796_v29 = vadd.f32 %v2795_v55, %v2586_v56 }
 0x599   :  { %10160 = vpow2.f32 %v9023_v57  ;;  %v2825_v31 = vpop.f32.mrf.mxu0  ;;  %v2809_v7 = vpop.f32.mrf.mxu3 }
 0x59a   :  { %v2826_v11 = vadd.f32 %v2825_v31, %v2591_v6  ;;  %v11686_v23 = vadd.f32 %v2809_v7, %v2796_v29 }
 0x59c   :  { %v9022_v42 = vmul.f32 -1.442695, %v11686_v23  ;;  %v2839_v20 = vpop.f32.mrf.mxu1 }
 0x59d   :  { %v11694_v8 = vadd.f32 %v2839_v20, %v2826_v11 }
 0x59e   :  { %10162 = vpow2.f32 %v9022_v42  ;;  %v2797_v54 = vpop.f32.mrf.mxu2 }
 0x59f   :  { %v10161_v46 = vpop.eup %10160  ;;  %v9027_v14 = vmul.f32 -1.442695, %v11694_v8  ;;  %v2798_v52 = vadd.f32 %v2797_v54, %v2590_v38  ;;  %v2593_v54 = vld [vmem:[%s14707_s7 + $0x38] sm:$0xff] }
 0x5a0   :  { %v2923_v4 = vadd.f32 1.0, %v10161_v46 }
 0x5a1   :  { %10164 = vpow2.f32 %v9027_v14  ;;  %v2811_v63 = vpop.f32.mrf.mxu3  ;;  %v2893_v0 = vpop.f32.mrf.mxu0 }
 0x5a2   :  { %10166 = vrcp.f32 %v2923_v4  ;;  %v11701_v58 = vadd.f32 %v2811_v63, %v2798_v52  ;;  %v2956_v33 = vand.u32 2147483648, %v2923_v4  ;;  %vm2950_vm8 = vweird.f32 %v2923_v4 }
 0x5a3   :  { %v2954_v45 = vand.u32 2147483647, %v2923_v4 }
 0x5a4   :  { %v10163_v40 = vpop.eup %10162  ;;  %v9026_v9 = vmul.f32 -1.442695, %v11701_v58  ;;  %v2957_v15 = vor.u32 1.1754944e-38, %v2956_v33 }
 0x5a5   :  { %v2922_v60 = vadd.f32 1.0, %v10163_v40  ;;  %vm2955_vm10 = vcmp.eq.f32.partialorder %v2954_v45, 8.507059e+37 }
 0x5a6   :  { %v2865_v22 = vpop.f32.mrf.mxu2 }
 0x5a7   :  { %v10165_v32 = vpop.eup %10164  ;;  %10168 = vrcp.f32 %v2922_v60  ;;  %v2941_v24 = vand.u32 2147483648, %v2922_v60  ;;  %v2939_v44 = vand.u32 2147483647, %v2922_v60 }
 0x5a8   :  { %v10167_v18 = vpop.eup %10166  ;;  %v11707_v35 = vadd.f32 1.0, %v10165_v32  ;;  %10170 = vpow2.f32 %v9026_v9 }
 0x5a9   :  { %v2946_v59 = vmul.f32 %v10167_v18, %v2923_v4  ;;  %vm2951_vm13 = vweird.f32 %v10167_v18  ;;  %v2942_v57 = vor.u32 1.1754944e-38, %v2941_v24  ;;  %v2895_v32 = vpop.f32.mrf.mxu0 }
 0x5aa   :  { %10172 = vrcp.f32 %v11707_v35  ;;  %vm2952_vm2 = vmor %vm2950_vm8, %vm2951_vm13  ;;  %vm2935_vm8 = vweird.f32 %v2922_v60  ;;  %v3016_v29 = vand.u32 2147483648, %v11707_v35  ;;  %v3014_v31 = vand.u32 2147483647, %v11707_v35 }
 0x5ab   :  { %v2947_v47 = vsub.f32 1.0, %v2946_v59  ;;  %v2592_v59 = vld [vmem:[%s14707_s7 + $0x30] sm:$0xff] }
 0x5ac   :  { %v3017_v14 = vor.u32 1.1754944e-38, %v3016_v29 }
 0x5ad   :  { %v10169_v16 = vpop.eup %10168  ;;  %v2948_v37 = vmul.f32 %v10167_v18, %v2947_v47 }
 0x5ae   :  { %v10171_v49 = vpop.eup %10170  ;;  %v2931_v26 = vmul.f32 %v10169_v16, %v2922_v60  ;;  %vm2936_vm12 = vweird.f32 %v10169_v16 }
 0x5af   :  { %v2949_v5 = vadd.f32 %v10167_v18, %v2948_v37  ;;  %v11712_v12 = vadd.f32 1.0, %v10171_v49  ;;  %vm2937_vm13 = vmor %vm2935_vm8, %vm2936_vm12  ;;  %vm3010_vm12 = vweird.f32 %v11707_v35  ;;  %v2867_v49 = vpop.f32.mrf.mxu2 }
 0x5b0   :  { %v10173_v48 = vpop.eup %10172  ;;  %v2932_v21 = vsub.f32 1.0, %v2931_v26 }
 0x5b1   :  { %v2953_v62 = vsel %vm2952_vm2, %v10167_v18, %v2949_v5  ;;  %v3006_v19 = vmul.f32 %v10173_v48, %v11707_v35  ;;  %10174 = vrcp.f32 %v11712_v12  ;;  %vm3011_vm2 = vweird.f32 %v10173_v48 }
 0x5b2   :  { %v2958_v2 = vsel %vm2955_vm10, %v2957_v15, %v2953_v62  ;;  %v2933_v61 = vmul.f32 %v10169_v16, %v2932_v21  ;;  %vm2940_vm10 = vcmp.eq.f32.partialorder %v2939_v44, 8.507059e+37  ;;  %vm3012_vm8 = vmor %vm3010_vm12, %vm3011_vm2  ;;  %v3001_v9 = vand.u32 2147483648, %v11712_v12  ;;  %v11752_v15 = vpop.permute.xlu2 %3656 }
 0x5b3   :  { %v3051_v10 = vmul.f32 %v2958_v2, %v11679_v41  ;;  %v3007_v1 = vsub.f32 1.0, %v3006_v19  ;;  %v2588_v41 = vld [vmem:[%s14707_s7 + $0x10] sm:$0xff] }
 0x5b4   :  { %v2879_v30 = vpop.f32.mrf.mxu1  ;;  %v2934_v55 = vadd.f32 %v10169_v16, %v2933_v61  ;;  %v3002_v33 = vor.u32 1.1754944e-38, %v3001_v9 }
 0x5b5   :  { %v2880_v56 = vadd.f32 %v2879_v30, %v2589_v25  ;;  %v3008_v6 = vmul.f32 %v10173_v48, %v3007_v1  ;;  %3068 = vrot.lane.b32.xlu0 %v3051_v10, %s10241_s23 }
 0x5b6   :  { %v2938_v13 = vsel %vm2937_vm13, %v10169_v16, %v2934_v55  ;;  %vm3015_vm13 = vcmp.eq.f32.partialorder %v3014_v31, 8.507059e+37 }
 0x5b7   :  { %v11722_v7 = vadd.f32 %v2893_v0, %v2880_v56  ;;  %v10175_v11 = vpop.eup %10174  ;;  %v2943_v50 = vsel %vm2940_vm10, %v2942_v57, %v2938_v13  ;;  %v3009_v42 = vadd.f32 %v10173_v48, %v3008_v6  ;;  %vm2995_vm10 = vweird.f32 %v11712_v12  ;;  %v11760_v56 = vpop.permute.xlu0 %3658 }
 0x5b8   :  { %v3050_v46 = vmul.f32 %v2943_v50, %v11686_v23  ;;  %v2991_v52 = vmul.f32 %v10175_v11, %v11712_v12  ;;  %v2999_v23 = vand.u32 2147483647, %v11712_v12  ;;  %vm2996_vm2 = vweird.f32 %v10175_v11 }
 0x5b9   :  { %v9025_v20 = vmul.f32 -1.442695, %v11722_v7  ;;  %v2851_v38 = vpop.f32.mrf.mxu3  ;;  %v3013_v43 = vsel %vm3012_vm8, %v10173_v48, %v3009_v42  ;;  %vm2997_vm12 = vmor %vm2995_vm10, %vm2996_vm2 }
 0x5ba   :  { %v2852_v4 = vadd.f32 %v2851_v38, %v2588_v41  ;;  %v3018_v3 = vsel %vm3015_vm13, %v3017_v14, %v3013_v43  ;;  %v2992_v39 = vsub.f32 1.0, %v2991_v52  ;;  %3066 = vrot.lane.b32.xlu2 %v3050_v46, %s10241_s23  ;;  %vm3000_vm8 = vcmp.eq.f32.partialorder %v2999_v23, 8.507059e+37  ;;  %v11758_v2 = vpop.permute.xlu2 %3566 }
 0x5bb   :  { %10176 = vpow2.f32 %v9025_v20  ;;  %v3055_v60 = vmul.f32 %v3018_v3, %v11694_v8 }
 0x5bc   :  { %v2881_v63 = vpop.f32.mrf.mxu1  ;;  %v11736_v51 = vadd.f32 %v2865_v22, %v2852_v4  ;;  %v2993_v34 = vmul.f32 %v10175_v11, %v2992_v39 }
 0x5bd   :  { %v2882_v40 = vadd.f32 %v2881_v63, %v2593_v54  ;;  %3076 = vrot.lane.b32.xlu1 %v3055_v60, %s10241_s23 }
 0x5be   :  { %v9024_v18 = vmul.f32 -1.442695, %v11736_v51  ;;  %v2994_v47 = vadd.f32 %v10175_v11, %v2993_v34 }
 0x5bf   :  { %v11743_v35 = vadd.f32 %v2895_v32, %v2882_v40  ;;  %v11766_v9 = vpop.permute.xlu0 %3568 }
 0x5c0   :  { %10178 = vpow2.f32 %v9024_v18  ;;  %v2998_v37 = vsel %vm2997_vm12, %v10175_v11, %v2994_v47 }
 0x5c1   :  { %v9029_v8 = vmul.f32 -1.442695, %v11743_v35  ;;  %v10177_v28 = vpop.eup %10176  ;;  %v2853_v16 = vpop.f32.mrf.mxu3  ;;  %v3003_v5 = vsel %vm3000_vm8, %v3002_v33, %v2998_v37 }
 0x5c2   :  { %v2925_v45 = vadd.f32 1.0, %v10177_v28  ;;  %v2854_v26 = vadd.f32 %v2853_v16, %v2592_v59  ;;  %v3054_v48 = vmul.f32 %v3003_v5, %v11701_v58  ;;  %v11762_v54 = vpop.permute.xlu2 %3572  ;;  %v11773_v16 = vpop.permute.xlu1 %3654 }
 0x5c3   :  { %10180 = vpow2.f32 %v9029_v8 }
 0x5c4   :  { %10182 = vrcp.f32 %v2925_v45  ;;  %v11754_v12 = vadd.f32 %v2867_v49, %v2854_v26  ;;  %3074 = vrot.lane.b32.xlu0 %v3054_v48, %s10241_s23  ;;  %v2986_v61 = vand.u32 2147483648, %v2925_v45  ;;  %v2984_v1 = vand.u32 2147483647, %v2925_v45 }
 0x5c5   :  { %vm2980_vm2 = vweird.f32 %v2925_v45 }
 0x5c6   :  { %v10179_v21 = vpop.eup %10178  ;;  %v9028_v25 = vmul.f32 -1.442695, %v11754_v12  ;;  %v2987_v6 = vor.u32 1.1754944e-38, %v2986_v61  ;;  %vm2985_vm9 = vcmp.eq.f32.partialorder %v2984_v1, 8.507059e+37 }
 0x5c7   :  { %v2924_v24 = vadd.f32 1.0, %v10179_v21  ;;  %v11776_v48 = vpop.permute.xlu0 %3478 }
 0x5c9   :  { %v10181_v62 = vpop.eup %10180  ;;  %10184 = vrcp.f32 %v2924_v24  ;;  %v2971_v31 = vand.u32 2147483648, %v2924_v24  ;;  %vm2965_vm12 = vweird.f32 %v2924_v24  ;;  %v2969_v11 = vand.u32 2147483647, %v2924_v24 }
 0x5ca   :  { %v10183_v19 = vpop.eup %10182  ;;  %v2929_v0 = vadd.f32 1.0, %v10181_v62  ;;  %10186 = vpow2.f32 %v9028_v25  ;;  %v11770_v8 = vpop.permute.xlu2 %3482 }
 0x5cb   :  { %v2976_v30 = vmul.f32 %v10183_v19, %v2925_v45  ;;  %vm2981_vm13 = vweird.f32 %v10183_v19  ;;  %v2972_v14 = vor.u32 1.1754944e-38, %v2971_v31  ;;  %vm2970_vm6 = vcmp.eq.f32.partialorder %v2969_v11, 8.507059e+37 }
 0x5cc   :  { %10188 = vrcp.f32 %v2929_v0  ;;  %vm2982_vm10 = vmor %vm2980_vm2, %vm2981_vm13  ;;  %v3046_v43 = vand.u32 2147483648, %v2929_v0  ;;  %v3044_v3 = vand.u32 2147483647, %v2929_v0  ;;  %v11824_v11 = vsel %vm471_vm5, %v11758_v2, %v11766_v9 }
 0x5cd   :  { %v2977_v58 = vsub.f32 1.0, %v2976_v30 }
 0x5ce   :  { %v3047_v32 = vor.u32 1.1754944e-38, %v3046_v43 }
 0x5cf   :  { %v10185_v44 = vpop.eup %10184  ;;  %v2978_v10 = vmul.f32 %v10183_v19, %v2977_v58  ;;  %v11784_v25 = vpop.permute.xlu0 %3484 }
 0x5d0   :  { %v10187_v55 = vpop.eup %10186  ;;  %v2961_v57 = vmul.f32 %v10185_v44, %v2924_v24  ;;  %vm2966_vm8 = vweird.f32 %v10185_v44  ;;  %v11782_v24 = vpop.permute.xlu1 %3660 }
 0x5d1   :  { %v2979_v29 = vadd.f32 %v10183_v19, %v2978_v10  ;;  %v2928_v41 = vadd.f32 1.0, %v10187_v55  ;;  %vm2967_vm7 = vmor %vm2965_vm12, %vm2966_vm8 }
 0x5d2   :  { %v10189_v13 = vpop.eup %10188  ;;  %v2962_v22 = vsub.f32 1.0, %v2961_v57 }
 0x5d3   :  { %v2983_v50 = vsel %vm2982_vm10, %v10183_v19, %v2979_v29  ;;  %v3036_v42 = vmul.f32 %v10189_v13, %v2929_v0  ;;  %10190 = vrcp.f32 %v2928_v41  ;;  %vm3041_vm13 = vweird.f32 %v10189_v13 }
 0x5d4   :  { %v2988_v20 = vsel %vm2985_vm9, %v2987_v6, %v2983_v50  ;;  %v2963_v38 = vmul.f32 %v10185_v44, %v2962_v22  ;;  %vm3040_vm9 = vweird.f32 %v2929_v0  ;;  %vm3045_vm10 = vcmp.eq.f32.partialorder %v3044_v3, 8.507059e+37 }
 0x5d5   :  { %v3053_v46 = vmul.f32 %v2988_v20, %v11722_v7  ;;  %v3037_v52 = vsub.f32 1.0, %v3036_v42  ;;  %vm3042_vm2 = vmor %vm3040_vm9, %vm3041_vm13  ;;  %v3031_v33 = vand.u32 2147483648, %v2928_v41  ;;  %v3029_v45 = vand.u32 2147483647, %v2928_v41 }
 0x5d6   :  { %v2964_v4 = vadd.f32 %v10185_v44, %v2963_v38  ;;  %vm14789_vm13 = vcmask 1047688  }
 0x5d7   :  { %v3038_v63 = vmul.f32 %v10189_v13, %v3037_v52  ;;  %3072 = vrot.lane.b32.xlu2 %v3053_v46, %s10241_s23  ;;  %v3032_v49 = vor.u32 1.1754944e-38, %v3031_v33  ;;  %vm3030_vm8 = vcmp.eq.f32.partialorder %v3029_v45, 8.507059e+37  ;;  %v11790_v0 = vpop.permute.xlu0 %3338  ;;  %vm14791_vm9 = vmmov %vm14789_vm13 }
 0x5d8   :  { %v2968_v39 = vsel %vm2967_vm7, %v10185_v44, %v2964_v4  ;;  %vm3025_vm7 = vweird.f32 %v2928_v41  ;;  %v11788_v19 = vpop.permute.xlu1 %3570  ;;  %v11849_v4 = vld [vmem:[%s14762_s29] ss:$8 sm:$0xf] }
 0x5d9   :  { %v10191_v40 = vpop.eup %10190  ;;  %v2973_v60 = vsel %vm2970_vm6, %v2972_v14, %v2968_v39  ;;  %v3039_v23 = vadd.f32 %v10189_v13, %v3038_v63  ;;  %v3662_v39 = vsel %vm533_vm4, %v11773_v16, %v11752_v15 }
 0x5da   :  { %v3052_v7 = vmul.f32 %v2973_v60, %v11736_v51  ;;  %v3021_v34 = vmul.f32 %v10191_v40, %v2928_v41  ;;  %vm3026_vm6 = vweird.f32 %v10191_v40  ;;  %v3118_v60 = vperm.slane %v11849_v4, 0 }
 0x5db   :  { %v3043_v18 = vsel %vm3042_vm2, %v10189_v13, %v3039_v23  ;;  %vm3027_vm12 = vmor %vm3025_vm7, %vm3026_vm6  ;;  %v3119_v23 = vperm.slane %v11849_v4, 1  ;;  %vm14792_vm2 = vcmask 7168  }
 0x5dc   :  { %v3048_v59 = vsel %vm3045_vm10, %v3047_v32, %v3043_v18  ;;  %v3022_v47 = vsub.f32 1.0, %v3021_v34  ;;  %3070 = vrot.lane.b32.xlu1 %v3052_v7, %s10241_s23  ;;  %vm14793_vm10 = vcmask 277504  }
 0x5dd   :  { %v3057_v28 = vmul.f32 %v3048_v59, %v11743_v35  ;;  %v11779_v35 = vpop.permute.xlu2 %3336  ;;  %vm14794_vm6 = vmmov %vm14793_vm10 }
 0x5de   :  { %v3023_v37 = vmul.f32 %v10191_v40, %v3022_v47  ;;  %vm14795_vm7 = vmmov %vm14794_vm6 }
 0x5df   :  { %3080 = vrot.lane.b32.xlu0 %v3057_v28, %s10241_s23  ;;  %v11796_v61 = vpop.permute.xlu0 %3248 }
 0x5e0   :  { %v3024_v51 = vadd.f32 %v10191_v40, %v3023_v37  ;;  %v11794_v58 = vpop.permute.xlu1 %3480 }
 0x5e1   :  { %v11829_v50 = vsel %vm409_vm14, %v11776_v48, %v11794_v58 }
 0x5e2   :  { %v3028_v26 = vsel %vm3027_vm12, %v10191_v40, %v3024_v51  ;;  %vm14796_vm12 = vmmov %vm14792_vm2 }
 0x5e3   :  { %v3033_v5 = vsel %vm3030_vm8, %v3032_v49, %v3028_v26  ;;  %vm14797_vm8 = vmmov %vm14792_vm2 }
 0x5e4   :  { %v3056_v21 = vmul.f32 %v3033_v5, %v11754_v12 }
 0x5e5   :  { %v11786_v62 = vpop.permute.xlu2 %3246 }
 0x5e6   :  { %3078 = vrot.lane.b32.xlu2 %v3056_v21, %s10241_s23 }
 0x5e7   :  { %v11802_v10 = vpop.permute.xlu0 %3158 }
 0x5e8   :  { %v11800_v44 = vpop.permute.xlu1 %3334 }
 0x5e9   :  { %v3342_v37 = vsel %vm314_vm15, %v11800_v44, %v11779_v35 }
 0x5ed   :  { %v11792_v30 = vpop.permute.xlu2 %3252 }
 0x5ef   :  { %v11808_v57 = vpop.permute.xlu0 %3164 }
 0x5f0   :  { %v11806_v55 = vpop.permute.xlu1 %3340 }
 0x5f5   :  { %v11798_v12 = vpop.permute.xlu2 %3162 }
 0x5f7   :  { %v11813_v31 = vpop.permute.xlu0 %3746 }
 0x5f8   :  { %v11811_v6 = vpop.permute.xlu1 %3250 }
 0x5fd   :  { %v11804_v1 = vpop.permute.xlu2 %3744 }
 0x600   :  { %v11815_v41 = vpop.permute.xlu1 %3160 }
 0x608   :  { %v11851_v43 = vpop.permute.xlu1 %3742 }
 0x610   :  { %v11869_v45 = vpop.permute.xlu1 %3748 }
 0x614   :  { %v3067_v29 = vpop.permute.xlu2 %3066 }
 0x615   :  { %3098 = vst.msk [vmem:[#allocation2] sm:$0xff] %vm14789_vm13, %v3067_v29  ;;  %vm14798_vm13 = vcmask 908288  }
 0x61c   :  { %v11817_v13 = vld [vmem:[#allocation2] sm:$0xff] }
 0x61d   :  { %v3582_v20 = vmul.f32 %v11817_v13, %v11758_v2  ;;  %v3494_v14 = vmul.f32 %v11817_v13, %v11776_v48  ;;  %v3108_v7 = vld [vmem:[#allocation2] sm:$0xff]  ;;  %v3670_v34 = vmul.f32 %v11817_v13, %v11773_v16  ;;  %v3350_v5 = vmul.f32 %v11817_v13, %v11800_v44 }
 0x61e   :  { %v3126_v47 = vmul.f32 %v3118_v60, %v3108_v7 }
 0x627   :  { %v11819_v22 = vpop.permute.xlu0 %3068 }
 0x628   :  { %v11833_v42 = vsel %vm60_vm0, %v3067_v29, %v11819_v22 }
 0x629   :  { %3099 = vst [vmem:[#allocation2 + $0x8] sm:$0xff] %v11833_v42  ;;  %v3416_v38 = vpack.c.bf16 %v11833_v42, %v11817_v13  ;;  %v3583_v46 = vmul.f32 %v11824_v11, %v11833_v42  ;;  %v3495_v52 = vmul.f32 %v11829_v50, %v11833_v42  ;;  %v3671_v40 = vmul.f32 %v3662_v39, %v11833_v42 }
 0x62a   :  { %v3351_v51 = vmul.f32 %v3342_v37, %v11833_v42 }
 0x62b   :  { %3428 = vrot.lane.b32.xlu2 %v3416_v38, %s10250_s0  ;;  %v3592_v63 = vpack.c.bf16 %v3583_v46, %v3582_v20  ;;  %v3504_v3 = vpack.c.bf16 %v3495_v52, %v3494_v14  ;;  %v3680_v59 = vpack.c.bf16 %v3671_v40, %v3670_v34  ;;  %v3254_v38 = vsel %vm252_vm1, %v11786_v62, %v11796_v61 }
 0x62c   :  { %v3360_v29 = vpack.c.bf16 %v3351_v51, %v3350_v5  ;;  %v3263_v14 = vmul.f32 %v3254_v38, %v11833_v42 }
 0x62d   :  { %3604 = vrot.lane.b32.xlu0 %v3592_v63, %s14790_s3  ;;  %3516 = vrot.lane.b32.xlu1 %v3504_v3, %s14781_s5 }
 0x62f   :  { %v3077_v46 = vpop.permute.xlu1 %3076 }
 0x630   :  { %v3109_v18 = vld [vmem:[#allocation2 + $0x8] sm:$0xff] }
 0x631   :  { %v3073_v32 = vpop.permute.xlu2 %3072  ;;  %v3127_v28 = vmul.f32 %v3119_v23, %v3109_v18  ;;  %v3262_v18 = vmul.f32 %v11817_v13, %v11786_v62 }
 0x632   :  { %3102 = vst.msk [vmem:[#allocation2 + $0x20] sm:$0xff] %vm60_vm0, %v3073_v32 }
 0x633   :  { %3692 = vrot.lane.b32.xlu2 %v3680_v59, %s14769_s4  ;;  %v3134_v33 = vpack.c.bf16 %v3127_v28, %v3126_v47  ;;  %v3272_v59 = vpack.c.bf16 %v3263_v14, %v3262_v18 }
 0x635   :  { %3138 = vst [vmem:[#allocation3] sm:$0xff] %v3134_v33  ;;  %v11907_v33 = vsel %vm14792_vm2, %v11802_v10, %v11815_v41  ;;  %vm14800_vm2 = vmmov %vm14798_vm13 }
 0x636   :  { %v3075_v49 = vpop.permute.xlu0 %3074 }
 0x637   :  { %3103 = vst.msk [vmem:[#allocation2 + $0x28] sm:$0xff] %vm14791_vm9, %v3075_v49  ;;  %v11886_v52 = vsel %vm60_vm0, %v3075_v49, %v3077_v46  ;;  %vm14799_vm9 = vcmask 777216  }
 0x638   :  { %v3131_v49 = vmul.f32 %v3119_v23, %v11886_v52  ;;  %v3676_v5 = vmul.f32 %v3662_v39, %v11886_v52  ;;  %v3356_v18 = vmul.f32 %v3342_v37, %v11886_v52 }
 0x639   :  { %v11873_v26 = vld [vmem:[#allocation2 + $0x20] sm:$0xff] }
 0x63a   :  { %v3674_v21 = vmul.f32 %v11782_v24, %v11873_v26  ;;  %v3586_v40 = vmul.f32 %v11873_v26, %v11762_v54 }
 0x63b   :  { %3372 = vrot.lane.b32.xlu2 %v3360_v29, %s14771_s1 }
 0x63c   :  { %v3682_v20 = vpack.c.bf16 %v3674_v21, %v3674_v21  ;;  %v3594_v47 = vpack.c.bf16 %v3586_v40, %v3586_v40  ;;  %v3175_v21 = vmul.f32 %v11907_v33, %v11833_v42 }
 0x63e   :  { %3696 = vrot.lane.b32.xlu0 %v3682_v20, %s14769_s4  ;;  %v11888_v3 = vld [vmem:[#allocation2 + $0x28] sm:$0xff] }
 0x63f   :  { %v3419_v34 = vpack.c.bf16 %v11886_v52, %v11888_v3  ;;  %v3675_v28 = vmul.f32 %v11773_v16, %v11888_v3  ;;  %v3130_v51 = vmul.f32 %v11888_v3, %v3118_v60  ;;  %v3498_v16 = vmul.f32 %v11873_v26, %v11784_v25 }
 0x640   :  { %v3079_v63 = vpop.permute.xlu2 %3078  ;;  %v3355_v23 = vmul.f32 %v11888_v3, %v11800_v44  ;;  %v3499_v44 = vmul.f32 %v11776_v48, %v11888_v3 }
 0x641   :  { %v11893_v7 = vsel %vm60_vm0, %v3077_v46, %v3079_v63  ;;  %3434 = vrot.lane.b32.xlu1 %v3419_v34, %s10250_s0  ;;  %v3136_v29 = vpack.c.bf16 %v3131_v49, %v3130_v51  ;;  %v3683_v20 = vpack.c.bf16 %v3676_v5, %v3675_v28  ;;  %v3174_v46 = vmul.f32 %v11817_v13, %v11802_v10 }
 0x642   :  { %3105 = vst [vmem:[#allocation2 + $0x38] sm:$0xff] %v11893_v7  ;;  %v3506_v60 = vpack.c.bf16 %v3498_v16, %v3498_v16  ;;  %v3363_v28 = vpack.c.bf16 %v3356_v18, %v3355_v23  ;;  %v3267_v51 = vmul.f32 %v11888_v3, %v11786_v62  ;;  %v11970_v62 = vsel %vm14794_vm6, %v11813_v31, %v11869_v45  ;;  %vm14802_vm6 = vmmov %vm14799_vm9 }
 0x643   :  { %3284 = vrot.lane.b32.xlu2 %v3272_v59, %s14772_s26  ;;  %3140 = vst [vmem:[#allocation3 + $0x10] sm:$0xff] %v3136_v29  ;;  %v3184_v14 = vpack.c.bf16 %v3175_v21, %v3174_v46  ;;  %v3587_v59 = vmul.f32 %v11758_v2, %v11888_v3  ;;  %v3500_v2 = vmul.f32 %v11829_v50, %v11886_v52 }
 0x644   :  { %v11959_v50 = vsel %vm409_vm14, %v11770_v8, %v11784_v25 }
 0x645   :  { %v3507_v37 = vpack.c.bf16 %v3500_v2, %v3499_v44  ;;  %v3180_v2 = vmul.f32 %v11907_v33, %v11886_v52  ;;  %v3575_v33 = vsel %vm471_vm5, %v11766_v9, %v11788_v19 }
 0x646   :  { %3608 = vrot.lane.b32.xlu0 %v3594_v47, %s14790_s3 }
 0x649   :  { %3698 = vrot.lane.b32.xlu1 %v3683_v20, %s14769_s4 }
 0x64b   :  { %3196 = vrot.lane.b32.xlu2 %v3184_v14, %s14773_s21 }
 0x64e   :  { %v3071_v39 = vpop.permute.xlu1 %3070  ;;  %3520 = vrot.lane.b32.xlu0 %v3506_v60, %s14781_s5  ;;  %v3114_v60 = vld [vmem:[#allocation2 + $0x38] sm:$0xff] }
 0x64f   :  { %v11926_v40 = vsel %vm60_vm0, %v11819_v22, %v3071_v39  ;;  %v11929_v34 = vsel %vm60_vm0, %v3071_v39, %v3073_v32  ;;  %v3588_v22 = vmul.f32 %v11824_v11, %v11886_v52  ;;  %v11954_v11 = vsel %vm409_vm14, %v11794_v58, %v11770_v8 }
 0x650   :  { %3100 = vst [vmem:[#allocation2 + $0x10] sm:$0xff] %v11926_v40  ;;  %v3268_v58 = vmul.f32 %v3254_v38, %v11886_v52  ;;  %v3496_v49 = vmul.f32 %v11954_v11, %v11926_v40  ;;  %v3497_v8 = vmul.f32 %v11959_v50, %v11929_v34  ;;  %v11983_v21 = vmul.f32 %v11970_v62, %v11929_v34 }
 0x651   :  { %3101 = vst [vmem:[#allocation2 + $0x18] sm:$0xff] %v11929_v34  ;;  %v3081_v47 = vpop.permute.xlu0 %3080  ;;  %3378 = vrot.lane.b32.xlu1 %v3363_v28, %s14771_s1  ;;  %v3595_v48 = vpack.c.bf16 %v3588_v22, %v3587_v59  ;;  %v3121_v38 = vperm.slane %v11849_v4, 3  ;;  %v3417_v18 = vpack.c.bf16 %v11929_v34, %v11926_v40  ;;  %v3179_v59 = vmul.f32 %v11888_v3, %v11802_v10 }
 0x652   :  { %v11941_v32 = vsel %vm60_vm0, %v3079_v63, %v3081_v47  ;;  %3107 = vst.msk [vmem:[#allocation2 + $0x48] sm:$0xff] %vm60_vm0, %v3081_v47  ;;  %v11964_v63 = vsel %vm14793_vm10, %v11804_v1, %v11813_v31  ;;  %v3275_v29 = vpack.c.bf16 %v3268_v58, %v3267_v51  ;;  %v3120_v31 = vperm.slane %v11849_v4, 2 }
 0x653   :  { %3106 = vst [vmem:[#allocation2 + $0x40] sm:$0xff] %v11941_v32  ;;  %3610 = vrot.lane.b32.xlu2 %v3595_v48, %s14790_s3  ;;  %v11979_v5 = vmul.f32 %v11964_v63, %v11926_v40  ;;  %v3505_v46 = vpack.c.bf16 %v3497_v8, %v3496_v49  ;;  %v3663_v28 = vsel %vm533_vm4, %v11752_v15, %v11760_v56  ;;  %vm14801_vm10 = vcmask 916480  }
 0x654   :  { %v3132_v4 = vmul.f32 %v3120_v31, %v3114_v60  ;;  %v3664_v22 = vsel %vm533_vm4, %v11760_v56, %v11782_v24  ;;  %v3672_v10 = vmul.f32 %v3663_v28, %v11926_v40  ;;  %v3187_v58 = vpack.c.bf16 %v3180_v2, %v3179_v59 }
 0x655   :  { %v3769_v14 = vpack.c.bf16 %v11983_v21, %v11979_v5  ;;  %v3420_v15 = vpack.c.bf16 %v11941_v32, %v11893_v7  ;;  %v3576_v56 = vsel %vm471_vm5, %v11788_v19, %v11762_v54  ;;  %v3584_v8 = vmul.f32 %v3575_v33, %v11926_v40 }
 0x656   :  { %3522 = vrot.lane.b32.xlu0 %v3507_v37, %s14781_s5  ;;  %v3673_v37 = vmul.f32 %v3664_v22, %v11929_v34  ;;  %v3255_v59 = vsel %vm252_vm1, %v11796_v61, %v11811_v6  ;;  %v3167_v61 = vsel %vm14796_vm12, %v11815_v41, %v11798_v12  ;;  %vm14804_vm12 = vcmask 785408  }
 0x657   :  { %v3110_v16 = vld [vmem:[#allocation2 + $0x10] sm:$0xff] }
 0x658   :  { %v3111_v20 = vld [vmem:[#allocation2 + $0x18] sm:$0xff]  ;;  %v3128_v39 = vmul.f32 %v3120_v31, %v3110_v16  ;;  %v3681_v49 = vpack.c.bf16 %v3673_v37, %v3672_v10  ;;  %v3585_v16 = vmul.f32 %v3576_v56, %v11929_v34  ;;  %v3344_v31 = vsel %vm314_vm15, %v11790_v0, %v11806_v55 }
 0x659   :  { %3290 = vrot.lane.b32.xlu1 %v3275_v29, %s14772_s26  ;;  %v3129_v44 = vmul.f32 %v3121_v38, %v3111_v20  ;;  %v3343_v29 = vsel %vm314_vm15, %v11779_v35, %v11790_v0  ;;  %v3353_v19 = vmul.f32 %v3344_v31, %v11929_v34  ;;  %v12029_v60 = vld [vmem:[#allocation2 + $0x48] sm:$0xff]  ;;  %v3750_v0 = vsel %vm14795_vm7, %v11851_v43, %v11804_v1  ;;  %vm14803_vm7 = vmmov %vm14802_vm6 }
 0x65a   :  { %v3115_v23 = vld [vmem:[#allocation2 + $0x40] sm:$0xff]  ;;  %v3352_v9 = vmul.f32 %v3343_v29, %v11926_v40  ;;  %v3593_v20 = vpack.c.bf16 %v3585_v16, %v3584_v8  ;;  %v3679_v35 = vmul.f32 %v11782_v24, %v12029_v60  ;;  %v3264_v24 = vmul.f32 %v3255_v59, %v11926_v40 }
 0x65b   :  { %3518 = vrot.lane.b32.xlu2 %v3505_v46, %s14781_s5  ;;  %v3133_v47 = vmul.f32 %v3121_v38, %v3115_v23  ;;  %v3135_v48 = vpack.c.bf16 %v3129_v44, %v3128_v39  ;;  %v3678_v38 = vmul.f32 %v3664_v22, %v11941_v32  ;;  %v3677_v46 = vmul.f32 %v3663_v28, %v11893_v7 }
 0x65c   :  { %v3361_v39 = vpack.c.bf16 %v3353_v19, %v3352_v9  ;;  %v3759_v44 = vmul.f32 %v3750_v0, %v11833_v42  ;;  %v3685_v1 = vpack.c.bf16 %v3679_v35, %v3679_v35  ;;  %v3591_v2 = vmul.f32 %v12029_v60, %v11762_v54 }
 0x65d   :  { %v3137_v51 = vpack.c.bf16 %v3133_v47, %v3132_v4  ;;  %3139 = vst [vmem:[#allocation3 + $0x8] sm:$0xff] %v3135_v48  ;;  %v3684_v23 = vpack.c.bf16 %v3678_v38, %v3677_v46  ;;  %v3758_v47 = vmul.f32 %v11851_v43, %v11817_v13  ;;  %v3358_v13 = vmul.f32 %v3344_v31, %v11941_v32 }
 0x65e   :  { %3430 = vrot.lane.b32.xlu0 %v3417_v18, %s10250_s0  ;;  %v3256_v18 = vsel %vm252_vm1, %v11811_v6, %v11792_v30  ;;  %v3168_v6 = vsel %vm14797_vm8, %v11798_v12, %v11808_v57  ;;  %v3176_v42 = vmul.f32 %v3167_v61, %v11926_v40  ;;  %v3597_v10 = vpack.c.bf16 %v3591_v2, %v3591_v2  ;;  %vm14805_vm8 = vmmov %vm14804_vm12 }
 0x65f   :  { %3141 = vst [vmem:[#allocation3 + $0x18] sm:$0xff] %v3137_v51  ;;  %v3265_v4 = vmul.f32 %v3256_v18, %v11929_v34  ;;  %v3768_v28 = vpack.c.bf16 %v3759_v44, %v3758_v47  ;;  %v3177_v48 = vmul.f32 %v3168_v6, %v11929_v34  ;;  %v3357_v54 = vmul.f32 %v3343_v29, %v11893_v7 }
 0x660   :  { %v3503_v41 = vmul.f32 %v12029_v60, %v11784_v25  ;;  %v3270_v12 = vmul.f32 %v3256_v18, %v11941_v32  ;;  %v3590_v40 = vmul.f32 %v3576_v56, %v11941_v32  ;;  %v3269_v34 = vmul.f32 %v3255_v59, %v11893_v7 }
 0x661   :  { %3202 = vrot.lane.b32.xlu1 %v3187_v58, %s14773_s21  ;;  %v3273_v22 = vpack.c.bf16 %v3265_v4, %v3264_v24  ;;  %v3364_v37 = vpack.c.bf16 %v3358_v13, %v3357_v54  ;;  %v3185_v51 = vpack.c.bf16 %v3177_v48, %v3176_v42  ;;  %v3502_v25 = vmul.f32 %v11959_v50, %v11941_v32  ;;  %v3852_v4 = vld [vmem:[%s14708_s9] sm:$0xff] }
 0x662   :  { %v3509_v58 = vpack.c.bf16 %v3503_v41, %v3503_v41  ;;  %v3501_v16 = vmul.f32 %v11954_v11, %v11893_v7  ;;  %v3182_v29 = vmul.f32 %v3168_v6, %v11941_v32  ;;  %v3418_v50 = vpack.c.bf16 %v11873_v26, %v11873_v26 }
 0x663   :  { %3436 = vrot.lane.b32.xlu2 %v3420_v15, %s10250_s0  ;;  %v3589_v15 = vmul.f32 %v3575_v33, %v11893_v7  ;;  %v3181_v33 = vmul.f32 %v3167_v61, %v11893_v7  ;;  %v3766_v11 = vmul.f32 %v11970_v62, %v11941_v32  ;;  %v3421_v19 = vpack.c.bf16 %v12029_v60, %v12029_v60 }
 0x664   :  { %v3508_v31 = vpack.c.bf16 %v3502_v25, %v3501_v16  ;;  %v3764_v32 = vmul.f32 %v3750_v0, %v11886_v52  ;;  %v3359_v35 = vmul.f32 %v12029_v60, %v11806_v55  ;;  %v3183_v5 = vmul.f32 %v12029_v60, %v11808_v57 }
 0x665   :  { %v3596_v8 = vpack.c.bf16 %v3590_v40, %v3589_v15  ;;  %v3188_v38 = vpack.c.bf16 %v3182_v29, %v3181_v33  ;;  %v3271_v21 = vmul.f32 %v12029_v60, %v11792_v30  ;;  %v3762_v24 = vmul.f32 %v11869_v45, %v11873_v26 }
 0x666   :  { %3694 = vrot.lane.b32.xlu0 %v3681_v49, %s14769_s4  ;;  %v3276_v49 = vpack.c.bf16 %v3270_v12, %v3269_v34  ;;  %v3189_v0 = vpack.c.bf16 %v3183_v5, %v3183_v5 }
 0x667   :  { %v3277_v18 = vpack.c.bf16 %v3271_v21, %v3271_v21  ;;  %v3770_v47 = vpack.c.bf16 %v3762_v24, %v3762_v24 }
 0x669   :  { %3606 = vrot.lane.b32.xlu1 %v3593_v20, %s14790_s3  ;;  %v3765_v20 = vmul.f32 %v11964_v63, %v11893_v7  ;;  %v3266_v7 = vmul.f32 %v11873_v26, %v11792_v30  ;;  %v3354_v63 = vmul.f32 %v11873_v26, %v11806_v55  ;;  %v3178_v55 = vmul.f32 %v11873_v26, %v11808_v57 }
 0x66b   :  { %3700 = vrot.lane.b32.xlu2 %v3684_v23, %s14769_s4  ;;  %v3772_v46 = vpack.c.bf16 %v3766_v11, %v3765_v20  ;;  %v3763_v23 = vmul.f32 %v11851_v43, %v11888_v3  ;;  %v3274_v43 = vpack.c.bf16 %v3266_v7, %v3266_v7  ;;  %v3362_v3 = vpack.c.bf16 %v3354_v63, %v3354_v63 }
 0x66c   :  { %v3186_v30 = vpack.c.bf16 %v3178_v55, %v3178_v55 }
 0x66e   :  { %3374 = vrot.lane.b32.xlu0 %v3361_v39, %s14771_s1  ;;  %v3771_v39 = vpack.c.bf16 %v3764_v32, %v3763_v23 }
 0x671   :  { %3702 = vrot.lane.b32.xlu1 %v3685_v1, %s14769_s4  ;;  %v3767_v1 = vmul.f32 %v11869_v45, %v12029_v60 }
 0x673   :  { %3780 = vrot.lane.b32.xlu2 %v3768_v28, %s14770_s2  ;;  %v3773_v2 = vpack.c.bf16 %v3767_v1, %v3767_v1 }
 0x676   :  { %3286 = vrot.lane.b32.xlu0 %v3273_v22, %s14772_s26 }
 0x679   :  { %3614 = vrot.lane.b32.xlu1 %v3597_v10, %s14790_s3 }
 0x67b   :  { %3380 = vrot.lane.b32.xlu2 %v3364_v37, %s14771_s1 }
 0x67e   :  { %3198 = vrot.lane.b32.xlu0 %v3185_v51, %s14773_s21 }
 0x681   :  { %3526 = vrot.lane.b32.xlu1 %v3509_v58, %s14781_s5 }
 0x683   :  { %3292 = vrot.lane.b32.xlu2 %v3276_v49, %s14772_s26 }
 0x685   :  { %v12081_v56 = vpop.permute.xlu2 %3428 }
 0x686   :  { %3612 = vrot.lane.b32.xlu0 %v3596_v8, %s14790_s3  ;;  %v3440_v11 = vrot.slane %v12081_v56, 4 }
 0x689   :  { %3524 = vrot.lane.b32.xlu1 %v3508_v31, %s14781_s5 }
 0x68b   :  { %3204 = vrot.lane.b32.xlu2 %v3188_v38, %s14773_s21 }
 0x68d   :  { %v12090_v9 = vpop.permute.xlu2 %3692 }
 0x68e   :  { %3432 = vrot.lane.b32.xlu0 %v3418_v50, %s10250_s0 }
 0x691   :  { %3438 = vrot.lane.b32.xlu1 %v3421_v19, %s10250_s0 }
 0x693   :  { %3788 = vrot.lane.b32.xlu2 %v3772_v46, %s14770_s2 }
 0x695   :  { %v12107_v62 = vpop.permute.xlu2 %3372 }
 0x696   :  { %3782 = vrot.lane.b32.xlu0 %v3769_v14, %s14770_s2  ;;  %v3365_v14 = vpack.c.bf16 %v3359_v35, %v3359_v35 }
 0x699   :  { %3786 = vrot.lane.b32.xlu1 %v3771_v39, %s14770_s2 }
 0x69b   :  { %3288 = vrot.lane.b32.xlu2 %v3274_v43, %s14772_s26  ;;  %v3704_v43 = vrot.slane %v12090_v9, 4 }
 0x69d   :  { %v12118_v52 = vpop.permute.xlu2 %3284 }
 0x69e   :  { %3376 = vrot.lane.b32.xlu0 %v3362_v3, %s14771_s1 }
 0x69f   :  { %v12131_v44 = vpop.permute.xlu0 %3604  ;;  %v3517_v57 = vpop.permute.xlu1 %3516 }
 0x6a0   :  { %v3528_v6 = vrot.slane %v3517_v57, 4  ;;  %v3616_v24 = vrot.slane %v12131_v44, 4 }
 0x6a1   :  { %3382 = vrot.lane.b32.xlu1 %v3365_v14, %s14771_s1 }
 0x6a3   :  { %3206 = vrot.lane.b32.xlu2 %v3189_v0, %s14773_s21 }
 0x6a5   :  { %v12129_v59 = vpop.permute.xlu2 %3196 }
 0x6a6   :  { %3294 = vrot.lane.b32.xlu0 %v3277_v18, %s14772_s26 }
 0x6a9   :  { %3200 = vrot.lane.b32.xlu1 %v3186_v30, %s14773_s21 }
 0x6ab   :  { %3856 = vperm.xlu2 %10157, %v3852_v4  }
 0x6ad   :  { %v12142_v28 = vpop.permute.xlu2 %3610 }
 0x6ae   :  { %3784 = vrot.lane.b32.xlu0 %v3770_v47, %s14770_s2 }
 0x6b0   :  { %v3697_v22 = vpop.permute.xlu0 %3696 }
 0x6b1   :  { %3790 = vrot.lane.b32.xlu1 %v3773_v2, %s14770_s2  ;;  %v3706_v3 = vrot.slane %v3697_v22, 4 }
 0x6b3   :  { %v3435_v26 = vpop.permute.xlu1 %3434 }
 0x6b4   :  { %v3443_v54 = vrot.slane %v3435_v26, 4 }
 0x6b5   :  { %v3519_v61 = vpop.permute.xlu2 %3518 }
 0x6b6   :  { %v3529_v42 = vrot.slane %v3519_v61, 4 }
 0x6b8   :  { %v3609_v13 = vpop.permute.xlu0 %3608  ;;  %v3534_v48 = vsel %vm218_vm3, %v3528_v6, %v3529_v42 }
 0x6b9   :  { %v3535_v10 = vsel %vm439_vm11, %v3517_v57, %v3534_v48  ;;  %v3618_v30 = vrot.slane %v3609_v13, 4 }
 0x6ba   :  { %3546 = vst [vmem:[#allocation3 + $0xa0] sm:$0xff] %v3535_v10 }
 0x6bb   :  { %v3699_v45 = vpop.permute.xlu1 %3698 }
 0x6bc   :  { %v3707_v8 = vrot.slane %v3699_v45, 4 }
 0x6bd   :  { %v12147_v60 = vpop.permute.xlu2 %3436 }
 0x6be   :  { %v3444_v51 = vrot.slane %v12147_v60, 4 }
 0x6c0   :  { %v3521_v37 = vpop.permute.xlu0 %3520  ;;  %v3450_v12 = vsel %vm218_vm3, %v3443_v54, %v3444_v51 }
 0x6c1   :  { %v3530_v41 = vrot.slane %v3521_v37, 4  ;;  %v3451_v58 = vsel %vm14798_vm13, %v3435_v26, %v3450_v12  ;;  %v3384_v26 = vrot.slane %v12107_v62, 4  ;;  %vm14806_vm13 = vcmask 1031168  }
 0x6c2   :  { %3460 = vst [vmem:[#allocation3 + $0x90] sm:$0xff] %v3451_v58 }
 0x6c3   :  { %v3536_v40 = vsel %vm218_vm3, %v3529_v42, %v3530_v41  ;;  %v3379_v15 = vpop.permute.xlu1 %3378 }
 0x6c4   :  { %v3537_v34 = vsel %vm439_vm11, %v3519_v61, %v3536_v40  ;;  %v3387_v7 = vrot.slane %v3379_v15, 4 }
 0x6c5   :  { %3547 = vst [vmem:[#allocation3 + $0xa8] sm:$0xff] %v3537_v34  ;;  %v12156_v49 = vpop.permute.xlu2 %3700 }
 0x6c6   :  { %v3708_v16 = vrot.slane %v12156_v49, 4 }
 0x6c8   :  { %v12158_v25 = vpop.permute.xlu0 %3522  ;;  %v3714_v29 = vsel %vm218_vm3, %v3707_v8, %v3708_v16 }
 0x6c9   :  { %v3715_v31 = vsel %vm14799_vm9, %v3699_v45, %v3714_v29  ;;  %vm14807_vm9 = vmmov %vm14801_vm10 }
 0x6ca   :  { %3724 = vst [vmem:[#allocation3 + $0xf0] sm:$0xff] %v3715_v31 }
 0x6cb   :  { %v3291_v33 = vpop.permute.xlu1 %3290 }
 0x6cc   :  { %v3299_v57 = vrot.slane %v3291_v33, 4 }
 0x6cd   :  { %v12165_v38 = vpop.permute.xlu2 %3780 }
 0x6d0   :  { %v12167_v50 = vpop.permute.xlu0 %3430 }
 0x6d1   :  { %v3441_v19 = vrot.slane %v12167_v50, 4  ;;  %v9985_v45 = vld [vmem:[#allocation3 + $0xec] sm:$0xf0]  ;;  %v9161_v54 = vld [vmem:[#allocation3 + $0xf0] sm:$0xf0] }
 0x6d3   :  { %v3446_v20 = vsel %vm218_vm3, %v3440_v11, %v3441_v19  ;;  %v3203_v23 = vpop.permute.xlu1 %3202 }
 0x6d4   :  { %v3447_v46 = vsel %vm14800_vm2, %v12081_v56, %v3446_v20  ;;  %v3211_v8 = vrot.slane %v3203_v23, 4  ;;  %vm14808_vm2 = vmmov %vm14802_vm6 }
 0x6d5   :  { %3458 = vst [vmem:[#allocation3 + $0x80] sm:$0xff] %v3447_v46  ;;  %v12176_v32 = vpop.permute.xlu2 %3380 }
 0x6d6   :  { %v3388_v39 = vrot.slane %v12176_v32, 4 }
 0x6d8   :  { %v3695_v63 = vpop.permute.xlu0 %3694  ;;  %v3394_v5 = vsel %vm218_vm3, %v3387_v7, %v3388_v39 }
 0x6d9   :  { %v3705_v35 = vrot.slane %v3695_v63, 4  ;;  %v3395_v14 = vsel %vm14801_vm10, %v3379_v15, %v3394_v5  ;;  %vm14809_vm10 = vcmask 1039360  }
 0x6da   :  { %3404 = vst [vmem:[#allocation3 + $0x70] sm:$0xff] %v3395_v14 }
 0x6db   :  { %v3710_v21 = vsel %vm218_vm3, %v3704_v43, %v3705_v35  ;;  %v3712_v56 = vsel %vm218_vm3, %v3705_v35, %v3706_v3  ;;  %v3607_v55 = vpop.permute.xlu1 %3606 }
 0x6dc   :  { %v3711_v0 = vsel %vm14802_vm6, %v12090_v9, %v3710_v21  ;;  %v3713_v18 = vsel %vm14803_vm7, %v3695_v63, %v3712_v56  ;;  %v3617_v4 = vrot.slane %v3607_v55, 4  ;;  %vm14810_vm6 = vmmov %vm14806_vm13 }
 0x6dd   :  { %3722 = vst [vmem:[#allocation3 + $0xe0] sm:$0xff] %v3711_v0  ;;  %v12190_v47 = vpop.permute.xlu2 %3292  ;;  %vm14811_vm7 = vmmov %vm14809_vm10 }
 0x6de   :  { %3723 = vst [vmem:[#allocation3 + $0xe8] sm:$0xff] %v3713_v18  ;;  %v3622_v1 = vsel %vm218_vm3, %v3616_v24, %v3617_v4  ;;  %v3624_v22 = vsel %vm218_vm3, %v3617_v4, %v3618_v30  ;;  %v3300_v9 = vrot.slane %v12190_v47, 4  ;;  %v3619_v18 = vrot.slane %v12142_v28, 4 }
 0x6df   :  { %v3623_v61 = vsel %vm14804_vm12, %v12131_v44, %v3622_v1  ;;  %v3625_v6 = vsel %vm14805_vm8, %v3607_v55, %v3624_v22  ;;  %vm14812_vm12 = vmmov %vm14810_vm6 }
 0x6e0   :  { %v12194_v2 = vpop.permute.xlu0 %3374  ;;  %3634 = vst [vmem:[#allocation3 + $0xc0] sm:$0xff] %v3623_v61  ;;  %v3306_v42 = vsel %vm218_vm3, %v3299_v57, %v3300_v9  ;;  %v3531_v61 = vrot.slane %v12158_v25, 4 }
 0x6e1   :  { %v3385_v13 = vrot.slane %v12194_v2, 4  ;;  %3635 = vst [vmem:[#allocation3 + $0xc8] sm:$0xff] %v3625_v6  ;;  %v3307_v10 = vsel %vm14806_vm13, %v3291_v33, %v3306_v42  ;;  %vm14813_vm13 = vmmov %vm14805_vm8 }
 0x6e2   :  { %3316 = vst [vmem:[#allocation3 + $0x50] sm:$0xff] %v3307_v10 }
 0x6e3   :  { %v3390_v48 = vsel %vm218_vm3, %v3384_v26, %v3385_v13  ;;  %v3703_v12 = vpop.permute.xlu1 %3702 }
 0x6e4   :  { %v3391_v44 = vsel %vm14807_vm9, %v12107_v62, %v3390_v48  ;;  %v9159_v37 = vld [vmem:[#allocation3 + $0xe0] sm:$0xf]  ;;  %v9983_v41 = vld [vmem:[#allocation3 + $0xe4] sm:$0xf]  ;;  %v3709_v34 = vrot.slane %v3703_v12, 4  ;;  %v3296_v62 = vrot.slane %v12118_v52, 4  ;;  %vm14814_vm9 = vmmov %vm14811_vm7 }
 0x6e5   :  { %3402 = vst [vmem:[#allocation3 + $0x60] sm:$0xff] %v3391_v44  ;;  %v9160_v40 = vor.u32 %v9985_v45, %v9159_v37  ;;  %v9164_v58 = vor.u32 %v9983_v41, %v9161_v54  ;;  %v3205_v15 = vpop.permute.xlu2 %3204 }
 0x6e6   :  { %v3716_v29 = vsel %vm218_vm3, %v3708_v16, %v3709_v34  ;;  %v3212_v33 = vrot.slane %v3205_v15, 4 }
 0x6e7   :  { %4056 = vmatpush.bf16.msra.mxu2 %v9160_v40  ;;  %4084 = vmatpush.bf16.msra.mxu0 %v9164_v58  ;;  %v3717_v11 = vsel %vm14808_vm2, %v12156_v49, %v3716_v29  ;;  %v3208_v49 = vrot.slane %v12129_v59, 4  ;;  %v9143_v34 = vld [vmem:[#allocation3 + $0xc0] sm:$0xf]  ;;  %vm14815_vm2 = vcmask 908288  }
 0x6e8   :  { %v3287_v31 = vpop.permute.xlu0 %3286  ;;  %3725 = vst [vmem:[#allocation3 + $0xf8] sm:$0xff] %v3717_v11  ;;  %v3218_v46 = vsel %vm218_vm3, %v3211_v8, %v3212_v33  ;;  %v9979_v8 = vld [vmem:[#allocation3 + $0xc4] sm:$0xf] }
 0x6e9   :  { %v3297_v20 = vrot.slane %v3287_v31, 4  ;;  %v3219_v63 = vsel %vm14809_vm10, %v3203_v23, %v3218_v46  ;;  %v9127_v46 = vld [vmem:[#allocation3 + $0xa0] sm:$0xf]  ;;  %vm14816_vm10 = vmmov %vm14815_vm2 }
 0x6ea   :  { %3228 = vst [vmem:[#allocation3 + $0x30] sm:$0xff] %v3219_v63 }
 0x6eb   :  { %v3302_v7 = vsel %vm218_vm3, %v3296_v62, %v3297_v20  ;;  %v3615_v16 = vpop.permute.xlu1 %3614 }
 0x6ec   :  { %v3303_v43 = vsel %vm14810_vm6, %v12118_v52, %v3302_v7  ;;  %v3621_v55 = vrot.slane %v3615_v16, 4  ;;  %v9975_v7 = vld [vmem:[#allocation3 + $0xa4] sm:$0xf]  ;;  %vm14817_vm6 = vcmask 769024  }
 0x6ed   :  { %3314 = vst [vmem:[#allocation3 + $0x40] sm:$0xff] %v3303_v43  ;;  %v12222_v3 = vpop.permute.xlu2 %3788 }
 0x6f0   :  { %v12224_v35 = vpop.permute.xlu0 %3198 }
 0x6f1   :  { %v3209_v5 = vrot.slane %v12224_v35, 4 }
 0x6f3   :  { %v3214_v21 = vsel %vm218_vm3, %v3208_v49, %v3209_v5  ;;  %v3527_v52 = vpop.permute.xlu1 %3526 }
 0x6f4   :  { %v3215_v23 = vsel %vm14811_vm7, %v12129_v59, %v3214_v21  ;;  %v3533_v6 = vrot.slane %v3527_v52, 4  ;;  %v9111_v52 = vld [vmem:[#allocation3 + $0x80] sm:$0xf]  ;;  %vm14818_vm7 = vmmov %vm14817_vm6 }
 0x6f5   :  { %3226 = vst [vmem:[#allocation3 + $0x20] sm:$0xff] %v3215_v23  ;;  %v3289_v56 = vpop.permute.xlu2 %3288 }
 0x6f6   :  { %v3298_v0 = vrot.slane %v3289_v56, 4  ;;  %v9971_v56 = vld [vmem:[#allocation3 + $0x84] sm:$0xf] }
 0x6f8   :  { %v3613_v14 = vpop.permute.xlu0 %3612  ;;  %v3304_v30 = vsel %vm218_vm3, %v3297_v20, %v3298_v0  ;;  %v9973_v0 = vld [vmem:[#allocation3 + $0x8c] sm:$0xf0] }
 0x6f9   :  { %v3620_v24 = vrot.slane %v3613_v14, 4  ;;  %v3305_v1 = vsel %vm14812_vm12, %v3287_v31, %v3304_v30  ;;  %v9112_v30 = vor.u32 %v9973_v0, %v9111_v52  ;;  %vm14819_vm12 = vcmask 916480   ;;  %v9047_v0 = vld [vmem:[#allocation3] sm:$0xf] }
 0x6fa   :  { %3315 = vst [vmem:[#allocation3 + $0x48] sm:$0xff] %v3305_v1  ;;  %v9967_v1 = vld [vmem:[#allocation3 + $0x64] sm:$0xf] }
 0x6fb   :  { %v3626_v4 = vsel %vm218_vm3, %v3619_v18, %v3620_v24  ;;  %v3628_v57 = vsel %vm218_vm3, %v3620_v24, %v3621_v55  ;;  %v3525_v26 = vpop.permute.xlu1 %3524  ;;  %v9113_v18 = vld [vmem:[#allocation3 + $0x90] sm:$0xf0]  ;;  %v3796_v55 = vrot.slane %v12222_v3, 4 }
 0x6fc   :  { %v3627_v59 = vsel %vm14805_vm8, %v12142_v28, %v3626_v4  ;;  %v3629_v22 = vsel %vm14813_vm13, %v3613_v14, %v3628_v57  ;;  %v3532_v42 = vrot.slane %v3525_v26, 4  ;;  %v9116_v4 = vor.u32 %v9971_v56, %v9113_v18  ;;  %v9095_v57 = vld [vmem:[#allocation3 + $0x60] sm:$0xf]  ;;  %vm14820_vm8 = vmmov %vm14819_vm12  ;;  %v9167_v56 = vld [vmem:[#allocation3 + $0xe8] sm:$0xf] }
 0x6fd   :  { %3636 = vst [vmem:[#allocation3 + $0xd0] sm:$0xff] %v3627_v59  ;;  %v3207_v48 = vpop.permute.xlu2 %3206  ;;  %vm14821_vm13 = vcmask 1031168  }
 0x6fe   :  { %3637 = vst [vmem:[#allocation3 + $0xd8] sm:$0xff] %v3629_v22  ;;  %v3538_v10 = vsel %vm218_vm3, %v3531_v61, %v3532_v42  ;;  %v3540_v45 = vsel %vm218_vm3, %v3532_v42, %v3533_v6  ;;  %v3213_v44 = vrot.slane %v3207_v48, 4  ;;  %v9969_v61 = vld [vmem:[#allocation3 + $0x6c] sm:$0xf0]  ;;  %v9097_v6 = vld [vmem:[#allocation3 + $0x70] sm:$0xf0] }
 0x6ff   :  { %v3539_v28 = vsel %vm439_vm11, %v12158_v25, %v3538_v10  ;;  %v3541_v37 = vsel %vm439_vm11, %v3525_v26, %v3540_v45  ;;  %v9096_v42 = vor.u32 %v9969_v61, %v9095_v57  ;;  %v9100_v48 = vor.u32 %v9967_v1, %v9097_v6  ;;  %v9079_v45 = vld [vmem:[#allocation3 + $0x40] sm:$0xf]  ;;  %v9039_v57 = vld [vmem:[%s14709_s8] sm:$0xf] }
 0x700   :  { %v3433_v54 = vpop.permute.xlu0 %3432  ;;  %3548 = vst [vmem:[#allocation3 + $0xb0] sm:$0xff] %v3539_v28  ;;  %v3220_v12 = vsel %vm218_vm3, %v3212_v33, %v3213_v44 }
 0x701   :  { %v3442_v41 = vrot.slane %v3433_v54, 4  ;;  %3549 = vst [vmem:[#allocation3 + $0xb8] sm:$0xff] %v3541_v37  ;;  %v3221_v58 = vsel %vm14814_vm9, %v3205_v15, %v3220_v12  ;;  %v9963_v54 = vld [vmem:[#allocation3 + $0x44] sm:$0xf]  ;;  %v9965_v37 = vld [vmem:[#allocation3 + $0x4c] sm:$0xf0] }
 0x702   :  { %3229 = vst [vmem:[#allocation3 + $0x38] sm:$0xff] %v3221_v58 }
 0x703   :  { %v3448_v40 = vsel %vm218_vm3, %v3441_v19, %v3442_v41  ;;  %v3439_v62 = vpop.permute.xlu1 %3438  ;;  %v9081_v41 = vld [vmem:[#allocation3 + $0x50] sm:$0xf0] }
 0x704   :  { %v3449_v29 = vsel %vm14815_vm2, %v12167_v50, %v3448_v40  ;;  %v9981_v25 = vld [vmem:[#allocation3 + $0xcc] sm:$0xf0]  ;;  %v9145_v31 = vld [vmem:[#allocation3 + $0xd0] sm:$0xf0]  ;;  %v3445_v33 = vrot.slane %v3439_v62, 4  ;;  %v3792_v50 = vrot.slane %v12165_v38, 4  ;;  %v9080_v40 = vor.u32 %v9965_v37, %v9079_v45  ;;  %vm14822_vm2 = vmmov %vm14817_vm6 }
 0x705   :  { %3459 = vst [vmem:[#allocation3 + $0x88] sm:$0xff] %v3449_v29  ;;  %v9144_v11 = vor.u32 %v9981_v25, %v9143_v34  ;;  %v9148_v20 = vor.u32 %v9979_v8, %v9145_v31  ;;  %v9084_v58 = vor.u32 %v9963_v54, %v9081_v41  ;;  %v3853_v34 = vld [vmem:[%s14708_s9 + $0x8] sm:$0xff]  ;;  %v9063_v8 = vld [vmem:[#allocation3 + $0x20] sm:$0xf]  ;;  %v9959_v29 = vld [vmem:[#allocation3 + $0x24] sm:$0xf] }
 0x706   :  { %v3452_v19 = vsel %vm218_vm3, %v3444_v51, %v3445_v33  ;;  %v9986_v25 = vld [vmem:[#allocation3 + $0xf4] sm:$0xf0]  ;;  %v9169_v31 = vld [vmem:[#allocation3 + $0xf8] sm:$0xf0]  ;;  %3861 = vperm.xlu0 %10158, %v3853_v34  }
 0x707   :  { %4057 = vmatpush.bf16.msra.mxu2 %v9144_v11  ;;  %4085 = vmatpush.bf16.msra.mxu0 %v9148_v20  ;;  %v3453_v63 = vsel %vm14816_vm10, %v12147_v60, %v3452_v19  ;;  %v9977_v16 = vld [vmem:[#allocation3 + $0xac] sm:$0xf0]  ;;  %v9129_v49 = vld [vmem:[#allocation3 + $0xb0] sm:$0xf0]  ;;  %vm14823_vm10 = vmmov %vm14822_vm2 }
 0x708   :  { %v12257_v15 = vpop.permute.xlu0 %3782  ;;  %3461 = vst [vmem:[#allocation3 + $0x98] sm:$0xff] %v3453_v63  ;;  %v9128_v21 = vor.u32 %v9977_v16, %v9127_v46  ;;  %v9132_v23 = vor.u32 %v9975_v7, %v9129_v49  ;;  %v9041_v19 = vld [vmem:[%s14709_s8 + $0x8] sm:$0xf0]  ;;  %v9137_v34 = vld [vmem:[#allocation3 + $0xb8] sm:$0xf0] }
 0x709   :  { %v3793_v43 = vrot.slane %v12257_v15, 4 }
 0x70b   :  { %v3798_v51 = vsel %vm218_vm3, %v3792_v50, %v3793_v43  ;;  %4058 = vmatpush.bf16.msra.mxu2 %v9128_v21  ;;  %4086 = vmatpush.bf16.msra.mxu0 %v9132_v23  ;;  %v3787_v60 = vpop.permute.xlu1 %3786  ;;  %v9065_v21 = vld [vmem:[#allocation3 + $0x30] sm:$0xf0]  ;;  %v9957_v23 = vld [vmem:[#allocation3 + $0xc] sm:$0xf0] }
 0x70c   :  { %v3799_v14 = vsel %vm14817_vm6, %v12165_v38, %v3798_v51  ;;  %v3795_v24 = vrot.slane %v3787_v60, 4  ;;  %v9068_v52 = vor.u32 %v9959_v29, %v9065_v21 }
 0x70d   :  { %3810 = vst [vmem:[#allocation3 + $0x100] sm:$0xff] %v3799_v14  ;;  %v9984_v14 = vld [vmem:[#allocation3 + $0xec] sm:$0xf] }
 0x70e   :  { %v3802_v59 = vsel %vm218_vm3, %v3795_v24, %v3796_v55  ;;  %v9168_v24 = vor.u32 %v9986_v25, %v9167_v56 }
 0x70f   :  { %4059 = vmatpush.bf16.msra.mxu2 %v9112_v30  ;;  %4087 = vmatpush.bf16.msra.mxu0 %v9116_v4  ;;  %v3803_v22 = vsel %vm14818_vm7, %v3787_v60, %v3802_v59  ;;  %v9172_v30 = vor.u32 %v9984_v14, %v9169_v31  ;;  %v9982_v4 = vld [vmem:[#allocation3 + $0xd4] sm:$0xf0]  ;;  %v9153_v59 = vld [vmem:[#allocation3 + $0xd8] sm:$0xf0] }
 0x710   :  { %v3377_v38 = vpop.permute.xlu0 %3376  ;;  %3812 = vst [vmem:[#allocation3 + $0x110] sm:$0xff] %v3803_v22  ;;  %v9048_v22 = vor.u32 %v9957_v23, %v9047_v0  ;;  %v9205_v31 = vld [vmem:[%s14762_s29 + $0x6] ss:$8 sm:$0xf]  ;;  %v9087_v0 = vld [vmem:[#allocation3 + $0x48] sm:$0xf] }
 0x711   :  { %v3386_v26 = vrot.slane %v3377_v38, 4  ;;  %v4834_v14 = vperm.slane %v9205_v31, 2 }
 0x713   :  { %v3392_v10 = vsel %vm218_vm3, %v3385_v13, %v3386_v26  ;;  %4060 = vmatpush.bf16.msra.mxu2 %v9096_v42  ;;  %4088 = vmatpush.bf16.msra.mxu0 %v9100_v48  ;;  %v3383_v28 = vpop.permute.xlu1 %3382  ;;  %v9961_v13 = vld [vmem:[#allocation3 + $0x2c] sm:$0xf0]  ;;  %v9955_v26 = vld [vmem:[#allocation3 + $0x4] sm:$0xf]  ;;  %v9151_v42 = vld [vmem:[#allocation3 + $0xc8] sm:$0xf] }
 0x714   :  { %v3393_v44 = vsel %vm14819_vm12, %v12194_v2, %v3392_v10  ;;  %v3389_v12 = vrot.slane %v3383_v28, 4  ;;  %v9953_v2 = vld [vmem:[%s14709_s8 + $0x4] sm:$0xf]  ;;  %v9175_v20 = vld [vmem:[#allocation3 + $0x100] sm:$0xf]  ;;  %v9064_v16 = vor.u32 %v9961_v13, %v9063_v8 }
 0x715   :  { %3403 = vst [vmem:[#allocation3 + $0x68] sm:$0xff] %v3393_v44  ;;  %v9987_v33 = vld [vmem:[#allocation3 + $0x104] sm:$0xf]  ;;  %v12295_v60 = vor.u32 %v9953_v2, %v9041_v19  ;;  %v9980_v48 = vld [vmem:[#allocation3 + $0xcc] sm:$0xf]  ;;  %v9152_v44 = vor.u32 %v9982_v4, %v9151_v42  ;;  %v4832_v19 = vperm.slane %v9205_v31, 0 }
 0x716   :  { %v3396_v62 = vsel %vm218_vm3, %v3388_v39, %v3389_v12  ;;  %v9156_v28 = vor.u32 %v9980_v48, %v9153_v59  ;;  %v9135_v8 = vld [vmem:[#allocation3 + $0xa8] sm:$0xf]  ;;  %v9976_v13 = vld [vmem:[#allocation3 + $0xac] sm:$0xf]  ;;  %v9974_v2 = vld [vmem:[#allocation3 + $0x94] sm:$0xf0] }
 0x717   :  { %4061 = vmatpush.bf16.msra.mxu2 %v9080_v40  ;;  %4089 = vmatpush.bf16.msra.mxu0 %v9084_v58  ;;  %v3397_v46 = vsel %vm14820_vm8, %v12176_v32, %v3396_v62  ;;  %v9989_v50 = vld [vmem:[#allocation3 + $0x10c] sm:$0xf0]  ;;  %v9177_v63 = vld [vmem:[#allocation3 + $0x110] sm:$0xf0]  ;;  %v9978_v58 = vld [vmem:[#allocation3 + $0xb4] sm:$0xf0]  ;;  %v9140_v25 = vor.u32 %v9976_v13, %v9137_v34 }
 0x718   :  { %v3295_v11 = vpop.permute.xlu0 %3294  ;;  %3405 = vst [vmem:[#allocation3 + $0x78] sm:$0xff] %v3397_v46  ;;  %v9176_v49 = vor.u32 %v9989_v50, %v9175_v20  ;;  %v9180_v39 = vor.u32 %v9987_v33, %v9177_v63  ;;  %v9049_v32 = vld [vmem:[#allocation3 + $0x10] sm:$0xf0]  ;;  %v9136_v29 = vor.u32 %v9978_v58, %v9135_v8  ;;  %v9121_v62 = vld [vmem:[#allocation3 + $0x98] sm:$0xf0]  ;;  %v4833_v63 = vperm.slane %v9205_v31, 1 }
 0x719   :  { %v3301_v7 = vrot.slane %v3295_v11, 4  ;;  %v9052_v6 = vor.u32 %v9955_v26, %v9049_v32  ;;  %v9119_v33 = vld [vmem:[#allocation3 + $0x88] sm:$0xf]  ;;  %v9964_v32 = vld [vmem:[#allocation3 + $0x4c] sm:$0xf] }
 0x71a   :  { %4077 = vmatpush.bf16.msra.mxu3 %v9176_v49  ;;  %4105 = vmatpush.bf16.msra.mxu1 %v9180_v39  ;;  %v9203_v34 = vld [vmem:[%s14762_s29 + $0x3] ss:$8 sm:$0xf] }
 0x71b   :  { %v3308_v51 = vsel %vm218_vm3, %v3300_v9, %v3301_v7  ;;  %4062 = vmatpush.bf16.msra.mxu2 %v9064_v16  ;;  %v9954_v9 = vld [vmem:[%s14709_s8 + $0x4] sm:$0xf0]  ;;  %4090 = vmatpush.bf16.msra.mxu0 %v9068_v52  ;;  %v3201_v1 = vpop.permute.xlu1 %3200  ;;  %v9120_v7 = vor.u32 %v9974_v2, %v9119_v33  ;;  %v4602_v8 = vperm.slane %v9203_v34, 2  ;;  %v4603_v13 = vperm.slane %v9203_v34, 3  ;;  %v12368_v2 = vpop.permute.xlu2 %3856 }
 0x71c   :  { %v3309_v18 = vsel %vm14821_vm13, %v12190_v47, %v3308_v51  ;;  %v9206_v47 = vld [vmem:[%s14762_s29 + $0x7] ss:$8 sm:$0xf]  ;;  %v3210_v38 = vrot.slane %v3201_v1, 4  ;;  %v12310_v10 = vor.u32 %v9954_v9, %v9039_v57  ;;  %v9103_v39 = vld [vmem:[#allocation3 + $0x68] sm:$0xf] }
 0x71d   :  { %3317 = vst [vmem:[#allocation3 + $0x58] sm:$0xff] %v3309_v18  ;;  %v4920_v61 = vperm.slane %v9206_v47, 0  ;;  %9189 = vmatmul.msk.bf16.vlgmr.msra.gmra.mxu3 %vm314_vm15, %v12295_v60  ;;  %v4921_v45 = vperm.slane %v9206_v47, 1  ;;  %9190 = vmatmul.msk.bf16.vlgmr.msra.gmra.mxu1 %vm314_vm15, %v12295_v60  ;;  %v4922_v41 = vperm.slane %v9206_v47, 2  ;;  %v4923_v11 = vperm.slane %v9206_v47, 3 }
 0x71e   :  { %4112 = vmatpush.bf16.msrb.mxu3 %v9168_v24  ;;  %4140 = vmatpush.bf16.msrb.mxu1 %v9172_v30  ;;  %v3216_v54 = vsel %vm218_vm3, %v3209_v5, %v3210_v38  ;;  %v9968_v23 = vld [vmem:[#allocation3 + $0x6c] sm:$0xf]  ;;  %v4835_v18 = vperm.slane %v9205_v31, 3  ;;  %v9201_v33 = vld [vmem:[%s14762_s29 + $0x1] ss:$8 sm:$0xf] }
 0x71f   :  { %4063 = vmatpush.bf16.msra.mxu2 %v9048_v22  ;;  %v3217_v12 = vsel %vm14814_vm9, %v12224_v35, %v3216_v54  ;;  %4091 = vmatpush.bf16.msra.mxu0 %v9052_v6  ;;  %v9970_v49 = vld [vmem:[#allocation3 + $0x74] sm:$0xf0]  ;;  %v9105_v21 = vld [vmem:[#allocation3 + $0x78] sm:$0xf0] }
 0x720   :  { %v3785_v37 = vpop.permute.xlu0 %3784  ;;  %4924 = vrot.lane.b32.xlu1 %v4920_v61, %s10240_s20  ;;  %3227 = vst [vmem:[#allocation3 + $0x28] sm:$0xff] %v3217_v12  ;;  %4926 = vrot.lane.b32.xlu2 %v4921_v45, %s10240_s20  ;;  %v9104_v51 = vor.u32 %v9970_v49, %v9103_v39  ;;  %v9108_v52 = vor.u32 %v9968_v23, %v9105_v21  ;;  %v9962_v61 = vld [vmem:[#allocation3 + $0x34] sm:$0xf0]  ;;  %v9073_v6 = vld [vmem:[#allocation3 + $0x38] sm:$0xf0]  ;;  %v4426_v49 = vperm.slane %v9201_v33, 2 }
 0x721   :  { %v3794_v40 = vrot.slane %v3785_v37, 4  ;;  %4928 = vrot.lane.b32.xlu0 %v4922_v41, %s10240_s20  ;;  %v9958_v45 = vld [vmem:[#allocation3 + $0x14] sm:$0xf0]  ;;  %v9057_v54 = vld [vmem:[#allocation3 + $0x18] sm:$0xf0] }
 0x722   :  { %4113 = vmatpush.bf16.msrb.mxu3 %v9152_v44  ;;  %4141 = vmatpush.bf16.msrb.mxu1 %v9156_v28  ;;  %v9055_v28 = vld [vmem:[#allocation3 + $0x8] sm:$0xf]  ;;  %v9956_v37 = vld [vmem:[#allocation3 + $0xc] sm:$0xf] }
 0x723   :  { %v3800_v5 = vsel %vm218_vm3, %v3793_v43, %v3794_v40  ;;  %4064 = vmatmul.bf16.vlgmr.msra.gmra.mxu2 %v12310_v10  ;;  %4092 = vmatmul.bf16.vlgmr.msra.gmra.mxu0 %v12310_v10  ;;  %v3791_v43 = vpop.permute.xlu1 %3790  ;;  %v9056_v12 = vor.u32 %v9958_v45, %v9055_v28  ;;  %v9060_v40 = vor.u32 %v9956_v37, %v9057_v54 }
 0x724   :  { %v3801_v35 = vsel %vm14822_vm2, %v12257_v15, %v3800_v5  ;;  %v3797_v20 = vrot.slane %v3791_v43, 4  ;;  %v9972_v15 = vld [vmem:[#allocation3 + $0x8c] sm:$0xf]  ;;  %v9089_v56 = vld [vmem:[#allocation3 + $0x58] sm:$0xf0]  ;;  %v4600_v5 = vperm.slane %v9203_v34, 0 }
 0x725   :  { %3811 = vst [vmem:[#allocation3 + $0x108] sm:$0xff] %v3801_v35  ;;  %v9124_v50 = vor.u32 %v9972_v15, %v9121_v62  ;;  %v9092_v4 = vor.u32 %v9964_v32, %v9089_v56  ;;  %v9202_v35 = vld [vmem:[%s14762_s29 + $0x2] ss:$8 sm:$0xf]  ;;  %v4427_v32 = vperm.slane %v9201_v33, 3 }
 0x726   :  { %4114 = vmatpush.bf16.msrb.mxu3 %v9136_v29  ;;  %4142 = vmatpush.bf16.msrb.mxu1 %v9140_v25  ;;  %v3804_v46 = vsel %vm218_vm3, %v3796_v55, %v3797_v20  ;;  %v9204_v55 = vld [vmem:[%s14762_s29 + $0x5] ss:$8 sm:$0xf]  ;;  %v4512_v29 = vperm.slane %v9202_v35, 0  ;;  %v4514_v25 = vperm.slane %v9202_v35, 2  ;;  %v4515_v43 = vperm.slane %v9202_v35, 3 }
 0x727   :  { %v3805_v16 = vsel %vm14823_vm10, %v12222_v3, %v3804_v46  ;;  %v9966_v3 = vld [vmem:[#allocation3 + $0x54] sm:$0xf0]  ;;  %v4744_v24 = vperm.slane %v9204_v55, 0  ;;  %v9071_v9 = vld [vmem:[#allocation3 + $0x28] sm:$0xf]  ;;  %v4745_v44 = vperm.slane %v9204_v55, 1 }
 0x728   :  { %4930 = vrot.lane.b32.xlu1 %v4923_v11, %s10240_s20  ;;  %3813 = vst [vmem:[#allocation3 + $0x118] sm:$0xff] %v3805_v16  ;;  %4836 = vrot.lane.b32.xlu2 %v4832_v19, %s10242_s25  ;;  %v9088_v30 = vor.u32 %v9966_v3, %v9087_v0  ;;  %v9960_v1 = vld [vmem:[#allocation3 + $0x2c] sm:$0xf]  ;;  %v9072_v42 = vor.u32 %v9962_v61, %v9071_v9  ;;  %v4746_v41 = vperm.slane %v9204_v55, 2  ;;  %v4747_v58 = vperm.slane %v9204_v55, 3 }
 0x729   :  { %4838 = vrot.lane.b32.xlu0 %v4833_v63, %s10242_s25  ;;  %v9076_v48 = vor.u32 %v9960_v1, %v9073_v6  ;;  %v4424_v46 = vperm.slane %v9201_v33, 0  ;;  %v9207_v3 = vld [vmem:[%s14762_s29 + $0x20] ss:$8 sm:$0xf] }
 0x72a   :  { %4115 = vmatpush.bf16.msrb.mxu3 %v9120_v7  ;;  %4143 = vmatpush.bf16.msrb.mxu1 %v9124_v50  ;;  %v4425_v7 = vperm.slane %v9201_v33, 1  ;;  %v5010_v61 = vperm.slane %v9207_v3, 2  ;;  %v5011_v6 = vperm.slane %v9207_v3, 3 }
 0x72c   :  { %v9183_v57 = vld [vmem:[#allocation3 + $0x108] sm:$0xf]  ;;  %v9988_v47 = vld [vmem:[#allocation3 + $0x10c] sm:$0xf] }
 0x72e   :  { %4116 = vmatpush.bf16.msrb.mxu3 %v9104_v51  ;;  %4144 = vmatpush.bf16.msrb.mxu1 %v9108_v52 }
 0x72f   :  { %v9990_v59 = vld [vmem:[#allocation3 + $0x114] sm:$0xf0]  ;;  %v9185_v38 = vld [vmem:[#allocation3 + $0x118] sm:$0xf0] }
 0x730   :  { %4840 = vrot.lane.b32.xlu1 %v4834_v14, %s10242_s25  ;;  %v9184_v22 = vor.u32 %v9990_v59, %v9183_v57  ;;  %v9188_v26 = vor.u32 %v9988_v47, %v9185_v38  ;;  %4842 = vrot.lane.b32.xlu2 %v4835_v18, %s10242_s25  ;;  %v5008_v18 = vperm.slane %v9207_v3, 0 }
 0x731   :  { %4748 = vrot.lane.b32.xlu0 %v4744_v24, %s14824_s6 }
 0x732   :  { %4117 = vmatpush.bf16.msrb.mxu3 %v9088_v30  ;;  %4145 = vmatpush.bf16.msrb.mxu1 %v9092_v4  ;;  %v5009_v4 = vperm.slane %v9207_v3, 1 }
 0x733   :  { %4133 = vmatpush.bf16.msrb.mxu2 %v9184_v22  ;;  %4161 = vmatpush.bf16.msrb.mxu0 %v9188_v26 }
 0x736   :  { %4118 = vmatpush.bf16.msrb.mxu3 %v9072_v42  ;;  %4146 = vmatpush.bf16.msrb.mxu1 %v9076_v48 }
 0x737   :  { %9191 = vmatmul.msk.bf16.vlgmr.msrb.gmra.mxu2 %vm314_vm15, %v12295_v60  ;;  %9192 = vmatmul.msk.bf16.vlgmr.msrb.gmra.mxu0 %vm314_vm15, %v12295_v60  ;;  %v4601_v60 = vperm.slane %v9203_v34, 1 }
 0x738   :  { %4750 = vrot.lane.b32.xlu1 %v4745_v44, %s14824_s6  ;;  %4752 = vrot.lane.b32.xlu2 %v4746_v41, %s14824_s6 }
 0x739   :  { %4754 = vrot.lane.b32.xlu0 %v4747_v58, %s14824_s6 }
 0x73a   :  { %4119 = vmatpush.bf16.msrb.mxu3 %v9056_v12  ;;  %4147 = vmatpush.bf16.msrb.mxu1 %v9060_v40 }
 0x73d   :  { %4120 = vmatmul.bf16.vlgmr.msrb.gmra.mxu3 %v12310_v10  ;;  %4148 = vmatmul.bf16.vlgmr.msrb.gmra.mxu1 %v12310_v10  ;;  %v4513_v10 = vperm.slane %v9202_v35, 1 }
 0x740   :  { %4604 = vrot.lane.b32.xlu1 %v4600_v5, %s10245_s22  ;;  %4606 = vrot.lane.b32.xlu2 %v4601_v60, %s10245_s22 }
 0x741   :  { %4608 = vrot.lane.b32.xlu0 %v4602_v8, %s10245_s22 }
 0x748   :  { %4610 = vrot.lane.b32.xlu1 %v4603_v13, %s10245_s22  ;;  %4516 = vrot.lane.b32.xlu2 %v4512_v29, %s10246_s24 }
 0x749   :  { %4518 = vrot.lane.b32.xlu0 %v4513_v10, %s10246_s24 }
 0x750   :  { %4520 = vrot.lane.b32.xlu1 %v4514_v25, %s10246_s24  ;;  %4522 = vrot.lane.b32.xlu2 %v4515_v43, %s10246_s24 }
 0x751   :  { %4428 = vrot.lane.b32.xlu0 %v4424_v46, %s10247_s30 }
 0x758   :  { %4430 = vrot.lane.b32.xlu1 %v4425_v7, %s10247_s30  ;;  %4432 = vrot.lane.b32.xlu2 %v4426_v49, %s10247_s30 }
 0x759   :  { %4434 = vrot.lane.b32.xlu0 %v4427_v32, %s10247_s30 }
 0x760   :  { %5012 = vrot.lane.b32.xlu1 %v5008_v18, %s14780_s10  ;;  %5014 = vrot.lane.b32.xlu2 %v5009_v4, %s14780_s10 }
 0x761   :  { %5016 = vrot.lane.b32.xlu0 %v5010_v61, %s14780_s10 }
 0x768   :  { %5018 = vrot.lane.b32.xlu1 %v5011_v6, %s14780_s10 }
 0x778   :  { %v12379_v16 = vpop.permute.xlu0 %3861 }
 0x79a   :  { %v4107_v31 = vpop.f32.mrf.mxu1 }
 0x7a0   :  { %v4093_v62 = vpop.f32.mrf.mxu0  ;;  %v4079_v50 = vpop.f32.mrf.mxu3 }
 0x7a1   :  { %v4094_v11 = vadd.f32 %v4093_v62, %v12368_v2 }
 0x7a2   :  { %v4109_v23 = vpop.f32.mrf.mxu1 }
 0x7a3   :  { %v12372_v20 = vadd.f32 %v4107_v31, %v4094_v11 }
 0x7a5   :  { %v9194_v15 = vmul.f32 -1.442695, %v12372_v20 }
 0x7a6   :  { %v4065_v19 = vpop.f32.mrf.mxu2 }
 0x7a7   :  { %v4066_v63 = vadd.f32 %v4065_v19, %v12368_v2  ;;  %10192 = vpow2.f32 %v9194_v15 }
 0x7a8   :  { %v4095_v39 = vpop.f32.mrf.mxu0  ;;  %v4081_v57 = vpop.f32.mrf.mxu3 }
 0x7a9   :  { %v12383_v21 = vadd.f32 %v4079_v50, %v4066_v63  ;;  %v4096_v51 = vadd.f32 %v4095_v39, %v12379_v16 }
 0x7ab   :  { %v9193_v52 = vmul.f32 -1.442695, %v12383_v21  ;;  %v12388_v55 = vadd.f32 %v4109_v23, %v4096_v51 }
 0x7ad   :  { %10194 = vpow2.f32 %v9193_v52  ;;  %v10193_v56 = vpop.eup %10192  ;;  %v9198_v14 = vmul.f32 -1.442695, %v12388_v55 }
 0x7ae   :  { %v4067_v0 = vpop.f32.mrf.mxu2  ;;  %v4193_v24 = vadd.f32 1.0, %v10193_v56 }
 0x7af   :  { %v4068_v30 = vadd.f32 %v4067_v0, %v12379_v16  ;;  %10196 = vpow2.f32 %v9198_v14 }
 0x7b0   :  { %10198 = vrcp.f32 %v4193_v24  ;;  %v4224_v54 = vand.u32 2147483647, %v4193_v24  ;;  %v4226_v28 = vand.u32 2147483648, %v4193_v24  ;;  %vm4220_vm7 = vweird.f32 %v4193_v24 }
 0x7b1   :  { %v12397_v9 = vadd.f32 %v4081_v57, %v4068_v30 }
 0x7b2   :  { %vm4225_vm12 = vcmp.eq.f32.partialorder %v4224_v54, 8.507059e+37  ;;  %v4227_v13 = vor.u32 1.1754944e-38, %v4226_v28 }
 0x7b3   :  { %v10195_v1 = vpop.eup %10194  ;;  %v9197_v47 = vmul.f32 -1.442695, %v12397_v9 }
 0x7b4   :  { %v4192_v59 = vadd.f32 1.0, %v10195_v1  ;;  %v4163_v48 = vpop.f32.mrf.mxu0 }
 0x7b5   :  { %v10197_v38 = vpop.eup %10196 }
 0x7b6   :  { %10200 = vrcp.f32 %v4192_v59  ;;  %v10199_v22 = vpop.eup %10198  ;;  %v12401_v26 = vadd.f32 1.0, %v10197_v38  ;;  %v4209_v29 = vand.u32 2147483647, %v4192_v59  ;;  %v4211_v43 = vand.u32 2147483648, %v4192_v59 }
 0x7b7   :  { %10202 = vpow2.f32 %v9197_v47  ;;  %v4216_v42 = vmul.f32 %v10199_v22, %v4193_v24  ;;  %vm4221_vm6 = vweird.f32 %v10199_v22  ;;  %vm4205_vm9 = vweird.f32 %v4192_v59 }
 0x7b8   :  { %10204 = vrcp.f32 %v12401_v26  ;;  %vm4222_vm8 = vmor %vm4220_vm7, %vm4221_vm6  ;;  %vm4210_vm2 = vcmp.eq.f32.partialorder %v4209_v29, 8.507059e+37  ;;  %v4212_v23 = vor.u32 1.1754944e-38, %v4211_v43  ;;  %vm4280_vm6 = vweird.f32 %v12401_v26 }
 0x7b9   :  { %v4217_v45 = vsub.f32 1.0, %v4216_v42  ;;  %v4284_v52 = vand.u32 2147483647, %v12401_v26  ;;  %v4286_v32 = vand.u32 2147483648, %v12401_v26 }
 0x7ba   :  { %v4149_v44 = vpop.f32.mrf.mxu1  ;;  %v4135_v25 = vpop.f32.mrf.mxu2 }
 0x7bb   :  { %v4150_v37 = vadd.f32 %v4149_v44, %v12368_v2  ;;  %v4218_v12 = vmul.f32 %v10199_v22, %v4217_v45  ;;  %v4287_v61 = vor.u32 1.1754944e-38, %v4286_v32 }
 0x7bc   :  { %v10201_v41 = vpop.eup %10200  ;;  %v4165_v50 = vpop.f32.mrf.mxu0 }
 0x7bd   :  { %v10203_v40 = vpop.eup %10202  ;;  %v4201_v58 = vmul.f32 %v10201_v41, %v4192_v59  ;;  %v12407_v34 = vadd.f32 %v4163_v48, %v4150_v37  ;;  %v4219_v5 = vadd.f32 %v10199_v22, %v4218_v12  ;;  %vm4206_vm13 = vweird.f32 %v10201_v41 }
 0x7be   :  { %v12409_v60 = vadd.f32 1.0, %v10203_v40  ;;  %v12411_v8 = vpop.eup %10204  ;;  %vm4207_vm10 = vmor %vm4205_vm9, %vm4206_vm13 }
 0x7bf   :  { %v4202_v35 = vsub.f32 1.0, %v4201_v58  ;;  %v9196_v10 = vmul.f32 -1.442695, %v12407_v34  ;;  %v4223_v31 = vsel %vm4222_vm8, %v10199_v22, %v4219_v5  ;;  %v4276_v62 = vmul.f32 %v12411_v8, %v12401_v26 }
 0x7c0   :  { %10206 = vrcp.f32 %v12409_v60  ;;  %v4121_v11 = vpop.f32.mrf.mxu3  ;;  %v4228_v33 = vsel %vm4225_vm12, %v4227_v13, %v4223_v31  ;;  %vm4281_vm7 = vweird.f32 %v12411_v8  ;;  %vm12440_vm8 = vcmp.eq.f32.partialorder %v4284_v52, 8.507059e+37 }
 0x7c1   :  { %v4203_v15 = vmul.f32 %v10201_v41, %v4202_v35  ;;  %v4321_v19 = vmul.f32 %v4228_v33, %v12372_v20  ;;  %v4277_v46 = vsub.f32 1.0, %v4276_v62  ;;  %10208 = vpow2.f32 %v9196_v10  ;;  %vm12436_vm12 = vmor %vm4280_vm6, %vm4281_vm7  ;;  %v12462_v62 = vpop.permute.xlu2 %4926  ;;  %v12464_v33 = vpop.permute.xlu1 %4924 }
 0x7c2   :  { %v4151_v7 = vpop.f32.mrf.mxu1  ;;  %v4122_v49 = vadd.f32 %v4121_v11, %v12368_v2  ;;  %v4137_v26 = vpop.f32.mrf.mxu2  ;;  %v4271_v6 = vand.u32 2147483648, %v12409_v60  ;;  %v4269_v45 = vand.u32 2147483647, %v12409_v60  ;;  %vm4265_vm9 = vweird.f32 %v12409_v60 }
 0x7c3   :  { %v4204_v63 = vadd.f32 %v10201_v41, %v4203_v15  ;;  %v4152_v39 = vadd.f32 %v4151_v7, %v12379_v16  ;;  %v4278_v51 = vmul.f32 %v12411_v8, %v4277_v46  ;;  %4338 = vrot.lane.b32.xlu2 %v4321_v19, %s10241_s23 }
 0x7c4   :  { %v12425_v3 = vadd.f32 %v4135_v25, %v4122_v49  ;;  %v4272_v37 = vor.u32 1.1754944e-38, %v4271_v6 }
 0x7c5   :  { %v4208_v20 = vsel %vm4207_vm10, %v10201_v41, %v4204_v63  ;;  %v12427_v56 = vadd.f32 %v4165_v50, %v4152_v39  ;;  %v4279_v0 = vadd.f32 %v12411_v8, %v4278_v51  ;;  %vm4270_vm10 = vcmp.eq.f32.partialorder %v4269_v45, 8.507059e+37 }
 0x7c6   :  { %v10207_v2 = vpop.eup %10206  ;;  %v4213_v14 = vsel %vm4210_vm2, %v4212_v23, %v4208_v20  ;;  %v9195_v30 = vmul.f32 -1.442695, %v12425_v3 }
 0x7c7   :  { %v4320_v18 = vmul.f32 %v4213_v14, %v12383_v21  ;;  %v4261_v24 = vmul.f32 %v10207_v2, %v12409_v60  ;;  %v10209_v4 = vpop.eup %10208  ;;  %v9200_v59 = vmul.f32 -1.442695, %v12427_v56  ;;  %v4283_v21 = vsel %vm12436_vm12, %v12411_v8, %v4279_v0 }
 0x7c8   :  { %v4123_v47 = vpop.f32.mrf.mxu3  ;;  %v4195_v22 = vadd.f32 1.0, %v10209_v4  ;;  %10210 = vpow2.f32 %v9195_v30  ;;  %vm4266_vm13 = vweird.f32 %v10207_v2  ;;  %v4288_v54 = vsel %vm12440_vm8, %v4287_v61, %v4283_v21 }
 0x7c9   :  { %v4262_v38 = vsub.f32 1.0, %v4261_v24  ;;  %4336 = vrot.lane.b32.xlu1 %v4320_v18, %s10241_s23  ;;  %10212 = vpow2.f32 %v9200_v59  ;;  %v4124_v42 = vadd.f32 %v4123_v47, %v12379_v16  ;;  %vm4267_vm2 = vmor %vm4265_vm9, %vm4266_vm13  ;;  %v4325_v16 = vmul.f32 %v4288_v54, %v12388_v55  ;;  %v12470_v47 = vpop.permute.xlu1 %4930 }
 0x7ca   :  { %10214 = vrcp.f32 %v4195_v22  ;;  %v4256_v25 = vand.u32 2147483648, %v4195_v22  ;;  %v4254_v43 = vand.u32 2147483647, %v4195_v22  ;;  %vm4250_vm7 = vweird.f32 %v4195_v22 }
 0x7cb   :  { %v4263_v48 = vmul.f32 %v10207_v2, %v4262_v38  ;;  %v12454_v44 = vadd.f32 %v4137_v26, %v4124_v42 }
 0x7cc   :  { %v4257_v46 = vor.u32 1.1754944e-38, %v4256_v25  ;;  %vm4255_vm8 = vcmp.eq.f32.partialorder %v4254_v43, 8.507059e+37 }
 0x7cd   :  { %v4264_v28 = vadd.f32 %v10207_v2, %v4263_v48  ;;  %v9199_v41 = vmul.f32 -1.442695, %v12454_v44 }
 0x7ce   :  { %v10211_v12 = vpop.eup %10210 }
 0x7cf   :  { %v4268_v40 = vsel %vm4267_vm2, %v10207_v2, %v4264_v28  ;;  %v10213_v58 = vpop.eup %10212  ;;  %v4194_v8 = vadd.f32 1.0, %v10211_v12  ;;  %10216 = vpow2.f32 %v9199_v41 }
 0x7d0   :  { %v4273_v5 = vsel %vm4270_vm10, %v4272_v37, %v4268_v40  ;;  %v10215_v13 = vpop.eup %10214  ;;  %v4199_v29 = vadd.f32 1.0, %v10213_v58 }
 0x7d1   :  { %v4324_v35 = vmul.f32 %v4273_v5, %v12397_v9  ;;  %4346 = vrot.lane.b32.xlu1 %v4325_v16, %s10241_s23  ;;  %v4246_v60 = vmul.f32 %v10215_v13, %v4195_v22  ;;  %10218 = vrcp.f32 %v4194_v8  ;;  %vm4251_vm6 = vweird.f32 %v10215_v13  ;;  %v12479_v16 = vpop.permute.xlu1 %4840 }
 0x7d2   :  { %10220 = vrcp.f32 %v4199_v29  ;;  %vm4252_vm12 = vmor %vm4250_vm7, %vm4251_vm6  ;;  %v4241_v51 = vand.u32 2147483648, %v4194_v8  ;;  %v4239_v2 = vand.u32 2147483647, %v4194_v8  ;;  %v4316_v14 = vand.u32 2147483648, %v4199_v29 }
 0x7d3   :  { %4344 = vrot.lane.b32.xlu0 %v4324_v35, %s10241_s23  ;;  %v4247_v10 = vsub.f32 1.0, %v4246_v60  ;;  %v4314_v32 = vand.u32 2147483647, %v4199_v29  ;;  %vm4235_vm2 = vweird.f32 %v4194_v8  ;;  %vm4310_vm6 = vweird.f32 %v4199_v29 }
 0x7d4   :  { %v4242_v30 = vor.u32 1.1754944e-38, %v4241_v51  ;;  %vm4240_vm7 = vcmp.eq.f32.partialorder %v4239_v2, 8.507059e+37  ;;  %v4317_v59 = vor.u32 1.1754944e-38, %v4316_v14 }
 0x7d5   :  { %v10217_v55 = vpop.eup %10216  ;;  %v4248_v31 = vmul.f32 %v10215_v13, %v4247_v10 }
 0x7d6   :  { %v4198_v11 = vadd.f32 1.0, %v10217_v55 }
 0x7d7   :  { %v10219_v9 = vpop.eup %10218  ;;  %v4249_v15 = vadd.f32 %v10215_v13, %v4248_v31 }
 0x7d8   :  { %v10221_v19 = vpop.eup %10220  ;;  %v4231_v7 = vmul.f32 %v10219_v9, %v4194_v8  ;;  %10222 = vrcp.f32 %v4198_v11  ;;  %vm4236_vm13 = vweird.f32 %v10219_v9  ;;  %v4301_v6 = vand.u32 2147483648, %v4198_v11 }
 0x7d9   :  { %v4253_v50 = vsel %vm4252_vm12, %v10215_v13, %v4249_v15  ;;  %v4306_v63 = vmul.f32 %v10221_v19, %v4199_v29  ;;  %vm4311_vm9 = vweird.f32 %v10221_v19  ;;  %vm4237_vm10 = vmor %vm4235_vm2, %vm4236_vm13  ;;  %v4299_v45 = vand.u32 2147483647, %v4198_v11  ;;  %v12486_v58 = vpop.permute.xlu1 %4750 }
 0x7da   :  { %v4258_v49 = vsel %vm4255_vm8, %v4257_v46, %v4253_v50  ;;  %v4232_v39 = vsub.f32 1.0, %v4231_v7  ;;  %vm4312_vm12 = vmor %vm4310_vm6, %vm4311_vm9  ;;  %vm4315_vm8 = vcmp.eq.f32.partialorder %v4314_v32, 8.507059e+37  ;;  %vm4295_vm9 = vweird.f32 %v4198_v11 }
 0x7db   :  { %v4323_v23 = vmul.f32 %v4258_v49, %v12407_v34  ;;  %v4307_v52 = vsub.f32 1.0, %v4306_v63  ;;  %v12468_v34 = vpop.permute.xlu2 %4836  ;;  %v4302_v28 = vor.u32 1.1754944e-38, %v4301_v6  ;;  %vm14829_vm6 = vcmask 1047688  }
 0x7dc   :  { %v4233_v20 = vmul.f32 %v10219_v9, %v4232_v39 }
 0x7dd   :  { %v4308_v0 = vmul.f32 %v10221_v19, %v4307_v52  ;;  %4342 = vrot.lane.b32.xlu2 %v4323_v23, %s10241_s23 }
 0x7de   :  { %v10223_v18 = vpop.eup %10222  ;;  %v4234_v24 = vadd.f32 %v10219_v9, %v4233_v20 }
 0x7df   :  { %v4309_v4 = vadd.f32 %v10221_v19, %v4308_v0  ;;  %v4291_v57 = vmul.f32 %v10223_v18, %v4198_v11  ;;  %vm4296_vm13 = vweird.f32 %v10223_v18 }
 0x7e0   :  { %v4238_v1 = vsel %vm4237_vm10, %v10219_v9, %v4234_v24  ;;  %vm4297_vm2 = vmor %vm4295_vm9, %vm4296_vm13  ;;  %vm4300_vm10 = vcmp.eq.f32.partialorder %v4299_v45, 8.507059e+37  ;;  %vm14834_vm9 = vcmask 277504  }
 0x7e1   :  { %v4243_v21 = vsel %vm4240_vm7, %v4242_v30, %v4238_v1  ;;  %v4313_v38 = vsel %vm4312_vm12, %v10221_v19, %v4309_v4  ;;  %v4292_v22 = vsub.f32 1.0, %v4291_v57  ;;  %v12492_v13 = vpop.permute.xlu1 %4604  ;;  %vm14830_vm7 = vmmov %vm14829_vm6  ;;  %vm14831_vm12 = vcmask 7168  }
 0x7e2   :  { %v4322_v26 = vmul.f32 %v4243_v21, %v12425_v3  ;;  %v4318_v61 = vsel %vm4315_vm8, %v4317_v59, %v4313_v38  ;;  %vm14832_vm8 = vmmov %vm14831_vm12 }
 0x7e3   :  { %v4327_v42 = vmul.f32 %v4318_v61, %v12427_v56  ;;  %v4293_v48 = vmul.f32 %v10223_v18, %v4292_v22  ;;  %v12477_v12 = vpop.permute.xlu2 %4842  ;;  %v12482_v56 = vpop.permute.xlu0 %4928  ;;  %v12582_v61 = vld [vmem:[%s14762_s29] ss:$8 sm:$0xf]  ;;  %vm14833_vm13 = vmmov %vm14832_vm8 }
 0x7e4   :  { %4340 = vrot.lane.b32.xlu1 %v4322_v26, %s10241_s23  ;;  %v4932_v26 = vsel %vm533_vm4, %v12464_v33, %v12462_v62 }
 0x7e5   :  { %v4294_v54 = vadd.f32 %v10223_v18, %v4293_v48  ;;  %4350 = vrot.lane.b32.xlu0 %v4327_v42, %s10241_s23  ;;  %v4388_v48 = vperm.slane %v12582_v61, 0 }
 0x7e7   :  { %v4298_v37 = vsel %vm4297_vm2, %v10223_v18, %v4294_v54  ;;  %v4389_v54 = vperm.slane %v12582_v61, 1  ;;  %vm14835_vm2 = vmmov %vm14834_vm9 }
 0x7e8   :  { %v4303_v41 = vsel %vm4300_vm10, %v4302_v28, %v4298_v37  ;;  %vm14836_vm10 = vmmov %vm14835_vm2 }
 0x7e9   :  { %v4326_v3 = vmul.f32 %v4303_v41, %v12454_v44  ;;  %v12498_v29 = vpop.permute.xlu1 %4610 }
 0x7eb   :  { %4348 = vrot.lane.b32.xlu2 %v4326_v3, %s10241_s23  ;;  %v12484_v40 = vpop.permute.xlu2 %4752  ;;  %v12488_v5 = vpop.permute.xlu0 %4838 }
 0x7ec   :  { %v12541_v51 = vsel %vm471_vm5, %v12468_v34, %v12488_v5 }
 0x7f1   :  { %v12504_v25 = vpop.permute.xlu1 %4520 }
 0x7f3   :  { %v12490_v8 = vpop.permute.xlu2 %4606  ;;  %v12494_v35 = vpop.permute.xlu0 %4748 }
 0x7f4   :  { %v12546_v52 = vsel %vm409_vm14, %v12494_v35, %v12486_v58 }
 0x7f9   :  { %v12510_v43 = vpop.permute.xlu1 %4430 }
 0x7fb   :  { %v12496_v44 = vpop.permute.xlu2 %4516  ;;  %v12500_v60 = vpop.permute.xlu0 %4754 }
 0x801   :  { %v12516_v15 = vpop.permute.xlu1 %5012 }
 0x803   :  { %v12502_v10 = vpop.permute.xlu2 %4522  ;;  %v12506_v55 = vpop.permute.xlu0 %4608 }
 0x809   :  { %v12522_v7 = vpop.permute.xlu1 %5018 }
 0x80b   :  { %v12508_v31 = vpop.permute.xlu2 %4432  ;;  %v12512_v11 = vpop.permute.xlu0 %4518 }
 0x813   :  { %v12514_v9 = vpop.permute.xlu2 %5014  ;;  %v12518_v19 = vpop.permute.xlu0 %4428 }
 0x81b   :  { %v12524_v50 = vpop.permute.xlu0 %4434 }
 0x81d   :  { %v12520_v46 = vpop.permute.xlu2 %4338 }
 0x823   :  { %v12535_v23 = vpop.permute.xlu0 %5016 }
 0x837   :  { %v12526_v63 = vpop.permute.xlu2 %4342 }
 0x838   :  { %4372 = vst.msk [vmem:[#allocation2 + $0x20] sm:$0xff] %vm60_vm0, %v12526_v63 }
 0x83b   :  { %v4337_v49 = vpop.permute.xlu1 %4336 }
 0x83c   :  { %v12532_v39 = vsel %vm60_vm0, %v4337_v49, %v12520_v46  ;;  %4368 = vst.msk [vmem:[#allocation2] sm:$0xff] %vm14829_vm6, %v4337_v49  ;;  %vm14839_vm6 = vcmask 908288  }
 0x83d   :  { %4369 = vst [vmem:[#allocation2 + $0x8] sm:$0xff] %v12532_v39  ;;  %v4853_v14 = vmul.f32 %v12541_v51, %v12532_v39  ;;  %v4765_v24 = vmul.f32 %v12546_v52, %v12532_v39  ;;  %v4941_v6 = vmul.f32 %v4932_v26, %v12532_v39 }
 0x83f   :  { %v12569_v38 = vld [vmem:[#allocation2 + $0x20] sm:$0xff] }
 0x840   :  { %v4944_v42 = vmul.f32 %v12470_v47, %v12569_v38 }
 0x842   :  { %v4952_v37 = vpack.c.bf16 %v4944_v42, %v4944_v42 }
 0x843   :  { %v12548_v20 = vld [vmem:[#allocation2] sm:$0xff]  ;;  %v4347_v2 = vpop.permute.xlu1 %4346 }
 0x844   :  { %v4686_v0 = vpack.c.bf16 %v12532_v39, %v12548_v20  ;;  %v4852_v32 = vmul.f32 %v12468_v34, %v12548_v20  ;;  %v4764_v18 = vmul.f32 %v12494_v35, %v12548_v20  ;;  %v4940_v22 = vmul.f32 %v12464_v33, %v12548_v20 }
 0x845   :  { %v4345_v30 = vpop.permute.xlu0 %4344  ;;  %v4349_v57 = vpop.permute.xlu2 %4348  ;;  %v4396_v3 = vmul.f32 %v4388_v48, %v12548_v20 }
 0x846   :  { %v12561_v4 = vsel %vm60_vm0, %v4345_v30, %v4347_v2  ;;  %4373 = vst.msk [vmem:[#allocation2 + $0x28] sm:$0xff] %vm14830_vm7, %v4345_v30  ;;  %4698 = vrot.lane.b32.xlu2 %v4686_v0, %s10250_s0  ;;  %v4862_v1 = vpack.c.bf16 %v4853_v14, %v4852_v32  ;;  %v4774_v59 = vpack.c.bf16 %v4765_v24, %v4764_v18  ;;  %vm14840_vm7 = vcmask 777216  }
 0x847   :  { %4374 = vst [vmem:[#allocation2 + $0x30] sm:$0xff] %v12561_v4  ;;  %v12567_v21 = vsel %vm60_vm0, %v4347_v2, %v4349_v57  ;;  %v4950_v45 = vpack.c.bf16 %v4941_v6, %v4940_v22  ;;  %v4612_v2 = vsel %vm314_vm15, %v12492_v13, %v12490_v8  ;;  %v4620_v14 = vmul.f32 %v12492_v13, %v12548_v20 }
 0x848   :  { %4375 = vst [vmem:[#allocation2 + $0x38] sm:$0xff] %v12567_v21  ;;  %4874 = vrot.lane.b32.xlu0 %v4862_v1, %s14790_s3  ;;  %4786 = vrot.lane.b32.xlu1 %v4774_v59, %s14781_s5  ;;  %v4397_v0 = vmul.f32 %v4389_v54, %v12532_v39  ;;  %v4621_v32 = vmul.f32 %v4612_v2, %v12532_v39 }
 0x849   :  { %v4856_v18 = vmul.f32 %v12569_v38, %v12477_v12  ;;  %v4946_v6 = vmul.f32 %v4932_v26, %v12561_v4  ;;  %v4532_v26 = vmul.f32 %v12496_v44, %v12548_v20 }
 0x84a   :  { %v4404_v59 = vpack.c.bf16 %v4397_v0, %v4396_v3  ;;  %v4630_v22 = vpack.c.bf16 %v4621_v32, %v4620_v14  ;;  %v4768_v3 = vmul.f32 %v12569_v38, %v12500_v60  ;;  %v4626_v0 = vmul.f32 %v4612_v2, %v12561_v4 }
 0x84b   :  { %v12647_v32 = vsel %vm14832_vm8, %v12508_v31, %v12524_v50  ;;  %vm14842_vm8 = vcmask 785408  }
 0x84c   :  { %4408 = vst [vmem:[#allocation3] sm:$0xff] %v4404_v59  ;;  %v5022_v59 = vsel %vm14835_vm2, %v12535_v23, %v12522_v7  ;;  %vm14845_vm2 = vmmov %vm14840_vm7 }
 0x84d   :  { %v12589_v28 = vld [vmem:[#allocation2 + $0x28] sm:$0xff] }
 0x84e   :  { %4962 = vrot.lane.b32.xlu2 %v4950_v45, %s14769_s4  ;;  %v4689_v41 = vpack.c.bf16 %v12561_v4, %v12589_v28  ;;  %v4383_v49 = vld [vmem:[#allocation2 + $0x30] sm:$0xff]  ;;  %v4945_v24 = vmul.f32 %v12464_v33, %v12589_v28  ;;  %v4400_v30 = vmul.f32 %v12589_v28, %v4388_v48  ;;  %v4864_v45 = vpack.c.bf16 %v4856_v18, %v4856_v18 }
 0x84f   :  { %v4401_v1 = vmul.f32 %v4389_v54, %v4383_v49  ;;  %v4524_v54 = vsel %vm252_vm1, %v12496_v44, %v12512_v11  ;;  %v4625_v49 = vmul.f32 %v12589_v28, %v12492_v13  ;;  %v4776_v13 = vpack.c.bf16 %v4768_v3, %v4768_v3 }
 0x850   :  { %4966 = vrot.lane.b32.xlu0 %v4952_v37, %s14769_s4  ;;  %4704 = vrot.lane.b32.xlu1 %v4689_v41, %s10250_s0  ;;  %v4953_v37 = vpack.c.bf16 %v4946_v6, %v4945_v24  ;;  %v4436_v24 = vsel %vm14833_vm13, %v12518_v19, %v12510_v43  ;;  %vm14843_vm13 = vmmov %vm14842_vm8 }
 0x851   :  { %v4406_v42 = vpack.c.bf16 %v4401_v1, %v4400_v30  ;;  %v4633_v18 = vpack.c.bf16 %v4626_v0, %v4625_v49  ;;  %v4391_v1 = vperm.slane %v12582_v61, 3  ;;  %v4384_v49 = vld [vmem:[#allocation2 + $0x38] sm:$0xff] }
 0x853   :  { %4410 = vst [vmem:[#allocation3 + $0x10] sm:$0xff] %v4406_v42 }
 0x856   :  { %4642 = vrot.lane.b32.xlu2 %v4630_v22, %s14771_s1  ;;  %v4341_v41 = vpop.permute.xlu1 %4340 }
 0x857   :  { %v12613_v27 = vsel %vm60_vm0, %v12520_v46, %v4341_v41  ;;  %v12617_v33 = vsel %vm60_vm0, %v4341_v41, %v12526_v63  ;;  %v4351_v48 = vpop.permute.xlu0 %4350  ;;  %v4533_v63 = vmul.f32 %v4524_v54, %v12532_v39  ;;  %v4537_v41 = vmul.f32 %v12589_v28, %v12496_v44 }
 0x858   :  { %4878 = vrot.lane.b32.xlu0 %v4864_v45, %s14790_s3  ;;  %4968 = vrot.lane.b32.xlu1 %v4953_v37, %s14769_s4  ;;  %4370 = vst [vmem:[#allocation2 + $0x10] sm:$0xff] %v12613_v27  ;;  %v12628_v46 = vsel %vm60_vm0, %v4349_v57, %v4351_v48  ;;  %v12642_v57 = vsel %vm14831_vm12, %v12510_v43, %v12508_v31  ;;  %v4390_v45 = vperm.slane %v12582_v61, 2  ;;  %vm14841_vm12 = vmmov %vm14839_vm6 }
 0x859   :  { %4371 = vst [vmem:[#allocation2 + $0x18] sm:$0xff] %v12617_v33  ;;  %v4542_v14 = vpack.c.bf16 %v4533_v63, %v4532_v26  ;;  %v12655_v2 = vmul.f32 %v12642_v57, %v12567_v21  ;;  %v12659_v30 = vmul.f32 %v12647_v32, %v12628_v46  ;;  %v5021_v31 = vsel %vm14834_vm9, %v12514_v9, %v12535_v23  ;;  %vm14844_vm9 = vmmov %vm14840_vm7 }
 0x85a   :  { %4376 = vst [vmem:[#allocation2 + $0x40] sm:$0xff] %v12628_v46  ;;  %v4444_v43 = vmul.f32 %v12518_v19, %v12548_v20  ;;  %v12675_v6 = vmul.f32 %v5021_v31, %v12613_v27  ;;  %v12678_v42 = vmul.f32 %v5022_v59, %v12617_v33  ;;  %v4445_v23 = vmul.f32 %v4436_v24, %v12532_v39 }
 0x85b   :  { %4377 = vst.msk [vmem:[#allocation2 + $0x48] sm:$0xff] %vm60_vm0, %v4351_v48  ;;  %v4769_v37 = vmul.f32 %v12494_v35, %v12589_v28  ;;  %v12687_v48 = vmul.f32 %v5022_v59, %v12628_v46  ;;  %v12692_v3 = vmul.f32 %v5021_v31, %v12567_v21  ;;  %v4398_v61 = vmul.f32 %v4390_v45, %v12613_v27 }
 0x85c   :  { %v4454_v0 = vpack.c.bf16 %v4445_v23, %v4444_v43  ;;  %v4770_v35 = vmul.f32 %v12546_v52, %v12561_v4  ;;  %v4538_v44 = vmul.f32 %v4524_v54, %v12561_v4  ;;  %v4402_v63 = vmul.f32 %v4390_v45, %v4384_v49 }
 0x85d   :  { %v4857_v43 = vmul.f32 %v12468_v34, %v12589_v28  ;;  %v4858_v54 = vmul.f32 %v12541_v51, %v12561_v4  ;;  %v4450_v45 = vmul.f32 %v4436_v24, %v12561_v4  ;;  %v12717_v34 = vsel %vm409_vm14, %v12486_v58, %v12484_v40 }
 0x85e   :  { %4554 = vrot.lane.b32.xlu2 %v4542_v14, %s14772_s26  ;;  %v4399_v14 = vmul.f32 %v4391_v1, %v12617_v33  ;;  %v4777_v59 = vpack.c.bf16 %v4770_v35, %v4769_v37  ;;  %v4545_v31 = vpack.c.bf16 %v4538_v44, %v4537_v41  ;;  %v4687_v37 = vpack.c.bf16 %v12617_v33, %v12613_v27 }
 0x85f   :  { %v4865_v23 = vpack.c.bf16 %v4858_v54, %v4857_v43  ;;  %v4758_v51 = vsel %vm409_vm14, %v12484_v40, %v12500_v60  ;;  %v4934_v58 = vsel %vm533_vm4, %v12482_v56, %v12470_v47  ;;  %v4846_v40 = vsel %vm471_vm5, %v12479_v16, %v12477_v12 }
 0x860   :  { %4790 = vrot.lane.b32.xlu0 %v4776_v13, %s14781_s5  ;;  %4648 = vrot.lane.b32.xlu1 %v4633_v18, %s14771_s1  ;;  %v5042_v18 = vpack.c.bf16 %v12687_v48, %v12692_v3  ;;  %v4405_v22 = vpack.c.bf16 %v4399_v14, %v4398_v61  ;;  %v4767_v24 = vmul.f32 %v4758_v51, %v12617_v33 }
 0x861   :  { %v4385_v26 = vld [vmem:[#allocation2 + $0x40] sm:$0xff]  ;;  %v4943_v49 = vmul.f32 %v4934_v58, %v12617_v33 }
 0x862   :  { %v4403_v13 = vmul.f32 %v4391_v1, %v4385_v26  ;;  %4409 = vst [vmem:[#allocation3 + $0x8] sm:$0xff] %v4405_v22  ;;  %v4449_v1 = vmul.f32 %v12589_v28, %v12518_v19  ;;  %v4766_v19 = vmul.f32 %v12717_v34, %v12613_v27  ;;  %v4933_v22 = vsel %vm533_vm4, %v12462_v62, %v12482_v56  ;;  %v12744_v35 = vld [vmem:[#allocation2 + $0x48] sm:$0xff] }
 0x863   :  { %v4845_v26 = vsel %vm471_vm5, %v12488_v5, %v12479_v16  ;;  %v4855_v62 = vmul.f32 %v4846_v40, %v12617_v33  ;;  %v4613_v16 = vsel %vm314_vm15, %v12490_v8, %v12506_v55  ;;  %v4614_v5 = vsel %vm314_vm15, %v12506_v55, %v12498_v29 }
 0x864   :  { %v4407_v52 = vpack.c.bf16 %v4403_v13, %v4402_v63  ;;  %v4457_v41 = vpack.c.bf16 %v4450_v45, %v4449_v1  ;;  %v4942_v63 = vmul.f32 %v4933_v22, %v12613_v27  ;;  %v4854_v61 = vmul.f32 %v4845_v26, %v12613_v27 }
 0x865   :  { %v4775_v14 = vpack.c.bf16 %v4767_v24, %v4766_v19  ;;  %v4622_v44 = vmul.f32 %v4613_v16, %v12613_v27  ;;  %v4623_v13 = vmul.f32 %v4614_v5, %v12617_v33  ;;  %v4948_v8 = vmul.f32 %v4934_v58, %v12628_v46 }
 0x866   :  { %4466 = vrot.lane.b32.xlu2 %v4454_v0, %s14773_s21  ;;  %4411 = vst [vmem:[#allocation3 + $0x18] sm:$0xff] %v4407_v52  ;;  %v4951_v56 = vpack.c.bf16 %v4943_v49, %v4942_v63  ;;  %v4863_v0 = vpack.c.bf16 %v4855_v62, %v4854_v61  ;;  %v4526_v55 = vsel %vm252_vm1, %v12504_v25, %v12502_v10 }
 0x867   :  { %v4631_v43 = vpack.c.bf16 %v4623_v13, %v4622_v44  ;;  %v4947_v54 = vmul.f32 %v4933_v22, %v12567_v21  ;;  %v4861_v45 = vmul.f32 %v12744_v35, %v12477_v12  ;;  %v4446_v12 = vmul.f32 %v12642_v57, %v12613_v27 }
 0x868   :  { %4792 = vrot.lane.b32.xlu0 %v4777_v59, %s14781_s5  ;;  %4560 = vrot.lane.b32.xlu1 %v4545_v31, %s14772_s26  ;;  %v4949_v59 = vmul.f32 %v12470_v47, %v12744_v35  ;;  %v4690_v31 = vpack.c.bf16 %v12628_v46, %v12567_v21  ;;  %v4525_v47 = vsel %vm252_vm1, %v12512_v11, %v12504_v25 }
 0x869   :  { %v4534_v1 = vmul.f32 %v4525_v47, %v12613_v27  ;;  %v4867_v19 = vpack.c.bf16 %v4861_v45, %v4861_v45  ;;  %v5028_v25 = vmul.f32 %v12516_v15, %v12548_v20  ;;  %v5020_v11 = vsel %vm14836_vm10, %v12516_v15, %v12514_v9 }
 0x86a   :  { %v4955_v52 = vpack.c.bf16 %v4949_v59, %v4949_v59  ;;  %v5029_v24 = vmul.f32 %v5020_v11, %v12532_v39  ;;  %v4447_v22 = vmul.f32 %v12647_v32, %v12617_v33  ;;  %v4773_v58 = vmul.f32 %v12744_v35, %v12500_v60 }
 0x86b   :  { %v4628_v9 = vmul.f32 %v4614_v5, %v12628_v46  ;;  %v4627_v39 = vmul.f32 %v4613_v16, %v12567_v21  ;;  %v4860_v27 = vmul.f32 %v4846_v40, %v12628_v46  ;;  %v4859_v60 = vmul.f32 %v4845_v26, %v12567_v21 }
 0x86c   :  { %v5038_v63 = vpack.c.bf16 %v5029_v24, %v5028_v25  ;;  %v4455_v49 = vpack.c.bf16 %v4447_v22, %v4446_v12  ;;  %v4779_v20 = vpack.c.bf16 %v4773_v58, %v4773_v58  ;;  %v4771_v32 = vmul.f32 %v12717_v34, %v12567_v21 }
 0x86d   :  { %v4634_v57 = vpack.c.bf16 %v4628_v9, %v4627_v39  ;;  %v4866_v61 = vpack.c.bf16 %v4860_v27, %v4859_v60  ;;  %v4539_v40 = vmul.f32 %v4525_v47, %v12567_v21  ;;  %v4691_v34 = vpack.c.bf16 %v12744_v35, %v12744_v35 }
 0x86e   :  { %4880 = vrot.lane.b32.xlu2 %v4865_v23, %s14790_s3  ;;  %v4535_v23 = vmul.f32 %v4526_v55, %v12617_v33  ;;  %v4772_v33 = vmul.f32 %v4758_v51, %v12628_v46  ;;  %v4688_v51 = vpack.c.bf16 %v12569_v38, %v12569_v38  ;;  %v5034_v21 = vmul.f32 %v5020_v11, %v12561_v4 }
 0x86f   :  { %v14838_v44 = vpack.c.bf16 %v12678_v42, %v12675_v6  ;;  %v4629_v4 = vmul.f32 %v12744_v35, %v12498_v29  ;;  %v4536_v6 = vmul.f32 %v12569_v38, %v12502_v10  ;;  %v4541_v42 = vmul.f32 %v12744_v35, %v12502_v10 }
 0x870   :  { %4700 = vrot.lane.b32.xlu0 %v4687_v37, %s10250_s0  ;;  %4472 = vrot.lane.b32.xlu1 %v4457_v41, %s14773_s21  ;;  %v4954_v37 = vpack.c.bf16 %v4948_v8, %v4947_v54  ;;  %v4543_v41 = vpack.c.bf16 %v4535_v23, %v4534_v1  ;;  %v4778_v62 = vpack.c.bf16 %v4772_v33, %v4771_v32  ;;  %vm14846_vm10 = vcmask 916480  }
 0x871   :  { %v4544_v13 = vpack.c.bf16 %v4536_v6, %v4536_v6  ;;  %v4547_v48 = vpack.c.bf16 %v4541_v42, %v4541_v42  ;;  %v4453_v59 = vmul.f32 %v12744_v35, %v12524_v50  ;;  %v5032_v10 = vmul.f32 %v12522_v7, %v12569_v38 }
 0x873   :  { %v4459_v8 = vpack.c.bf16 %v4453_v59, %v4453_v59 }
 0x876   :  { %4788 = vrot.lane.b32.xlu2 %v4775_v14, %s14781_s5  ;;  %v4540_v14 = vmul.f32 %v4526_v55, %v12628_v46  ;;  %v5033_v46 = vmul.f32 %v12516_v15, %v12589_v28  ;;  %v4624_v15 = vmul.f32 %v12569_v38, %v12498_v29  ;;  %v4448_v29 = vmul.f32 %v12569_v38, %v12524_v50  ;;  %v5121_v38 = vld [vmem:[%s14710_s11] sm:$0xf] }
 0x877   :  { %v5040_v55 = vpack.c.bf16 %v5032_v10, %v5032_v10 }
 0x878   :  { %4964 = vrot.lane.b32.xlu0 %v4951_v56, %s14769_s4  ;;  %4876 = vrot.lane.b32.xlu1 %v4863_v0, %s14790_s3  ;;  %v4546_v56 = vpack.c.bf16 %v4540_v14, %v4539_v40  ;;  %v14837_v0 = vpack.c.bf16 %v12659_v30, %v12655_v2  ;;  %v5041_v16 = vpack.c.bf16 %v5034_v21, %v5033_v46 }
 0x879   :  { %v4632_v28 = vpack.c.bf16 %v4624_v15, %v4624_v15  ;;  %v4635_v2 = vpack.c.bf16 %v4629_v4, %v4629_v4  ;;  %v4456_v3 = vpack.c.bf16 %v4448_v29, %v4448_v29 }
 0x87e   :  { %4706 = vrot.lane.b32.xlu2 %v4690_v31, %s10250_s0 }
 0x880   :  { %4644 = vrot.lane.b32.xlu0 %v4631_v43, %s14771_s1  ;;  %4972 = vrot.lane.b32.xlu1 %v4955_v52, %s14769_s4  ;;  %v5037_v52 = vmul.f32 %v12522_v7, %v12744_v35 }
 0x882   :  { %v5043_v47 = vpack.c.bf16 %v5037_v52, %v5037_v52 }
 0x886   :  { %4970 = vrot.lane.b32.xlu2 %v4954_v37, %s14769_s4 }
 0x888   :  { %4556 = vrot.lane.b32.xlu0 %v4543_v41, %s14772_s26  ;;  %4884 = vrot.lane.b32.xlu1 %v4867_v19, %s14790_s3 }
 0x88e   :  { %5050 = vrot.lane.b32.xlu2 %v5038_v63, %s14770_s2 }
 0x890   :  { %4468 = vrot.lane.b32.xlu0 %v4455_v49, %s14773_s21  ;;  %4796 = vrot.lane.b32.xlu1 %v4779_v20, %s14781_s5 }
 0x896   :  { %4650 = vrot.lane.b32.xlu2 %v4634_v57, %s14771_s1 }
 0x898   :  { %4882 = vrot.lane.b32.xlu0 %v4866_v61, %s14790_s3  ;;  %4794 = vrot.lane.b32.xlu1 %v4778_v62, %s14781_s5 }
 0x89e   :  { %4562 = vrot.lane.b32.xlu2 %v4546_v56, %s14772_s26 }
 0x8a0   :  { %v12810_v26 = vpop.permute.xlu2 %4698  ;;  %4702 = vrot.lane.b32.xlu0 %v4688_v51, %s10250_s0  ;;  %4708 = vrot.lane.b32.xlu1 %v4691_v34, %s10250_s0 }
 0x8a1   :  { %v4710_v14 = vrot.slane %v12810_v26, 4 }
 0x8a6   :  { %4474 = vrot.lane.b32.xlu2 %v14837_v0, %s14773_s21 }
 0x8a8   :  { %v12821_v5 = vpop.permute.xlu2 %4962  ;;  %5052 = vrot.lane.b32.xlu0 %v14838_v44, %s14770_s2  ;;  %5056 = vrot.lane.b32.xlu1 %v5041_v16, %s14770_s2 }
 0x8a9   :  { %v4974_v0 = vrot.slane %v12821_v5, 4 }
 0x8ae   :  { %5058 = vrot.lane.b32.xlu2 %v5042_v18, %s14770_s2 }
 0x8b0   :  { %v12836_v30 = vpop.permute.xlu2 %4642  ;;  %4646 = vrot.lane.b32.xlu0 %v4632_v28, %s14771_s1  ;;  %4652 = vrot.lane.b32.xlu1 %v4635_v2, %s14771_s1 }
 0x8b6   :  { %4558 = vrot.lane.b32.xlu2 %v4544_v13, %s14772_s26 }
 0x8b8   :  { %v12847_v18 = vpop.permute.xlu2 %4554  ;;  %4564 = vrot.lane.b32.xlu0 %v4547_v48, %s14772_s26  ;;  %4470 = vrot.lane.b32.xlu1 %v4456_v3, %s14773_s21 }
 0x8ba   :  { %v4787_v31 = vpop.permute.xlu1 %4786  ;;  %v12853_v43 = vpop.permute.xlu0 %4874 }
 0x8bb   :  { %v4798_v37 = vrot.slane %v4787_v31, 4  ;;  %v4886_v16 = vrot.slane %v12853_v43, 4 }
 0x8be   :  { %4476 = vrot.lane.b32.xlu2 %v4459_v8, %s14773_s21 }
 0x8c0   :  { %v12860_v54 = vpop.permute.xlu2 %4466  ;;  %5054 = vrot.lane.b32.xlu0 %v5040_v55, %s14770_s2  ;;  %5060 = vrot.lane.b32.xlu1 %v5043_v47, %s14770_s2 }
 0x8c2   :  { %v4705_v50 = vpop.permute.xlu1 %4704  ;;  %v4967_v1 = vpop.permute.xlu0 %4966 }
 0x8c3   :  { %v4713_v49 = vrot.slane %v4705_v50, 4  ;;  %v4976_v4 = vrot.slane %v4967_v1, 4 }
 0x8c6   :  { %5124 = vperm.xlu2 %10157, %v5121_v38  }
 0x8c8   :  { %v12867_v23 = vpop.permute.xlu2 %4880 }
 0x8ca   :  { %v4969_v7 = vpop.permute.xlu1 %4968  ;;  %v4879_v35 = vpop.permute.xlu0 %4878 }
 0x8cb   :  { %v4977_v60 = vrot.slane %v4969_v7, 4  ;;  %v4888_v28 = vrot.slane %v4879_v35, 4 }
 0x8d0   :  { %v4789_v45 = vpop.permute.xlu2 %4788 }
 0x8d1   :  { %v4799_v41 = vrot.slane %v4789_v45, 4 }
 0x8d2   :  { %v4649_v19 = vpop.permute.xlu1 %4648  ;;  %v4791_v25 = vpop.permute.xlu0 %4790 }
 0x8d3   :  { %v4804_v11 = vsel %vm218_vm3, %v4798_v37, %v4799_v41  ;;  %v4800_v24 = vrot.slane %v4791_v25, 4  ;;  %v4657_v52 = vrot.slane %v4649_v19, 4 }
 0x8d4   :  { %v4805_v12 = vsel %vm439_vm11, %v4787_v31, %v4804_v11 }
 0x8d5   :  { %4816 = vst [vmem:[#allocation3 + $0xa0] sm:$0xff] %v4805_v12  ;;  %v4806_v22 = vsel %vm218_vm3, %v4799_v41, %v4800_v24 }
 0x8d6   :  { %v4807_v58 = vsel %vm439_vm11, %v4789_v45, %v4806_v22 }
 0x8d7   :  { %4817 = vst [vmem:[#allocation3 + $0xa8] sm:$0xff] %v4807_v58 }
 0x8d8   :  { %v12873_v63 = vpop.permute.xlu2 %4706 }
 0x8d9   :  { %v4714_v20 = vrot.slane %v12873_v63, 4 }
 0x8da   :  { %v12876_v9 = vpop.permute.xlu1 %4560  ;;  %v12878_v39 = vpop.permute.xlu0 %4792 }
 0x8db   :  { %v4720_v27 = vsel %vm218_vm3, %v4713_v49, %v4714_v20  ;;  %v4569_v12 = vrot.slane %v12876_v9, 4 }
 0x8dc   :  { %v4721_v33 = vsel %vm14839_vm6, %v4705_v50, %v4720_v27  ;;  %vm14847_vm6 = vmmov %vm14845_vm2 }
 0x8dd   :  { %4730 = vst [vmem:[#allocation3 + $0x90] sm:$0xff] %v4721_v33 }
 0x8e0   :  { %v4971_v57 = vpop.permute.xlu2 %4970 }
 0x8e1   :  { %v4978_v32 = vrot.slane %v4971_v57, 4 }
 0x8e2   :  { %v12884_v61 = vpop.permute.xlu1 %4472  ;;  %v12886_v62 = vpop.permute.xlu0 %4700 }
 0x8e3   :  { %v4984_v40 = vsel %vm218_vm3, %v4977_v60, %v4978_v32  ;;  %v4711_v56 = vrot.slane %v12886_v62, 4 }
 0x8e4   :  { %v4985_v51 = vsel %vm14840_vm7, %v4969_v7, %v4984_v40  ;;  %vm14848_vm7 = vmmov %vm14846_vm10 }
 0x8e5   :  { %4994 = vst [vmem:[#allocation3 + $0xf0] sm:$0xff] %v4985_v51  ;;  %v4716_v34 = vsel %vm218_vm3, %v4710_v14, %v4711_v56 }
 0x8e6   :  { %v4717_v46 = vsel %vm14841_vm12, %v12810_v26, %v4716_v34  ;;  %vm14849_vm12 = vcmask 1031168   ;;  %v4481_v34 = vrot.slane %v12884_v61, 4 }
 0x8e7   :  { %4728 = vst [vmem:[#allocation3 + $0x80] sm:$0xff] %v4717_v46 }
 0x8e8   :  { %v12897_v21 = vpop.permute.xlu2 %5050 }
 0x8ea   :  { %v4877_v44 = vpop.permute.xlu1 %4876  ;;  %v4965_v15 = vpop.permute.xlu0 %4964 }
 0x8eb   :  { %v4887_v2 = vrot.slane %v4877_v44, 4  ;;  %v4975_v6 = vrot.slane %v4965_v15, 4 }
 0x8ec   :  { %v10021_v41 = vld [vmem:[#allocation3 + $0xec] sm:$0xf0]  ;;  %v9324_v25 = vld [vmem:[#allocation3 + $0xf0] sm:$0xf0] }
 0x8ed   :  { %v4892_v42 = vsel %vm218_vm3, %v4886_v16, %v4887_v2  ;;  %v4894_v29 = vsel %vm218_vm3, %v4887_v2, %v4888_v28  ;;  %v4980_v13 = vsel %vm218_vm3, %v4974_v0, %v4975_v6  ;;  %v4982_v26 = vsel %vm218_vm3, %v4975_v6, %v4976_v4 }
 0x8ee   :  { %v4893_v48 = vsel %vm14842_vm8, %v12853_v43, %v4892_v42  ;;  %v4895_v3 = vsel %vm14843_vm13, %v4877_v44, %v4894_v29  ;;  %v4981_v59 = vsel %vm14844_vm9, %v12821_v5, %v4980_v13  ;;  %v4983_v31 = vsel %vm14845_vm2, %v4965_v15, %v4982_v26  ;;  %vm14850_vm8 = vmmov %vm14849_vm12 }
 0x8ef   :  { %4904 = vst [vmem:[#allocation3 + $0xc0] sm:$0xff] %v4893_v48  ;;  %v4654_v43 = vrot.slane %v12836_v30, 4  ;;  %v4478_v44 = vrot.slane %v12860_v54, 4  ;;  %vm14851_vm13 = vcmask 1039360   ;;  %v4889_v6 = vrot.slane %v12867_v23, 4 }
 0x8f0   :  { %4905 = vst [vmem:[#allocation3 + $0xc8] sm:$0xff] %v4895_v3  ;;  %v12911_v10 = vpop.permute.xlu2 %4650  ;;  %vm14852_vm9 = vmmov %vm14851_vm13  ;;  %v4801_v42 = vrot.slane %v12878_v39, 4  ;;  %vm14853_vm2 = vcmask 785408  }
 0x8f1   :  { %4992 = vst [vmem:[#allocation3 + $0xe0] sm:$0xff] %v4981_v59  ;;  %v4658_v8 = vrot.slane %v12911_v10, 4 }
 0x8f2   :  { %4993 = vst [vmem:[#allocation3 + $0xe8] sm:$0xff] %v4983_v31  ;;  %v4973_v55 = vpop.permute.xlu1 %4972  ;;  %v12914_v47 = vpop.permute.xlu0 %4644 }
 0x8f3   :  { %v4664_v5 = vsel %vm218_vm3, %v4657_v52, %v4658_v8  ;;  %v4979_v50 = vrot.slane %v4973_v55, 4  ;;  %v4655_v1 = vrot.slane %v12914_v47, 4 }
 0x8f4   :  { %v4665_v38 = vsel %vm14846_vm10, %v4649_v19, %v4664_v5  ;;  %vm14854_vm10 = vmmov %vm14853_vm2 }
 0x8f5   :  { %4674 = vst [vmem:[#allocation3 + $0x70] sm:$0xff] %v4665_v38  ;;  %v4986_v7 = vsel %vm218_vm3, %v4978_v32, %v4979_v50  ;;  %v4660_v35 = vsel %vm218_vm3, %v4654_v43, %v4655_v1 }
 0x8f6   :  { %v4987_v45 = vsel %vm14847_vm6, %v4971_v57, %v4986_v7  ;;  %v4661_v37 = vsel %vm14848_vm7, %v12836_v30, %v4660_v35  ;;  %v4566_v57 = vrot.slane %v12847_v18, 4  ;;  %vm14855_vm6 = vmmov %vm14850_vm8  ;;  %vm14856_vm7 = vcmask 908288  }
 0x8f7   :  { %4995 = vst [vmem:[#allocation3 + $0xf8] sm:$0xff] %v4987_v45 }
 0x8f8   :  { %4672 = vst [vmem:[#allocation3 + $0x60] sm:$0xff] %v4661_v37  ;;  %v12929_v11 = vpop.permute.xlu2 %4562  ;;  %v9322_v24 = vld [vmem:[#allocation3 + $0xe0] sm:$0xf]  ;;  %v10019_v19 = vld [vmem:[#allocation3 + $0xe4] sm:$0xf] }
 0x8f9   :  { %v4570_v22 = vrot.slane %v12929_v11, 4  ;;  %v9323_v58 = vor.u32 %v10021_v41, %v9322_v24  ;;  %v9327_v49 = vor.u32 %v10019_v19, %v9324_v25 }
 0x8fa   :  { %v4885_v27 = vpop.permute.xlu1 %4884  ;;  %v4557_v33 = vpop.permute.xlu0 %4556 }
 0x8fb   :  { %v4576_v30 = vsel %vm218_vm3, %v4569_v12, %v4570_v22  ;;  %5314 = vmatpush.bf16.msra.mxu2 %v9323_v58  ;;  %5340 = vmatpush.bf16.msra.mxu0 %v9327_v49  ;;  %v4567_v60 = vrot.slane %v4557_v33, 4  ;;  %v4891_v26 = vrot.slane %v4885_v27, 4  ;;  %v9306_v58 = vld [vmem:[#allocation3 + $0xc0] sm:$0xf]  ;;  %v10015_v49 = vld [vmem:[#allocation3 + $0xc4] sm:$0xf] }
 0x8fc   :  { %v4577_v32 = vsel %vm14849_vm12, %v12876_v9, %v4576_v30  ;;  %vm14857_vm12 = vmmov %vm14856_vm7  ;;  %v12986_v30 = vld.sshfl [vmem:[#allocation1 + $0x8] sm:$0xff pattern:$0x73625140] }
 0x8fd   :  { %4586 = vst [vmem:[#allocation3 + $0x50] sm:$0xff] %v4577_v32  ;;  %v4572_v14 = vsel %vm218_vm3, %v4566_v57, %v4567_v60 }
 0x8fe   :  { %v4573_v40 = vsel %vm14850_vm8, %v12847_v18, %v4572_v14  ;;  %vm14858_vm8 = vmmov %vm14852_vm9 }
 0x8ff   :  { %4584 = vst [vmem:[#allocation3 + $0x40] sm:$0xff] %v4573_v40  ;;  %v5062_v40 = vrot.slane %v12897_v21, 4 }
 0x900   :  { %v12942_v51 = vpop.permute.xlu2 %4474 }
 0x901   :  { %v4482_v46 = vrot.slane %v12942_v51, 4 }
 0x902   :  { %v4797_v0 = vpop.permute.xlu1 %4796  ;;  %v12946_v16 = vpop.permute.xlu0 %4468 }
 0x903   :  { %v4488_v9 = vsel %vm218_vm3, %v4481_v34, %v4482_v46  ;;  %v4479_v15 = vrot.slane %v12946_v16, 4  ;;  %v4803_v48 = vrot.slane %v4797_v0, 4  ;;  %v8114_v0 = vld [vmem:[%s14711_s16] sm:$0xf]  ;;  %s14887_s16 = sld [smem:[#allocation10_spill]] }
 0x904   :  { %v4489_v18 = vsel %vm14851_vm13, %v12884_v61, %v4488_v9  ;;  %vm14859_vm13 = vcmask 769024  }
 0x905   :  { %4498 = vst [vmem:[#allocation3 + $0x30] sm:$0xff] %v4489_v18  ;;  %v4484_v4 = vsel %vm218_vm3, %v4478_v44, %v4479_v15 }
 0x906   :  { %v4485_v28 = vsel %vm14852_vm9, %v12860_v54, %v4484_v4  ;;  %vm14860_vm9 = vmmov %vm14859_vm13 }
 0x907   :  { %4496 = vst [vmem:[#allocation3 + $0x20] sm:$0xff] %v4485_v28 }
 0x908   :  { %v12960_v2 = vpop.permute.xlu2 %5058 }
 0x909   :  { %v5066_v44 = vrot.slane %v12960_v2, 4 }
 0x90a   :  { %v4795_v29 = vpop.permute.xlu1 %4794  ;;  %v4883_v13 = vpop.permute.xlu0 %4882 }
 0x90b   :  { %v4802_v61 = vrot.slane %v4795_v29, 4  ;;  %v4890_v3 = vrot.slane %v4883_v13, 4 }
 0x90d   :  { %v4808_v59 = vsel %vm218_vm3, %v4801_v42, %v4802_v61  ;;  %v4810_v31 = vsel %vm218_vm3, %v4802_v61, %v4803_v48  ;;  %v4896_v52 = vsel %vm218_vm3, %v4889_v6, %v4890_v3  ;;  %v4898_v54 = vsel %vm218_vm3, %v4890_v3, %v4891_v26  ;;  %v9290_v6 = vld [vmem:[#allocation3 + $0xa0] sm:$0xf]  ;;  %v10011_v42 = vld [vmem:[#allocation3 + $0xa4] sm:$0xf] }
 0x90e   :  { %v4809_v55 = vsel %vm439_vm11, %v12878_v39, %v4808_v59  ;;  %v4811_v43 = vsel %vm439_vm11, %v4795_v29, %v4810_v31  ;;  %v4897_v5 = vsel %vm14853_vm2, %v12867_v23, %v4896_v52  ;;  %v4899_v50 = vsel %vm14854_vm10, %v4883_v13, %v4898_v54  ;;  %v9274_v3 = vld [vmem:[#allocation3 + $0x80] sm:$0xf]  ;;  %v10009_v59 = vld [vmem:[#allocation3 + $0x8c] sm:$0xf0]  ;;  %v9276_v31 = vld [vmem:[#allocation3 + $0x90] sm:$0xf0] }
 0x90f   :  { %4818 = vst [vmem:[#allocation3 + $0xb0] sm:$0xff] %v4809_v55  ;;  %v9275_v52 = vor.u32 %v10009_v59, %v9274_v3  ;;  %vm14861_vm2 = vcmask 916480   ;;  %v9314_v3 = vld [vmem:[#allocation3 + $0xc8] sm:$0xf] }
 0x910   :  { %4819 = vst [vmem:[#allocation3 + $0xb8] sm:$0xff] %v4811_v43  ;;  %v4559_v38 = vpop.permute.xlu2 %4558  ;;  %vm14862_vm10 = vmmov %vm14861_vm2 }
 0x911   :  { %4906 = vst [vmem:[#allocation3 + $0xd0] sm:$0xff] %v4897_v5  ;;  %v4568_v7 = vrot.slane %v4559_v38, 4  ;;  %v9258_v5 = vld [vmem:[#allocation3 + $0x60] sm:$0xf] }
 0x912   :  { %4907 = vst [vmem:[#allocation3 + $0xd8] sm:$0xff] %v4899_v50  ;;  %v4709_v35 = vpop.permute.xlu1 %4708  ;;  %v4703_v45 = vpop.permute.xlu0 %4702  ;;  %v10003_v50 = vld [vmem:[#allocation3 + $0x64] sm:$0xf] }
 0x913   :  { %v4574_v37 = vsel %vm218_vm3, %v4567_v60, %v4568_v7  ;;  %v4715_v41 = vrot.slane %v4709_v35, 4  ;;  %v4712_v25 = vrot.slane %v4703_v45, 4  ;;  %v10005_v35 = vld [vmem:[#allocation3 + $0x6c] sm:$0xf0] }
 0x914   :  { %v4575_v39 = vsel %vm14855_vm6, %v4557_v33, %v4574_v37  ;;  %vm14863_vm6 = vmmov %vm14858_vm8 }
 0x915   :  { %4585 = vst [vmem:[#allocation3 + $0x48] sm:$0xff] %v4575_v39  ;;  %v4722_v23 = vsel %vm218_vm3, %v4714_v20, %v4715_v41  ;;  %v4718_v24 = vsel %vm218_vm3, %v4711_v56, %v4712_v25  ;;  %v9259_v41 = vor.u32 %v10005_v35, %v9258_v5  ;;  %v9242_v39 = vld [vmem:[#allocation3 + $0x40] sm:$0xf] }
 0x916   :  { %v4723_v19 = vsel %vm14856_vm7, %v12873_v63, %v4722_v23  ;;  %v4719_v12 = vsel %vm14857_vm12, %v12886_v62, %v4718_v24  ;;  %v10013_v14 = vld [vmem:[#allocation3 + $0xac] sm:$0xf0]  ;;  %v9292_v56 = vld [vmem:[#allocation3 + $0xb0] sm:$0xf0]  ;;  %v10022_v23 = vld [vmem:[#allocation3 + $0xf4] sm:$0xf0] }
 0x917   :  { %4731 = vst [vmem:[#allocation3 + $0x98] sm:$0xff] %v4723_v19  ;;  %v12991_v62 = vld.sshfl [vmem:[#allocation1] sm:$0xff pattern:$0x73625140]  ;;  %v9291_v13 = vor.u32 %v10013_v14, %v9290_v6  ;;  %v9295_v26 = vor.u32 %v10011_v42, %v9292_v56  ;;  %v9332_v24 = vld [vmem:[#allocation3 + $0xf8] sm:$0xf0]  ;;  %vm14865_vm12 = vmmov %vm14860_vm9 }
 0x918   :  { %4729 = vst [vmem:[#allocation3 + $0x88] sm:$0xff] %v4719_v12  ;;  %v4477_v27 = vpop.permute.xlu2 %4476  ;;  %v10017_v33 = vld [vmem:[#allocation3 + $0xcc] sm:$0xf0]  ;;  %v9308_v57 = vld [vmem:[#allocation3 + $0xd0] sm:$0xf0]  ;;  %vm14864_vm7 = vcmask 1031168  }
 0x919   :  { %v4483_v20 = vrot.slane %v4477_v27, 4  ;;  %v9307_v60 = vor.u32 %v10017_v33, %v9306_v58  ;;  %v9311_v32 = vor.u32 %v10015_v49, %v9308_v57  ;;  %8158 = vst [vmem:[#allocation1] ss:$4 sm:$0xff] %v8114_v0  ;;  %v9999_v49 = vld [vmem:[#allocation3 + $0x44] sm:$0xf] }
 0x91a   :  { %v5057_v63 = vpop.permute.xlu1 %5056  ;;  %v12989_v34 = vpop.permute.xlu0 %5052  ;;  %v10020_v57 = vld [vmem:[#allocation3 + $0xec] sm:$0xf]  ;;  %v9228_v6 = vld [vmem:[#allocation3 + $0x30] sm:$0xf0]  ;;  %v10018_v42 = vld [vmem:[#allocation3 + $0xd4] sm:$0xf0] }
 0x91b   :  { %v4490_v9 = vsel %vm218_vm3, %v4482_v46, %v4483_v20  ;;  %5315 = vmatpush.bf16.msra.mxu2 %v9307_v60  ;;  %5341 = vmatpush.bf16.msra.mxu0 %v9311_v32  ;;  %v5065_v18 = vrot.slane %v5057_v63, 4  ;;  %v5063_v4 = vrot.slane %v12989_v34, 4  ;;  %v10001_v20 = vld [vmem:[#allocation3 + $0x4c] sm:$0xf0]  ;;  %v9244_v32 = vld [vmem:[#allocation3 + $0x50] sm:$0xf0] }
 0x91c   :  { %v4491_v28 = vsel %vm14858_vm8, %v12942_v51, %v4490_v9  ;;  %v10007_v51 = vld [vmem:[#allocation3 + $0x84] sm:$0xf]  ;;  %v9243_v56 = vor.u32 %v10001_v20, %v9242_v39  ;;  %v9300_v35 = vld [vmem:[#allocation3 + $0xb8] sm:$0xf0]  ;;  %vm14866_vm8 = vmmov %vm14860_vm9 }
 0x91d   :  { %4499 = vst [vmem:[#allocation3 + $0x38] sm:$0xff] %v4491_v28  ;;  %v5072_v29 = vsel %vm218_vm3, %v5065_v18, %v5066_v44  ;;  %v5068_v46 = vsel %vm218_vm3, %v5062_v40, %v5063_v4  ;;  %v9279_v54 = vor.u32 %v10007_v51, %v9276_v31  ;;  %v9226_v40 = vld [vmem:[#allocation3 + $0x20] sm:$0xf]  ;;  %v9335_v18 = vor.u32 %v10020_v57, %v9332_v24 }
 0x91e   :  { %v5073_v48 = vsel %vm14859_vm13, %v5057_v63, %v5072_v29  ;;  %v5069_v61 = vsel %vm14860_vm9, %v12897_v21, %v5068_v46  ;;  %v9260_v21 = vld [vmem:[#allocation3 + $0x70] sm:$0xf0]  ;;  %v9997_v63 = vld [vmem:[#allocation3 + $0x2c] sm:$0xf0]  ;;  %v9316_v29 = vld [vmem:[#allocation3 + $0xd8] sm:$0xf0] }
 0x91f   :  { %5082 = vst [vmem:[#allocation3 + $0x110] sm:$0xff] %v5073_v48  ;;  %5316 = vmatpush.bf16.msra.mxu2 %v9291_v13  ;;  %5342 = vmatpush.bf16.msra.mxu0 %v9295_v26  ;;  %v9263_v25 = vor.u32 %v10003_v50, %v9260_v21  ;;  %v13025_v26 = vld [vmem:[%s14762_s29 + $0x7] ss:$8 sm:$0xf]  ;;  %v9227_v48 = vor.u32 %v9997_v63, %v9226_v40  ;;  %vm14868_vm13 = vcmask 1043592   ;;  %vm14869_vm9 = vcmask 134144  }
 0x920   :  { %5080 = vst [vmem:[#allocation3 + $0x100] sm:$0xff] %v5069_v61  ;;  %v5779_v51 = vperm.slane %v13025_v26, 0  ;;  %v5781_v59 = vperm.slane %v13025_v26, 2  ;;  %v5780_v21 = vperm.slane %v13025_v26, 1 }
 0x922   :  { %v4653_v55 = vpop.permute.xlu1 %4652  ;;  %v4647_v43 = vpop.permute.xlu0 %4646  ;;  %5783 = vrot.lane.b32.xlu1 %v5779_v51, %s10240_s20  ;;  %5787 = vrot.lane.b32.xlu0 %v5781_v59, %s10240_s20 }
 0x923   :  { %5317 = vmatpush.bf16.msra.mxu2 %v9275_v52  ;;  %5343 = vmatpush.bf16.msra.mxu0 %v9279_v54  ;;  %v4659_v38 = vrot.slane %v4653_v55, 4  ;;  %v4656_v7 = vrot.slane %v4647_v43, 4  ;;  %v9315_v54 = vor.u32 %v10018_v42, %v9314_v3  ;;  %v10016_v55 = vld [vmem:[#allocation3 + $0xcc] sm:$0xf]  ;;  %v9250_v42 = vld [vmem:[#allocation3 + $0x48] sm:$0xf] }
 0x924   :  { %v9319_v50 = vor.u32 %v10016_v55, %v9316_v29  ;;  %5785 = vrot.lane.b32.xlu2 %v5780_v21, %s10240_s20  ;;  %v10000_v29 = vld [vmem:[#allocation3 + $0x4c] sm:$0xf]  ;;  %v9236_v55 = vld [vmem:[#allocation3 + $0x38] sm:$0xf0] }
 0x925   :  { %v4666_v45 = vsel %vm218_vm3, %v4658_v8, %v4659_v38  ;;  %v4662_v37 = vsel %vm218_vm3, %v4655_v1, %v4656_v7  ;;  %v9330_v1 = vld [vmem:[#allocation3 + $0xe8] sm:$0xf]  ;;  %v9993_v38 = vld [vmem:[#allocation3 + $0xc] sm:$0xf0]  ;;  %v9212_v7 = vld [vmem:[#allocation3 + $0x10] sm:$0xf0] }
 0x926   :  { %v4667_v19 = vsel %vm14861_vm2, %v12911_v10, %v4666_v45  ;;  %v4663_v12 = vsel %vm14862_vm10, %v12914_v47, %v4662_v37  ;;  %v10025_v58 = vld [vmem:[#allocation3 + $0x10c] sm:$0xf0]  ;;  %v9340_v27 = vld [vmem:[#allocation3 + $0x110] sm:$0xf0]  ;;  %v9247_v10 = vor.u32 %v9999_v49, %v9244_v32  ;;  %v9995_v47 = vld [vmem:[#allocation3 + $0x24] sm:$0xf]  ;;  %v9331_v9 = vor.u32 %v10022_v23, %v9330_v1 }
 0x927   :  { %4675 = vst [vmem:[#allocation3 + $0x78] sm:$0xff] %v4667_v19  ;;  %5318 = vmatpush.bf16.msra.mxu2 %v9259_v41  ;;  %5344 = vmatpush.bf16.msra.mxu0 %v9263_v25  ;;  %v9338_v8 = vld [vmem:[#allocation3 + $0x100] sm:$0xf]  ;;  %v10023_v33 = vld [vmem:[#allocation3 + $0x104] sm:$0xf]  ;;  %v9231_v61 = vor.u32 %v9995_v47, %v9228_v6  ;;  %v5782_v1 = vperm.slane %v13025_v26, 3 }
 0x928   :  { %4673 = vst [vmem:[#allocation3 + $0x68] sm:$0xff] %v4663_v12  ;;  %v9339_v60 = vor.u32 %v10025_v58, %v9338_v8  ;;  %v9343_v14 = vor.u32 %v10023_v33, %v9340_v27  ;;  %v9298_v41 = vld [vmem:[#allocation3 + $0xa8] sm:$0xf]  ;;  %v10012_v25 = vld [vmem:[#allocation3 + $0xac] sm:$0xf]  ;;  %vm14870_vm2 = vcmask 7168  }
 0x929   :  { %v9303_v24 = vor.u32 %v10012_v25, %v9300_v35  ;;  %v9282_v12 = vld [vmem:[#allocation3 + $0x88] sm:$0xf]  ;;  %v10010_v58 = vld [vmem:[#allocation3 + $0x94] sm:$0xf0]  ;;  %v9284_v49 = vld [vmem:[#allocation3 + $0x98] sm:$0xf0] }
 0x92a   :  { %5334 = vmatpush.bf16.msra.mxu3 %v9339_v60  ;;  %5360 = vmatpush.bf16.msra.mxu1 %v9343_v14  ;;  %v4471_v0 = vpop.permute.xlu1 %4470  ;;  %v4565_v28 = vpop.permute.xlu0 %4564  ;;  %v10008_v33 = vld [vmem:[#allocation3 + $0x8c] sm:$0xf]  ;;  %v9283_v32 = vor.u32 %v10010_v58, %v9282_v12  ;;  %vm14871_vm10 = vmmov %vm14870_vm2 }
 0x92b   :  { %5319 = vmatpush.bf16.msra.mxu2 %v9243_v56  ;;  %5345 = vmatpush.bf16.msra.mxu0 %v9247_v10  ;;  %v4480_v46 = vrot.slane %v4471_v0, 4  ;;  %v4571_v13 = vrot.slane %v4565_v28, 4  ;;  %v9287_v40 = vor.u32 %v10008_v33, %v9284_v49  ;;  %v9992_v35 = vld [vmem:[#allocation3 + $0xc] sm:$0xf]  ;;  %v5125_v49 = vpop.permute.xlu2 %5124 }
 0x92c   :  { %5789 = vrot.lane.b32.xlu1 %v5782_v1, %s10240_s20 }
 0x92d   :  { %v4486_v31 = vsel %vm218_vm3, %v4479_v15, %v4480_v46  ;;  %v4578_v52 = vsel %vm218_vm3, %v4570_v22, %v4571_v13  ;;  %9353 = vmatmul.msk.bf16.vlgmr.msra.gmra.mxu1 %vm314_vm15, %v12986_v30  ;;  %9352 = vmatmul.msk.bf16.vlgmr.msra.gmra.mxu3 %vm314_vm15, %v12986_v30  ;;  %v9210_v15 = vld [vmem:[#allocation3] sm:$0xf]  ;;  %v10014_v22 = vld [vmem:[#allocation3 + $0xb4] sm:$0xf0] }
 0x92e   :  { %5366 = vmatpush.bf16.msrb.mxu3 %v9331_v9  ;;  %5392 = vmatpush.bf16.msrb.mxu1 %v9335_v18  ;;  %v4487_v43 = vsel %vm14863_vm6, %v12946_v16, %v4486_v31  ;;  %v4579_v5 = vsel %vm14864_vm7, %v12929_v11, %v4578_v52  ;;  %v9991_v16 = vld [vmem:[#allocation3 + $0x4] sm:$0xf]  ;;  %v9211_v45 = vor.u32 %v9993_v38, %v9210_v15  ;;  %v10006_v63 = vld [vmem:[#allocation3 + $0x74] sm:$0xf0]  ;;  %v9220_v15 = vld [vmem:[#allocation3 + $0x18] sm:$0xf0] }
 0x92f   :  { %4497 = vst [vmem:[#allocation3 + $0x28] sm:$0xff] %v4487_v43  ;;  %5320 = vmatpush.bf16.msra.mxu2 %v9227_v48  ;;  %5346 = vmatpush.bf16.msra.mxu0 %v9231_v61  ;;  %v13049_v11 = vld [vmem:[%s14762_s29 + $0x6] ss:$8 sm:$0xf]  ;;  %v9215_v37 = vor.u32 %v9991_v16, %v9212_v7  ;;  %v9299_v23 = vor.u32 %v10014_v22, %v9298_v41  ;;  %v9266_v47 = vld [vmem:[#allocation3 + $0x68] sm:$0xf]  ;;  %vm14873_vm7 = vmmov %vm14870_vm2 }
 0x930   :  { %4587 = vst [vmem:[#allocation3 + $0x58] sm:$0xff] %v4579_v5  ;;  %v5725_v57 = vperm.slane %v13049_v11, 1  ;;  %v5724_v14 = vperm.slane %v13049_v11, 0  ;;  %v10004_v0 = vld [vmem:[#allocation3 + $0x6c] sm:$0xf]  ;;  %v5726_v28 = vperm.slane %v13049_v11, 2  ;;  %v9223_v16 = vor.u32 %v9992_v35, %v9220_v15 }
 0x931   :  { %v9218_v22 = vld [vmem:[#allocation3 + $0x8] sm:$0xf]  ;;  %v5727_v25 = vperm.slane %v13049_v11, 3  ;;  %vm14872_vm6 = vcmask 277504  }
 0x932   :  { %5367 = vmatpush.bf16.msrb.mxu3 %v9315_v54  ;;  %5393 = vmatpush.bf16.msrb.mxu1 %v9319_v50  ;;  %v5061_v39 = vpop.permute.xlu1 %5060  ;;  %v5055_v19 = vpop.permute.xlu0 %5054  ;;  %v9998_v54 = vld [vmem:[#allocation3 + $0x34] sm:$0xf0] }
 0x933   :  { %5321 = vmatpush.bf16.msra.mxu2 %v9211_v45  ;;  %5347 = vmatpush.bf16.msra.mxu0 %v9215_v37  ;;  %v5067_v27 = vrot.slane %v5061_v39, 4  ;;  %v5064_v8 = vrot.slane %v5055_v19, 4  ;;  %v9994_v50 = vld [vmem:[#allocation3 + $0x14] sm:$0xf0] }
 0x934   :  { %5730 = vrot.lane.b32.xlu0 %v5725_v57, %s10242_s25  ;;  %5728 = vrot.lane.b32.xlu2 %v5724_v14, %s10242_s25  ;;  %v9219_v21 = vor.u32 %v9994_v50, %v9218_v22  ;;  %v9358_v45 = vld [vmem:[%s14762_s29 + $0x3] ss:$8 sm:$0xf]  ;;  %v9357_v39 = vld [vmem:[%s14762_s29 + $0x2] ss:$8 sm:$0xf] }
 0x935   :  { %v5074_v20 = vsel %vm218_vm3, %v5066_v44, %v5067_v27  ;;  %v5070_v60 = vsel %vm218_vm3, %v5063_v4, %v5064_v8  ;;  %v9268_v44 = vld [vmem:[#allocation3 + $0x78] sm:$0xf0]  ;;  %5732 = vrot.lane.b32.xlu1 %v5726_v28, %s10242_s25  ;;  %v5586_v37 = vperm.slane %v9358_v45, 0  ;;  %v5588_v41 = vperm.slane %v9358_v45, 2 }
 0x936   :  { %5368 = vmatpush.bf16.msrb.mxu3 %v9299_v23  ;;  %5394 = vmatpush.bf16.msrb.mxu1 %v9303_v24  ;;  %v5075_v56 = vsel %vm14865_vm12, %v12960_v2, %v5074_v20  ;;  %v5071_v10 = vsel %vm14866_vm8, %v12989_v34, %v5070_v60  ;;  %v13072_v2 = vld [vmem:[%s14762_s29 + $0x5] ss:$8 sm:$0xf]  ;;  %v9267_v34 = vor.u32 %v10006_v63, %v9266_v47  ;;  %v9234_v61 = vld [vmem:[#allocation3 + $0x28] sm:$0xf]  ;;  %v5532_v23 = vperm.slane %v9357_v39, 1  ;;  %vm14874_vm12 = vmmov %vm14872_vm6 }
 0x937   :  { %5322 = vmatmul.bf16.vlgmr.msra.gmra.mxu2 %v12991_v62  ;;  %5348 = vmatmul.bf16.vlgmr.msra.gmra.mxu0 %v12991_v62  ;;  %5083 = vst [vmem:[#allocation3 + $0x118] sm:$0xff] %v5075_v56  ;;  %v9271_v4 = vor.u32 %v10004_v0, %v9268_v44  ;;  %v10002_v9 = vld [vmem:[#allocation3 + $0x54] sm:$0xf0]  ;;  %v9252_v18 = vld [vmem:[#allocation3 + $0x58] sm:$0xf0]  ;;  %v5669_v6 = vperm.slane %v13072_v2, 0  ;;  %v9235_v43 = vor.u32 %v9998_v54, %v9234_v61  ;;  %vm14875_vm8 = vmmov %vm14872_vm6 }
 0x938   :  { %5081 = vst [vmem:[#allocation3 + $0x108] sm:$0xff] %v5071_v10  ;;  %v9251_v46 = vor.u32 %v10002_v9, %v9250_v42  ;;  %v9255_v13 = vor.u32 %v10000_v29, %v9252_v18  ;;  %v9996_v59 = vld [vmem:[#allocation3 + $0x2c] sm:$0xf]  ;;  %v5670_v38 = vperm.slane %v13072_v2, 1  ;;  %v5672_v7 = vperm.slane %v13072_v2, 3 }
 0x939   :  { %v9239_v5 = vor.u32 %v9996_v59, %v9236_v55  ;;  %v5587_v24 = vperm.slane %v9358_v45, 1  ;;  %v5531_v12 = vperm.slane %v9357_v39, 0  ;;  %v5533_v10 = vperm.slane %v9357_v39, 2 }
 0x93a   :  { %5369 = vmatpush.bf16.msrb.mxu3 %v9283_v32  ;;  %5395 = vmatpush.bf16.msrb.mxu1 %v9287_v40 }
 0x93c   :  { %5673 = vrot.lane.b32.xlu0 %v5669_v6, %s14824_s6  ;;  %5734 = vrot.lane.b32.xlu2 %v5727_v25, %s10242_s25 }
 0x93d   :  { %5675 = vrot.lane.b32.xlu1 %v5670_v38, %s14824_s6 }
 0x93e   :  { %5370 = vmatpush.bf16.msrb.mxu3 %v9267_v34  ;;  %5396 = vmatpush.bf16.msrb.mxu1 %v9271_v4  ;;  %v10026_v26 = vld [vmem:[#allocation3 + $0x114] sm:$0xf0]  ;;  %v9348_v48 = vld [vmem:[#allocation3 + $0x118] sm:$0xf0] }
 0x93f   :  { %v9346_v3 = vld [vmem:[#allocation3 + $0x108] sm:$0xf]  ;;  %v10024_v51 = vld [vmem:[#allocation3 + $0x10c] sm:$0xf] }
 0x940   :  { %v9347_v31 = vor.u32 %v10026_v26, %v9346_v3  ;;  %v9351_v52 = vor.u32 %v10024_v51, %v9348_v48 }
 0x942   :  { %5371 = vmatpush.bf16.msrb.mxu3 %v9251_v46  ;;  %5397 = vmatpush.bf16.msrb.mxu1 %v9255_v13  ;;  %v14867_v13 = vld [vmem:[#allocation4_spill] sm:$0xff] }
 0x943   :  { %5386 = vmatpush.bf16.msrb.mxu2 %v9347_v31  ;;  %5412 = vmatpush.bf16.msrb.mxu0 %v9351_v52 }
 0x944   :  { %5679 = vrot.lane.b32.xlu0 %v5672_v7, %s14824_s6 }
 0x945   :  { %5590 = vrot.lane.b32.xlu1 %v5586_v37, %s10245_s22 }
 0x946   :  { %5372 = vmatpush.bf16.msrb.mxu3 %v9235_v43  ;;  %5398 = vmatpush.bf16.msrb.mxu1 %v9239_v5 }
 0x947   :  { %9355 = vmatmul.msk.bf16.vlgmr.msrb.gmra.mxu0 %vm314_vm15, %v12986_v30  ;;  %9354 = vmatmul.msk.bf16.vlgmr.msrb.gmra.mxu2 %vm314_vm15, %v12986_v30  ;;  %v5589_v30 = vperm.slane %v9358_v45, 3 }
 0x94a   :  { %5373 = vmatpush.bf16.msrb.mxu3 %v9219_v21  ;;  %5399 = vmatpush.bf16.msrb.mxu1 %v9223_v16 }
 0x94c   :  { %5594 = vrot.lane.b32.xlu0 %v5588_v41, %s10245_s22 }
 0x94d   :  { %5374 = vmatmul.bf16.vlgmr.msrb.gmra.mxu3 %v12991_v62  ;;  %5400 = vmatmul.bf16.vlgmr.msrb.gmra.mxu1 %v12991_v62  ;;  %v5671_v62 = vperm.slane %v13072_v2, 2 }
 0x94e   :  { %5596 = vrot.lane.b32.xlu1 %v5589_v30, %s10245_s22 }
 0x94f   :  { %5677 = vrot.lane.b32.xlu2 %v5671_v62, %s14824_s6 }
 0x954   :  { %5537 = vrot.lane.b32.xlu0 %v5532_v23, %s10246_s24 }
 0x957   :  { %5592 = vrot.lane.b32.xlu2 %v5587_v24, %s10245_s22 }
 0x95f   :  { %5535 = vrot.lane.b32.xlu2 %v5531_v12, %s10246_s24 }
 0x97e   :  { %v13129_v55 = vpop.permute.xlu2 %5785 }
 0x98e   :  { %v5729_v50 = vpop.permute.xlu2 %5728 }
 0x994   :  { %v5784_v54 = vpop.permute.xlu1 %5783  ;;  %v13131_v43 = vpop.permute.xlu0 %5787 }
 0x996   :  { %v13139_v7 = vpop.permute.xlu2 %5734 }
 0x99e   :  { %v13133_v5 = vpop.permute.xlu1 %5789 }
 0x9a6   :  { %v13135_v15 = vpop.permute.xlu0 %5730 }
 0x9a7   :  { %v13137_v38 = vpop.permute.xlu1 %5732 }
 0x9a9   :  { %v13143_v21 = vpop.permute.xlu2 %5677 }
 0x9aa   :  { %v5362_v19 = vpop.f32.mrf.mxu1 }
 0x9ae   :  { %v5674_v22 = vpop.permute.xlu0 %5673 }
 0x9af   :  { %v13141_v35 = vpop.permute.xlu1 %5675 }
 0x9b0   :  { %v5336_v58 = vpop.f32.mrf.mxu3 }
 0x9b1   :  { %v13147_v37 = vpop.permute.xlu2 %5592 }
 0x9b2   :  { %v5364_v11 = vpop.f32.mrf.mxu1 }
 0x9b4   :  { %v5349_v27 = vpop.f32.mrf.mxu0 }
 0x9b5   :  { %v5350_v8 = vadd.f32 %v5349_v27, %v5125_v49 }
 0x9b6   :  { %v13145_v16 = vpop.permute.xlu0 %5679 }
 0x9b7   :  { %v5363_v33 = vadd.f32 %v5362_v19, %v5350_v8  ;;  %v5591_v45 = vpop.permute.xlu1 %5590 }
 0x9b8   :  { %v5338_v57 = vpop.f32.mrf.mxu3 }
 0x9b9   :  { %v5419_v1 = vadd.f32 %v5363_v33, %v11389_v53  ;;  %v9356_v53 = vld [vmem:[%s14762_s29 + $0x1] ss:$8 sm:$0xf]  ;;  %v13153_v25 = vpop.permute.xlu2 %5535 }
 0x9ba   :  { %v5323_v20 = vpop.f32.mrf.mxu2  ;;  %v5477_v44 = vperm.slane %v9356_v53, 1  ;;  %v5476_v48 = vperm.slane %v9356_v53, 0  ;;  %v5479_v51 = vperm.slane %v9356_v53, 3  ;;  %v5478_v59 = vperm.slane %v9356_v53, 2 }
 0x9bb   :  { %v5324_v60 = vadd.f32 %v5323_v20, %v5125_v49  ;;  %5428 = vrot.lane.b32.xlu1 %v5419_v1, %s10241_s23  ;;  %v5736_v1 = vsel %vm471_vm5, %v5729_v50, %v13135_v15 }
 0x9bc   :  { %v5351_v32 = vpop.f32.mrf.mxu0 }
 0x9bd   :  { %v5337_v14 = vadd.f32 %v5336_v58, %v5324_v60  ;;  %v5451_v58 = vld [vmem:[%s14762_s29] ss:$8 sm:$0xf] }
 0x9be   :  { %v13149_v41 = vpop.permute.xlu0 %5594  ;;  %v5453_v11 = vperm.slane %v5451_v58, 0 }
 0x9bf   :  { %v5418_v56 = vadd.f32 %v5337_v14, %v11393_v17  ;;  %v9362_v17 = vld [vmem:[%s14762_s29 + $0x20] ss:$8 sm:$0xf] }
 0x9c0   :  { %v5834_v28 = vperm.slane %v9362_v17, 0  ;;  %v5837_v61 = vperm.slane %v9362_v17, 3  ;;  %v5836_v31 = vperm.slane %v9362_v17, 2  ;;  %v5835_v52 = vperm.slane %v9362_v17, 1  ;;  %v13151_v30 = vpop.permute.xlu1 %5596 }
 0x9c1   :  { %5426 = vrot.lane.b32.xlu0 %v5418_v56, %s10241_s23  ;;  %v5681_v56 = vsel %vm409_vm14, %v5674_v22, %v13141_v35 }
 0x9c2   :  { %v5325_v40 = vpop.f32.mrf.mxu2 }
 0x9c3   :  { %5539 = vrot.lane.b32.xlu1 %v5533_v10, %s10246_s24 }
 0x9c4   :  { %v5414_v63 = vpop.f32.mrf.mxu0 }
 0x9ca   :  { %v5401_v47 = vpop.f32.mrf.mxu1  ;;  %v5388_v2 = vpop.f32.mrf.mxu2 }
 0x9cb   :  { %v5402_v0 = vadd.f32 %v5401_v47, %v5125_v49  ;;  %5482 = vrot.lane.b32.xlu1 %v5477_v44, %s10247_s30 }
 0x9cc   :  { %v5416_v4 = vpop.f32.mrf.mxu0 }
 0x9cd   :  { %v5415_v34 = vadd.f32 %v5414_v63, %v5402_v0 }
 0x9cf   :  { %v5421_v9 = vadd.f32 %v5415_v34, %v11401_v36  ;;  %v5534_v36 = vperm.slane %v9357_v39, 3  ;;  %v13155_v39 = vpop.permute.xlu0 %5537 }
 0x9d0   :  { %v5375_v18 = vpop.f32.mrf.mxu3 }
 0x9d1   :  { %v5376_v6 = vadd.f32 %v5375_v18, %v5125_v49  ;;  %5432 = vrot.lane.b32.xlu0 %v5421_v9, %s10241_s23  ;;  %v5454_v49 = vperm.slane %v5451_v58, 1  ;;  %v5791_v9 = vsel %vm533_vm4, %v5784_v54, %v13129_v55 }
 0x9d2   :  { %v5403_v42 = vpop.f32.mrf.mxu1  ;;  %v5390_v46 = vpop.f32.mrf.mxu2 }
 0x9d3   :  { %v5389_v29 = vadd.f32 %v5388_v2, %v5376_v6  ;;  %5838 = vrot.lane.b32.xlu1 %v5834_v28, %s14780_s10 }
 0x9d5   :  { %v5420_v26 = vadd.f32 %v5389_v29, %v14867_v13 }
 0x9d7   :  { %5430 = vrot.lane.b32.xlu2 %v5420_v26, %s10241_s23 }
 0x9d8   :  { %v5377_v3 = vpop.f32.mrf.mxu3 }
 0x9d9   :  { %5480 = vrot.lane.b32.xlu0 %v5476_v48, %s10247_s30  ;;  %v5598_v48 = vsel %vm314_vm15, %v5591_v45, %v13147_v37  ;;  %v5456_v3 = vperm.slane %v5451_v58, 3 }
 0x9db   :  { %5844 = vrot.lane.b32.xlu1 %v5837_v61, %s14780_s10  ;;  %v5455_v61 = vperm.slane %v5451_v58, 2 }
 0x9df   :  { %5541 = vrot.lane.b32.xlu2 %v5534_v36, %s10246_s24 }
 0x9e1   :  { %5486 = vrot.lane.b32.xlu0 %v5479_v51, %s10247_s30 }
 0x9e7   :  { %5484 = vrot.lane.b32.xlu2 %v5478_v59, %s10247_s30 }
 0x9e9   :  { %5842 = vrot.lane.b32.xlu0 %v5836_v31, %s14780_s10 }
 0x9ef   :  { %5840 = vrot.lane.b32.xlu2 %v5835_v52, %s14780_s10 }
 0xa2d   :  { %v5429_v23 = vpop.permute.xlu1 %5428 }
 0xa31   :  { %v5431_v62 = vpop.permute.xlu2 %5430 }
 0xa32   :  { %v5435_v24 = vsel %vm60_vm0, %v5429_v23, %v5431_v62 }
 0xa33   :  { %5444 = vst [vmem:[#allocation2 + $0x10] sm:$0xf] %v5435_v24  ;;  %v5427_v19 = vpop.permute.xlu0 %5426 }
 0xa34   :  { %v5434_v12 = vsel %vm60_vm0, %v5427_v19, %v5429_v23  ;;  %5442 = vst.msk [vmem:[#allocation2] sm:$0xf] %vm14868_vm13, %v5427_v19  ;;  %vm14876_vm13 = vcmask 785408  }
 0xa35   :  { %5443 = vst [vmem:[#allocation2 + $0x8] sm:$0xf] %v5434_v12 }
 0xa3a   :  { %v5449_v36 = vld [vmem:[#allocation2 + $0x10] sm:$0xf] }
 0xa3b   :  { %v5447_v27 = vld [vmem:[#allocation2] sm:$0xf]  ;;  %v5463_v23 = vmul.f32 %v5455_v61, %v5449_v36 }
 0xa3c   :  { %v5634_v8 = vld [vmem:[#allocation2] sm:$0xf]  ;;  %v5448_v57 = vld [vmem:[#allocation2 + $0x8] sm:$0xf]  ;;  %v5461_v20 = vmul.f32 %v5453_v11, %v5447_v27 }
 0xa3d   :  { %v5717_v33 = vld [vmem:[#allocation2] sm:$0xf]  ;;  %v5635_v60 = vld [vmem:[#allocation2 + $0x8] sm:$0xf]  ;;  %v5462_v10 = vmul.f32 %v5454_v49, %v5448_v57  ;;  %v5540_v49 = vpop.permute.xlu1 %5539  ;;  %v5738_v57 = vsel %vm471_vm5, %v13137_v38, %v13139_v7 }
 0xa3e   :  { %v5718_v32 = vld [vmem:[#allocation2 + $0x8] sm:$0xf]  ;;  %v5744_v14 = vmul.f32 %v5729_v50, %v5717_v33  ;;  %v5639_v40 = vpack.c.bf16 %v5635_v60, %v5634_v8  ;;  %v5662_v53 = vld [vmem:[#allocation2] sm:$0xf]  ;;  %v13182_v33 = vpop.permute.xlu2 %5541  ;;  %v5719_v60 = vld [vmem:[#allocation2 + $0x10] sm:$0xf] }
 0xa3f   :  { %v5745_v63 = vmul.f32 %v5736_v1, %v5718_v32  ;;  %v5663_v44 = vld [vmem:[#allocation2 + $0x8] sm:$0xf]  ;;  %v5689_v47 = vmul.f32 %v5674_v22, %v5662_v53  ;;  %v5772_v2 = vld [vmem:[#allocation2] sm:$0xf]  ;;  %v5465_v4 = vpack.c.bf16 %v5462_v10, %v5461_v20  ;;  %v5774_v1 = vld [vmem:[#allocation2 + $0x10] sm:$0xf]  ;;  %v5792_v32 = vsel %vm533_vm4, %v13129_v55, %v13131_v43 }
 0xa40   :  { %v5690_v0 = vmul.f32 %v5681_v56, %v5663_v44  ;;  %v5773_v34 = vld [vmem:[#allocation2 + $0x8] sm:$0xf]  ;;  %5645 = vrot.lane.b32.xlu2 %v5639_v40, %s10250_s0  ;;  %v5799_v28 = vmul.f32 %v5784_v54, %v5772_v2  ;;  %v5579_v13 = vld [vmem:[#allocation2] sm:$0xf]  ;;  %v5636_v54 = vld [vmem:[#allocation2 + $0x10] sm:$0xf]  ;;  %v5737_v56 = vsel %vm471_vm5, %v13135_v15, %v13137_v38  ;;  %v5801_v10 = vmul.f32 %v5792_v32, %v5774_v1 }
 0xa41   :  { %v5749_v17 = vpack.c.bf16 %v5745_v63, %v5744_v14  ;;  %5467 = vst [vmem:[#allocation3] sm:$0x33] %v5465_v4  ;;  %v5800_v6 = vmul.f32 %v5791_v9, %v5773_v34  ;;  %v5580_v26 = vld [vmem:[#allocation2 + $0x8] sm:$0xf]  ;;  %v5606_v51 = vmul.f32 %v5591_v45, %v5579_v13  ;;  %v5793_v45 = vsel %vm533_vm4, %v13131_v43, %v13133_v5  ;;  %v5524_v2 = vld [vmem:[#allocation2] sm:$0xf] }
 0xa42   :  { %v5694_v18 = vpack.c.bf16 %v5690_v0, %v5689_v47  ;;  %v5607_v59 = vmul.f32 %v5598_v48, %v5580_v26  ;;  %v5746_v40 = vmul.f32 %v5737_v56, %v5719_v60  ;;  %v5525_v34 = vld [vmem:[#allocation2 + $0x8] sm:$0xf]  ;;  %v5600_v55 = vsel %vm314_vm15, %v13149_v41, %v13151_v30  ;;  %v5581_v43 = vld [vmem:[#allocation2 + $0x10] sm:$0xf] }
 0xa43   :  { %5755 = vrot.lane.b32.xlu1 %v5749_v17, %s14790_s3  ;;  %v5433_v42 = vpop.permute.xlu0 %5432  ;;  %v5804_v46 = vpack.c.bf16 %v5800_v6, %v5799_v28  ;;  %v5683_v15 = vsel %vm409_vm14, %v13143_v21, %v13145_v16  ;;  %v5543_v38 = vsel %vm252_vm1, %v13153_v25, %v13155_v39  ;;  %v5664_v9 = vld [vmem:[#allocation2 + $0x10] sm:$0xf]  ;;  %v5551_v6 = vmul.f32 %v13153_v25, %v5524_v2 }
 0xa44   :  { %5700 = vrot.lane.b32.xlu0 %v5694_v18, %s14781_s5  ;;  %v5436_v29 = vsel %vm60_vm0, %v5431_v62, %v5433_v42  ;;  %5446 = vst.msk [vmem:[#allocation2 + $0x20] sm:$0xf] %vm14869_vm9, %v5433_v42  ;;  %v5611_v19 = vpack.c.bf16 %v5607_v59, %v5606_v51  ;;  %v5599_v18 = vsel %vm314_vm15, %v13147_v37, %v13149_v41  ;;  %v5526_v25 = vld [vmem:[#allocation2 + $0x10] sm:$0xf]  ;;  %vm14877_vm9 = vcmask 908288  }
 0xa45   :  { %5445 = vst [vmem:[#allocation2 + $0x18] sm:$0xf] %v5436_v29  ;;  %v5552_v42 = vmul.f32 %v5543_v38, %v5525_v34  ;;  %v5608_v13 = vmul.f32 %v5599_v18, %v5581_v43  ;;  %v5545_v61 = vsel %vm252_vm1, %v5540_v49, %v13182_v33 }
 0xa46   :  { %v5485_v28 = vpop.permute.xlu2 %5484 }
 0xa48   :  { %5810 = vrot.lane.b32.xlu2 %v5804_v46, %s14769_s4  ;;  %v5682_v46 = vsel %vm409_vm14, %v13141_v35, %v13143_v21  ;;  %v5469_v35 = vld [vmem:[#allocation2] sm:$0xf]  ;;  %v5470_v21 = vld [vmem:[#allocation2 + $0x8] sm:$0xf] }
 0xa49   :  { %v5691_v26 = vmul.f32 %v5682_v46, %v5664_v9 }
 0xa4b   :  { %v5776_v31 = vld [vmem:[#allocation2 + $0x20] sm:$0xf]  ;;  %v5481_v0 = vpop.permute.xlu0 %5480 }
 0xa4c   :  { %v5450_v52 = vld [vmem:[#allocation2 + $0x18] sm:$0xf]  ;;  %v5803_v22 = vmul.f32 %v13133_v5, %v5776_v31  ;;  %v5721_v58 = vld [vmem:[#allocation2 + $0x20] sm:$0xf] }
 0xa4d   :  { %v5637_v50 = vld [vmem:[#allocation2 + $0x18] sm:$0xf]  ;;  %v5464_v62 = vmul.f32 %v5456_v3, %v5450_v52  ;;  %v5748_v5 = vmul.f32 %v13139_v7, %v5721_v58  ;;  %v5483_v7 = vpop.permute.xlu1 %5482  ;;  %v5556_v3 = vpack.c.bf16 %v5552_v42, %v5551_v6  ;;  %v5666_v41 = vld [vmem:[#allocation2 + $0x20] sm:$0xf]  ;;  %v5544_v52 = vsel %vm252_vm1, %v13155_v39, %v5540_v49  ;;  %v5471_v49 = vld [vmem:[#allocation2 + $0x10] sm:$0xf] }
 0xa4e   :  { %v5640_v24 = vpack.c.bf16 %v5637_v50, %v5636_v54  ;;  %v5806_v12 = vpack.c.bf16 %v5803_v22, %v5803_v22  ;;  %v5775_v11 = vld [vmem:[#allocation2 + $0x18] sm:$0xf]  ;;  %v5488_v37 = vsel %vm14870_vm2, %v5481_v0, %v5483_v7  ;;  %v5496_v54 = vmul.f32 %v5481_v0, %v5469_v35  ;;  %v5638_v32 = vld [vmem:[#allocation2 + $0x20] sm:$0xf]  ;;  %v5829_v0 = vld [vmem:[#allocation2 + $0x10] sm:$0xf] }
 0xa4f   :  { %v5466_v27 = vpack.c.bf16 %v5464_v62, %v5463_v23  ;;  %v5720_v8 = vld [vmem:[#allocation2 + $0x18] sm:$0xf]  ;;  %v5802_v20 = vmul.f32 %v5793_v45, %v5775_v11  ;;  %v5751_v53 = vpack.c.bf16 %v5748_v5, %v5748_v5  ;;  %v5497_v50 = vmul.f32 %v5488_v37, %v5470_v21  ;;  %v5831_v9 = vld [vmem:[#allocation2 + $0x20] sm:$0xf] }
 0xa50   :  { %5647 = vrot.lane.b32.xlu0 %v5640_v24, %s10250_s0  ;;  %5617 = vrot.lane.b32.xlu2 %v5611_v19, %s14771_s1  ;;  %v5747_v14 = vmul.f32 %v5738_v57, %v5720_v8  ;;  %v5582_v47 = vld [vmem:[#allocation2 + $0x18] sm:$0xf]  ;;  %v5693_v22 = vmul.f32 %v13145_v16, %v5666_v41  ;;  %v5553_v23 = vmul.f32 %v5544_v52, %v5526_v25  ;;  %v5841_v24 = vpop.permute.xlu2 %5840  ;;  %v5828_v16 = vld [vmem:[#allocation2 + $0x8] sm:$0xf]  ;;  %vm14878_vm2 = vcmask 777216  }
 0xa51   :  { %5814 = vrot.lane.b32.xlu1 %v5806_v12, %s14769_s4  ;;  %5468 = vst [vmem:[#allocation3 + $0x8] sm:$0x33] %v5466_v27  ;;  %v5805_v63 = vpack.c.bf16 %v5802_v20, %v5801_v10  ;;  %v5665_v4 = vld [vmem:[#allocation2 + $0x18] sm:$0xf]  ;;  %v5609_v17 = vmul.f32 %v5600_v55, %v5582_v47  ;;  %v5501_v12 = vpack.c.bf16 %v5497_v50, %v5496_v54  ;;  %v5827_v20 = vld [vmem:[#allocation2] sm:$0xf] }
 0xa52   :  { %v5750_v44 = vpack.c.bf16 %v5747_v14, %v5746_v40  ;;  %v5692_v29 = vmul.f32 %v5683_v15, %v5665_v4  ;;  %v5527_v51 = vld [vmem:[#allocation2 + $0x18] sm:$0xf]  ;;  %v5696_v27 = vpack.c.bf16 %v5693_v22, %v5693_v22  ;;  %v5489_v8 = vsel %vm14873_vm7, %v5483_v7, %v5485_v28  ;;  %v5528_v47 = vld [vmem:[#allocation2 + $0x20] sm:$0xf] }
 0xa53   :  { %v5612_v48 = vpack.c.bf16 %v5609_v17, %v5608_v13  ;;  %v5487_v59 = vpop.permute.xlu0 %5486  ;;  %v5554_v31 = vmul.f32 %v5545_v61, %v5527_v51  ;;  %v5472_v45 = vld [vmem:[#allocation2 + $0x18] sm:$0xf]  ;;  %v5498_v57 = vmul.f32 %v5489_v8, %v5471_v49  ;;  %v5555_v43 = vmul.f32 %v13182_v33, %v5528_v47  ;;  %v5473_v17 = vld [vmem:[#allocation2 + $0x20] sm:$0xf] }
 0xa54   :  { %v5695_v36 = vpack.c.bf16 %v5692_v29, %v5691_v26  ;;  %v5490_v11 = vsel %vm14871_vm10, %v5485_v28, %v5487_v59  ;;  %v5830_v2 = vld [vmem:[#allocation2 + $0x18] sm:$0xf]  ;;  %v5500_v18 = vmul.f32 %v5487_v59, %v5473_v17  ;;  %vm14879_vm10 = vmmov %vm14878_vm2  ;;  %vm14881_vm7 = vcmask 916480  }
 0xa55   :  { %v5839_v62 = vpop.permute.xlu1 %5838  ;;  %v5557_v19 = vpack.c.bf16 %v5554_v31, %v5553_v23  ;;  %v5499_v39 = vmul.f32 %v5490_v11, %v5472_v45  ;;  %v5558_v7 = vpack.c.bf16 %v5555_v43, %v5555_v43 }
 0xa56   :  { %v5846_v58 = vsel %vm14872_vm6, %v5839_v62, %v5841_v24  ;;  %v5854_v5 = vmul.f32 %v5839_v62, %v5827_v20  ;;  %v5503_v6 = vpack.c.bf16 %v5500_v18, %v5500_v18  ;;  %vm14880_vm6 = vmmov %vm14876_vm13 }
 0xa57   :  { %v5855_v1 = vmul.f32 %v5846_v58, %v5828_v16  ;;  %v5502_v56 = vpack.c.bf16 %v5499_v39, %v5498_v57 }
 0xa58   :  { %5812 = vrot.lane.b32.xlu0 %v5805_v63, %s14769_s4  ;;  %5757 = vrot.lane.b32.xlu2 %v5750_v44, %s14790_s3  ;;  %v5583_v44 = vld [vmem:[#allocation2 + $0x20] sm:$0xf] }
 0xa59   :  { %5759 = vrot.lane.b32.xlu1 %v5751_v53, %s14790_s3  ;;  %v5859_v10 = vpack.c.bf16 %v5855_v1, %v5854_v5  ;;  %v5641_v53 = vpack.c.bf16 %v5638_v32, %v5638_v32  ;;  %v5610_v55 = vmul.f32 %v13151_v30, %v5583_v44 }
 0xa5b   :  { %v5843_v60 = vpop.permute.xlu0 %5842  ;;  %v5613_v38 = vpack.c.bf16 %v5610_v55, %v5610_v55  ;;  %v9471_v55 = vld [vmem:[#allocation3 + $0xd0] sm:$0xf0] }
 0xa5c   :  { %v5847_v40 = vsel %vm14874_vm12, %v5841_v24, %v5843_v60  ;;  %vm14882_vm12 = vcmask 1031168  }
 0xa5d   :  { %v5845_v14 = vpop.permute.xlu1 %5844  ;;  %v5856_v34 = vmul.f32 %v5847_v40, %v5829_v0 }
 0xa5e   :  { %v5848_v63 = vsel %vm14875_vm8, %v5843_v60, %v5845_v14  ;;  %v5858_v28 = vmul.f32 %v5845_v14, %v5831_v9  ;;  %v10059_v60 = vld [vmem:[#allocation3 + $0xec] sm:$0xf0]  ;;  %vm14883_vm8 = vmmov %vm14882_vm12 }
 0xa5f   :  { %v5857_v4 = vmul.f32 %v5848_v63, %v5830_v2 }
 0xa60   :  { %5619 = vrot.lane.b32.xlu0 %v5612_v48, %s14771_s1  ;;  %5562 = vrot.lane.b32.xlu2 %v5556_v3, %s14772_s26  ;;  %v5861_v42 = vpack.c.bf16 %v5858_v28, %v5858_v28 }
 0xa61   :  { %5702 = vrot.lane.b32.xlu1 %v5695_v36, %s14781_s5  ;;  %v5860_v15 = vpack.c.bf16 %v5857_v4, %v5856_v34  ;;  %v10055_v4 = vld [vmem:[#allocation3 + $0xcc] sm:$0xf0] }
 0xa68   :  { %5564 = vrot.lane.b32.xlu0 %v5557_v19, %s14772_s26  ;;  %5507 = vrot.lane.b32.xlu2 %v5501_v12, %s14773_s21 }
 0xa69   :  { %5704 = vrot.lane.b32.xlu1 %v5696_v27, %s14781_s5 }
 0xa70   :  { %5509 = vrot.lane.b32.xlu0 %v5502_v56, %s14773_s21  ;;  %5865 = vrot.lane.b32.xlu2 %v5859_v10, %s14770_s2  ;;  %v9487_v10 = vld [vmem:[#allocation3 + $0xf0] sm:$0xf0] }
 0xa71   :  { %5649 = vrot.lane.b32.xlu1 %v5641_v53, %s10250_s0 }
 0xa78   :  { %5867 = vrot.lane.b32.xlu0 %v5860_v15, %s14770_s2  ;;  %5566 = vrot.lane.b32.xlu2 %v5558_v7, %s14772_s26 }
 0xa79   :  { %5621 = vrot.lane.b32.xlu1 %v5613_v38, %s14771_s1 }
 0xa80   :  { %5511 = vrot.lane.b32.xlu0 %v5503_v6, %s14773_s21 }
 0xa81   :  { %5869 = vrot.lane.b32.xlu1 %v5861_v42, %s14770_s2 }
 0xa9a   :  { %v5646_v30 = vpop.permute.xlu2 %5645 }
 0xa9b   :  { %v5651_v41 = vrot.slane %v5646_v30, 4 }
 0xaa2   :  { %v5811_v33 = vpop.permute.xlu2 %5810 }
 0xaa3   :  { %v5816_v54 = vrot.slane %v5811_v33, 4 }
 0xaaa   :  { %v5618_v29 = vpop.permute.xlu2 %5617 }
 0xaab   :  { %v5623_v16 = vrot.slane %v5618_v29, 4 }
 0xab2   :  { %v5758_v46 = vpop.permute.xlu2 %5757 }
 0xab3   :  { %v5762_v26 = vrot.slane %v5758_v46, 4 }
 0xab5   :  { %v5756_v13 = vpop.permute.xlu1 %5755 }
 0xab6   :  { %v5761_v48 = vrot.slane %v5756_v13, 4  ;;  %v5701_v36 = vpop.permute.xlu0 %5700 }
 0xab7   :  { %v5706_v1 = vrot.slane %v5701_v36, 4 }
 0xab8   :  { %v5764_v61 = vsel %vm218_vm3, %v5761_v48, %v5762_v26 }
 0xab9   :  { %v5765_v3 = vsel %vm14876_vm13, %v5756_v13, %v5764_v61  ;;  %vm14884_vm13 = vcmask 1039360  }
 0xaba   :  { %5770 = vst [vmem:[#allocation3 + $0xc0] sm:$0x33] %v5765_v3  ;;  %v13244_v51 = vpop.permute.xlu2 %5562 }
 0xabb   :  { %v5568_v2 = vrot.slane %v13244_v51, 4 }
 0xac1   :  { %v9469_v47 = vld [vmem:[#allocation3 + $0xc0] sm:$0xf]  ;;  %v10053_v0 = vld [vmem:[#allocation3 + $0xc4] sm:$0xf] }
 0xac2   :  { %v13246_v37 = vpop.permute.xlu0 %5647  ;;  %v13249_v21 = vpop.permute.xlu2 %5507  ;;  %v9470_v7 = vor.u32 %v10055_v4, %v9469_v47  ;;  %v9474_v17 = vor.u32 %v10053_v0, %v9471_v55  ;;  %v9391_v0 = vld [vmem:[#allocation3 + $0x30] sm:$0xf0]  ;;  %v9373_v55 = vld [vmem:[#allocation3] sm:$0xf] }
 0xac3   :  { %v5652_v25 = vrot.slane %v13246_v37, 4  ;;  %v5815_v35 = vpop.permute.xlu1 %5814 }
 0xac4   :  { %v5818_v50 = vrot.slane %v5815_v35, 4 }
 0xac5   :  { %v5654_v59 = vsel %vm218_vm3, %v5651_v41, %v5652_v25  ;;  %v5513_v41 = vrot.slane %v13249_v21, 4 }
 0xac6   :  { %v5655_v31 = vsel %vm14877_vm9, %v5646_v30, %v5654_v59 }
 0xac7   :  { %5660 = vst [vmem:[#allocation3 + $0x80] sm:$0x33] %v5655_v31  ;;  %v10047_v31 = vld [vmem:[#allocation3 + $0x8c] sm:$0xf0] }
 0xaca   :  { %v5813_v52 = vpop.permute.xlu0 %5812  ;;  %v13260_v58 = vpop.permute.xlu2 %5865 }
 0xacb   :  { %v5817_v22 = vrot.slane %v5813_v52, 4  ;;  %v5760_v23 = vpop.permute.xlu1 %5759 }
 0xacc   :  { %v5763_v62 = vrot.slane %v5760_v23, 4 }
 0xacd   :  { %v5819_v24 = vsel %vm218_vm3, %v5816_v54, %v5817_v22  ;;  %v5821_v19 = vsel %vm218_vm3, %v5817_v22, %v5818_v50 }
 0xace   :  { %v5820_v12 = vsel %vm14878_vm2, %v5811_v33, %v5819_v24  ;;  %v5822_v11 = vsel %vm14879_vm10, %v5813_v52, %v5821_v19  ;;  %v5766_v27 = vsel %vm218_vm3, %v5762_v26, %v5763_v62  ;;  %v10051_v33 = vld [vmem:[#allocation3 + $0xac] sm:$0xf0]  ;;  %v9437_v3 = vld [vmem:[#allocation3 + $0x80] sm:$0xf]  ;;  %v9439_v52 = vld [vmem:[#allocation3 + $0x90] sm:$0xf0] }
 0xacf   :  { %5825 = vst [vmem:[#allocation3 + $0xe0] sm:$0x33] %v5820_v12  ;;  %v5767_v8 = vsel %vm14880_vm6, %v5758_v46, %v5766_v27  ;;  %v9438_v50 = vor.u32 %v10047_v31, %v9437_v3  ;;  %v10043_v27 = vld [vmem:[#allocation3 + $0x6c] sm:$0xf0]  ;;  %vm14885_vm2 = vcmask 769024   ;;  %vm14886_vm10 = vmmov %vm14881_vm7 }
 0xad0   :  { %5826 = vst [vmem:[#allocation3 + $0xe8] sm:$0x33] %v5822_v11  ;;  %vm14888_vm6 = vmmov %vm14884_vm13  ;;  %v10060_v31 = vld [vmem:[#allocation3 + $0xf4] sm:$0xf0] }
 0xad1   :  { %5771 = vst [vmem:[#allocation3 + $0xc8] sm:$0x33] %v5767_v8  ;;  %v9423_v8 = vld [vmem:[#allocation3 + $0x70] sm:$0xf0] }
 0xad2   :  { %v13263_v45 = vpop.permute.xlu0 %5619  ;;  %v5567_v44 = vpop.permute.xlu2 %5566 }
 0xad3   :  { %v5624_v39 = vrot.slane %v13263_v45, 4  ;;  %v5703_v49 = vpop.permute.xlu1 %5702  ;;  %v5570_v43 = vrot.slane %v5567_v44, 4 }
 0xad4   :  { %v5707_v57 = vrot.slane %v5703_v49, 4 }
 0xad5   :  { %v5626_v20 = vsel %vm218_vm3, %v5623_v16, %v5624_v39 }
 0xad6   :  { %v5627_v32 = vsel %vm14881_vm7, %v5618_v29, %v5626_v20  ;;  %v5709_v5 = vsel %vm218_vm3, %v5706_v1, %v5707_v57  ;;  %v9485_v14 = vld [vmem:[#allocation3 + $0xe0] sm:$0xf]  ;;  %v10057_v56 = vld [vmem:[#allocation3 + $0xe4] sm:$0xf]  ;;  %v9455_v29 = vld [vmem:[#allocation3 + $0xb0] sm:$0xf0] }
 0xad7   :  { %5632 = vst [vmem:[#allocation3 + $0x60] sm:$0x33] %v5627_v32  ;;  %v5710_v40 = vsel %vm439_vm11, %v5701_v36, %v5709_v5  ;;  %v9486_v63 = vor.u32 %v10059_v60, %v9485_v14  ;;  %v9490_v53 = vor.u32 %v10057_v56, %v9487_v10  ;;  %v10045_v36 = vld [vmem:[#allocation3 + $0x84] sm:$0xf]  ;;  %v5871_v20 = vrot.slane %v13260_v58, 4  ;;  %vm14889_vm7 = vmmov %vm14885_vm2 }
 0xad8   :  { %5715 = vst [vmem:[#allocation3 + $0xa0] sm:$0x33] %v5710_v40  ;;  %v9442_v22 = vor.u32 %v10045_v36, %v9439_v52  ;;  %v10039_v32 = vld [vmem:[#allocation3 + $0x4c] sm:$0xf0]  ;;  %v9407_v5 = vld [vmem:[#allocation3 + $0x50] sm:$0xf0] }
 0xad9   :  { %6120 = vmatpush.bf16.msra.mxu2 %v9486_v63  ;;  %6148 = vmatpush.bf16.msra.mxu0 %v9490_v53  ;;  %v10035_v40 = vld [vmem:[#allocation3 + $0x2c] sm:$0xf0]  ;;  %v10058_v36 = vld [vmem:[#allocation3 + $0xec] sm:$0xf]  ;;  %v9495_v52 = vld [vmem:[#allocation3 + $0xf8] sm:$0xf0] }
 0xada   :  { %v5565_v34 = vpop.permute.xlu0 %5564 }
 0xadb   :  { %v5569_v15 = vrot.slane %v5565_v34, 4  ;;  %v5705_v38 = vpop.permute.xlu1 %5704 }
 0xadc   :  { %v5708_v9 = vrot.slane %v5705_v38, 4 }
 0xadd   :  { %v5571_v18 = vsel %vm218_vm3, %v5568_v2, %v5569_v15  ;;  %v5573_v28 = vsel %vm218_vm3, %v5569_v15, %v5570_v43  ;;  %6121 = vmatpush.bf16.msra.mxu2 %v9470_v7  ;;  %6149 = vmatpush.bf16.msra.mxu0 %v9474_v17  ;;  %v10029_v43 = vld [vmem:[#allocation3 + $0x4] sm:$0xf]  ;;  %v10028_v15 = vld [vmem:[%s14887_s16 + $0x4] sm:$0xf0] }
 0xade   :  { %v5572_v6 = vsel %vm14882_vm12, %v13244_v51, %v5571_v18  ;;  %v5574_v42 = vsel %vm14883_vm8, %v5565_v34, %v5573_v28  ;;  %v5711_v30 = vsel %vm218_vm3, %v5707_v57, %v5708_v9  ;;  %v9421_v62 = vld [vmem:[#allocation3 + $0x60] sm:$0xf]  ;;  %v10041_v24 = vld [vmem:[#allocation3 + $0x64] sm:$0xf]  ;;  %v10031_v17 = vld [vmem:[#allocation3 + $0xc] sm:$0xf0] }
 0xadf   :  { %5577 = vst [vmem:[#allocation3 + $0x40] sm:$0x33] %v5572_v6  ;;  %v5712_v46 = vsel %vm439_vm11, %v5703_v49, %v5711_v30  ;;  %v9453_v13 = vld [vmem:[#allocation3 + $0xa0] sm:$0xf]  ;;  %v10049_v26 = vld [vmem:[#allocation3 + $0xa4] sm:$0xf]  ;;  %v9422_v16 = vor.u32 %v10043_v27, %v9421_v62  ;;  %v9426_v49 = vor.u32 %v10041_v24, %v9423_v8  ;;  %v9374_v18 = vor.u32 %v10031_v17, %v9373_v55 }
 0xae0   :  { %5578 = vst [vmem:[#allocation3 + $0x48] sm:$0x33] %v5574_v42  ;;  %v9454_v48 = vor.u32 %v10051_v33, %v9453_v13  ;;  %v9458_v61 = vor.u32 %v10049_v26, %v9455_v29  ;;  %v10063_v6 = vld [vmem:[#allocation3 + $0x10c] sm:$0xf0]  ;;  %v9503_v42 = vld [vmem:[#allocation3 + $0x110] sm:$0xf0] }
 0xae1   :  { %5716 = vst [vmem:[#allocation3 + $0xa8] sm:$0x33] %v5712_v46  ;;  %v9493_v29 = vld [vmem:[#allocation3 + $0xe8] sm:$0xf]  ;;  %v10027_v46 = vld [vmem:[%s14887_s16 + $0x4] sm:$0xf] }
 0xae2   :  { %6122 = vmatpush.bf16.msra.mxu2 %v9454_v48  ;;  %6150 = vmatpush.bf16.msra.mxu0 %v9458_v61  ;;  %v13280_v51 = vpop.permute.xlu0 %5509  ;;  %v9367_v13 = vld [vmem:[%s14887_s16 + $0x8] sm:$0xf0]  ;;  %v9479_v27 = vld [vmem:[#allocation3 + $0xd8] sm:$0xf0]  ;;  %vm14890_vm12 = vcmask 277504   ;;  %vm14891_vm8 = vcmask 1047688  }
 0xae3   :  { %v5514_v35 = vrot.slane %v13280_v51, 4  ;;  %v5650_v59 = vpop.permute.xlu1 %5649  ;;  %v9524_v62 = vld [vmem:[%s14762_s29 + $0x7] ss:$8 sm:$0xf] }
 0xae4   :  { %v5653_v54 = vrot.slane %v5650_v59, 4  ;;  %v6832_v24 = vperm.slane %v9524_v62, 0 }
 0xae5   :  { %v5516_v23 = vsel %vm218_vm3, %v5513_v41, %v5514_v35 }
 0xae6   :  { %v5517_v19 = vsel %vm14884_vm13, %v13249_v21, %v5516_v23  ;;  %v5656_v12 = vsel %vm218_vm3, %v5652_v25, %v5653_v54  ;;  %6123 = vmatpush.bf16.msra.mxu2 %v9438_v50  ;;  %6151 = vmatpush.bf16.msra.mxu0 %v9442_v22  ;;  %v9405_v1 = vld [vmem:[#allocation3 + $0x40] sm:$0xf]  ;;  %v10037_v57 = vld [vmem:[#allocation3 + $0x44] sm:$0xf]  ;;  %v13324_v54 = vor.u32 %v10027_v46, %v9367_v13  ;;  %v9477_v22 = vld [vmem:[#allocation3 + $0xc8] sm:$0xf] }
 0xae7   :  { %5522 = vst [vmem:[#allocation3 + $0x20] sm:$0x33] %v5517_v19  ;;  %v5657_v11 = vsel %vm14877_vm9, %v13246_v37, %v5656_v12  ;;  %v9406_v56 = vor.u32 %v10039_v32, %v9405_v1  ;;  %v9410_v10 = vor.u32 %v10037_v57, %v9407_v5  ;;  %v9498_v50 = vor.u32 %v10058_v36, %v9495_v52  ;;  %v10054_v23 = vld [vmem:[#allocation3 + $0xcc] sm:$0xf]  ;;  %v10064_v1 = vld [vmem:[#allocation3 + $0x114] sm:$0xf0]  ;;  %vm14892_vm13 = vmmov %vm14890_vm12 }
 0xae8   :  { %5661 = vst [vmem:[#allocation3 + $0x88] sm:$0x33] %v5657_v11  ;;  %v6834_v19 = vperm.slane %v9524_v62, 2  ;;  %v6833_v12 = vperm.slane %v9524_v62, 1  ;;  %v10056_v11 = vld [vmem:[#allocation3 + $0xd4] sm:$0xf0]  ;;  %6836 = vrot.lane.b32.xlu1 %v6832_v24, %s10240_s20  ;;  %vm14893_vm9 = vmmov %vm14891_vm8 }
 0xae9   :  { %v9478_v8 = vor.u32 %v10056_v11, %v9477_v22  ;;  %v10050_v57 = vld [vmem:[#allocation3 + $0xac] sm:$0xf]  ;;  %v10052_v32 = vld [vmem:[#allocation3 + $0xb4] sm:$0xf0] }
 0xaea   :  { %6124 = vmatpush.bf16.msra.mxu2 %v9422_v16  ;;  %6152 = vmatpush.bf16.msra.mxu0 %v9426_v49  ;;  %v5868_v21 = vpop.permute.xlu0 %5867  ;;  %v9482_v16 = vor.u32 %v10054_v23, %v9479_v27  ;;  %v9461_v49 = vld [vmem:[#allocation3 + $0xa8] sm:$0xf]  ;;  %v10032_v52 = vld [vmem:[#allocation3 + $0x14] sm:$0xf0] }
 0xaeb   :  { %v5872_v60 = vrot.slane %v5868_v21, 4  ;;  %v5622_v25 = vpop.permute.xlu1 %5621  ;;  %6840 = vrot.lane.b32.xlu0 %v6834_v19, %s10240_s20  ;;  %6838 = vrot.lane.b32.xlu2 %v6833_v12, %s10240_s20  ;;  %v9521_v22 = vld [vmem:[%s14762_s29 + $0x3] ss:$8 sm:$0xf] }
 0xaec   :  { %v5625_v14 = vrot.slane %v5622_v25, 4  ;;  %v9511_v25 = vld [vmem:[#allocation3 + $0x118] sm:$0xf0]  ;;  %v6512_v23 = vperm.slane %v9521_v22, 0  ;;  %v6513_v24 = vperm.slane %v9521_v22, 1  ;;  %v6515_v12 = vperm.slane %v9521_v22, 3 }
 0xaed   :  { %v5874_v37 = vsel %vm218_vm3, %v5871_v20, %v5872_v60  ;;  %v9520_v19 = vld [vmem:[%s14762_s29 + $0x2] ss:$8 sm:$0xf] }
 0xaee   :  { %v5875_v63 = vsel %vm14885_vm2, %v13260_v58, %v5874_v37  ;;  %v5628_v53 = vsel %vm218_vm3, %v5624_v39, %v5625_v14  ;;  %6125 = vmatpush.bf16.msra.mxu2 %v9406_v56  ;;  %6153 = vmatpush.bf16.msra.mxu0 %v9410_v10  ;;  %v9389_v44 = vld [vmem:[#allocation3 + $0x20] sm:$0xf]  ;;  %v10033_v47 = vld [vmem:[#allocation3 + $0x24] sm:$0xf]  ;;  %v9365_v39 = vld [vmem:[%s14887_s16] sm:$0xf]  ;;  %v9462_v10 = vor.u32 %v10052_v32, %v9461_v49 }
 0xaef   :  { %5880 = vst [vmem:[#allocation3 + $0x100] sm:$0x33] %v5875_v63  ;;  %v5629_v2 = vsel %vm14886_vm10, %v13263_v45, %v5628_v53  ;;  %v9390_v34 = vor.u32 %v10035_v40, %v9389_v44  ;;  %v9394_v4 = vor.u32 %v10033_v47, %v9391_v0  ;;  %v9375_v45 = vld [vmem:[#allocation3 + $0x10] sm:$0xf0]  ;;  %v13312_v33 = vor.u32 %v10028_v15, %v9365_v39  ;;  %v9463_v14 = vld [vmem:[#allocation3 + $0xb8] sm:$0xf0]  ;;  %vm14895_vm10 = vmmov %vm14890_vm12 }
 0xaf0   :  { %5633 = vst [vmem:[#allocation3 + $0x68] sm:$0x33] %v5629_v2  ;;  %v9378_v28 = vor.u32 %v10029_v43, %v9375_v45  ;;  %v9466_v37 = vor.u32 %v10050_v57, %v9463_v14  ;;  %v6835_v40 = vperm.slane %v9524_v62, 3  ;;  %v9445_v63 = vld [vmem:[#allocation3 + $0x88] sm:$0xf]  ;;  %v6514_v62 = vperm.slane %v9521_v22, 2 }
 0xaf1   :  { %v10046_v53 = vld [vmem:[#allocation3 + $0x8c] sm:$0xf]  ;;  %v10048_v0 = vld [vmem:[#allocation3 + $0x94] sm:$0xf0]  ;;  %v9447_v2 = vld [vmem:[#allocation3 + $0x98] sm:$0xf0] }
 0xaf2   :  { %6126 = vmatpush.bf16.msra.mxu2 %v9390_v34  ;;  %6154 = vmatpush.bf16.msra.mxu0 %v9394_v4  ;;  %v5512_v58 = vpop.permute.xlu0 %5511  ;;  %v9446_v34 = vor.u32 %v10048_v0, %v9445_v63  ;;  %v9450_v4 = vor.u32 %v10046_v53, %v9447_v2  ;;  %v10044_v39 = vld [vmem:[#allocation3 + $0x74] sm:$0xf0]  ;;  %v9431_v15 = vld [vmem:[#allocation3 + $0x78] sm:$0xf0]  ;;  %v9413_v45 = vld [vmem:[#allocation3 + $0x48] sm:$0xf] }
 0xaf3   :  { %v5515_v38 = vrot.slane %v5512_v58, 4  ;;  %v5870_v7 = vpop.permute.xlu1 %5869  ;;  %6842 = vrot.lane.b32.xlu1 %v6835_v40, %s10240_s20  ;;  %v9522_v58 = vld [vmem:[%s14762_s29 + $0x5] ss:$8 sm:$0xf]  ;;  %v6425_v11 = vperm.slane %v9520_v19, 1  ;;  %v6424_v27 = vperm.slane %v9520_v19, 0 }
 0xaf4   :  { %v5873_v9 = vrot.slane %v5870_v7, 4  ;;  %v6657_v36 = vperm.slane %v9522_v58, 1  ;;  %v6427_v49 = vperm.slane %v9520_v19, 3  ;;  %v5921_v14 = vld [vmem:[%s14713_s13 + $0x8] sm:$0xff]  ;;  %v5920_v40 = vld [vmem:[%s14713_s13] sm:$0xff]  ;;  %vm14894_vm2 = vcmask 7168  }
 0xaf5   :  { %v5518_v30 = vsel %vm218_vm3, %v5514_v35, %v5515_v38  ;;  %v5925_v2 = vld [vmem:[%s14713_s13 + $0x28] sm:$0xff] }
 0xaf6   :  { %v5519_v26 = vsel %vm14888_vm6, %v13280_v51, %v5518_v30  ;;  %v5876_v48 = vsel %vm218_vm3, %v5872_v60, %v5873_v9  ;;  %6127 = vmatpush.bf16.msra.mxu2 %v9374_v18  ;;  %6155 = vmatpush.bf16.msra.mxu0 %v9378_v28  ;;  %v9501_v61 = vld [vmem:[#allocation3 + $0x100] sm:$0xf]  ;;  %v10061_v3 = vld [vmem:[#allocation3 + $0x104] sm:$0xf]  ;;  %v9494_v51 = vor.u32 %v10060_v31, %v9493_v29  ;;  %v10038_v9 = vld [vmem:[#allocation3 + $0x4c] sm:$0xf] }
 0xaf7   :  { %5523 = vst [vmem:[#allocation3 + $0x28] sm:$0x33] %v5519_v26  ;;  %v5877_v41 = vsel %vm14889_vm7, %v5868_v21, %v5876_v48  ;;  %v9502_v35 = vor.u32 %v10063_v6, %v9501_v61  ;;  %v9506_v59 = vor.u32 %v10061_v3, %v9503_v42  ;;  %v9523_v21 = vld [vmem:[%s14762_s29 + $0x6] ss:$8 sm:$0xf]  ;;  %v6656_v18 = vperm.slane %v9522_v58, 0  ;;  %vm14896_vm6 = vmmov %vm14894_vm2 }
 0xaf8   :  { %5881 = vst [vmem:[#allocation3 + $0x108] sm:$0x33] %v5877_v41  ;;  %v6745_v44 = vperm.slane %v9523_v21, 1  ;;  %v6744_v47 = vperm.slane %v9523_v21, 0  ;;  %v9429_v55 = vld [vmem:[#allocation3 + $0x68] sm:$0xf]  ;;  %vm14897_vm7 = vmmov %vm14894_vm2 }
 0xaf9   :  { %6128 = vmatmul.bf16.vlgmr.msra.gmra.mxu2 %v13312_v33  ;;  %6141 = vmatpush.bf16.msra.mxu3 %v9502_v35  ;;  %v10042_v43 = vld [vmem:[#allocation3 + $0x6c] sm:$0xf]  ;;  %v9430_v38 = vor.u32 %v10044_v39, %v9429_v55  ;;  %v6746_v17 = vperm.slane %v9523_v21, 2  ;;  %v6747_v28 = vperm.slane %v9523_v21, 3  ;;  %v10040_v6 = vld [vmem:[#allocation3 + $0x54] sm:$0xf0] }
 0xafa   :  { %6156 = vmatmul.bf16.vlgmr.msra.gmra.mxu0 %v13312_v33  ;;  %6169 = vmatpush.bf16.msra.mxu1 %v9506_v59  ;;  %v9434_v7 = vor.u32 %v10042_v43, %v9431_v15  ;;  %v9415_v42 = vld [vmem:[#allocation3 + $0x58] sm:$0xf0]  ;;  %v9414_v30 = vor.u32 %v10040_v6, %v9413_v45  ;;  %v10036_v26 = vld [vmem:[#allocation3 + $0x34] sm:$0xf0]  ;;  %v9381_v41 = vld [vmem:[#allocation3 + $0x8] sm:$0xf] }
 0xafb   :  { %6750 = vrot.lane.b32.xlu0 %v6745_v44, %s10242_s25  ;;  %6748 = vrot.lane.b32.xlu2 %v6744_v47, %s10242_s25  ;;  %v9418_v29 = vor.u32 %v10038_v9, %v9415_v42  ;;  %v9399_v48 = vld [vmem:[#allocation3 + $0x38] sm:$0xf0]  ;;  %v10030_v35 = vld [vmem:[#allocation3 + $0xc] sm:$0xf]  ;;  %v6659_v59 = vperm.slane %v9522_v58, 3  ;;  %v6658_v31 = vperm.slane %v9522_v58, 2 }
 0xafc   :  { %9515 = vmatmul.msk.bf16.vlgmr.msra.gmra.mxu3 %vm314_vm15, %v13324_v54  ;;  %6752 = vrot.lane.b32.xlu1 %v6746_v17, %s10242_s25  ;;  %v5924_v15 = vld [vmem:[%s14713_s13 + $0x20] sm:$0xff] }
 0xafd   :  { %6176 = vmatpush.bf16.msrb.mxu3 %v9494_v51  ;;  %9516 = vmatmul.msk.bf16.vlgmr.msra.gmra.mxu1 %vm314_vm15, %v13324_v54  ;;  %v9382_v51 = vor.u32 %v10032_v52, %v9381_v41  ;;  %v5922_v41 = vld [vmem:[%s14713_s13 + $0x10] sm:$0xff] }
 0xafe   :  { %6204 = vmatpush.bf16.msrb.mxu1 %v9498_v50  ;;  %v9397_v46 = vld [vmem:[#allocation3 + $0x28] sm:$0xf]  ;;  %v10034_v13 = vld [vmem:[#allocation3 + $0x2c] sm:$0xf] }
 0xaff   :  { %v9509_v20 = vld [vmem:[#allocation3 + $0x108] sm:$0xf]  ;;  %v10062_v60 = vld [vmem:[#allocation3 + $0x10c] sm:$0xf]  ;;  %v9398_v61 = vor.u32 %v10036_v26, %v9397_v46  ;;  %v9402_v3 = vor.u32 %v10034_v13, %v9399_v48  ;;  %v5923_v46 = vld [vmem:[%s14713_s13 + $0x18] sm:$0xff] }
 0xb00   :  { %v9510_v5 = vor.u32 %v10064_v1, %v9509_v20  ;;  %v9514_v56 = vor.u32 %v10062_v60, %v9511_v25  ;;  %v9525_v20 = vld [vmem:[%s14762_s29 + $0x20] ss:$8 sm:$0xf] }
 0xb01   :  { %6177 = vmatpush.bf16.msrb.mxu3 %v9478_v8  ;;  %v6426_v8 = vperm.slane %v9520_v19, 2  ;;  %v6920_v60 = vperm.slane %v9525_v20, 0  ;;  %v6922_v25 = vperm.slane %v9525_v20, 2  ;;  %v6923_v32 = vperm.slane %v9525_v20, 3 }
 0xb02   :  { %6205 = vmatpush.bf16.msrb.mxu1 %v9482_v16  ;;  %6197 = vmatpush.bf16.msrb.mxu2 %v9510_v5  ;;  %v6921_v5 = vperm.slane %v9525_v20, 1 }
 0xb03   :  { %6225 = vmatpush.bf16.msrb.mxu0 %v9514_v56  ;;  %6660 = vrot.lane.b32.xlu0 %v6656_v18, %s14824_s6 }
 0xb04   :  { %6754 = vrot.lane.b32.xlu2 %v6747_v28, %s10242_s25  ;;  %6662 = vrot.lane.b32.xlu1 %v6657_v36, %s14824_s6 }
 0xb05   :  { %6178 = vmatpush.bf16.msrb.mxu3 %v9462_v10 }
 0xb06   :  { %6206 = vmatpush.bf16.msrb.mxu1 %v9466_v37 }
 0xb09   :  { %6179 = vmatpush.bf16.msrb.mxu3 %v9446_v34  ;;  %9517 = vmatmul.msk.bf16.vlgmr.msrb.gmra.mxu2 %vm314_vm15, %v13324_v54 }
 0xb0a   :  { %6207 = vmatpush.bf16.msrb.mxu1 %v9450_v4  ;;  %9518 = vmatmul.msk.bf16.vlgmr.msrb.gmra.mxu0 %vm314_vm15, %v13324_v54  ;;  %v9383_v54 = vld [vmem:[#allocation3 + $0x18] sm:$0xf0] }
 0xb0b   :  { %v9386_v50 = vor.u32 %v10030_v35, %v9383_v54  ;;  %6666 = vrot.lane.b32.xlu0 %v6659_v59, %s14824_s6  ;;  %v5927_v54 = vld [vmem:[%s14713_s13 + $0x38] sm:$0xff] }
 0xb0c   :  { %6664 = vrot.lane.b32.xlu2 %v6658_v31, %s14824_s6  ;;  %6516 = vrot.lane.b32.xlu1 %v6512_v23, %s10245_s22 }
 0xb0d   :  { %6180 = vmatpush.bf16.msrb.mxu3 %v9430_v38 }
 0xb0e   :  { %6208 = vmatpush.bf16.msrb.mxu1 %v9434_v7 }
 0xb11   :  { %6181 = vmatpush.bf16.msrb.mxu3 %v9414_v30 }
 0xb12   :  { %6209 = vmatpush.bf16.msrb.mxu1 %v9418_v29 }
 0xb13   :  { %6520 = vrot.lane.b32.xlu0 %v6514_v62, %s10245_s22 }
 0xb14   :  { %6518 = vrot.lane.b32.xlu2 %v6513_v24, %s10245_s22  ;;  %6522 = vrot.lane.b32.xlu1 %v6515_v12, %s10245_s22 }
 0xb15   :  { %6182 = vmatpush.bf16.msrb.mxu3 %v9398_v61 }
 0xb16   :  { %6210 = vmatpush.bf16.msrb.mxu1 %v9402_v3 }
 0xb19   :  { %6183 = vmatpush.bf16.msrb.mxu3 %v9382_v51 }
 0xb1a   :  { %6211 = vmatpush.bf16.msrb.mxu1 %v9386_v50 }
 0xb1b   :  { %6430 = vrot.lane.b32.xlu0 %v6425_v11, %s10246_s24 }
 0xb1c   :  { %6184 = vmatmul.bf16.vlgmr.msrb.gmra.mxu3 %v13312_v33  ;;  %6428 = vrot.lane.b32.xlu2 %v6424_v27, %s10246_s24  ;;  %v5926_v27 = vld [vmem:[%s14713_s13 + $0x30] sm:$0xff] }
 0xb1d   :  { %6212 = vmatmul.bf16.vlgmr.msrb.gmra.mxu1 %v13312_v33  ;;  %v9519_v33 = vld [vmem:[%s14762_s29 + $0x1] ss:$8 sm:$0xf]  ;;  %6432 = vrot.lane.b32.xlu1 %v6426_v8, %s10246_s24 }
 0xb1e   :  { %v6336_v16 = vperm.slane %v9519_v33, 0  ;;  %v6337_v1 = vperm.slane %v9519_v33, 1  ;;  %v6339_v57 = vperm.slane %v9519_v33, 3  ;;  %v6338_v21 = vperm.slane %v9519_v33, 2 }
 0xb23   :  { %6340 = vrot.lane.b32.xlu0 %v6336_v16, %s10247_s30 }
 0xb24   :  { %6434 = vrot.lane.b32.xlu2 %v6427_v49, %s10246_s24 }
 0xb25   :  { %6342 = vrot.lane.b32.xlu1 %v6337_v1, %s10247_s30 }
 0xb2b   :  { %6346 = vrot.lane.b32.xlu0 %v6339_v57, %s10247_s30 }
 0xb2c   :  { %6344 = vrot.lane.b32.xlu2 %v6338_v21, %s10247_s30 }
 0xb2d   :  { %6924 = vrot.lane.b32.xlu1 %v6920_v60, %s14780_s10 }
 0xb33   :  { %6928 = vrot.lane.b32.xlu0 %v6922_v25, %s14780_s10 }
 0xb34   :  { %6926 = vrot.lane.b32.xlu2 %v6921_v5, %s14780_s10 }
 0xb35   :  { %6930 = vrot.lane.b32.xlu1 %v6923_v32, %s14780_s10 }
 0xb45   :  { %v13393_v63 = vpop.permute.xlu2 %6838 }
 0xb55   :  { %v13403_v17 = vpop.permute.xlu2 %6748 }
 0xb5a   :  { %v13423_v31 = vpop.permute.xlu1 %6836 }
 0xb5d   :  { %v13406_v42 = vpop.permute.xlu0 %6840 }
 0xb5e   :  { %v13409_v30 = vpop.permute.xlu2 %6754 }
 0xb65   :  { %v13438_v1 = vpop.permute.xlu1 %6842 }
 0xb66   :  { %v13416_v61 = vpop.permute.xlu2 %6664 }
 0xb6d   :  { %v13411_v29 = vpop.permute.xlu0 %6750 }
 0xb6e   :  { %v13429_v12 = vpop.permute.xlu2 %6518  ;;  %v13445_v25 = vpop.permute.xlu1 %6752 }
 0xb75   :  { %v13418_v36 = vpop.permute.xlu0 %6660 }
 0xb76   :  { %v13443_v60 = vpop.permute.xlu2 %6428 }
 0xb77   :  { %v6157_v56 = vpop.f32.mrf.mxu0 }
 0xb78   :  { %v6158_v10 = vadd.f32 %v6157_v56, %v5921_v14  ;;  %v13451_v14 = vpop.permute.xlu1 %6662 }
 0xb7a   :  { %v6171_v37 = vpop.f32.mrf.mxu1 }
 0xb7b   :  { %v6172_v53 = vadd.f32 %v6171_v37, %v6158_v10 }
 0xb7c   :  { %v6129_v44 = vpop.f32.mrf.mxu2 }
 0xb7d   :  { %v6233_v47 = vmax.f32 %v6172_v53, 0.0  ;;  %v6130_v0 = vadd.f32 %v6129_v44, %v5920_v40  ;;  %v13431_v11 = vpop.permute.xlu0 %6666 }
 0xb7e   :  { %v13449_v5 = vpop.permute.xlu2 %6434 }
 0xb7f   :  { %v6159_v34 = vpop.f32.mrf.mxu0  ;;  %6250 = vrot.lane.b32.xlu0 %v6233_v47, %s10241_s23  ;;  %v6143_v4 = vpop.f32.mrf.mxu3 }
 0xb80   :  { %v6160_v55 = vadd.f32 %v6159_v34, %v5925_v2  ;;  %v6144_v43 = vadd.f32 %v6143_v4, %v6130_v0  ;;  %v13459_v40 = vpop.permute.xlu1 %6516 }
 0xb82   :  { %v6232_v58 = vmax.f32 %v6144_v43, 0.0  ;;  %v6173_v39 = vpop.f32.mrf.mxu1 }
 0xb83   :  { %v6174_v38 = vadd.f32 %v6173_v39, %v6160_v55  ;;  %v13477_v55 = vld [vmem:[%s14762_s29] ss:$8 sm:$0xf] }
 0xb84   :  { %v6131_v7 = vpop.f32.mrf.mxu2  ;;  %6248 = vrot.lane.b32.xlu2 %v6232_v58, %s10241_s23  ;;  %v6300_v58 = vperm.slane %v13477_v55, 0 }
 0xb85   :  { %v6237_v45 = vmax.f32 %v6174_v38, 0.0  ;;  %v6132_v9 = vadd.f32 %v6131_v7, %v5924_v15  ;;  %v13440_v20 = vpop.permute.xlu0 %6520  ;;  %v6301_v15 = vperm.slane %v13477_v55, 1  ;;  %v13488_v38 = vsel %vm471_vm5, %v13403_v17, %v13411_v29 }
 0xb86   :  { %v13455_v10 = vpop.permute.xlu2 %6344  ;;  %v13493_v7 = vsel %vm409_vm14, %v13418_v36, %v13451_v14 }
 0xb87   :  { %6258 = vrot.lane.b32.xlu1 %v6237_v45, %s10241_s23  ;;  %v6145_v18 = vpop.f32.mrf.mxu3  ;;  %v6227_v26 = vpop.f32.mrf.mxu0 }
 0xb88   :  { %v6146_v28 = vadd.f32 %v6145_v18, %v6132_v9  ;;  %v13467_v0 = vpop.permute.xlu1 %6522 }
 0xb8a   :  { %v6236_v6 = vmax.f32 %v6146_v28, 0.0 }
 0xb8c   :  { %6256 = vrot.lane.b32.xlu0 %v6236_v6, %s10241_s23  ;;  %v6199_v35 = vpop.f32.mrf.mxu2 }
 0xb8d   :  { %v13447_v32 = vpop.permute.xlu0 %6430 }
 0xb8e   :  { %v6927_v53 = vpop.permute.xlu2 %6926 }
 0xb8f   :  { %v6229_v62 = vpop.f32.mrf.mxu0 }
 0xb90   :  { %v13469_v2 = vpop.permute.xlu1 %6432 }
 0xb94   :  { %v6201_v16 = vpop.f32.mrf.mxu2 }
 0xb95   :  { %v13453_v56 = vpop.permute.xlu0 %6340 }
 0xb98   :  { %v13472_v4 = vpop.permute.xlu1 %6342 }
 0xb9a   :  { %v6213_v13 = vpop.f32.mrf.mxu1 }
 0xb9b   :  { %v6214_v48 = vadd.f32 %v6213_v13, %v5923_v46 }
 0xb9d   :  { %v6228_v3 = vadd.f32 %v6227_v26, %v6214_v48  ;;  %v13457_v37 = vpop.permute.xlu0 %6346 }
 0xb9f   :  { %v6235_v59 = vmax.f32 %v6228_v3, 0.0  ;;  %v6185_v52 = vpop.f32.mrf.mxu3 }
 0xba0   :  { %v6186_v51 = vadd.f32 %v6185_v52, %v5922_v41  ;;  %v13479_v43 = vpop.permute.xlu1 %6924 }
 0xba1   :  { %6254 = vrot.lane.b32.xlu2 %v6235_v59, %s10241_s23  ;;  %v6932_v3 = vsel %vm14892_vm13, %v13479_v43, %v6927_v53 }
 0xba2   :  { %v6215_v50 = vpop.f32.mrf.mxu1  ;;  %v6200_v22 = vadd.f32 %v6199_v35, %v6186_v51 }
 0xba3   :  { %v6216_v23 = vadd.f32 %v6215_v50, %v5927_v54  ;;  %v6844_v54 = vsel %vm533_vm4, %v13423_v31, %v13393_v63 }
 0xba4   :  { %v6234_v24 = vmax.f32 %v6200_v22, 0.0 }
 0xba5   :  { %v6230_v19 = vadd.f32 %v6229_v62, %v6216_v23  ;;  %v13461_v44 = vpop.permute.xlu0 %6928 }
 0xba6   :  { %6252 = vrot.lane.b32.xlu1 %v6234_v24, %s10241_s23  ;;  %v13465_v47 = vsel %vm14890_vm12, %v6927_v53, %v13461_v44  ;;  %v6524_v24 = vsel %vm314_vm15, %v13459_v40, %v13429_v12  ;;  %vm14898_vm12 = vcmask 908288  }
 0xba7   :  { %v6239_v33 = vmax.f32 %v6230_v19, 0.0  ;;  %v6187_v8 = vpop.f32.mrf.mxu3  ;;  %vm14900_vm13 = vmmov %vm14898_vm12 }
 0xba8   :  { %v6188_v49 = vadd.f32 %v6187_v8, %v5926_v27  ;;  %v13515_v51 = vpop.permute.xlu1 %6930 }
 0xba9   :  { %6262 = vrot.lane.b32.xlu0 %v6239_v33, %s10241_s23 }
 0xbaa   :  { %v6202_v57 = vadd.f32 %v6201_v16, %v6188_v49 }
 0xbac   :  { %v6238_v21 = vmax.f32 %v6202_v57, 0.0 }
 0xbae   :  { %6260 = vrot.lane.b32.xlu2 %v6238_v21, %s10241_s23 }
 0xbde   :  { %v6249_v34 = vpop.permute.xlu2 %6248 }
 0xbdf   :  { %6280 = vst.msk [vmem:[#allocation2] sm:$0xff] %vm14891_vm8, %v6249_v34  ;;  %vm14899_vm8 = vcmask 777216  }
 0xbe6   :  { %v13482_v39 = vld [vmem:[#allocation2] sm:$0xff] }
 0xbe7   :  { %v6764_v18 = vmul.f32 %v13482_v39, %v13403_v17  ;;  %v6676_v28 = vmul.f32 %v13482_v39, %v13418_v36  ;;  %v6308_v6 = vmul.f32 %v13482_v39, %v6300_v58  ;;  %v6852_v23 = vmul.f32 %v13482_v39, %v13423_v31 }
 0xbe8   :  { %v6532_v57 = vmul.f32 %v13482_v39, %v13459_v40 }
 0xbf1   :  { %v13495_v45 = vpop.permute.xlu0 %6250 }
 0xbf2   :  { %v6264_v9 = vsel %vm60_vm0, %v6249_v34, %v13495_v45 }
 0xbf3   :  { %v6598_v46 = vpack.c.bf16 %v6264_v9, %v13482_v39  ;;  %v6765_v13 = vmul.f32 %v13488_v38, %v6264_v9  ;;  %v6677_v26 = vmul.f32 %v13493_v7, %v6264_v9  ;;  %v6309_v48 = vmul.f32 %v6301_v15, %v6264_v9 }
 0xbf4   :  { %v13510_v52 = vmul.f32 %v6932_v3, %v6264_v9  ;;  %v6853_v50 = vmul.f32 %v6844_v54, %v6264_v9  ;;  %v6533_v8 = vmul.f32 %v6524_v24, %v6264_v9 }
 0xbf5   :  { %6610 = vrot.lane.b32.xlu2 %v6598_v46, %s10250_s0  ;;  %v6774_v41 = vpack.c.bf16 %v6765_v13, %v6764_v18  ;;  %v6686_v35 = vpack.c.bf16 %v6677_v26, %v6676_v28  ;;  %v6316_v59 = vpack.c.bf16 %v6309_v48, %v6308_v6  ;;  %v6436_v18 = vsel %vm252_vm1, %v13443_v60, %v13447_v32 }
 0xbf6   :  { %v6862_v62 = vpack.c.bf16 %v6853_v50, %v6852_v23  ;;  %v6542_v34 = vpack.c.bf16 %v6533_v8, %v6532_v57  ;;  %v6445_v6 = vmul.f32 %v6436_v18, %v6264_v9  ;;  %v6348_v50 = vsel %vm14894_vm2, %v13453_v56, %v13472_v4  ;;  %vm14902_vm2 = vmmov %vm14899_vm8 }
 0xbf7   :  { %6786 = vrot.lane.b32.xlu0 %v6774_v41, %s14790_s3  ;;  %6698 = vrot.lane.b32.xlu1 %v6686_v35, %s14781_s5  ;;  %6320 = vst [vmem:[#allocation3] sm:$0xff] %v6316_v59  ;;  %v6444_v41 = vmul.f32 %v13482_v39, %v13443_v60 }
 0xbf9   :  { %v6259_v19 = vpop.permute.xlu1 %6258 }
 0xbfb   :  { %v6255_v22 = vpop.permute.xlu2 %6254 }
 0xbfc   :  { %6284 = vst.msk [vmem:[#allocation2 + $0x20] sm:$0xff] %vm60_vm0, %v6255_v22 }
 0xbfd   :  { %6874 = vrot.lane.b32.xlu2 %v6862_v62, %s14769_s4 }
 0xbfe   :  { %v6257_v27 = vpop.permute.xlu0 %6256 }
 0xbff   :  { %v13527_v33 = vsel %vm60_vm0, %v6257_v27, %v6259_v19  ;;  %6285 = vst.msk [vmem:[#allocation2 + $0x28] sm:$0xff] %vm14893_vm9, %v6257_v27  ;;  %v6357_v27 = vmul.f32 %v6348_v50, %v6264_v9  ;;  %v6302_v9 = vperm.slane %v13477_v55, 2  ;;  %vm14901_vm9 = vmmov %vm14899_vm8 }
 0xc00   :  { %v13537_v21 = vmul.f32 %v6932_v3, %v13527_v33  ;;  %v6313_v13 = vmul.f32 %v6301_v15, %v13527_v33  ;;  %v6858_v15 = vmul.f32 %v6844_v54, %v13527_v33 }
 0xc03   :  { %v13530_v16 = vld [vmem:[#allocation2 + $0x20] sm:$0xff] }
 0xc04   :  { %v6856_v49 = vmul.f32 %v13438_v1, %v13530_v16  ;;  %v6768_v48 = vmul.f32 %v13530_v16, %v13409_v30  ;;  %v6680_v62 = vmul.f32 %v13530_v16, %v13431_v11 }
 0xc05   :  { %6554 = vrot.lane.b32.xlu2 %v6542_v34, %s14771_s1  ;;  %v6538_v34 = vmul.f32 %v6524_v24, %v13527_v33 }
 0xc06   :  { %v6864_v53 = vpack.c.bf16 %v6856_v49, %v6856_v49  ;;  %v13544_v28 = vld [vmem:[#allocation2 + $0x28] sm:$0xff]  ;;  %v6776_v35 = vpack.c.bf16 %v6768_v48, %v6768_v48  ;;  %v6688_v49 = vpack.c.bf16 %v6680_v62, %v6680_v62  ;;  %v6450_v62 = vmul.f32 %v6436_v18, %v13527_v33 }
 0xc07   :  { %v6312_v46 = vmul.f32 %v6300_v58, %v13544_v28  ;;  %v6601_v26 = vpack.c.bf16 %v13527_v33, %v13544_v28  ;;  %v6857_v59 = vmul.f32 %v13423_v31, %v13544_v28  ;;  %v6454_v58 = vpack.c.bf16 %v6445_v6, %v6444_v41 }
 0xc08   :  { %6878 = vrot.lane.b32.xlu0 %v6864_v53, %s14769_s4  ;;  %v6356_v31 = vmul.f32 %v13482_v39, %v13453_v56  ;;  %v6261_v8 = vpop.permute.xlu2 %6260  ;;  %v6537_v54 = vmul.f32 %v13459_v40, %v13544_v28  ;;  %v6303_v53 = vperm.slane %v13477_v55, 3  ;;  %v6769_v24 = vmul.f32 %v13403_v17, %v13544_v28 }
 0xc09   :  { %v6318_v3 = vpack.c.bf16 %v6313_v13, %v6312_v46  ;;  %6616 = vrot.lane.b32.xlu1 %v6601_v26, %s10250_s0  ;;  %v6865_v23 = vpack.c.bf16 %v6858_v15, %v6857_v59  ;;  %v13576_v6 = vsel %vm60_vm0, %v6259_v19, %v6261_v8  ;;  %v6681_v13 = vmul.f32 %v13418_v36, %v13544_v28 }
 0xc0a   :  { %v6366_v57 = vpack.c.bf16 %v6357_v27, %v6356_v31  ;;  %v6545_v48 = vpack.c.bf16 %v6538_v34, %v6537_v54  ;;  %v6682_v36 = vmul.f32 %v13493_v7, %v13527_v33  ;;  %v6314_v17 = vmul.f32 %v6302_v9, %v13576_v6 }
 0xc0b   :  { %6322 = vst [vmem:[#allocation3 + $0x10] sm:$0xff] %v6318_v3  ;;  %v13615_v7 = vsel %vm409_vm14, %v13416_v61, %v13431_v11  ;;  %v6846_v34 = vsel %vm533_vm4, %v13406_v42, %v13438_v1 }
 0xc0c   :  { %v6689_v59 = vpack.c.bf16 %v6682_v36, %v6681_v13 }
 0xc0d   :  { %6466 = vrot.lane.b32.xlu2 %v6454_v58, %s14772_s26  ;;  %v6449_v58 = vmul.f32 %v13443_v60, %v13544_v28 }
 0xc0f   :  { %v6457_v60 = vpack.c.bf16 %v6450_v62, %v6449_v58  ;;  %v6438_v58 = vsel %vm252_vm1, %v13469_v2, %v13449_v5 }
 0xc10   :  { %6790 = vrot.lane.b32.xlu0 %v6776_v35, %s14790_s3 }
 0xc11   :  { %6880 = vrot.lane.b32.xlu1 %v6865_v23, %s14769_s4 }
 0xc15   :  { %6378 = vrot.lane.b32.xlu2 %v6366_v57, %s14773_s21  ;;  %v13638_v57 = vmul.f32 %v13465_v47, %v13576_v6 }
 0xc18   :  { %6702 = vrot.lane.b32.xlu0 %v6688_v49, %s14781_s5  ;;  %v6253_v46 = vpop.permute.xlu1 %6252 }
 0xc19   :  { %v13582_v40 = vsel %vm60_vm0, %v13495_v45, %v6253_v46  ;;  %v13585_v26 = vsel %vm60_vm0, %v6253_v46, %v6255_v22  ;;  %6560 = vrot.lane.b32.xlu1 %v6545_v48, %s14771_s1  ;;  %v6770_v45 = vmul.f32 %v13488_v38, %v13527_v33  ;;  %v13610_v38 = vsel %vm409_vm14, %v13451_v14, %v13416_v61 }
 0xc1a   :  { %v6310_v55 = vmul.f32 %v6302_v9, %v13582_v40  ;;  %v6311_v19 = vmul.f32 %v6303_v53, %v13585_v26  ;;  %v6678_v27 = vmul.f32 %v13610_v38, %v13582_v40  ;;  %v6679_v18 = vmul.f32 %v13615_v7, %v13585_v26 }
 0xc1b   :  { %v6263_v3 = vpop.permute.xlu0 %6262  ;;  %v6777_v15 = vpack.c.bf16 %v6770_v45, %v6769_v24  ;;  %v13623_v31 = vmul.f32 %v13465_v47, %v13582_v40  ;;  %v6934_v14 = vsel %vm14895_vm10, %v13461_v44, %v13515_v51  ;;  %v6599_v61 = vpack.c.bf16 %v13585_v26, %v13582_v40 }
 0xc1c   :  { %v13592_v41 = vsel %vm60_vm0, %v6261_v8, %v6263_v3  ;;  %6289 = vst.msk [vmem:[#allocation2 + $0x48] sm:$0xff] %vm60_vm0, %v6263_v3  ;;  %v6317_v22 = vpack.c.bf16 %v6311_v19, %v6310_v55  ;;  %v6361_v8 = vmul.f32 %v13453_v56, %v13544_v28  ;;  %v6687_v49 = vpack.c.bf16 %v6679_v18, %v6678_v27 }
 0xc1d   :  { %v6315_v35 = vmul.f32 %v6303_v53, %v13592_v41  ;;  %6792 = vrot.lane.b32.xlu2 %v6777_v15, %s14790_s3  ;;  %v13634_v54 = vmul.f32 %v6934_v14, %v13585_v26  ;;  %v13641_v53 = vmul.f32 %v6934_v14, %v13592_v41  ;;  %v6362_v44 = vmul.f32 %v6348_v50, %v13527_v33 }
 0xc1e   :  { %6321 = vst [vmem:[#allocation3 + $0x8] sm:$0xff] %v6317_v22  ;;  %v6845_v56 = vsel %vm533_vm4, %v13393_v63, %v13406_v42  ;;  %v6855_v33 = vmul.f32 %v6846_v34, %v13585_v26  ;;  %v6757_v63 = vsel %vm471_vm5, %v13411_v29, %v13445_v25  ;;  %v6758_v42 = vsel %vm471_vm5, %v13445_v25, %v13409_v30 }
 0xc1f   :  { %v6319_v23 = vpack.c.bf16 %v6315_v35, %v6314_v17  ;;  %v6951_v47 = vpack.c.bf16 %v13634_v54, %v13623_v31  ;;  %v6954_v9 = vpack.c.bf16 %v13641_v53, %v13638_v57  ;;  %v6369_v46 = vpack.c.bf16 %v6362_v44, %v6361_v8 }
 0xc20   :  { %6704 = vrot.lane.b32.xlu0 %v6689_v59, %s14781_s5  ;;  %v6854_v13 = vmul.f32 %v6845_v56, %v13582_v40  ;;  %v6766_v48 = vmul.f32 %v6757_v63, %v13582_v40  ;;  %v6767_v24 = vmul.f32 %v6758_v42, %v13585_v26  ;;  %v6602_v55 = vpack.c.bf16 %v13592_v41, %v13576_v6 }
 0xc21   :  { %6323 = vst [vmem:[#allocation3 + $0x18] sm:$0xff] %v6319_v23  ;;  %6472 = vrot.lane.b32.xlu1 %v6457_v60, %s14772_s26  ;;  %v6525_v29 = vsel %vm314_vm15, %v13429_v12, %v13440_v20  ;;  %v6526_v25 = vsel %vm314_vm15, %v13440_v20, %v13467_v0  ;;  %v6860_v45 = vmul.f32 %v6846_v34, %v13592_v41  ;;  %vm14903_vm10 = vcmask 916480  }
 0xc22   :  { %v6863_v50 = vpack.c.bf16 %v6855_v33, %v6854_v13  ;;  %v6775_v19 = vpack.c.bf16 %v6767_v24, %v6766_v48  ;;  %v6534_v3 = vmul.f32 %v6525_v29, %v13582_v40  ;;  %v6535_v36 = vmul.f32 %v6526_v25, %v13585_v26 }
 0xc23   :  { %v13680_v17 = vld [vmem:[#allocation2 + $0x48] sm:$0xff]  ;;  %v6859_v22 = vmul.f32 %v6845_v56, %v13576_v6  ;;  %v6437_v20 = vsel %vm252_vm1, %v13447_v32, %v13469_v2  ;;  %v6447_v62 = vmul.f32 %v6438_v58, %v13585_v26  ;;  %v6349_v2 = vsel %vm14896_vm6, %v13472_v4, %v13455_v10 }
 0xc24   :  { %v6543_v35 = vpack.c.bf16 %v6535_v36, %v6534_v3  ;;  %v6861_v12 = vmul.f32 %v13438_v1, %v13680_v17  ;;  %v6446_v23 = vmul.f32 %v6437_v20, %v13582_v40  ;;  %v6940_v1 = vmul.f32 %v13479_v43, %v13482_v39 }
 0xc25   :  { %6700 = vrot.lane.b32.xlu2 %v6687_v49, %s14781_s5  ;;  %v6866_v59 = vpack.c.bf16 %v6860_v45, %v6859_v22  ;;  %v6773_v27 = vmul.f32 %v13680_v17, %v13409_v30  ;;  %v6350_v39 = vsel %vm14897_vm7, %v13455_v10, %v13457_v37  ;;  %v6358_v14 = vmul.f32 %v6349_v2, %v13582_v40  ;;  %v7034_v45 = vld [vmem:[%s14714_s15] sm:$0xff] }
 0xc26   :  { %v6867_v15 = vpack.c.bf16 %v6861_v12, %v6861_v12  ;;  %v6455_v60 = vpack.c.bf16 %v6447_v62, %v6446_v23  ;;  %v6950_v32 = vpack.c.bf16 %v13510_v52, %v6940_v1  ;;  %v6540_v30 = vmul.f32 %v6526_v25, %v13592_v41 }
 0xc27   :  { %v6779_v18 = vpack.c.bf16 %v6773_v27, %v6773_v27  ;;  %v6539_v52 = vmul.f32 %v6525_v29, %v13576_v6  ;;  %v6685_v49 = vmul.f32 %v13680_v17, %v13431_v11  ;;  %v6772_v40 = vmul.f32 %v6758_v42, %v13592_v41 }
 0xc28   :  { %6612 = vrot.lane.b32.xlu0 %v6599_v61, %s10250_s0  ;;  %v6359_v61 = vmul.f32 %v6350_v39, %v13585_v26  ;;  %v6452_v26 = vmul.f32 %v6438_v58, %v13592_v41  ;;  %v6771_v44 = vmul.f32 %v6757_v63, %v13576_v6  ;;  %v6451_v56 = vmul.f32 %v6437_v20, %v13576_v6 }
 0xc29   :  { %6384 = vrot.lane.b32.xlu1 %v6369_v46, %s14773_s21  ;;  %v6546_v4 = vpack.c.bf16 %v6540_v30, %v6539_v52  ;;  %v6691_v10 = vpack.c.bf16 %v6685_v49, %v6685_v49  ;;  %v6684_v11 = vmul.f32 %v13615_v7, %v13592_v41  ;;  %v6683_v13 = vmul.f32 %v13610_v38, %v13576_v6 }
 0xc2a   :  { %v6367_v8 = vpack.c.bf16 %v6359_v61, %v6358_v14  ;;  %v6778_v34 = vpack.c.bf16 %v6772_v40, %v6771_v44  ;;  %v6458_v46 = vpack.c.bf16 %v6452_v26, %v6451_v56  ;;  %v6363_v63 = vmul.f32 %v6349_v2, %v13576_v6 }
 0xc2b   :  { %v6690_v33 = vpack.c.bf16 %v6684_v11, %v6683_v13  ;;  %v6600_v7 = vpack.c.bf16 %v13530_v16, %v13530_v16  ;;  %v6603_v38 = vpack.c.bf16 %v13680_v17, %v13680_v17  ;;  %v6536_v29 = vmul.f32 %v13530_v16, %v13467_v0 }
 0xc2c   :  { %v6541_v31 = vmul.f32 %v13680_v17, %v13467_v0  ;;  %v6453_v53 = vmul.f32 %v13680_v17, %v13449_v5  ;;  %v6360_v0 = vmul.f32 %v13530_v16, %v13457_v37  ;;  %vm14904_vm6 = vcmask 785408  }
 0xc2d   :  { %6618 = vrot.lane.b32.xlu2 %v6602_v55, %s10250_s0  ;;  %vm14905_vm7 = vmmov %vm14904_vm6 }
 0xc2e   :  { %v6368_v3 = vpack.c.bf16 %v6360_v0, %v6360_v0 }
 0xc30   :  { %6876 = vrot.lane.b32.xlu0 %v6863_v50, %s14769_s4  ;;  %v6364_v50 = vmul.f32 %v6350_v39, %v13592_v41  ;;  %v6945_v41 = vmul.f32 %v13479_v43, %v13544_v28  ;;  %v6448_v43 = vmul.f32 %v13530_v16, %v13449_v5  ;;  %v6544_v28 = vpack.c.bf16 %v6536_v29, %v6536_v29 }
 0xc31   :  { %6788 = vrot.lane.b32.xlu1 %v6775_v19, %s14790_s3  ;;  %v6944_v5 = vmul.f32 %v13515_v51, %v13530_v16  ;;  %v7035_v16 = vld [vmem:[%s14714_s15 + $0x8] sm:$0xff] }
 0xc32   :  { %v6370_v48 = vpack.c.bf16 %v6364_v50, %v6363_v63  ;;  %v6953_v6 = vpack.c.bf16 %v13537_v21, %v6945_v41  ;;  %v6456_v54 = vpack.c.bf16 %v6448_v43, %v6448_v43  ;;  %v6547_v21 = vpack.c.bf16 %v6541_v31, %v6541_v31 }
 0xc33   :  { %v6952_v22 = vpack.c.bf16 %v6944_v5, %v6944_v5 }
 0xc35   :  { %6882 = vrot.lane.b32.xlu2 %v6866_v59, %s14769_s4 }
 0xc38   :  { %6556 = vrot.lane.b32.xlu0 %v6543_v35, %s14771_s1  ;;  %v6949_v35 = vmul.f32 %v13515_v51, %v13680_v17 }
 0xc39   :  { %6884 = vrot.lane.b32.xlu1 %v6867_v15, %s14769_s4 }
 0xc3a   :  { %v6955_v59 = vpack.c.bf16 %v6949_v35, %v6949_v35 }
 0xc3d   :  { %6962 = vrot.lane.b32.xlu2 %v6950_v32, %s14770_s2 }
 0xc40   :  { %6468 = vrot.lane.b32.xlu0 %v6455_v60, %s14772_s26 }
 0xc41   :  { %6796 = vrot.lane.b32.xlu1 %v6779_v18, %s14790_s3 }
 0xc45   :  { %6562 = vrot.lane.b32.xlu2 %v6546_v4, %s14771_s1 }
 0xc48   :  { %6380 = vrot.lane.b32.xlu0 %v6367_v8, %s14773_s21 }
 0xc49   :  { %6708 = vrot.lane.b32.xlu1 %v6691_v10, %s14781_s5 }
 0xc4d   :  { %6474 = vrot.lane.b32.xlu2 %v6458_v46, %s14772_s26 }
 0xc4f   :  { %v13730_v42 = vpop.permute.xlu2 %6610 }
 0xc50   :  { %6794 = vrot.lane.b32.xlu0 %v6778_v34, %s14790_s3  ;;  %v6622_v46 = vrot.slane %v13730_v42, 4 }
 0xc51   :  { %6706 = vrot.lane.b32.xlu1 %v6690_v33, %s14781_s5 }
 0xc55   :  { %6386 = vrot.lane.b32.xlu2 %v6370_v48, %s14773_s21 }
 0xc57   :  { %v13741_v24 = vpop.permute.xlu2 %6874 }
 0xc58   :  { %6614 = vrot.lane.b32.xlu0 %v6600_v7, %s10250_s0  ;;  %v6886_v7 = vrot.slane %v13741_v24, 4 }
 0xc59   :  { %6620 = vrot.lane.b32.xlu1 %v6603_v38, %s10250_s0 }
 0xc5d   :  { %6970 = vrot.lane.b32.xlu2 %v6954_v9, %s14770_s2  ;;  %v6459_v9 = vpack.c.bf16 %v6453_v53, %v6453_v53 }
 0xc5f   :  { %v13755_v55 = vpop.permute.xlu2 %6554 }
 0xc60   :  { %6964 = vrot.lane.b32.xlu0 %v6951_v47, %s14770_s2  ;;  %v6365_v47 = vmul.f32 %v13680_v17, %v13457_v37  ;;  %v6566_v35 = vrot.slane %v13755_v55, 4 }
 0xc61   :  { %6968 = vrot.lane.b32.xlu1 %v6953_v6, %s14770_s2 }
 0xc62   :  { %v6371_v25 = vpack.c.bf16 %v6365_v47, %v6365_v47 }
 0xc65   :  { %6470 = vrot.lane.b32.xlu2 %v6456_v54, %s14772_s26 }
 0xc67   :  { %v13766_v57 = vpop.permute.xlu2 %6466 }
 0xc68   :  { %6558 = vrot.lane.b32.xlu0 %v6544_v28, %s14771_s1 }
 0xc69   :  { %6564 = vrot.lane.b32.xlu1 %v6547_v21, %s14771_s1  ;;  %v13777_v19 = vpop.permute.xlu0 %6786  ;;  %v6699_v37 = vpop.permute.xlu1 %6698 }
 0xc6a   :  { %v6710_v62 = vrot.slane %v6699_v37, 4 }
 0xc6d   :  { %6388 = vrot.lane.b32.xlu2 %v6371_v25, %s14773_s21 }
 0xc6f   :  { %v13779_v36 = vpop.permute.xlu2 %6378 }
 0xc70   :  { %6476 = vrot.lane.b32.xlu0 %v6459_v9, %s14772_s26  ;;  %v6798_v9 = vrot.slane %v13777_v19, 4 }
 0xc71   :  { %6382 = vrot.lane.b32.xlu1 %v6368_v3, %s14773_s21 }
 0xc75   :  { %7038 = vperm.xlu2 %10157, %v7034_v45  }
 0xc77   :  { %v13790_v20 = vpop.permute.xlu2 %6792 }
 0xc78   :  { %6966 = vrot.lane.b32.xlu0 %v6952_v22, %s14770_s2 }
 0xc79   :  { %6972 = vrot.lane.b32.xlu1 %v6955_v59, %s14770_s2 }
 0xc7a   :  { %v6879_v12 = vpop.permute.xlu0 %6878 }
 0xc7b   :  { %v6617_v58 = vpop.permute.xlu1 %6616  ;;  %v6888_v41 = vrot.slane %v6879_v12, 4 }
 0xc7c   :  { %v6625_v2 = vrot.slane %v6617_v58, 4 }
 0xc7f   :  { %v6701_v23 = vpop.permute.xlu2 %6700 }
 0xc80   :  { %7043 = vperm.xlu0 %10158, %v7035_v16   ;;  %v6711_v1 = vrot.slane %v6701_v23, 4 }
 0xc82   :  { %v6791_v15 = vpop.permute.xlu0 %6790  ;;  %v6716_v51 = vsel %vm218_vm3, %v6710_v62, %v6711_v1 }
 0xc83   :  { %v6881_v17 = vpop.permute.xlu1 %6880  ;;  %v6717_v60 = vsel %vm439_vm11, %v6699_v37, %v6716_v51  ;;  %v6800_v0 = vrot.slane %v6791_v15, 4 }
 0xc84   :  { %6728 = vst [vmem:[#allocation3 + $0xa0] sm:$0xff] %v6717_v60  ;;  %v6889_v10 = vrot.slane %v6881_v17, 4 }
 0xc87   :  { %v13798_v32 = vpop.permute.xlu2 %6618 }
 0xc88   :  { %v6626_v18 = vrot.slane %v13798_v32, 4 }
 0xc8a   :  { %v6703_v27 = vpop.permute.xlu0 %6702  ;;  %v6632_v61 = vsel %vm218_vm3, %v6625_v2, %v6626_v18 }
 0xc8b   :  { %v6712_v39 = vrot.slane %v6703_v27, 4  ;;  %v6561_v52 = vpop.permute.xlu1 %6560  ;;  %v6633_v8 = vsel %vm14898_vm12, %v6617_v58, %v6632_v61  ;;  %vm14906_vm12 = vmmov %vm14903_vm10 }
 0xc8c   :  { %6642 = vst [vmem:[#allocation3 + $0x90] sm:$0xff] %v6633_v8  ;;  %v6569_v6 = vrot.slane %v6561_v52, 4 }
 0xc8d   :  { %v6718_v14 = vsel %vm218_vm3, %v6711_v1, %v6712_v39 }
 0xc8e   :  { %v6719_v30 = vsel %vm439_vm11, %v6701_v23, %v6718_v14 }
 0xc8f   :  { %6729 = vst [vmem:[#allocation3 + $0xa8] sm:$0xff] %v6719_v30  ;;  %v13809_v4 = vpop.permute.xlu2 %6882 }
 0xc90   :  { %v6890_v40 = vrot.slane %v13809_v4, 4 }
 0xc92   :  { %v13807_v49 = vpop.permute.xlu0 %6704  ;;  %v6896_v26 = vsel %vm218_vm3, %v6889_v10, %v6890_v40 }
 0xc93   :  { %v6473_v44 = vpop.permute.xlu1 %6472  ;;  %v6897_v56 = vsel %vm14899_vm8, %v6881_v17, %v6896_v26  ;;  %vm14907_vm8 = vcmask 1031168  }
 0xc94   :  { %6906 = vst [vmem:[#allocation3 + $0xf0] sm:$0xff] %v6897_v56  ;;  %v6481_v12 = vrot.slane %v6473_v44, 4 }
 0xc97   :  { %v13816_v11 = vpop.permute.xlu2 %6962 }
 0xc9a   :  { %v13814_v34 = vpop.permute.xlu0 %6612 }
 0xc9b   :  { %v6623_v13 = vrot.slane %v13814_v34, 4  ;;  %v13825_v63 = vpop.permute.xlu1 %6384  ;;  %v10097_v1 = vld [vmem:[#allocation3 + $0xec] sm:$0xf0]  ;;  %v9650_v51 = vld [vmem:[#allocation3 + $0xf0] sm:$0xf0] }
 0xc9c   :  { %v6393_v8 = vrot.slane %v13825_v63, 4 }
 0xc9d   :  { %v6628_v33 = vsel %vm218_vm3, %v6622_v46, %v6623_v13 }
 0xc9e   :  { %v6629_v50 = vsel %vm14900_vm13, %v13730_v42, %v6628_v33  ;;  %vm14908_vm13 = vmmov %vm14902_vm2 }
 0xc9f   :  { %6640 = vst [vmem:[#allocation3 + $0x80] sm:$0xff] %v6629_v50  ;;  %v13828_v38 = vpop.permute.xlu2 %6562 }
 0xca0   :  { %v6570_v43 = vrot.slane %v13828_v38, 4 }
 0xca2   :  { %v6877_v48 = vpop.permute.xlu0 %6876  ;;  %v6576_v42 = vsel %vm218_vm3, %v6569_v6, %v6570_v43 }
 0xca3   :  { %v6887_v29 = vrot.slane %v6877_v48, 4  ;;  %v6789_v53 = vpop.permute.xlu1 %6788  ;;  %v6577_v47 = vsel %vm14903_vm10, %v6561_v52, %v6576_v42  ;;  %v6478_v52 = vrot.slane %v13766_v57, 4 }
 0xca4   :  { %v6799_v25 = vrot.slane %v6789_v53, 4  ;;  %6586 = vst [vmem:[#allocation3 + $0x70] sm:$0xff] %v6577_v47 }
 0xca5   :  { %v6892_v28 = vsel %vm218_vm3, %v6886_v7, %v6887_v29  ;;  %v6894_v31 = vsel %vm218_vm3, %v6887_v29, %v6888_v41  ;;  %v6390_v7 = vrot.slane %v13779_v36, 4 }
 0xca6   :  { %v6893_v54 = vsel %vm14901_vm9, %v13741_v24, %v6892_v28  ;;  %v6895_v21 = vsel %vm14902_vm2, %v6877_v48, %v6894_v31  ;;  %v6804_v3 = vsel %vm218_vm3, %v6798_v9, %v6799_v25  ;;  %v6806_v5 = vsel %vm218_vm3, %v6799_v25, %v6800_v0  ;;  %vm14909_vm9 = vmmov %vm14907_vm8 }
 0xca7   :  { %6905 = vst [vmem:[#allocation3 + $0xe8] sm:$0xff] %v6895_v21  ;;  %v6805_v45 = vsel %vm14904_vm6, %v13777_v19, %v6804_v3  ;;  %v6807_v24 = vsel %vm14905_vm7, %v6789_v53, %v6806_v5  ;;  %v13848_v22 = vpop.permute.xlu2 %6474  ;;  %vm14910_vm2 = vcmask 1039360   ;;  %v6801_v28 = vrot.slane %v13790_v20, 4  ;;  %vm14912_vm7 = vmmov %vm14904_vm6 }
 0xca8   :  { %6904 = vst [vmem:[#allocation3 + $0xe0] sm:$0xff] %v6893_v54  ;;  %v6482_v16 = vrot.slane %v13848_v22, 4  ;;  %vm14911_vm10 = vmmov %vm14910_vm2  ;;  %v6713_v3 = vrot.slane %v13807_v49, 4 }
 0xca9   :  { %6816 = vst [vmem:[#allocation3 + $0xc0] sm:$0xff] %v6805_v45 }
 0xcaa   :  { %v13846_v37 = vpop.permute.xlu0 %6556  ;;  %6817 = vst [vmem:[#allocation3 + $0xc8] sm:$0xff] %v6807_v24  ;;  %v6488_v19 = vsel %vm218_vm3, %v6481_v12, %v6482_v16 }
 0xcab   :  { %v6567_v59 = vrot.slane %v13846_v37, 4  ;;  %v6885_v23 = vpop.permute.xlu1 %6884  ;;  %v6489_v62 = vsel %vm14907_vm8, %v6473_v44, %v6488_v19 }
 0xcac   :  { %v6891_v17 = vrot.slane %v6885_v23, 4  ;;  %6498 = vst [vmem:[#allocation3 + $0x50] sm:$0xff] %v6489_v62 }
 0xcad   :  { %v6572_v58 = vsel %vm218_vm3, %v6566_v35, %v6567_v59 }
 0xcae   :  { %v6573_v15 = vsel %vm14906_vm12, %v13755_v55, %v6572_v58  ;;  %v6898_v14 = vsel %vm218_vm3, %v6890_v40, %v6891_v17  ;;  %vm14913_vm12 = vmmov %vm14907_vm8  ;;  %vm14914_vm8 = vcmask 908288  }
 0xcaf   :  { %6584 = vst [vmem:[#allocation3 + $0x60] sm:$0xff] %v6573_v15  ;;  %v9648_v60 = vld [vmem:[#allocation3 + $0xe0] sm:$0xf]  ;;  %v10095_v27 = vld [vmem:[#allocation3 + $0xe4] sm:$0xf]  ;;  %v6899_v61 = vsel %vm14908_vm13, %v13809_v4, %v6898_v14  ;;  %v6387_v30 = vpop.permute.xlu2 %6386  ;;  %vm14915_vm13 = vmmov %vm14910_vm2 }
 0xcb0   :  { %v9649_v2 = vor.u32 %v10097_v1, %v9648_v60  ;;  %v9653_v39 = vor.u32 %v10095_v27, %v9650_v51  ;;  %6907 = vst [vmem:[#allocation3 + $0xf8] sm:$0xff] %v6899_v61  ;;  %v6394_v26 = vrot.slane %v6387_v30, 4  ;;  %v9632_v51 = vld [vmem:[#allocation3 + $0xc0] sm:$0xf] }
 0xcb2   :  { %7238 = vmatpush.bf16.msra.mxu2 %v9649_v2  ;;  %7266 = vmatpush.bf16.msra.mxu0 %v9653_v39  ;;  %v6469_v55 = vpop.permute.xlu0 %6468  ;;  %v6400_v56 = vsel %vm218_vm3, %v6393_v8, %v6394_v26  ;;  %v10091_v2 = vld [vmem:[#allocation3 + $0xc4] sm:$0xf] }
 0xcb3   :  { %v6479_v10 = vrot.slane %v6469_v55, 4  ;;  %v6797_v46 = vpop.permute.xlu1 %6796  ;;  %v6401_v4 = vsel %vm14910_vm2, %v13825_v63, %v6400_v56  ;;  %vm14917_vm2 = vcmask 769024  }
 0xcb4   :  { %6410 = vst [vmem:[#allocation3 + $0x30] sm:$0xff] %v6401_v4  ;;  %v6803_v31 = vrot.slane %v6797_v46, 4  ;;  %v9600_v4 = vld [vmem:[#allocation3 + $0x80] sm:$0xf] }
 0xcb5   :  { %v6484_v44 = vsel %vm218_vm3, %v6478_v52, %v6479_v10  ;;  %v9616_v52 = vld [vmem:[#allocation3 + $0xa0] sm:$0xf] }
 0xcb6   :  { %v6485_v40 = vsel %vm14909_vm9, %v13766_v57, %v6484_v44  ;;  %vm14916_vm9 = vmmov %vm14914_vm8  ;;  %v6974_v44 = vrot.slane %v13816_v11, 4 }
 0xcb7   :  { %6496 = vst [vmem:[#allocation3 + $0x40] sm:$0xff] %v6485_v40  ;;  %v13875_v50 = vpop.permute.xlu2 %6970 }
 0xcba   :  { %v13873_v33 = vpop.permute.xlu0 %6380 }
 0xcbb   :  { %v6391_v48 = vrot.slane %v13873_v33, 4  ;;  %v6709_v6 = vpop.permute.xlu1 %6708 }
 0xcbc   :  { %v6715_v5 = vrot.slane %v6709_v6, 4  ;;  %v9602_v6 = vld [vmem:[#allocation3 + $0x90] sm:$0xf0] }
 0xcbd   :  { %v6396_v41 = vsel %vm218_vm3, %v6390_v7, %v6391_v48 }
 0xcbe   :  { %v6397_v57 = vsel %vm14911_vm10, %v13779_v36, %v6396_v41  ;;  %vm14918_vm10 = vmmov %vm14917_vm2 }
 0xcbf   :  { %6408 = vst [vmem:[#allocation3 + $0x20] sm:$0xff] %v6397_v57  ;;  %v6471_v29 = vpop.permute.xlu2 %6470  ;;  %v10085_v57 = vld [vmem:[#allocation3 + $0x8c] sm:$0xf0] }
 0xcc0   :  { %v6480_v54 = vrot.slane %v6471_v29, 4 }
 0xcc2   :  { %v6795_v63 = vpop.permute.xlu0 %6794  ;;  %v6486_v47 = vsel %vm218_vm3, %v6479_v10, %v6480_v54  ;;  %v10087_v10 = vld [vmem:[#allocation3 + $0xa4] sm:$0xf] }
 0xcc3   :  { %v6802_v42 = vrot.slane %v6795_v63, 4  ;;  %v6707_v0 = vpop.permute.xlu1 %6706  ;;  %v6487_v25 = vsel %vm14913_vm12, %v6469_v55, %v6486_v47  ;;  %v10079_v54 = vld [vmem:[#allocation3 + $0x64] sm:$0xf]  ;;  %v10081_v47 = vld [vmem:[#allocation3 + $0x6c] sm:$0xf0] }
 0xcc4   :  { %v6714_v45 = vrot.slane %v6707_v0, 4  ;;  %6497 = vst [vmem:[#allocation3 + $0x48] sm:$0xff] %v6487_v25 }
 0xcc5   :  { %v6808_v21 = vsel %vm218_vm3, %v6801_v28, %v6802_v42  ;;  %v6810_v53 = vsel %vm218_vm3, %v6802_v42, %v6803_v31  ;;  %v9601_v28 = vor.u32 %v10085_v57, %v9600_v4  ;;  %v9584_v42 = vld [vmem:[#allocation3 + $0x60] sm:$0xf] }
 0xcc6   :  { %v6809_v9 = vsel %vm14904_vm6, %v13790_v20, %v6808_v21  ;;  %v6811_v36 = vsel %vm14912_vm7, %v6795_v63, %v6810_v53  ;;  %v6720_v24 = vsel %vm218_vm3, %v6713_v3, %v6714_v45  ;;  %v6722_v35 = vsel %vm218_vm3, %v6714_v45, %v6715_v5  ;;  %v9568_v3 = vld [vmem:[#allocation3 + $0x40] sm:$0xf]  ;;  %v10075_v5 = vld [vmem:[#allocation3 + $0x44] sm:$0xf] }
 0xcc7   :  { %6818 = vst [vmem:[#allocation3 + $0xd0] sm:$0xff] %v6809_v9  ;;  %v6721_v12 = vsel %vm439_vm11, %v13807_v49, %v6720_v24  ;;  %v6723_v20 = vsel %vm439_vm11, %v6707_v0, %v6722_v35  ;;  %v6389_v19 = vpop.permute.xlu2 %6388  ;;  %v6978_v63 = vrot.slane %v13875_v50, 4  ;;  %v9586_v9 = vld [vmem:[#allocation3 + $0x70] sm:$0xf0]  ;;  %v9585_v0 = vor.u32 %v10081_v47, %v9584_v42 }
 0xcc8   :  { %6819 = vst [vmem:[#allocation3 + $0xd8] sm:$0xff] %v6811_v36  ;;  %v6395_v23 = vrot.slane %v6389_v19, 4  ;;  %v9589_v25 = vor.u32 %v10079_v54, %v9586_v9  ;;  %vm14919_vm6 = vcmask 916480   ;;  %v9687_v54 = vld [vmem:[%s14762_s29 + $0x7] ss:$8 sm:$0xf] }
 0xcc9   :  { %6730 = vst [vmem:[#allocation3 + $0xb0] sm:$0xff] %v6721_v12  ;;  %v10077_v12 = vld [vmem:[#allocation3 + $0x4c] sm:$0xf0]  ;;  %vm14920_vm7 = vmmov %vm14919_vm6  ;;  %v7950_v47 = vperm.slane %v9687_v54, 0  ;;  %v7952_v9 = vperm.slane %v9687_v54, 2 }
 0xcca   :  { %v6615_v58 = vpop.permute.xlu0 %6614  ;;  %6731 = vst [vmem:[#allocation3 + $0xb8] sm:$0xff] %v6723_v20  ;;  %v6402_v1 = vsel %vm218_vm3, %v6394_v26, %v6395_v23  ;;  %v9570_v20 = vld [vmem:[#allocation3 + $0x50] sm:$0xf0]  ;;  %v9569_v19 = vor.u32 %v10077_v12, %v9568_v3  ;;  %v9552_v23 = vld [vmem:[#allocation3 + $0x20] sm:$0xf]  ;;  %v7951_v3 = vperm.slane %v9687_v54, 1 }
 0xccb   :  { %v6624_v15 = vrot.slane %v6615_v58, 4  ;;  %v6621_v60 = vpop.permute.xlu1 %6620  ;;  %v6403_v49 = vsel %vm14915_vm13, %v6387_v30, %v6402_v1  ;;  %v10071_v1 = vld [vmem:[#allocation3 + $0x24] sm:$0xf]  ;;  %7954 = vrot.lane.b32.xlu0 %v7950_v47, %s10240_s20  ;;  %v9624_v12 = vld [vmem:[#allocation3 + $0xa8] sm:$0xf]  ;;  %7958 = vrot.lane.b32.xlu2 %v7952_v9, %s10240_s20 }
 0xccc   :  { %v6627_v14 = vrot.slane %v6621_v60, 4  ;;  %6411 = vst [vmem:[#allocation3 + $0x38] sm:$0xff] %v6403_v49  ;;  %v9530_v49 = vld [vmem:[%s14715_s14 + $0x8] sm:$0xf0]  ;;  %7956 = vrot.lane.b32.xlu1 %v7951_v3, %s10240_s20  ;;  %v9544_v47 = vld [vmem:[#allocation3 + $0x8] sm:$0xf] }
 0xccd   :  { %v6630_v62 = vsel %vm218_vm3, %v6623_v13, %v6624_v15  ;;  %v9573_v15 = vor.u32 %v10075_v5, %v9570_v20  ;;  %v10088_v20 = vld [vmem:[#allocation3 + $0xac] sm:$0xf] }
 0xcce   :  { %v6631_v17 = vsel %vm14914_vm8, %v13814_v34, %v6630_v62  ;;  %v10093_v27 = vld [vmem:[#allocation3 + $0xcc] sm:$0xf0]  ;;  %v9634_v39 = vld [vmem:[#allocation3 + $0xd0] sm:$0xf0]  ;;  %v6634_v13 = vsel %vm218_vm3, %v6626_v18, %v6627_v14  ;;  %v10083_v18 = vld [vmem:[#allocation3 + $0x84] sm:$0xf] }
 0xccf   :  { %6641 = vst [vmem:[#allocation3 + $0x88] sm:$0xff] %v6631_v17  ;;  %v9633_v61 = vor.u32 %v10093_v27, %v9632_v51  ;;  %v9637_v55 = vor.u32 %v10091_v2, %v9634_v39  ;;  %v6635_v34 = vsel %vm14916_vm9, %v13798_v32, %v6634_v13  ;;  %v9605_v31 = vor.u32 %v10083_v18, %v9602_v6  ;;  %v10073_v62 = vld [vmem:[#allocation3 + $0x2c] sm:$0xf0]  ;;  %v10098_v51 = vld [vmem:[#allocation3 + $0xf4] sm:$0xf0]  ;;  %vm14921_vm8 = vmmov %vm14915_vm13 }
 0xcd0   :  { %v10089_v30 = vld [vmem:[#allocation3 + $0xac] sm:$0xf0]  ;;  %v9618_v26 = vld [vmem:[#allocation3 + $0xb0] sm:$0xf0]  ;;  %6643 = vst [vmem:[#allocation3 + $0x98] sm:$0xff] %v6635_v34  ;;  %vm14922_vm13 = vmmov %vm14917_vm2 }
 0xcd1   :  { %7239 = vmatpush.bf16.msra.mxu2 %v9633_v61  ;;  %7267 = vmatpush.bf16.msra.mxu0 %v9637_v55  ;;  %v9617_v40 = vor.u32 %v10089_v30, %v9616_v52  ;;  %v9621_v46 = vor.u32 %v10087_v10, %v9618_v26  ;;  %v9658_v17 = vld [vmem:[#allocation3 + $0xf8] sm:$0xf0]  ;;  %v9553_v55 = vor.u32 %v10073_v62, %v9552_v23  ;;  %v9554_v52 = vld [vmem:[#allocation3 + $0x30] sm:$0xf0]  ;;  %v9656_v10 = vld [vmem:[#allocation3 + $0xe8] sm:$0xf] }
 0xcd2   :  { %v13910_v8 = vpop.permute.xlu0 %6964  ;;  %v9557_v30 = vor.u32 %v10071_v1, %v9554_v52  ;;  %v10096_v26 = vld [vmem:[#allocation3 + $0xec] sm:$0xf]  ;;  %v9657_v4 = vor.u32 %v10098_v51, %v9656_v10  ;;  %vm14923_vm9 = vmmov %vm14917_vm2  ;;  %v9576_v10 = vld [vmem:[#allocation3 + $0x48] sm:$0xf] }
 0xcd3   :  { %v6975_v56 = vrot.slane %v13910_v8, 4  ;;  %v6969_v41 = vpop.permute.xlu1 %6968  ;;  %v9661_v18 = vor.u32 %v10096_v26, %v9658_v17  ;;  %v7953_v17 = vperm.slane %v9687_v54, 3  ;;  %v10076_v26 = vld [vmem:[#allocation3 + $0x4c] sm:$0xf] }
 0xcd4   :  { %v6977_v29 = vrot.slane %v6969_v41, 4  ;;  %v10068_v9 = vld [vmem:[#allocation3 + $0xc] sm:$0xf] }
 0xcd5   :  { %v6980_v7 = vsel %vm218_vm3, %v6974_v44, %v6975_v56  ;;  %7240 = vmatpush.bf16.msra.mxu2 %v9617_v40  ;;  %7268 = vmatpush.bf16.msra.mxu0 %v9621_v46  ;;  %v9536_v44 = vld [vmem:[#allocation3] sm:$0xf]  ;;  %v10069_v40 = vld [vmem:[#allocation3 + $0xc] sm:$0xf0] }
 0xcd6   :  { %v6981_v32 = vsel %vm14917_vm2, %v13816_v11, %v6980_v7  ;;  %v6984_v21 = vsel %vm218_vm3, %v6977_v29, %v6978_v63  ;;  %v9538_v7 = vld [vmem:[#allocation3 + $0x10] sm:$0xf0]  ;;  %v10094_v29 = vld [vmem:[#allocation3 + $0xd4] sm:$0xf0]  ;;  %v9537_v42 = vor.u32 %v10069_v40, %v9536_v44  ;;  %7960 = vrot.lane.b32.xlu0 %v7953_v17, %s10240_s20  ;;  %vm14925_vm2 = vcmask 7168  }
 0xcd7   :  { %6992 = vst [vmem:[#allocation3 + $0x100] sm:$0xff] %v6981_v32  ;;  %v6985_v53 = vsel %vm14918_vm10, %v6969_v41, %v6984_v21  ;;  %v9528_v32 = vld [vmem:[%s14715_s14] sm:$0xf]  ;;  %v10066_v41 = vld [vmem:[%s14715_s14 + $0x4] sm:$0xf0]  ;;  %vm14927_vm10 = vcmask 277504  }
 0xcd8   :  { %6994 = vst [vmem:[#allocation3 + $0x110] sm:$0xff] %v6985_v53  ;;  %v10092_v53 = vld [vmem:[#allocation3 + $0xcc] sm:$0xf]  ;;  %v10086_v1 = vld [vmem:[#allocation3 + $0x94] sm:$0xf0] }
 0xcd9   :  { %7241 = vmatpush.bf16.msra.mxu2 %v9601_v28  ;;  %7269 = vmatpush.bf16.msra.mxu0 %v9605_v31  ;;  %v9642_v28 = vld [vmem:[#allocation3 + $0xd8] sm:$0xf0] }
 0xcda   :  { %v6559_v11 = vpop.permute.xlu0 %6558  ;;  %v9610_v51 = vld [vmem:[#allocation3 + $0x98] sm:$0xf0] }
 0xcdb   :  { %v6568_v36 = vrot.slane %v6559_v11, 4  ;;  %v6565_v35 = vpop.permute.xlu1 %6564  ;;  %v13958_v11 = vor.u32 %v10066_v41, %v9528_v32 }
 0xcdc   :  { %v6571_v58 = vrot.slane %v6565_v35, 4  ;;  %v9626_v35 = vld [vmem:[#allocation3 + $0xb8] sm:$0xf0] }
 0xcdd   :  { %v6574_v45 = vsel %vm218_vm3, %v6567_v59, %v6568_v36  ;;  %7242 = vmatpush.bf16.msra.mxu2 %v9585_v0  ;;  %7270 = vmatpush.bf16.msra.mxu0 %v9589_v25  ;;  %v9645_v25 = vor.u32 %v10092_v53, %v9642_v28  ;;  %v10074_v28 = vld [vmem:[#allocation3 + $0x34] sm:$0xf0] }
 0xcde   :  { %v6575_v24 = vsel %vm14919_vm6, %v13846_v37, %v6574_v45  ;;  %v6578_v59 = vsel %vm218_vm3, %v6570_v43, %v6571_v58  ;;  %v9664_v60 = vld [vmem:[#allocation3 + $0x100] sm:$0xf]  ;;  %v10065_v37 = vld [vmem:[%s14715_s14 + $0x4] sm:$0xf]  ;;  %v10099_v14 = vld [vmem:[#allocation3 + $0x104] sm:$0xf] }
 0xcdf   :  { %6585 = vst [vmem:[#allocation3 + $0x68] sm:$0xff] %v6575_v24  ;;  %v6579_v27 = vsel %vm14920_vm7, %v13828_v38, %v6578_v59  ;;  %v10101_v39 = vld [vmem:[#allocation3 + $0x10c] sm:$0xf0]  ;;  %v9666_v61 = vld [vmem:[#allocation3 + $0x110] sm:$0xf0]  ;;  %v13940_v46 = vor.u32 %v10065_v37, %v9530_v49  ;;  %vm14928_vm6 = vmmov %vm14927_vm10  ;;  %vm14929_vm7 = vcmask 1047688  }
 0xce0   :  { %6587 = vst [vmem:[#allocation3 + $0x78] sm:$0xff] %v6579_v27  ;;  %v9665_v13 = vor.u32 %v10101_v39, %v9664_v60  ;;  %v9669_v34 = vor.u32 %v10099_v14, %v9666_v61  ;;  %v10090_v24 = vld [vmem:[#allocation3 + $0xb4] sm:$0xf0]  ;;  %v10084_v60 = vld [vmem:[#allocation3 + $0x8c] sm:$0xf] }
 0xce1   :  { %7243 = vmatpush.bf16.msra.mxu2 %v9569_v19  ;;  %7271 = vmatpush.bf16.msra.mxu0 %v9573_v15  ;;  %v9625_v58 = vor.u32 %v10090_v24, %v9624_v12  ;;  %v9629_v19 = vor.u32 %v10088_v20, %v9626_v35  ;;  %v9686_v15 = vld [vmem:[%s14762_s29 + $0x6] ss:$8 sm:$0xf]  ;;  %v9683_v35 = vld [vmem:[%s14762_s29 + $0x2] ss:$8 sm:$0xf] }
 0xce2   :  { %v6477_v2 = vpop.permute.xlu0 %6476  ;;  %7259 = vmatpush.bf16.msra.mxu3 %v9665_v13  ;;  %7287 = vmatpush.bf16.msra.mxu1 %v9669_v34  ;;  %v7863_v37 = vperm.slane %v9686_v15, 1  ;;  %v7862_v39 = vperm.slane %v9686_v15, 0  ;;  %v7865_v40 = vperm.slane %v9686_v15, 3  ;;  %v7543_v12 = vperm.slane %v9683_v35, 1 }
 0xce3   :  { %v6483_v43 = vrot.slane %v6477_v2, 4  ;;  %v6383_v6 = vpop.permute.xlu1 %6382  ;;  %v9613_v2 = vor.u32 %v10084_v60, %v9610_v51  ;;  %v9682_v20 = vld [vmem:[%s14762_s29 + $0x1] ss:$8 sm:$0xf]  ;;  %v7039_v60 = vpop.permute.xlu2 %7038 }
 0xce4   :  { %v6392_v31 = vrot.slane %v6383_v6, 4  ;;  %7868 = vrot.lane.b32.xlu2 %v7863_v37, %s10242_s25  ;;  %7866 = vrot.lane.b32.xlu1 %v7862_v39, %s10242_s25 }
 0xce5   :  { %v6490_v38 = vsel %vm218_vm3, %v6482_v16, %v6483_v43  ;;  %7244 = vmatpush.bf16.msra.mxu2 %v9553_v55  ;;  %7272 = vmatpush.bf16.msra.mxu0 %v9557_v30  ;;  %v10067_v16 = vld [vmem:[#allocation3 + $0x4] sm:$0xf]  ;;  %v7864_v30 = vperm.slane %v9686_v15, 2  ;;  %v7455_v15 = vperm.slane %v9682_v20, 1 }
 0xce6   :  { %v6491_v57 = vsel %vm14913_vm12, %v13848_v22, %v6490_v38  ;;  %7294 = vmatpush.bf16.msrb.mxu3 %v9657_v4  ;;  %7322 = vmatpush.bf16.msrb.mxu1 %v9661_v18  ;;  %v9541_v21 = vor.u32 %v10067_v16, %v9538_v7  ;;  %v9640_v22 = vld [vmem:[#allocation3 + $0xc8] sm:$0xf]  ;;  %v6398_v36 = vsel %vm218_vm3, %v6391_v48, %v6392_v31  ;;  %v10080_v55 = vld [vmem:[#allocation3 + $0x6c] sm:$0xf]  ;;  %v9562_v31 = vld [vmem:[#allocation3 + $0x38] sm:$0xf0] }
 0xce7   :  { %6499 = vst [vmem:[#allocation3 + $0x58] sm:$0xff] %v6491_v57  ;;  %9678 = vmatmul.msk.bf16.vlgmr.msra.gmra.mxu3 %vm314_vm15, %v13940_v46  ;;  %v9641_v0 = vor.u32 %v10094_v29, %v9640_v22  ;;  %9679 = vmatmul.msk.bf16.vlgmr.msra.gmra.mxu1 %vm314_vm15, %v13940_v46  ;;  %v6399_v5 = vsel %vm14921_vm8, %v13873_v33, %v6398_v36  ;;  %v10082_v14 = vld [vmem:[#allocation3 + $0x74] sm:$0xf0]  ;;  %v9594_v61 = vld [vmem:[#allocation3 + $0x78] sm:$0xf0]  ;;  %vm14931_vm12 = vmmov %vm14929_vm7 }
 0xce8   :  { %6409 = vst [vmem:[#allocation3 + $0x28] sm:$0xff] %v6399_v5  ;;  %v9592_v43 = vld [vmem:[#allocation3 + $0x68] sm:$0xf]  ;;  %v9597_v52 = vor.u32 %v10080_v55, %v9594_v61  ;;  %7870 = vrot.lane.b32.xlu0 %v7864_v30, %s10242_s25  ;;  %v9546_v22 = vld [vmem:[#allocation3 + $0x18] sm:$0xf0] }
 0xce9   :  { %7245 = vmatpush.bf16.msra.mxu2 %v9537_v42  ;;  %7273 = vmatpush.bf16.msra.mxu0 %v9541_v21  ;;  %v9593_v13 = vor.u32 %v10082_v14, %v9592_v43  ;;  %v10070_v21 = vld [vmem:[#allocation3 + $0x14] sm:$0xf0] }
 0xcea   :  { %v6967_v45 = vpop.permute.xlu0 %6966  ;;  %7295 = vmatpush.bf16.msrb.mxu3 %v9641_v0  ;;  %7323 = vmatpush.bf16.msrb.mxu1 %v9645_v25  ;;  %v9545_v0 = vor.u32 %v10070_v21, %v9544_v47  ;;  %v9549_v25 = vor.u32 %v10068_v9, %v9546_v22  ;;  %v9684_v5 = vld [vmem:[%s14762_s29 + $0x3] ss:$8 sm:$0xf] }
 0xceb   :  { %v6976_v48 = vrot.slane %v6967_v45, 4  ;;  %v6973_v62 = vpop.permute.xlu1 %6972  ;;  %v7630_v45 = vperm.slane %v9684_v5, 0  ;;  %v7631_v24 = vperm.slane %v9684_v5, 1 }
 0xcec   :  { %7246 = vmatmul.bf16.vlgmr.msra.gmra.mxu2 %v13958_v11  ;;  %7274 = vmatmul.bf16.vlgmr.msra.gmra.mxu0 %v13958_v11  ;;  %v6979_v59 = vrot.slane %v6973_v62, 4  ;;  %v7456_v62 = vperm.slane %v9682_v20, 2 }
 0xced   :  { %v6982_v33 = vsel %vm218_vm3, %v6975_v56, %v6976_v48  ;;  %v9608_v56 = vld [vmem:[#allocation3 + $0x88] sm:$0xf]  ;;  %7872 = vrot.lane.b32.xlu1 %v7865_v40, %s10242_s25  ;;  %v7633_v48 = vperm.slane %v9684_v5, 3 }
 0xcee   :  { %v6983_v23 = vsel %vm14922_vm13, %v13910_v8, %v6982_v33  ;;  %7296 = vmatpush.bf16.msrb.mxu3 %v9625_v58  ;;  %7324 = vmatpush.bf16.msrb.mxu1 %v9629_v19  ;;  %v6986_v49 = vsel %vm218_vm3, %v6978_v63, %v6979_v59  ;;  %v9609_v27 = vor.u32 %v10086_v1, %v9608_v56  ;;  %v9685_v63 = vld [vmem:[%s14762_s29 + $0x5] ss:$8 sm:$0xf]  ;;  %v7544_v33 = vperm.slane %v9683_v35, 2 }
 0xcef   :  { %6993 = vst [vmem:[#allocation3 + $0x108] sm:$0xff] %v6983_v23  ;;  %v6987_v8 = vsel %vm14923_vm9, %v13875_v50, %v6986_v49  ;;  %v10078_v50 = vld [vmem:[#allocation3 + $0x54] sm:$0xf0]  ;;  %v9578_v34 = vld [vmem:[#allocation3 + $0x58] sm:$0xf0]  ;;  %v7774_v44 = vperm.slane %v9685_v63, 0 }
 0xcf0   :  { %6995 = vst [vmem:[#allocation3 + $0x118] sm:$0xff] %v6987_v8  ;;  %v9577_v38 = vor.u32 %v10078_v50, %v9576_v10  ;;  %v9581_v4 = vor.u32 %v10076_v26, %v9578_v34  ;;  %v9560_v7 = vld [vmem:[#allocation3 + $0x28] sm:$0xf]  ;;  %v10072_v32 = vld [vmem:[#allocation3 + $0x2c] sm:$0xf]  ;;  %v7775_v53 = vperm.slane %v9685_v63, 1 }
 0xcf1   :  { %7778 = vrot.lane.b32.xlu2 %v7774_v44, %s14824_s6  ;;  %v9561_v42 = vor.u32 %v10074_v28, %v9560_v7  ;;  %v9565_v54 = vor.u32 %v10072_v32, %v9562_v31  ;;  %v7777_v36 = vperm.slane %v9685_v63, 3  ;;  %v7776_v3 = vperm.slane %v9685_v63, 2  ;;  %v9688_v1 = vld [vmem:[%s14762_s29 + $0x20] ss:$8 sm:$0xf] }
 0xcf2   :  { %7297 = vmatpush.bf16.msrb.mxu3 %v9609_v27  ;;  %7325 = vmatpush.bf16.msrb.mxu1 %v9613_v2  ;;  %v7454_v58 = vperm.slane %v9682_v20, 0  ;;  %v7545_v19 = vperm.slane %v9683_v35, 3  ;;  %v7457_v23 = vperm.slane %v9682_v20, 3  ;;  %v8038_v51 = vperm.slane %v9688_v1, 0  ;;  %v7044_v43 = vpop.permute.xlu0 %7043 }
 0xcf3   :  { %7780 = vrot.lane.b32.xlu0 %v7775_v53, %s14824_s6  ;;  %v8040_v17 = vperm.slane %v9688_v1, 2  ;;  %v8039_v59 = vperm.slane %v9688_v1, 1  ;;  %v8041_v56 = vperm.slane %v9688_v1, 3  ;;  %vm14947_vm13 = vcmask 916480  }
 0xcf4   :  { %vm14948_vm9 = vcmask 785408  }
 0xcf5   :  { %7782 = vrot.lane.b32.xlu1 %v7776_v3, %s14824_s6 }
 0xcf6   :  { %7298 = vmatpush.bf16.msrb.mxu3 %v9593_v13  ;;  %7326 = vmatpush.bf16.msrb.mxu1 %v9597_v52  ;;  %v9672_v18 = vld [vmem:[#allocation3 + $0x108] sm:$0xf]  ;;  %v10100_v57 = vld [vmem:[#allocation3 + $0x10c] sm:$0xf] }
 0xcf7   :  { %v10102_v41 = vld [vmem:[#allocation3 + $0x114] sm:$0xf0]  ;;  %v9674_v6 = vld [vmem:[#allocation3 + $0x118] sm:$0xf0] }
 0xcf8   :  { %v9673_v16 = vor.u32 %v10102_v41, %v9672_v18  ;;  %v9677_v29 = vor.u32 %v10100_v57, %v9674_v6 }
 0xcf9   :  { %7784 = vrot.lane.b32.xlu2 %v7777_v36, %s14824_s6 }
 0xcfa   :  { %7299 = vmatpush.bf16.msrb.mxu3 %v9577_v38  ;;  %7327 = vmatpush.bf16.msrb.mxu1 %v9581_v4 }
 0xcfb   :  { %7315 = vmatpush.bf16.msrb.mxu2 %v9673_v16  ;;  %7343 = vmatpush.bf16.msrb.mxu0 %v9677_v29 }
 0xcfc   :  { %7634 = vrot.lane.b32.xlu0 %v7630_v45, %s10245_s22 }
 0xcfd   :  { %7636 = vrot.lane.b32.xlu1 %v7631_v24, %s10245_s22 }
 0xcfe   :  { %7300 = vmatpush.bf16.msrb.mxu3 %v9561_v42  ;;  %7328 = vmatpush.bf16.msrb.mxu1 %v9565_v54 }
 0xcff   :  { %9680 = vmatmul.msk.bf16.vlgmr.msrb.gmra.mxu2 %vm314_vm15, %v13940_v46  ;;  %9681 = vmatmul.msk.bf16.vlgmr.msrb.gmra.mxu0 %vm314_vm15, %v13940_v46  ;;  %v7632_v46 = vperm.slane %v9684_v5, 2 }
 0xd01   :  { %7638 = vrot.lane.b32.xlu2 %v7632_v46, %s10245_s22 }
 0xd02   :  { %7301 = vmatpush.bf16.msrb.mxu3 %v9545_v0  ;;  %7329 = vmatpush.bf16.msrb.mxu1 %v9549_v25 }
 0xd04   :  { %7640 = vrot.lane.b32.xlu0 %v7633_v48, %s10245_s22 }
 0xd05   :  { %7302 = vmatmul.bf16.vlgmr.msrb.gmra.mxu3 %v13958_v11  ;;  %7330 = vmatmul.bf16.vlgmr.msrb.gmra.mxu1 %v13958_v11  ;;  %v7542_v11 = vperm.slane %v9683_v35, 0 }
 0xd07   :  { %7546 = vrot.lane.b32.xlu1 %v7542_v11, %s10246_s24 }
 0xd09   :  { %7548 = vrot.lane.b32.xlu2 %v7543_v12, %s10246_s24 }
 0xd0c   :  { %7550 = vrot.lane.b32.xlu0 %v7544_v33, %s10246_s24 }
 0xd0f   :  { %7552 = vrot.lane.b32.xlu1 %v7545_v19, %s10246_s24 }
 0xd11   :  { %7458 = vrot.lane.b32.xlu2 %v7454_v58, %s10247_s30 }
 0xd14   :  { %7460 = vrot.lane.b32.xlu0 %v7455_v15, %s10247_s30 }
 0xd17   :  { %7462 = vrot.lane.b32.xlu1 %v7456_v62, %s10247_s30 }
 0xd19   :  { %7464 = vrot.lane.b32.xlu2 %v7457_v23, %s10247_s30 }
 0xd1c   :  { %8042 = vrot.lane.b32.xlu0 %v8038_v51, %s14780_s10 }
 0xd1f   :  { %8044 = vrot.lane.b32.xlu1 %v8039_v59, %s14780_s10 }
 0xd21   :  { %8046 = vrot.lane.b32.xlu2 %v8040_v17, %s14780_s10 }
 0xd24   :  { %8048 = vrot.lane.b32.xlu0 %v8041_v56, %s14780_s10 }
 0xd25   :  { %v14031_v39 = vpop.permute.xlu2 %7958 }
 0xd3d   :  { %v14035_v40 = vpop.permute.xlu0 %7954 }
 0xd3e   :  { %v14037_v38 = vpop.permute.xlu1 %7956  ;;  %v14040_v18 = vpop.permute.xlu2 %7868 }
 0xd3f   :  { %v14045_v7 = vsel %vm533_vm4, %v14037_v38, %v14031_v39 }
 0xd48   :  { %v14048_v57 = vpop.permute.xlu0 %7960 }
 0xd4b   :  { %v14052_v28 = vpop.permute.xlu2 %7778 }
 0xd53   :  { %v14064_v45 = vpop.permute.xlu2 %7784 }
 0xd56   :  { %v14050_v6 = vpop.permute.xlu1 %7866 }
 0xd5a   :  { %v14054_v22 = vpop.permute.xlu0 %7870 }
 0xd5b   :  { %v14061_v9 = vsel %vm471_vm5, %v14040_v18, %v14054_v22  ;;  %v14074_v23 = vpop.permute.xlu2 %7638 }
 0xd5f   :  { %v14056_v53 = vpop.permute.xlu1 %7872 }
 0xd63   :  { %v14090_v56 = vpop.permute.xlu2 %7548 }
 0xd64   :  { %v7289_v37 = vpop.f32.mrf.mxu1 }
 0xd65   :  { %v7781_v48 = vpop.permute.xlu0 %7780 }
 0xd67   :  { %v14067_v12 = vpop.permute.xlu1 %7782 }
 0xd68   :  { %v14071_v33 = vsel %vm409_vm14, %v7781_v48, %v14067_v12 }
 0xd69   :  { %v7275_v49 = vpop.f32.mrf.mxu0 }
 0xd6a   :  { %v7276_v27 = vadd.f32 %v7275_v49, %v7039_v60  ;;  %v7261_v14 = vpop.f32.mrf.mxu3 }
 0xd6c   :  { %v7290_v2 = vadd.f32 %v7289_v37, %v7276_v27  ;;  %v7291_v63 = vpop.f32.mrf.mxu1  ;;  %v14101_v27 = vpop.permute.xlu2 %7458 }
 0xd6e   :  { %v7351_v8 = vmax.f32 %v7290_v2, 0.0  ;;  %v14077_v62 = vpop.permute.xlu0 %7634 }
 0xd6f   :  { %v7247_v61 = vpop.f32.mrf.mxu2  ;;  %v14079_v1 = vpop.permute.xlu1 %7636 }
 0xd70   :  { %v7248_v55 = vadd.f32 %v7247_v61, %v7039_v60  ;;  %7368 = vrot.lane.b32.xlu2 %v7351_v8, %s10241_s23  ;;  %v14084_v51 = vsel %vm314_vm15, %v14079_v1, %v14074_v23 }
 0xd71   :  { %v7277_v52 = vpop.f32.mrf.mxu0 }
 0xd72   :  { %v7262_v13 = vadd.f32 %v7261_v14, %v7248_v55  ;;  %v7278_v50 = vadd.f32 %v7277_v52, %v7044_v43  ;;  %v7263_v4 = vpop.f32.mrf.mxu3 }
 0xd74   :  { %v7350_v34 = vmax.f32 %v7262_v13, 0.0  ;;  %v7292_v30 = vadd.f32 %v7291_v63, %v7278_v50  ;;  %v14112_v61 = vpop.permute.xlu2 %7464 }
 0xd75   :  { %14926 = vst [vmem:[#allocation5_spill] sm:$0xff] %v14112_v61 }
 0xd76   :  { %7366 = vrot.lane.b32.xlu1 %v7350_v34, %s10241_s23  ;;  %v7355_v10 = vmax.f32 %v7292_v30, 0.0  ;;  %v14086_v17 = vpop.permute.xlu0 %7640 }
 0xd77   :  { %v7249_v26 = vpop.f32.mrf.mxu2 }
 0xd78   :  { %v7250_v44 = vadd.f32 %v7249_v26, %v7044_v43  ;;  %7376 = vrot.lane.b32.xlu0 %v7355_v10, %s10241_s23 }
 0xd79   :  { %v14088_v59 = vpop.permute.xlu1 %7546 }
 0xd7a   :  { %v7264_v32 = vadd.f32 %v7263_v4, %v7250_v44  ;;  %v14134_v44 = vld [vmem:[%s14762_s29] ss:$8 sm:$0xf] }
 0xd7c   :  { %v7354_v41 = vmax.f32 %v7264_v32, 0.0  ;;  %v7345_v16 = vpop.f32.mrf.mxu0  ;;  %v7418_v32 = vperm.slane %v14134_v44, 0 }
 0xd7e   :  { %7374 = vrot.lane.b32.xlu2 %v7354_v41, %s10241_s23 }
 0xd81   :  { %v14094_v37 = vpop.permute.xlu1 %7552 }
 0xd82   :  { %v7331_v29 = vpop.f32.mrf.mxu1  ;;  %v7317_v54 = vpop.f32.mrf.mxu2  ;;  %14924 = vst [vmem:[#allocation4_spill] sm:$0xff] %v14094_v37 }
 0xd83   :  { %v7332_v31 = vadd.f32 %v7331_v29, %v7039_v60 }
 0xd84   :  { %v7347_v25 = vpop.f32.mrf.mxu0 }
 0xd85   :  { %v7346_v42 = vadd.f32 %v7345_v16, %v7332_v31  ;;  %v7419_v16 = vperm.slane %v14134_v44, 1 }
 0xd87   :  { %v7353_v21 = vmax.f32 %v7346_v42, 0.0 }
 0xd88   :  { %v7303_v47 = vpop.f32.mrf.mxu3 }
 0xd89   :  { %v7304_v36 = vadd.f32 %v7303_v47, %v7039_v60  ;;  %7372 = vrot.lane.b32.xlu1 %v7353_v21, %s10241_s23  ;;  %v14092_v60 = vpop.permute.xlu0 %7550  ;;  %v14105_v8 = vpop.permute.xlu1 %7462 }
 0xd8a   :  { %v7333_v0 = vpop.f32.mrf.mxu1  ;;  %v7319_v20 = vpop.f32.mrf.mxu2  ;;  %v14099_v49 = vsel %vm252_vm1, %v14090_v56, %v14092_v60 }
 0xd8b   :  { %v7318_v3 = vadd.f32 %v7317_v54, %v7304_v36  ;;  %v7334_v5 = vadd.f32 %v7333_v0, %v7044_v43  ;;  %v14163_v36 = vsel %vm471_vm5, %v14050_v6, %v14040_v18  ;;  %v14167_v0 = vsel %vm409_vm14, %v14052_v28, %v7781_v48 }
 0xd8d   :  { %v7352_v46 = vmax.f32 %v7318_v3, 0.0  ;;  %v7348_v24 = vadd.f32 %v7347_v25, %v7334_v5 }
 0xd8f   :  { %v7357_v35 = vmax.f32 %v7348_v24, 0.0  ;;  %7370 = vrot.lane.b32.xlu0 %v7352_v46, %s10241_s23 }
 0xd90   :  { %v7305_v11 = vpop.f32.mrf.mxu3 }
 0xd91   :  { %v7306_v58 = vadd.f32 %v7305_v11, %v7044_v43  ;;  %7380 = vrot.lane.b32.xlu2 %v7357_v35, %s10241_s23  ;;  %v14103_v2 = vpop.permute.xlu0 %7460  ;;  %v14114_v43 = vpop.permute.xlu2 %8046 }
 0xd92   :  { %v14110_v14 = vsel %vm14925_vm2, %v14103_v2, %v14105_v8  ;;  %v8045_v13 = vpop.permute.xlu1 %8044 }
 0xd93   :  { %v7320_v19 = vadd.f32 %v7319_v20, %v7306_v58  ;;  %v14119_v63 = vsel %vm14928_vm6, %v8045_v13, %v14114_v43 }
 0xd95   :  { %v7356_v15 = vmax.f32 %v7320_v19, 0.0 }
 0xd97   :  { %7378 = vrot.lane.b32.xlu1 %v7356_v15, %s10241_s23 }
 0xd99   :  { %v8043_v55 = vpop.permute.xlu0 %8042 }
 0xd9a   :  { %v8050_v52 = vsel %vm14927_vm10, %v8043_v55, %v8045_v13  ;;  %vm14950_vm10 = vcmask 1031168  }
 0xda1   :  { %v14129_v26 = vpop.permute.xlu0 %8048 }
 0xda2   :  { %14930 = vst [vmem:[#allocation6_spill] sm:$0xff] %v14129_v26 }
 0xdca   :  { %v14121_v50 = vpop.permute.xlu2 %7368 }
 0xdd8   :  { %v7375_v34 = vpop.permute.xlu2 %7374 }
 0xdd9   :  { %7403 = vst.msk [vmem:[#allocation2 + $0x28] sm:$0xff] %vm14929_vm7, %v7375_v34  ;;  %vm14952_vm7 = vcmask 1039360  }
 0xde0   :  { %v14124_v30 = vld [vmem:[#allocation2 + $0x28] sm:$0xff] }
 0xde1   :  { %v14127_v10 = vmul.f32 %v8043_v55, %v14124_v30  ;;  %v7430_v21 = vmul.f32 %v7418_v32, %v14124_v30 }
 0xde8   :  { %v7367_v4 = vpop.permute.xlu1 %7366 }
 0xde9   :  { %v14139_v41 = vsel %vm60_vm0, %v7367_v4, %v14121_v50  ;;  %7398 = vst.msk [vmem:[#allocation2] sm:$0xff] %vm14931_vm12, %v7367_v4 }
 0xdea   :  { %7399 = vst [vmem:[#allocation2 + $0x8] sm:$0xff] %v14139_v41  ;;  %v14144_v29 = vpop.permute.xlu0 %7376  ;;  %v14147_v31 = vmul.f32 %v8050_v52, %v14139_v41  ;;  %v7427_v46 = vmul.f32 %v7419_v16, %v14139_v41  ;;  %v7883_v24 = vmul.f32 %v14163_v36, %v14139_v41  ;;  %v7795_v35 = vmul.f32 %v14167_v0, %v14139_v41 }
 0xdeb   :  { %v14151_v42 = vsel %vm60_vm0, %v7375_v34, %v14144_v29  ;;  %v14153_v54 = vpop.permute.xlu2 %7380 }
 0xdec   :  { %7404 = vst [vmem:[#allocation2 + $0x30] sm:$0xff] %v14151_v42  ;;  %v7431_v47 = vmul.f32 %v7419_v16, %v14151_v42  ;;  %v14170_v3 = vmul.f32 %v8050_v52, %v14151_v42 }
 0xded   :  { %7407 = vst.msk [vmem:[#allocation2 + $0x48] sm:$0xff] %vm60_vm0, %v14153_v54 }
 0xdee   :  { %v7436_v25 = vpack.c.bf16 %v7431_v47, %v7430_v21  ;;  %v7719_v21 = vpack.c.bf16 %v14151_v42, %v14124_v30 }
 0xdf0   :  { %v14172_v5 = vld [vmem:[#allocation2] sm:$0xff]  ;;  %7440 = vst [vmem:[#allocation3 + $0x10] sm:$0xff] %v7436_v25  ;;  %v14208_v25 = vsel %vm533_vm4, %v14031_v39, %v14048_v57  ;;  %v7642_v39 = vsel %vm314_vm15, %v14077_v62, %v14079_v1 }
 0xdf1   :  { %v7426_v18 = vmul.f32 %v7418_v32, %v14172_v5  ;;  %v7716_v48 = vpack.c.bf16 %v14139_v41, %v14172_v5  ;;  %v7882_v11 = vmul.f32 %v14050_v6, %v14172_v5  ;;  %v7794_v20 = vmul.f32 %v14052_v28, %v14172_v5 }
 0xdf2   :  { %v14188_v13 = vmul.f32 %v8043_v55, %v14172_v5  ;;  %v7970_v52 = vmul.f32 %v14035_v40, %v14172_v5  ;;  %v7962_v32 = vsel %vm533_vm4, %v14035_v40, %v14037_v38  ;;  %v7650_v38 = vmul.f32 %v14077_v62, %v14172_v5  ;;  %vm14932_vm4 = vmmov %vm14925_vm2 }
 0xdf3   :  { %v7434_v58 = vpack.c.bf16 %v7427_v46, %v7426_v18  ;;  %7728 = vrot.lane.b32.xlu1 %v7716_v48, %s10250_s0  ;;  %v7892_v19 = vpack.c.bf16 %v7883_v24, %v7882_v11  ;;  %v7804_v15 = vpack.c.bf16 %v7795_v35, %v7794_v20  ;;  %v7971_v55 = vmul.f32 %v7962_v32, %v14139_v41 }
 0xdf4   :  { %v14217_v46 = vsel %vm471_vm5, %v14054_v22, %v14056_v53  ;;  %v14222_v24 = vsel %vm409_vm14, %v14067_v12, %v14064_v45  ;;  %v14230_v35 = vsel %vm314_vm15, %v14074_v23, %v14086_v17  ;;  %v7554_v18 = vsel %vm252_vm1, %v14088_v59, %v14090_v56  ;;  %vm14933_vm5 = vmmov %vm14925_vm2 }
 0xdf5   :  { %7438 = vst [vmem:[#allocation3] sm:$0xff] %v7434_v58  ;;  %7904 = vrot.lane.b32.xlu2 %v7892_v19, %s14790_s3  ;;  %7816 = vrot.lane.b32.xlu0 %v7804_v15, %s14781_s5  ;;  %v7980_v16 = vpack.c.bf16 %v7971_v55, %v7970_v52  ;;  %v14238_v22 = vsel %vm252_vm1, %v14092_v60, %v14094_v37  ;;  %v7420_v56 = vperm.slane %v14134_v44, 2  ;;  %v7421_v11 = vperm.slane %v14134_v44, 3  ;;  %vm14934_vm14 = vmmov %vm14928_vm6 }
 0xdf6   :  { %v7651_v12 = vmul.f32 %v7642_v39, %v14139_v41  ;;  %v7976_v48 = vmul.f32 %v7962_v32, %v14151_v42  ;;  %v14245_v1 = vsel %vm14932_vm4, %v14101_v27, %v14103_v2  ;;  %v14250_v23 = vsel %vm14933_vm5, %v14105_v8, %v14112_v61  ;;  %vm14949_vm2 = vmmov %vm14948_vm9 }
 0xdf7   :  { %v14257_v60 = vsel %vm14934_vm14, %v14114_v43, %v14129_v26  ;;  %v7975_v58 = vmul.f32 %v14035_v40, %v14124_v30  ;;  %v7655_v2 = vmul.f32 %v14077_v62, %v14124_v30  ;;  %v7563_v8 = vmul.f32 %v7554_v18, %v14139_v41  ;;  %vm14955_vm5 = vmmov %vm14949_vm2 }
 0xdf8   :  { %v7660_v20 = vpack.c.bf16 %v7651_v12, %v7650_v38  ;;  %v7656_v15 = vmul.f32 %v7642_v39, %v14151_v42  ;;  %v14267_v44 = vmul.f32 %v14245_v1, %v14139_v41  ;;  %v14271_v43 = vmul.f32 %v14088_v59, %v14124_v30  ;;  %vm14956_vm14 = vmmov %vm14949_vm2 }
 0xdf9   :  { %v7983_v62 = vpack.c.bf16 %v7976_v48, %v7975_v58  ;;  %v7562_v32 = vmul.f32 %v14088_v59, %v14172_v5  ;;  %v14303_v38 = vmul.f32 %v7554_v18, %v14151_v42  ;;  %vm14945_vm1 = vcmask 777216  }
 0xdfa   :  { %vm14946_vm8 = vmmov %vm14945_vm1 }
 0xdfb   :  { %7992 = vrot.lane.b32.xlu1 %v7980_v16, %s14769_s4  ;;  %v7373_v47 = vpop.permute.xlu1 %7372  ;;  %vm14953_vm12 = vmmov %vm14945_vm1 }
 0xdfc   :  { %7402 = vst.msk [vmem:[#allocation2 + $0x20] sm:$0xff] %vm60_vm0, %v7373_v47  ;;  %vm14954_vm4 = vmmov %vm14945_vm1 }
 0xdfd   :  { %7734 = vrot.lane.b32.xlu0 %v7719_v21, %s10250_s0 }
 0xe01   :  { %v7371_v19 = vpop.permute.xlu0 %7370 }
 0xe02   :  { %v14275_v52 = vsel %vm60_vm0, %v14121_v50, %v7371_v19  ;;  %v14278_v40 = vsel %vm60_vm0, %v7371_v19, %v7373_v47  ;;  %v7474_v47 = vmul.f32 %v14101_v27, %v14172_v5  ;;  %v7572_v19 = vpack.c.bf16 %v7563_v8, %v7562_v32 }
 0xe03   :  { %7672 = vrot.lane.b32.xlu1 %v7660_v20, %s14771_s1  ;;  %7400 = vst [vmem:[#allocation2 + $0x10] sm:$0xff] %v14275_v52  ;;  %v7428_v41 = vmul.f32 %v7420_v56, %v14275_v52  ;;  %v7429_v55 = vmul.f32 %v7421_v11, %v14278_v40  ;;  %v14286_v16 = vld [vmem:[#allocation2 + $0x20] sm:$0xff]  ;;  %v14290_v50 = vmul.f32 %v14071_v33, %v14275_v52 }
 0xe04   :  { %v14294_v21 = vmul.f32 %v14222_v24, %v14278_v40  ;;  %7401 = vst [vmem:[#allocation2 + $0x18] sm:$0xff] %v14278_v40  ;;  %v7974_v59 = vmul.f32 %v14048_v57, %v14286_v16  ;;  %v14309_v48 = vmul.f32 %v14061_v9, %v14275_v52  ;;  %v14313_v20 = vmul.f32 %v14217_v46, %v14278_v40 }
 0xe05   :  { %7998 = vrot.lane.b32.xlu0 %v7983_v62, %s14769_s4  ;;  %v7435_v39 = vpack.c.bf16 %v7429_v55, %v7428_v41  ;;  %v7663_v62 = vpack.c.bf16 %v7656_v15, %v7655_v2  ;;  %v7886_v5 = vmul.f32 %v14286_v16, %v14056_v53  ;;  %v14321_v41 = vmul.f32 %v14045_v7, %v14275_v52 }
 0xe06   :  { %v7982_v58 = vpack.c.bf16 %v7974_v59, %v7974_v59  ;;  %v14325_v55 = vmul.f32 %v14208_v25, %v14278_v40  ;;  %v14329_v59 = vmul.f32 %v14084_v51, %v14275_v52  ;;  %v14334_v2 = vmul.f32 %v14230_v35, %v14278_v40 }
 0xe07   :  { %7439 = vst [vmem:[#allocation3 + $0x8] sm:$0xff] %v7435_v39  ;;  %v14338_v8 = vmul.f32 %v14099_v49, %v14275_v52  ;;  %v14342_v15 = vmul.f32 %v14238_v22, %v14278_v40  ;;  %v14346_v32 = vmul.f32 %v14110_v14, %v14275_v52  ;;  %v7484_v4 = vpack.c.bf16 %v14267_v44, %v7474_v47 }
 0xe08   :  { %7996 = vrot.lane.b32.xlu2 %v7982_v58, %s14769_s4  ;;  %v14353_v34 = vmul.f32 %v14250_v23, %v14278_v40  ;;  %v14357_v18 = vmul.f32 %v14119_v63, %v14275_v52  ;;  %v7661_v44 = vpack.c.bf16 %v14334_v2, %v14329_v59  ;;  %v7894_v37 = vpack.c.bf16 %v7886_v5, %v7886_v5  ;;  %v14942_v59 = vld [vmem:[#allocation5_spill] sm:$0xff] }
 0xe09   :  { %v7379_v39 = vpop.permute.xlu1 %7378 }
 0xe0a   :  { %v14361_v12 = vsel %vm60_vm0, %v14144_v29, %v7379_v39  ;;  %v7387_v26 = vsel %vm60_vm0, %v7379_v39, %v14153_v54  ;;  %vm14944_vm0 = vcmask 908288  }
 0xe0b   :  { %7584 = vrot.lane.b32.xlu1 %v7572_v19, %s14772_s26  ;;  %7405 = vst [vmem:[#allocation2 + $0x38] sm:$0xff] %v14361_v12  ;;  %v7432_v58 = vmul.f32 %v7420_v56, %v14361_v12  ;;  %v7433_v61 = vmul.f32 %v7421_v11, %v7387_v26  ;;  %v7977_v29 = vmul.f32 %v14045_v7, %v14361_v12  ;;  %vm14951_vm6 = vmmov %vm14944_vm0 }
 0xe0c   :  { %7406 = vst [vmem:[#allocation2 + $0x40] sm:$0xff] %v7387_v26  ;;  %v7978_v54 = vmul.f32 %v14208_v25, %v7387_v26  ;;  %v14378_v19 = vmul.f32 %v14084_v51, %v14361_v12  ;;  %v14381_v39 = vmul.f32 %v14230_v35, %v7387_v26  ;;  %v7801_v56 = vmul.f32 %v14071_v33, %v14361_v12 }
 0xe0d   :  { %7678 = vrot.lane.b32.xlu0 %v7663_v62, %s14771_s1  ;;  %v7437_v47 = vpack.c.bf16 %v7433_v61, %v7432_v58  ;;  %v7802_v11 = vmul.f32 %v14222_v24, %v7387_v26  ;;  %v7485_v7 = vpack.c.bf16 %v14353_v34, %v14346_v32  ;;  %v7569_v51 = vmul.f32 %v14099_v49, %v14361_v12 }
 0xe0e   :  { %v7984_v5 = vpack.c.bf16 %v7978_v54, %v7977_v29  ;;  %v7664_v25 = vpack.c.bf16 %v14381_v39, %v14378_v19  ;;  %v7570_v62 = vmul.f32 %v14238_v22, %v7387_v26  ;;  %v7889_v61 = vmul.f32 %v14061_v9, %v14361_v12 }
 0xe0f   :  { %7441 = vst [vmem:[#allocation3 + $0x18] sm:$0xff] %v7437_v47  ;;  %v7808_v35 = vpack.c.bf16 %v7802_v11, %v7801_v56  ;;  %v7890_v33 = vmul.f32 %v14217_v46, %v7387_v26  ;;  %v7481_v24 = vmul.f32 %v14110_v14, %v14361_v12  ;;  %v7482_v32 = vmul.f32 %v14250_v23, %v7387_v26 }
 0xe10   :  { %7908 = vrot.lane.b32.xlu2 %v7894_v37, %s14790_s3  ;;  %v7576_v34 = vpack.c.bf16 %v7570_v62, %v7569_v51  ;;  %v8065_v49 = vmul.f32 %v14119_v63, %v14361_v12  ;;  %v8066_v22 = vmul.f32 %v14257_v60, %v7387_v26  ;;  %v8061_v47 = vmul.f32 %v14257_v60, %v14278_v40 }
 0xe11   :  { %v7896_v58 = vpack.c.bf16 %v7890_v33, %v7889_v61  ;;  %v7575_v9 = vpack.c.bf16 %v14303_v38, %v14271_v43  ;;  %v7798_v37 = vmul.f32 %v14286_v16, %v14064_v45  ;;  %v7488_v14 = vpack.c.bf16 %v7482_v32, %v7481_v24 }
 0xe12   :  { %v8072_v46 = vpack.c.bf16 %v8066_v22, %v8065_v49  ;;  %v8069_v23 = vpack.c.bf16 %v8061_v47, %v14357_v18  ;;  %v7888_v63 = vmul.f32 %v14163_v36, %v14151_v42  ;;  %v7887_v60 = vmul.f32 %v14050_v6, %v14124_v30 }
 0xe13   :  { %7496 = vrot.lane.b32.xlu1 %v7484_v4, %s14773_s21  ;;  %v7806_v29 = vpack.c.bf16 %v7798_v37, %v7798_v37  ;;  %v7480_v4 = vmul.f32 %v14245_v1, %v14151_v42  ;;  %v7479_v38 = vmul.f32 %v14101_v27, %v14124_v30  ;;  %v7800_v54 = vmul.f32 %v14167_v0, %v14151_v42  ;;  %v7947_v27 = vld [vmem:[#allocation2 + $0x48] sm:$0xff] }
 0xe14   :  { %v7895_v43 = vpack.c.bf16 %v7888_v63, %v7887_v60  ;;  %v7799_v6 = vmul.f32 %v14052_v28, %v14124_v30  ;;  %v14935_v1 = vpack.c.bf16 %v14294_v21, %v14290_v50  ;;  %v14936_v19 = vpack.c.bf16 %v14313_v20, %v14309_v48 }
 0xe15   :  { %7590 = vrot.lane.b32.xlu0 %v7575_v9, %s14772_s26  ;;  %v7487_v18 = vpack.c.bf16 %v7480_v4, %v7479_v38  ;;  %v7717_v42 = vpack.c.bf16 %v14278_v40, %v14275_v52  ;;  %v7979_v0 = vmul.f32 %v14048_v57, %v7947_v27  ;;  %v7720_v28 = vpack.c.bf16 %v7387_v26, %v14361_v12 }
 0xe16   :  { %v7807_v36 = vpack.c.bf16 %v7800_v54, %v7799_v6  ;;  %v7891_v50 = vmul.f32 %v7947_v27, %v14056_v53  ;;  %v14937_v21 = vpack.c.bf16 %v14325_v55, %v14321_v41  ;;  %v7803_v57 = vmul.f32 %v7947_v27, %v14064_v45  ;;  %v14941_v41 = vld [vmem:[#allocation4_spill] sm:$0xff] }
 0xe17   :  { %v7985_v30 = vpack.c.bf16 %v7979_v0, %v7979_v0  ;;  %v14938_v53 = vpack.c.bf16 %v14147_v31, %v14188_v13  ;;  %v14939_v40 = vpack.c.bf16 %v14342_v15, %v14338_v8  ;;  %v7721_v45 = vpack.c.bf16 %v7947_v27, %v7947_v27 }
 0xe18   :  { %7820 = vrot.lane.b32.xlu2 %v7806_v29, %s14781_s5  ;;  %v7897_v52 = vpack.c.bf16 %v7891_v50, %v7891_v50  ;;  %v7809_v26 = vpack.c.bf16 %v7803_v57, %v7803_v57  ;;  %v14940_v31 = vpack.c.bf16 %v14170_v3, %v14127_v10  ;;  %v7718_v13 = vpack.c.bf16 %v14286_v16, %v14286_v16 }
 0xe19   :  { %v7659_v12 = vmul.f32 %v7947_v27, %v14086_v17  ;;  %v7566_v55 = vmul.f32 %v14286_v16, %v14941_v41  ;;  %v7478_v10 = vmul.f32 %v14286_v16, %v14942_v59  ;;  %v7654_v15 = vmul.f32 %v14286_v16, %v14086_v17 }
 0xe1a   :  { %v7483_v39 = vmul.f32 %v7947_v27, %v14942_v59 }
 0xe1b   :  { %7910 = vrot.lane.b32.xlu1 %v7895_v43, %s14790_s3  ;;  %v7665_v20 = vpack.c.bf16 %v7659_v12, %v7659_v12  ;;  %v7574_v3 = vpack.c.bf16 %v7566_v55, %v7566_v55  ;;  %v7486_v8 = vpack.c.bf16 %v7478_v10, %v7478_v10  ;;  %v7662_v56 = vpack.c.bf16 %v7654_v15, %v7654_v15 }
 0xe1d   :  { %7502 = vrot.lane.b32.xlu0 %v7487_v18, %s14773_s21 }
 0xe20   :  { %7822 = vrot.lane.b32.xlu2 %v7807_v36, %s14781_s5 }
 0xe23   :  { %7818 = vrot.lane.b32.xlu1 %v14935_v1, %s14781_s5 }
 0xe25   :  { %7906 = vrot.lane.b32.xlu0 %v14936_v19, %s14790_s3 }
 0xe28   :  { %7730 = vrot.lane.b32.xlu2 %v7717_v42, %s10250_s0 }
 0xe2b   :  { %7736 = vrot.lane.b32.xlu1 %v7720_v28, %s10250_s0 }
 0xe2d   :  { %8002 = vrot.lane.b32.xlu0 %v7985_v30, %s14769_s4 }
 0xe30   :  { %7994 = vrot.lane.b32.xlu2 %v14937_v21, %s14769_s4 }
 0xe33   :  { %8000 = vrot.lane.b32.xlu1 %v7984_v5, %s14769_s4 }
 0xe35   :  { %7914 = vrot.lane.b32.xlu0 %v7897_v52, %s14790_s3 }
 0xe38   :  { %7674 = vrot.lane.b32.xlu2 %v7661_v44, %s14771_s1 }
 0xe3b   :  { %8080 = vrot.lane.b32.xlu1 %v14938_v53, %s14770_s2 }
 0xe3d   :  { %7826 = vrot.lane.b32.xlu0 %v7809_v26, %s14781_s5 }
 0xe40   :  { %7586 = vrot.lane.b32.xlu2 %v14939_v40, %s14772_s26 }
 0xe43   :  { %7680 = vrot.lane.b32.xlu1 %v7664_v25, %s14771_s1  ;;  %v7489_v25 = vpack.c.bf16 %v7483_v39, %v7483_v39 }
 0xe45   :  { %7824 = vrot.lane.b32.xlu0 %v7808_v35, %s14781_s5  ;;  %v7571_v35 = vmul.f32 %v7947_v27, %v14941_v41 }
 0xe47   :  { %v7577_v17 = vpack.c.bf16 %v7571_v35, %v7571_v35 }
 0xe48   :  { %7498 = vrot.lane.b32.xlu2 %v7485_v7, %s14773_s21  ;;  %v14943_v7 = vld [vmem:[#allocation6_spill] sm:$0xff] }
 0xe49   :  { %v8067_v5 = vmul.f32 %v14943_v7, %v7947_v27 }
 0xe4b   :  { %7592 = vrot.lane.b32.xlu1 %v7576_v34, %s14772_s26  ;;  %v8073_v62 = vpack.c.bf16 %v8067_v5, %v8067_v5  ;;  %v8062_v34 = vmul.f32 %v14943_v7, %v14286_v16 }
 0xe4d   :  { %7738 = vrot.lane.b32.xlu0 %v7721_v45, %s10250_s0  ;;  %v8070_v49 = vpack.c.bf16 %v8062_v34, %v8062_v34 }
 0xe4f   :  { %v14479_v48 = vpop.permute.xlu2 %7904 }
 0xe50   :  { %7912 = vrot.lane.b32.xlu2 %v7896_v58, %s14790_s3  ;;  %v7916_v57 = vrot.slane %v14479_v48, 4 }
 0xe53   :  { %7504 = vrot.lane.b32.xlu1 %v7488_v14, %s14773_s21 }
 0xe55   :  { %8086 = vrot.lane.b32.xlu0 %v14940_v31, %s14770_s2 }
 0xe58   :  { %7732 = vrot.lane.b32.xlu2 %v7718_v13, %s10250_s0 }
 0xe5b   :  { %8088 = vrot.lane.b32.xlu1 %v8072_v46, %s14770_s2 }
 0xe5d   :  { %7682 = vrot.lane.b32.xlu0 %v7665_v20, %s14771_s1 }
 0xe60   :  { %8082 = vrot.lane.b32.xlu2 %v8069_v23, %s14770_s2 }
 0xe62   :  { %v7997_v2 = vpop.permute.xlu2 %7996 }
 0xe63   :  { %7588 = vrot.lane.b32.xlu1 %v7574_v3, %s14772_s26  ;;  %v8006_v4 = vrot.slane %v7997_v2, 4 }
 0xe65   :  { %v7729_v44 = vpop.permute.xlu1 %7728  ;;  %7500 = vrot.lane.b32.xlu0 %v7486_v8, %s14773_s21 }
 0xe66   :  { %v7740_v14 = vrot.slane %v7729_v44, 4 }
 0xe67   :  { %v7817_v11 = vpop.permute.xlu0 %7816 }
 0xe68   :  { %7676 = vrot.lane.b32.xlu2 %v7662_v56, %s14771_s1  ;;  %v7828_v30 = vrot.slane %v7817_v11, 4 }
 0xe6a   :  { %v7909_v51 = vpop.permute.xlu2 %7908 }
 0xe6b   :  { %7506 = vrot.lane.b32.xlu1 %v7489_v25, %s14773_s21  ;;  %v7918_v40 = vrot.slane %v7909_v51, 4 }
 0xe6d   :  { %v7993_v61 = vpop.permute.xlu1 %7992  ;;  %8090 = vrot.lane.b32.xlu0 %v8073_v62, %s14770_s2 }
 0xe6e   :  { %v8004_v43 = vrot.slane %v7993_v61, 4 }
 0xe6f   :  { %v14498_v33 = vpop.permute.xlu0 %7734 }
 0xe70   :  { %7594 = vrot.lane.b32.xlu2 %v7577_v17, %s14772_s26 }
 0xe72   :  { %v7821_v24 = vpop.permute.xlu2 %7820 }
 0xe73   :  { %v7830_v50 = vrot.slane %v7821_v24, 4 }
 0xe75   :  { %v7673_v32 = vpop.permute.xlu1 %7672 }
 0xe76   :  { %v7684_v42 = vrot.slane %v7673_v32, 4 }
 0xe77   :  { %v14503_v22 = vpop.permute.xlu0 %7998 }
 0xe78   :  { %8084 = vrot.lane.b32.xlu2 %v8070_v49, %s14770_s2 }
 0xe7a   :  { %v14506_v58 = vpop.permute.xlu2 %7822 }
 0xe7d   :  { %v7585_v47 = vpop.permute.xlu1 %7584 }
 0xe7e   :  { %v7596_v2 = vrot.slane %v7585_v47, 4 }
 0xe7f   :  { %v14508_v9 = vpop.permute.xlu0 %7678 }
 0xe82   :  { %v14510_v37 = vpop.permute.xlu2 %7730 }
 0xe83   :  { %v7741_v46 = vrot.slane %v14510_v37, 4 }
 0xe85   :  { %v14513_v23 = vpop.permute.xlu1 %7496  ;;  %v7746_v16 = vsel %vm218_vm3, %v7740_v14, %v7741_v46 }
 0xe86   :  { %v7747_v63 = vsel %vm14944_vm0, %v7729_v44, %v7746_v16  ;;  %v7743_v44 = vrot.slane %v14498_v33, 4  ;;  %v7508_v51 = vrot.slane %v14513_v23, 4 }
 0xe87   :  { %v14519_v29 = vpop.permute.xlu0 %7590  ;;  %7758 = vst [vmem:[#allocation3 + $0x80] sm:$0xff] %v7747_v63 }
 0xe8a   :  { %v7995_v60 = vpop.permute.xlu2 %7994 }
 0xe8b   :  { %v8005_v38 = vrot.slane %v7995_v60, 4 }
 0xe8d   :  { %v14521_v18 = vpop.permute.xlu1 %7910  ;;  %v8010_v54 = vsel %vm218_vm3, %v8004_v43, %v8005_v38  ;;  %v8012_v6 = vsel %vm218_vm3, %v8005_v38, %v8006_v4 }
 0xe8e   :  { %v8011_v36 = vsel %vm14945_vm1, %v7993_v61, %v8010_v54  ;;  %v8013_v1 = vsel %vm14946_vm8, %v7995_v60, %v8012_v6  ;;  %v8007_v61 = vrot.slane %v14503_v22, 4  ;;  %v7919_v60 = vrot.slane %v14521_v18, 4  ;;  %vm14957_vm1 = vmmov %vm14947_vm13 }
 0xe8f   :  { %v14527_v27 = vpop.permute.xlu0 %7502  ;;  %8022 = vst [vmem:[#allocation3 + $0xe0] sm:$0xff] %v8011_v36  ;;  %vm14958_vm8 = vcmask 769024  }
 0xe90   :  { %8023 = vst [vmem:[#allocation3 + $0xe8] sm:$0xff] %v8013_v1 }
 0xe92   :  { %v14529_v19 = vpop.permute.xlu2 %7674 }
 0xe93   :  { %v7685_v0 = vrot.slane %v14529_v19, 4 }
 0xe95   :  { %v7819_v28 = vpop.permute.xlu1 %7818  ;;  %v7690_v21 = vsel %vm218_vm3, %v7684_v42, %v7685_v0 }
 0xe96   :  { %v7829_v52 = vrot.slane %v7819_v28, 4  ;;  %v7691_v53 = vsel %vm14947_vm13, %v7673_v32, %v7690_v21  ;;  %v9803_v1 = vld [vmem:[#allocation3 + $0xe0] sm:$0xf]  ;;  %v10131_v42 = vld [vmem:[#allocation3 + $0xe4] sm:$0xf]  ;;  %vm14960_vm13 = vmmov %vm14944_vm0 }
 0xe97   :  { %v7907_v26 = vpop.permute.xlu0 %7906  ;;  %7702 = vst [vmem:[#allocation3 + $0x60] sm:$0xff] %v7691_v53 }
 0xe98   :  { %v7834_v45 = vsel %vm218_vm3, %v7828_v30, %v7829_v52  ;;  %v7836_v31 = vsel %vm218_vm3, %v7829_v52, %v7830_v50  ;;  %v7917_v13 = vrot.slane %v7907_v26, 4 }
 0xe99   :  { %v7835_v12 = vsel %vm439_vm11, %v7817_v11, %v7834_v45  ;;  %v7837_v20 = vsel %vm439_vm11, %v7819_v28, %v7836_v31 }
 0xe9a   :  { %7847 = vst [vmem:[#allocation3 + $0xa8] sm:$0xff] %v7837_v20  ;;  %v7922_v41 = vsel %vm218_vm3, %v7916_v57, %v7917_v13  ;;  %v7924_v55 = vsel %vm218_vm3, %v7917_v13, %v7918_v40  ;;  %v14546_v3 = vpop.permute.xlu2 %7586  ;;  %v7831_v13 = vrot.slane %v14506_v58, 4 }
 0xe9b   :  { %7846 = vst [vmem:[#allocation3 + $0xa0] sm:$0xff] %v7835_v12  ;;  %v7923_v59 = vsel %vm14948_vm9, %v14479_v48, %v7922_v41  ;;  %v7925_v10 = vsel %vm14949_vm2, %v7907_v26, %v7924_v55  ;;  %v7597_v8 = vrot.slane %v14546_v3, 4  ;;  %v7687_v26 = vrot.slane %v14508_v9, 4  ;;  %vm14961_vm9 = vmmov %vm14957_vm1 }
 0xe9c   :  { %7935 = vst [vmem:[#allocation3 + $0xc8] sm:$0xff] %v7925_v10  ;;  %vm14962_vm2 = vmmov %vm14952_vm7 }
 0xe9d   :  { %7934 = vst [vmem:[#allocation3 + $0xc0] sm:$0xff] %v7923_v59  ;;  %v14549_v15 = vpop.permute.xlu1 %7736  ;;  %v7602_v39 = vsel %vm218_vm3, %v7596_v2, %v7597_v8 }
 0xe9e   :  { %v7744_v56 = vrot.slane %v14549_v15, 4  ;;  %v7603_v48 = vsel %vm14950_vm10, %v7585_v47, %v7602_v39 }
 0xe9f   :  { %v8003_v11 = vpop.permute.xlu0 %8002  ;;  %7614 = vst [vmem:[#allocation3 + $0x40] sm:$0xff] %v7603_v48 }
 0xea0   :  { %v7750_v7 = vsel %vm218_vm3, %v7743_v44, %v7744_v56  ;;  %v8009_v17 = vrot.slane %v8003_v11, 4 }
 0xea1   :  { %v7751_v5 = vsel %vm14951_vm6, %v14498_v33, %v7750_v7  ;;  %vm14963_vm6 = vmmov %vm14958_vm8 }
 0xea2   :  { %7760 = vst [vmem:[#allocation3 + $0x90] sm:$0xff] %v7751_v5  ;;  %v14562_v25 = vpop.permute.xlu2 %7498 }
 0xea3   :  { %v7509_v62 = vrot.slane %v14562_v25, 4 }
 0xea4   :  { %v9787_v45 = vld [vmem:[#allocation3 + $0xc0] sm:$0xf]  ;;  %v10127_v31 = vld [vmem:[#allocation3 + $0xc4] sm:$0xf] }
 0xea5   :  { %v8001_v35 = vpop.permute.xlu1 %8000  ;;  %v7514_v24 = vsel %vm218_vm3, %v7508_v51, %v7509_v62 }
 0xea6   :  { %v8008_v34 = vrot.slane %v8001_v35, 4  ;;  %v7515_v32 = vsel %vm14952_vm7, %v14513_v23, %v7514_v24  ;;  %vm14964_vm7 = vmmov %vm14957_vm1 }
 0xea7   :  { %v7915_v33 = vpop.permute.xlu0 %7914  ;;  %7526 = vst [vmem:[#allocation3 + $0x20] sm:$0xff] %v7515_v32 }
 0xea8   :  { %v8014_v49 = vsel %vm218_vm3, %v8007_v61, %v8008_v34  ;;  %v8016_v47 = vsel %vm218_vm3, %v8008_v34, %v8009_v17  ;;  %v7921_v4 = vrot.slane %v7915_v33, 4  ;;  %v7599_v61 = vrot.slane %v14519_v29, 4 }
 0xea9   :  { %v8015_v14 = vsel %vm14953_vm12, %v14503_v22, %v8014_v49  ;;  %v8017_v16 = vsel %vm14954_vm4, %v8001_v35, %v8016_v47  ;;  %vm14965_vm12 = vmmov %vm14963_vm6 }
 0xeaa   :  { %8024 = vst [vmem:[#allocation3 + $0xf0] sm:$0xff] %v8015_v14  ;;  %v7913_v63 = vpop.permute.xlu2 %7912  ;;  %v9771_v14 = vld [vmem:[#allocation3 + $0xa0] sm:$0xf]  ;;  %vm14966_vm4 = vmmov %vm14950_vm10 }
 0xeab   :  { %8025 = vst [vmem:[#allocation3 + $0xf8] sm:$0xff] %v8017_v16  ;;  %v7920_v43 = vrot.slane %v7913_v63, 4 }
 0xead   :  { %v8081_v38 = vpop.permute.xlu1 %8080  ;;  %v7926_v23 = vsel %vm218_vm3, %v7919_v60, %v7920_v43  ;;  %v7928_v54 = vsel %vm218_vm3, %v7920_v43, %v7921_v4  ;;  %v10123_v4 = vld [vmem:[#allocation3 + $0xa4] sm:$0xf] }
 0xeae   :  { %v7927_v6 = vsel %vm14955_vm5, %v14521_v18, %v7926_v23  ;;  %v7929_v36 = vsel %vm14956_vm14, %v7913_v63, %v7928_v54  ;;  %v8092_v51 = vrot.slane %v8081_v38, 4  ;;  %vm14967_vm5 = vmmov %vm14962_vm2 }
 0xeaf   :  { %v7827_v22 = vpop.permute.xlu0 %7826  ;;  %7936 = vst [vmem:[#allocation3 + $0xd0] sm:$0xff] %v7927_v6  ;;  %vm14968_vm14 = vmmov %vm14962_vm2 }
 0xeb0   :  { %7937 = vst [vmem:[#allocation3 + $0xd8] sm:$0xff] %v7929_v36  ;;  %v7833_v12 = vrot.slane %v7827_v22, 4  ;;  %v9757_v36 = vld [vmem:[#allocation3 + $0x90] sm:$0xf0]  ;;  %v7511_v22 = vrot.slane %v14527_v27, 4 }
 0xeb1   :  { %v10133_v28 = vld [vmem:[#allocation3 + $0xec] sm:$0xf0]  ;;  %v9805_v30 = vld [vmem:[#allocation3 + $0xf0] sm:$0xf0] }
 0xeb2   :  { %v9804_v50 = vor.u32 %v10133_v28, %v9803_v1  ;;  %v9808_v21 = vor.u32 %v10131_v42, %v9805_v30  ;;  %v7733_v52 = vpop.permute.xlu2 %7732  ;;  %v9755_v28 = vld [vmem:[#allocation3 + $0x80] sm:$0xf]  ;;  %v10119_v30 = vld [vmem:[#allocation3 + $0x84] sm:$0xf] }
 0xeb3   :  { %v7742_v57 = vrot.slane %v7733_v52, 4  ;;  %v9760_v52 = vor.u32 %v10119_v30, %v9757_v36 }
 0xeb4   :  { %8344 = vmatpush.bf16.msra.mxu2 %v9804_v50  ;;  %8370 = vmatpush.bf16.msra.mxu0 %v9808_v21 }
 0xeb5   :  { %v14583_v53 = vpop.permute.xlu1 %7680  ;;  %v7748_v18 = vsel %vm218_vm3, %v7741_v46, %v7742_v57 }
 0xeb6   :  { %v7688_v40 = vrot.slane %v14583_v53, 4  ;;  %v7749_v20 = vsel %vm14944_vm0, %v14510_v37, %v7748_v18  ;;  %v10129_v55 = vld [vmem:[#allocation3 + $0xcc] sm:$0xf0]  ;;  %v9789_v59 = vld [vmem:[#allocation3 + $0xd0] sm:$0xf0]  ;;  %vm14969_vm0 = vmmov %vm14963_vm6 }
 0xeb7   :  { %v7825_v41 = vpop.permute.xlu0 %7824  ;;  %7759 = vst [vmem:[#allocation3 + $0x88] sm:$0xff] %v7749_v20  ;;  %v9788_v46 = vor.u32 %v10129_v55, %v9787_v45  ;;  %v9792_v44 = vor.u32 %v10127_v31, %v9789_v59  ;;  %v10115_v45 = vld [vmem:[#allocation3 + $0x64] sm:$0xf] }
 0xeb8   :  { %v7694_v10 = vsel %vm218_vm3, %v7687_v26, %v7688_v40  ;;  %v7832_v2 = vrot.slane %v7825_v41, 4 }
 0xeb9   :  { %v7695_v39 = vsel %vm14957_vm1, %v14508_v9, %v7694_v10  ;;  %8345 = vmatpush.bf16.msra.mxu2 %v9788_v46  ;;  %8371 = vmatpush.bf16.msra.mxu0 %v9792_v44 }
 0xeba   :  { %7704 = vst [vmem:[#allocation3 + $0x70] sm:$0xff] %v7695_v39  ;;  %v7838_v48 = vsel %vm218_vm3, %v7831_v13, %v7832_v2  ;;  %v7840_v11 = vsel %vm218_vm3, %v7832_v2, %v7833_v12  ;;  %v14603_v5 = vpop.permute.xlu2 %8082  ;;  %v8151_v2 = vld [vmem:[%s14716_s17] sm:$0x7]  ;;  %v9723_v39 = vld [vmem:[#allocation3 + $0x40] sm:$0xf] }
 0xebb   :  { %v7839_v37 = vsel %vm439_vm11, %v14506_v58, %v7838_v48  ;;  %v7841_v7 = vsel %vm439_vm11, %v7825_v41, %v7840_v11  ;;  %v8093_v35 = vrot.slane %v14603_v5, 4  ;;  %vm14959_vm11 = vmmov %vm14950_vm10  ;;  %v10111_v48 = vld [vmem:[#allocation3 + $0x44] sm:$0xf]  ;;  %8154 = vperm.xlu1 %10159, %v8151_v2  }
 0xebc   :  { %7848 = vst [vmem:[#allocation3 + $0xb0] sm:$0xff] %v7839_v37 }
 0xebd   :  { %7849 = vst [vmem:[#allocation3 + $0xb8] sm:$0xff] %v7841_v7  ;;  %v7593_v9 = vpop.permute.xlu1 %7592  ;;  %v8098_v17 = vsel %vm218_vm3, %v8092_v51, %v8093_v35 }
 0xebe   :  { %v7600_v24 = vrot.slane %v7593_v9, 4  ;;  %v8099_v34 = vsel %vm14958_vm8, %v8081_v38, %v8098_v17 }
 0xebf   :  { %v7739_v58 = vpop.permute.xlu0 %7738  ;;  %8110 = vst [vmem:[#allocation3 + $0x100] sm:$0xff] %v8099_v34 }
 0xec0   :  { %v7606_v32 = vsel %vm218_vm3, %v7599_v61, %v7600_v24  ;;  %v7745_v33 = vrot.slane %v7739_v58, 4 }
 0xec1   :  { %v7607_v49 = vsel %vm14959_vm11, %v14519_v29, %v7606_v32  ;;  %v10121_v29 = vld [vmem:[#allocation3 + $0x8c] sm:$0xf0]  ;;  %v9741_v26 = vld [vmem:[#allocation3 + $0x70] sm:$0xf0]  ;;  %v9707_v32 = vld [vmem:[#allocation3 + $0x20] sm:$0xf] }
 0xec2   :  { %7616 = vst [vmem:[#allocation3 + $0x50] sm:$0xff] %v7607_v49  ;;  %v7752_v47 = vsel %vm218_vm3, %v7744_v56, %v7745_v33  ;;  %v7677_v63 = vpop.permute.xlu2 %7676  ;;  %v9756_v21 = vor.u32 %v10121_v29, %v9755_v28  ;;  %v10117_v57 = vld [vmem:[#allocation3 + $0x6c] sm:$0xf0]  ;;  %v9744_v12 = vor.u32 %v10115_v45, %v9741_v26  ;;  %v10107_v33 = vld [vmem:[#allocation3 + $0x24] sm:$0xf] }
 0xec3   :  { %v7753_v16 = vsel %vm14960_vm13, %v14549_v15, %v7752_v47  ;;  %v10125_v60 = vld [vmem:[#allocation3 + $0xac] sm:$0xf0]  ;;  %v9773_v43 = vld [vmem:[#allocation3 + $0xb0] sm:$0xf0]  ;;  %v7686_v38 = vrot.slane %v7677_v63, 4 }
 0xec4   :  { %7761 = vst [vmem:[#allocation3 + $0x98] sm:$0xff] %v7753_v16  ;;  %v9772_v23 = vor.u32 %v10125_v60, %v9771_v14  ;;  %v9776_v54 = vor.u32 %v10123_v4, %v9773_v43  ;;  %v9691_v63 = vld [vmem:[#allocation3] sm:$0xf]  ;;  %v10103_v60 = vld [vmem:[#allocation3 + $0x4] sm:$0xf] }
 0xec5   :  { %v14619_v6 = vpop.permute.xlu1 %7504  ;;  %v7692_v56 = vsel %vm218_vm3, %v7685_v0, %v7686_v38  ;;  %v10105_v38 = vld [vmem:[#allocation3 + $0xc] sm:$0xf0]  ;;  %v9797_v45 = vld [vmem:[#allocation3 + $0xd8] sm:$0xf0] }
 0xec6   :  { %v7512_v15 = vrot.slane %v14619_v6, 4  ;;  %8346 = vmatpush.bf16.msra.mxu2 %v9772_v23  ;;  %8372 = vmatpush.bf16.msra.mxu0 %v9776_v54  ;;  %v7693_v1 = vsel %vm14961_vm9, %v14529_v19, %v7692_v56  ;;  %v9739_v19 = vld [vmem:[#allocation3 + $0x60] sm:$0xf]  ;;  %v9693_v23 = vld [vmem:[#allocation3 + $0x10] sm:$0xf0] }
 0xec7   :  { %v8087_v42 = vpop.permute.xlu0 %8086  ;;  %7703 = vst [vmem:[#allocation3 + $0x68] sm:$0xff] %v7693_v1  ;;  %v9740_v13 = vor.u32 %v10117_v57, %v9739_v19  ;;  %v10134_v54 = vld [vmem:[#allocation3 + $0xf4] sm:$0xf0]  ;;  %v9696_v56 = vor.u32 %v10103_v60, %v9693_v23  ;;  %v9819_v1 = vld [vmem:[#allocation3 + $0x100] sm:$0xf] }
 0xec8   :  { %v7518_v50 = vsel %vm218_vm3, %v7511_v22, %v7512_v15  ;;  %v8095_v59 = vrot.slane %v8087_v42, 4  ;;  %v9692_v22 = vor.u32 %v10105_v38, %v9691_v63  ;;  %v10135_v30 = vld [vmem:[#allocation3 + $0x104] sm:$0xf]  ;;  %v10130_v19 = vld [vmem:[#allocation3 + $0xd4] sm:$0xf0] }
 0xec9   :  { %v7519_v0 = vsel %vm14962_vm2, %v14527_v27, %v7518_v50  ;;  %v10113_v41 = vld [vmem:[#allocation3 + $0x4c] sm:$0xf0]  ;;  %v9725_v55 = vld [vmem:[#allocation3 + $0x50] sm:$0xf0] }
 0xeca   :  { %7528 = vst [vmem:[#allocation3 + $0x30] sm:$0xff] %v7519_v0  ;;  %8347 = vmatpush.bf16.msra.mxu2 %v9756_v21  ;;  %8373 = vmatpush.bf16.msra.mxu0 %v9760_v52  ;;  %v7595_v18 = vpop.permute.xlu2 %7594  ;;  %v9724_v7 = vor.u32 %v10113_v41, %v9723_v39  ;;  %v9728_v51 = vor.u32 %v10111_v48, %v9725_v55  ;;  %v9811_v52 = vld [vmem:[#allocation3 + $0xe8] sm:$0xf]  ;;  %v10132_v0 = vld [vmem:[#allocation3 + $0xec] sm:$0xf] }
 0xecb   :  { %v7601_v31 = vrot.slane %v7595_v18, 4  ;;  %v9812_v26 = vor.u32 %v10134_v54, %v9811_v52  ;;  %v10128_v41 = vld [vmem:[#allocation3 + $0xcc] sm:$0xf] }
 0xecd   :  { %v14633_v20 = vpop.permute.xlu1 %8088  ;;  %v7608_v10 = vsel %vm218_vm3, %v7600_v24, %v7601_v31  ;;  %v14667_v31 = vld.sshfl [vmem:[#allocation1 + $0x8] sm:$0xff pattern:$0x73625140] }
 0xece   :  { %v8096_v27 = vrot.slane %v14633_v20, 4  ;;  %8348 = vmatpush.bf16.msra.mxu2 %v9740_v13  ;;  %8374 = vmatpush.bf16.msra.mxu0 %v9744_v12  ;;  %v7609_v46 = vsel %vm14950_vm10, %v7593_v9, %v7608_v10  ;;  %v9795_v12 = vld [vmem:[#allocation3 + $0xc8] sm:$0xf] }
 0xecf   :  { %v7683_v44 = vpop.permute.xlu0 %7682  ;;  %7617 = vst [vmem:[#allocation3 + $0x58] sm:$0xff] %v7609_v46  ;;  %v9796_v55 = vor.u32 %v10130_v19, %v9795_v12  ;;  %v10126_v46 = vld [vmem:[#allocation3 + $0xb4] sm:$0xf0] }
 0xed0   :  { %v8102_v11 = vsel %vm218_vm3, %v8095_v59, %v8096_v27  ;;  %v7689_v37 = vrot.slane %v7683_v44, 4  ;;  %v9800_v59 = vor.u32 %v10128_v41, %v9797_v45  ;;  %v9781_v44 = vld [vmem:[#allocation3 + $0xb8] sm:$0xf0] }
 0xed1   :  { %v8103_v61 = vsel %vm14963_vm6, %v8087_v42, %v8102_v11  ;;  %v10109_v17 = vld [vmem:[#allocation3 + $0x2c] sm:$0xf0]  ;;  %v9709_v24 = vld [vmem:[#allocation3 + $0x30] sm:$0xf0]  ;;  %v9779_v11 = vld [vmem:[#allocation3 + $0xa8] sm:$0xf] }
 0xed2   :  { %8112 = vst [vmem:[#allocation3 + $0x110] sm:$0xff] %v8103_v61  ;;  %v7696_v9 = vsel %vm218_vm3, %v7688_v40, %v7689_v37  ;;  %8349 = vmatpush.bf16.msra.mxu2 %v9724_v7  ;;  %8375 = vmatpush.bf16.msra.mxu0 %v9728_v51  ;;  %v8085_v58 = vpop.permute.xlu2 %8084  ;;  %v9708_v47 = vor.u32 %v10109_v17, %v9707_v32  ;;  %v10124_v37 = vld [vmem:[#allocation3 + $0xac] sm:$0xf]  ;;  %v10122_v61 = vld [vmem:[#allocation3 + $0x94] sm:$0xf0] }
 0xed3   :  { %v7697_v34 = vsel %vm14964_vm7, %v14583_v53, %v7696_v9  ;;  %v8094_v49 = vrot.slane %v8085_v58, 4  ;;  %v9712_v14 = vor.u32 %v10107_v33, %v9709_v24  ;;  %v9780_v51 = vor.u32 %v10126_v46, %v9779_v11  ;;  %v9765_v17 = vld [vmem:[#allocation3 + $0x98] sm:$0xf0]  ;;  %v10120_v24 = vld [vmem:[#allocation3 + $0x8c] sm:$0xf] }
 0xed4   :  { %7705 = vst [vmem:[#allocation3 + $0x78] sm:$0xff] %v7697_v34  ;;  %v9768_v34 = vor.u32 %v10120_v24, %v9765_v17  ;;  %v10116_v33 = vld [vmem:[#allocation3 + $0x6c] sm:$0xf] }
 0xed5   :  { %v7589_v16 = vpop.permute.xlu1 %7588  ;;  %v8100_v4 = vsel %vm218_vm3, %v8093_v35, %v8094_v49  ;;  %v9813_v35 = vld [vmem:[#allocation3 + $0xf8] sm:$0xf0] }
 0xed6   :  { %v7598_v40 = vrot.slane %v7589_v16, 4  ;;  %8350 = vmatpush.bf16.msra.mxu2 %v9708_v47  ;;  %8376 = vmatpush.bf16.msra.mxu0 %v9712_v14  ;;  %v8101_v53 = vsel %vm14965_vm12, %v14603_v5, %v8100_v4  ;;  %v9816_v18 = vor.u32 %v10132_v0, %v9813_v35  ;;  %v9733_v38 = vld [vmem:[#allocation3 + $0x58] sm:$0xf0] }
 0xed7   :  { %v7501_v43 = vpop.permute.xlu0 %7500  ;;  %8111 = vst [vmem:[#allocation3 + $0x108] sm:$0xff] %v8101_v53 }
 0xed8   :  { %v7604_v29 = vsel %vm218_vm3, %v7597_v8, %v7598_v40  ;;  %v7510_v36 = vrot.slane %v7501_v43, 4  ;;  %v10114_v43 = vld [vmem:[#allocation3 + $0x54] sm:$0xf0] }
 0xed9   :  { %v7605_v42 = vsel %vm14966_vm4, %v14546_v3, %v7604_v29  ;;  %v10137_v28 = vld [vmem:[#allocation3 + $0x10c] sm:$0xf0]  ;;  %v9821_v5 = vld [vmem:[#allocation3 + $0x110] sm:$0xf0] }
 0xeda   :  { %7615 = vst [vmem:[#allocation3 + $0x48] sm:$0xff] %v7605_v42  ;;  %v7516_v50 = vsel %vm218_vm3, %v7509_v62, %v7510_v36  ;;  %8351 = vmatpush.bf16.msra.mxu2 %v9692_v22  ;;  %8377 = vmatpush.bf16.msra.mxu0 %v9696_v56  ;;  %v9820_v21 = vor.u32 %v10137_v28, %v9819_v1  ;;  %v14665_v3 = vld.sshfl [vmem:[#allocation1] sm:$0xff pattern:$0x73625140]  ;;  %v10106_v42 = vld [vmem:[#allocation3 + $0x14] sm:$0xf0] }
 0xedb   :  { %v9824_v8 = vor.u32 %v10135_v30, %v9821_v5  ;;  %v7517_v57 = vsel %vm14967_vm5, %v14562_v25, %v7516_v50  ;;  %v10118_v58 = vld [vmem:[#allocation3 + $0x74] sm:$0xf0]  ;;  %v9749_v32 = vld [vmem:[#allocation3 + $0x78] sm:$0xf0]  ;;  %v9699_v30 = vld [vmem:[#allocation3 + $0x8] sm:$0xf] }
 0xedc   :  { %7527 = vst [vmem:[#allocation3 + $0x28] sm:$0xff] %v7517_v57  ;;  %8364 = vmatpush.bf16.msra.mxu3 %v9820_v21  ;;  %v9701_v28 = vld [vmem:[#allocation3 + $0x18] sm:$0xf0]  ;;  %v10104_v5 = vld [vmem:[#allocation3 + $0xc] sm:$0xf]  ;;  %v9700_v50 = vor.u32 %v10106_v42, %v9699_v30 }
 0xedd   :  { %8390 = vmatpush.bf16.msra.mxu1 %v9824_v8  ;;  %v7507_v62 = vpop.permute.xlu1 %7506  ;;  %8352 = vmatmul.bf16.vlgmr.msra.gmra.mxu2 %v14665_v3  ;;  %v9704_v21 = vor.u32 %v10104_v5, %v9701_v28 }
 0xede   :  { %v7513_v13 = vrot.slane %v7507_v62, 4  ;;  %8378 = vmatmul.bf16.vlgmr.msra.gmra.mxu0 %v14665_v3  ;;  %v9827_v49 = vld [vmem:[#allocation3 + $0x108] sm:$0xf]  ;;  %v10136_v16 = vld [vmem:[#allocation3 + $0x10c] sm:$0xf] }
 0xedf   :  { %v8091_v25 = vpop.permute.xlu0 %8090  ;;  %9833 = vmatmul.msk.bf16.vlgmr.msra.gmra.mxu3 %vm314_vm15, %v14667_v31 }
 0xee0   :  { %8396 = vmatpush.bf16.msrb.mxu3 %v9812_v26  ;;  %9834 = vmatmul.msk.bf16.vlgmr.msra.gmra.mxu1 %vm314_vm15, %v14667_v31  ;;  %v7520_v10 = vsel %vm218_vm3, %v7512_v15, %v7513_v13  ;;  %v8097_v2 = vrot.slane %v8091_v25, 4  ;;  %v9784_v15 = vor.u32 %v10124_v37, %v9781_v44 }
 0xee1   :  { %8422 = vmatpush.bf16.msrb.mxu1 %v9816_v18  ;;  %v7521_v39 = vsel %vm14968_vm14, %v14619_v6, %v7520_v10  ;;  %v9763_v6 = vld [vmem:[#allocation3 + $0x88] sm:$0xf]  ;;  %v10112_v53 = vld [vmem:[#allocation3 + $0x4c] sm:$0xf] }
 0xee2   :  { %7529 = vst [vmem:[#allocation3 + $0x38] sm:$0xff] %v7521_v39  ;;  %v8104_v48 = vsel %vm218_vm3, %v8096_v27, %v8097_v2  ;;  %v9764_v9 = vor.u32 %v10122_v61, %v9763_v6  ;;  %v9747_v27 = vld [vmem:[#allocation3 + $0x68] sm:$0xf]  ;;  %v9736_v54 = vor.u32 %v10112_v53, %v9733_v38 }
 0xee3   :  { %v8105_v7 = vsel %vm14969_vm0, %v14633_v20, %v8104_v48  ;;  %v9748_v47 = vor.u32 %v10118_v58, %v9747_v27  ;;  %v9752_v20 = vor.u32 %v10116_v33, %v9749_v32  ;;  %v9731_v40 = vld [vmem:[#allocation3 + $0x48] sm:$0xf]  ;;  %v10108_v56 = vld [vmem:[#allocation3 + $0x2c] sm:$0xf] }
 0xee4   :  { %8397 = vmatpush.bf16.msrb.mxu3 %v9796_v55  ;;  %8113 = vst [vmem:[#allocation3 + $0x118] sm:$0xff] %v8105_v7  ;;  %v9732_v23 = vor.u32 %v10114_v43, %v9731_v40  ;;  %v9715_v22 = vld [vmem:[#allocation3 + $0x28] sm:$0xf] }
 0xee5   :  { %8423 = vmatpush.bf16.msrb.mxu1 %v9800_v59 }
 0xee8   :  { %8398 = vmatpush.bf16.msrb.mxu3 %v9780_v51 }
 0xee9   :  { %8424 = vmatpush.bf16.msrb.mxu1 %v9784_v15  ;;  %v10110_v29 = vld [vmem:[#allocation3 + $0x34] sm:$0xf0]  ;;  %v9717_v36 = vld [vmem:[#allocation3 + $0x38] sm:$0xf0] }
 0xeea   :  { %v9716_v1 = vor.u32 %v10110_v29, %v9715_v22  ;;  %v9720_v35 = vor.u32 %v10108_v56, %v9717_v36 }
 0xeeb   :  { %v10138_v14 = vld [vmem:[#allocation3 + $0x114] sm:$0xf0]  ;;  %v9829_v63 = vld [vmem:[#allocation3 + $0x118] sm:$0xf0] }
 0xeec   :  { %8399 = vmatpush.bf16.msrb.mxu3 %v9764_v9  ;;  %v9828_v60 = vor.u32 %v10138_v14, %v9827_v49  ;;  %v9832_v4 = vor.u32 %v10136_v16, %v9829_v63 }
 0xeed   :  { %8425 = vmatpush.bf16.msrb.mxu1 %v9768_v34 }
 0xeee   :  { %8416 = vmatpush.bf16.msrb.mxu2 %v9828_v60  ;;  %8442 = vmatpush.bf16.msrb.mxu0 %v9832_v4 }
 0xef0   :  { %8400 = vmatpush.bf16.msrb.mxu3 %v9748_v47 }
 0xef1   :  { %8426 = vmatpush.bf16.msrb.mxu1 %v9752_v20  ;;  %9835 = vmatmul.msk.bf16.vlgmr.msrb.gmra.mxu2 %vm314_vm15, %v14667_v31 }
 0xef2   :  { %9836 = vmatmul.msk.bf16.vlgmr.msrb.gmra.mxu0 %vm314_vm15, %v14667_v31 }
 0xef4   :  { %8401 = vmatpush.bf16.msrb.mxu3 %v9732_v23 }
 0xef5   :  { %8427 = vmatpush.bf16.msrb.mxu1 %v9736_v54 }
 0xef8   :  { %8402 = vmatpush.bf16.msrb.mxu3 %v9716_v1 }
 0xef9   :  { %8428 = vmatpush.bf16.msrb.mxu1 %v9720_v35 }
 0xefc   :  { %8403 = vmatpush.bf16.msrb.mxu3 %v9700_v50 }
 0xefd   :  { %8429 = vmatpush.bf16.msrb.mxu1 %v9704_v21 }
 0xeff   :  { %8404 = vmatmul.bf16.vlgmr.msrb.gmra.mxu3 %v14665_v3 }
 0xf00   :  { %8430 = vmatmul.bf16.vlgmr.msrb.gmra.mxu1 %v14665_v3 }
 0xf2d   :  { %v8155_v8 = vpop.permute.xlu1 %8154 }
 0xf5b   :  { %v8379_v52 = vpop.f32.mrf.mxu0 }
 0xf5c   :  { %v8380_v0 = vadd.f32 %v8379_v52, %v8155_v8 }
 0xf5d   :  { %v8392_v57 = vpop.f32.mrf.mxu1 }
 0xf5e   :  { %v8393_v26 = vadd.f32 %v8392_v57, %v8380_v0 }
 0xf60   :  { %v9838_v18 = vmul.f32 -1.442695, %v8393_v26  ;;  %v8353_v19 = vpop.f32.mrf.mxu2 }
 0xf61   :  { %v8354_v45 = vadd.f32 %v8353_v19, %v8155_v8 }
 0xf62   :  { %10224 = vpow2.f32 %v9838_v18  ;;  %v8366_v31 = vpop.f32.mrf.mxu3 }
 0xf63   :  { %v8381_v62 = vpop.f32.mrf.mxu0  ;;  %v8367_v13 = vadd.f32 %v8366_v31, %v8354_v45 }
 0xf65   :  { %v8394_v12 = vpop.f32.mrf.mxu1  ;;  %v9837_v41 = vmul.f32 -1.442695, %v8367_v13 }
 0xf67   :  { %10226 = vpow2.f32 %v9837_v41 }
 0xf68   :  { %v10225_v25 = vpop.eup %10224  ;;  %v8355_v59 = vpop.f32.mrf.mxu2 }
 0xf69   :  { %v8461_v55 = vadd.f32 1.0, %v10225_v25 }
 0xf6a   :  { %v8368_v10 = vpop.f32.mrf.mxu3 }
 0xf6b   :  { %10228 = vrcp.f32 %v8461_v55  ;;  %v8490_v48 = vand.u32 2147483648, %v8461_v55  ;;  %vm8484_vm15 = vweird.f32 %v8461_v55  ;;  %v8488_v37 = vand.u32 2147483647, %v8461_v55 }
 0xf6d   :  { %v10227_v3 = vpop.eup %10226  ;;  %v8491_v61 = vor.u32 1.1754944e-38, %v8490_v48  ;;  %vm8489_vm11 = vcmp.eq.f32.partialorder %v8488_v37, 8.507059e+37 }
 0xf6e   :  { %v8460_v2 = vadd.f32 1.0, %v10227_v3 }
 0xf6f   :  { %v8444_v46 = vpop.f32.mrf.mxu0 }
 0xf70   :  { %10230 = vrcp.f32 %v8460_v2  ;;  %vm8469_vm13 = vweird.f32 %v8460_v2  ;;  %v8473_v9 = vand.u32 2147483647, %v8460_v2  ;;  %v8475_v34 = vand.u32 2147483648, %v8460_v2 }
 0xf71   :  { %v10229_v44 = vpop.eup %10228 }
 0xf72   :  { %v8480_v39 = vmul.f32 %v10229_v44, %v8461_v55  ;;  %vm8485_vm1 = vweird.f32 %v10229_v44  ;;  %v8476_v14 = vor.u32 1.1754944e-38, %v8475_v34  ;;  %vm8474_vm10 = vcmp.eq.f32.partialorder %v8473_v9, 8.507059e+37 }
 0xf73   :  { %vm8486_vm8 = vmor %vm8484_vm15, %vm8485_vm1 }
 0xf74   :  { %v8481_v11 = vsub.f32 1.0, %v8480_v39  ;;  %v8418_v7 = vpop.f32.mrf.mxu2 }
 0xf76   :  { %v8482_v51 = vmul.f32 %v10229_v44, %v8481_v11  ;;  %v10231_v15 = vpop.eup %10230 }
 0xf77   :  { %v8446_v17 = vpop.f32.mrf.mxu0  ;;  %v8465_v24 = vmul.f32 %v10231_v15, %v8460_v2  ;;  %vm8470_vm9 = vweird.f32 %v10231_v15 }
 0xf78   :  { %v8483_v6 = vadd.f32 %v10229_v44, %v8482_v51  ;;  %vm8471_vm2 = vmor %vm8469_vm13, %vm8470_vm9 }
 0xf79   :  { %v8466_v27 = vsub.f32 1.0, %v8465_v24 }
 0xf7a   :  { %v8487_v32 = vsel %vm8486_vm8, %v10229_v44, %v8483_v6 }
 0xf7b   :  { %v8492_v49 = vsel %vm8489_vm11, %v8491_v61, %v8487_v32  ;;  %v8467_v47 = vmul.f32 %v10231_v15, %v8466_v27 }
 0xf7c   :  { %v8420_v16 = vpop.f32.mrf.mxu2  ;;  %v8528_v63 = vrot.slane %v8492_v49, 4 }
 0xf7d   :  { %v8431_v58 = vpop.f32.mrf.mxu1  ;;  %v8468_v60 = vadd.f32 %v10231_v15, %v8467_v47 }
 0xf7e   :  { %v8432_v33 = vadd.f32 %v8431_v58, %v8155_v8 }
 0xf7f   :  { %v8472_v53 = vsel %vm8471_vm2, %v10231_v15, %v8468_v60 }
 0xf80   :  { %v8445_v20 = vadd.f32 %v8444_v46, %v8432_v33  ;;  %v8477_v38 = vsel %vm8474_vm10, %v8476_v14, %v8472_v53 }
 0xf81   :  { %v8531_v54 = vsel %vm218_vm3, %v8477_v38, %v8528_v63 }
 0xf82   :  { %v9840_v4 = vmul.f32 -1.442695, %v8445_v20  ;;  %v8405_v40 = vpop.f32.mrf.mxu3  ;;  %8535 = vst [vmem:[%s14717_s18] sm:$0x77] %v8531_v54 }
 0xf83   :  { %v8406_v43 = vadd.f32 %v8405_v40, %v8155_v8 }
 0xf84   :  { %10232 = vpow2.f32 %v9840_v4 }
 0xf85   :  { %v8433_v23 = vpop.f32.mrf.mxu1  ;;  %v8419_v29 = vadd.f32 %v8418_v7, %v8406_v43 }
 0xf87   :  { %v9839_v36 = vmul.f32 -1.442695, %v8419_v29 }
 0xf89   :  { %10234 = vpow2.f32 %v9839_v36 }
 0xf8a   :  { %v10233_v22 = vpop.eup %10232  ;;  %v8407_v1 = vpop.f32.mrf.mxu3 }
 0xf8b   :  { %v8463_v56 = vadd.f32 1.0, %v10233_v22 }
 0xf8d   :  { %10236 = vrcp.f32 %v8463_v56  ;;  %v8520_v8 = vand.u32 2147483648, %v8463_v56  ;;  %vm8514_vm7 = vweird.f32 %v8463_v56  ;;  %v8518_v0 = vand.u32 2147483647, %v8463_v56 }
 0xf8f   :  { %v10235_v35 = vpop.eup %10234  ;;  %v8521_v19 = vor.u32 1.1754944e-38, %v8520_v8  ;;  %vm8519_vm4 = vcmp.eq.f32.partialorder %v8518_v0, 8.507059e+37 }
 0xf90   :  { %v8462_v42 = vadd.f32 1.0, %v10235_v35 }
 0xf92   :  { %10238 = vrcp.f32 %v8462_v42  ;;  %v8505_v45 = vand.u32 2147483648, %v8462_v42  ;;  %v8503_v62 = vand.u32 2147483647, %v8462_v42  ;;  %vm8499_vm14 = vweird.f32 %v8462_v42 }
 0xf93   :  { %v10237_v28 = vpop.eup %10236 }
 0xf94   :  { %v8510_v30 = vmul.f32 %v10237_v28, %v8463_v56  ;;  %vm8515_vm6 = vweird.f32 %v10237_v28  ;;  %v8506_v41 = vor.u32 1.1754944e-38, %v8505_v45  ;;  %vm8504_vm15 = vcmp.eq.f32.partialorder %v8503_v62, 8.507059e+37 }
 0xf95   :  { %vm8516_vm12 = vmor %vm8514_vm7, %vm8515_vm6 }
 0xf96   :  { %v8511_v5 = vsub.f32 1.0, %v8510_v30 }
 0xf98   :  { %v8512_v50 = vmul.f32 %v10237_v28, %v8511_v5  ;;  %v10239_v21 = vpop.eup %10238 }
 0xf99   :  { %v8495_v57 = vmul.f32 %v10239_v21, %v8462_v42  ;;  %vm8500_vm5 = vweird.f32 %v10239_v21 }
 0xf9a   :  { %v8513_v52 = vadd.f32 %v10237_v28, %v8512_v50  ;;  %vm8501_vm0 = vmor %vm8499_vm14, %vm8500_vm5 }
 0xf9b   :  { %v8496_v18 = vsub.f32 1.0, %v8495_v57 }
 0xf9c   :  { %v8517_v26 = vsel %vm8516_vm12, %v10237_v28, %v8513_v52 }
 0xf9d   :  { %v8497_v31 = vmul.f32 %v10239_v21, %v8496_v18  ;;  %v8522_v13 = vsel %vm8519_vm4, %v8521_v19, %v8517_v26 }
 0xf9e   :  { %v8529_v25 = vrot.slane %v8522_v13, 4 }
 0xf9f   :  { %v8498_v12 = vadd.f32 %v10239_v21, %v8497_v31 }
 0xfa1   :  { %v8502_v55 = vsel %vm8501_vm0, %v10239_v21, %v8498_v12 }
 0xfa2   :  { %v8507_v59 = vsel %vm8504_vm15, %v8506_v41, %v8502_v55 }
 0xfa3   :  { %v8532_v10 = vsel %vm218_vm3, %v8507_v59, %v8529_v25 }
 0xfa4   :  { %8536 = vst [vmem:[%s14717_s18 + $0x8] sm:$0x77] %v8532_v10 }

</bundles_post_ra>
